<compile_context>
chip_gen: v5e
topology: v5e:2x2
jax: 0.10.0
libtpu: 0.0.40
codegen_flags: <defaults>
</compile_context>

<pallas_src>
import functools

import jax
import jax.numpy as jnp
from jax import lax
from jax.experimental import pallas as pl
from jax.experimental.pallas import tpu as pltpu

EPS = 1e-5
LANE = 128   # real C <= 32 here; use 256-wide output tiles on v6e/v7x at scale


def _round_up(x, m):
    return (x + m - 1) // m * m


# ----------------------------- Pallas kernel --------------------------------
def _stage_kernel(mode, ngroups, nchunks, chunk,
                  p_ref, w_ref, ab_ref, o_ref, *scratch):
    """One fused conv stage: chunked matmul + BN(batch stats)/bias/tanh epilogue.

    p_ref : (M, Kp)     bf16 im2col patches (Kp padded to a lane multiple)
    w_ref : (Kp, G*Cp)  bf16 weights; G lane groups of Cp output channels
                        (G=1 plain conv, G=4 sub-pixel phases of a stride-2
                        transposed conv, lanes ordered (rh, rw, c))
    ab_ref: (2, Cp)     f32  row0 = BN gamma (unused otherwise),
                             row1 = BN beta or conv bias
    o_ref : (M, G*Cp)   bf16 (intermediate stages) / f32 (final tanh stage)
    scratch (bn_relu only): (M, G*Cp) f32 VMEM stash of the raw matmul result.
    """
    cp = ab_ref.shape[-1]

    if mode == "bn_relu":
        y_scr, = scratch
        # Pass 1: chunked matmul, stash raw f32 result, one-pass sum / sum-sq.
        s1 = jnp.zeros((1, ngroups * cp), jnp.float32)
        s2 = jnp.zeros((1, ngroups * cp), jnp.float32)
        for t in range(nchunks):
            r = t * chunk
            y = jnp.dot(p_ref[r:r + chunk, :], w_ref[...],
                        preferred_element_type=jnp.float32)
            y_scr[r:r + chunk, :] = y
            s1 = s1 + jnp.sum(y, axis=0, keepdims=True)
            s2 = s2 + jnp.sum(y * y, axis=0, keepdims=True)

        # Fold sub-pixel phase groups into per-channel statistics.
        if ngroups > 1:
            s1 = sum(s1[:, g * cp:(g + 1) * cp] for g in range(ngroups))
            s2 = sum(s2[:, g * cp:(g + 1) * cp] for g in range(ngroups))

        inv_cnt = 1.0 / float(nchunks * chunk * ngroups)
        mean = s1 * inv_cnt
        var = jnp.maximum(s2 * inv_cnt - mean * mean, 0.0)   # clamp >= 0
        a = lax.rsqrt(var + EPS) * ab_ref[0:1, :]            # gamma
        b = ab_ref[1:2, :] - mean * a                        # beta - mean*a
        if ngroups > 1:
            a = jnp.concatenate([a] * ngroups, axis=-1)
            b = jnp.concatenate([b] * ngroups, axis=-1)
        # Note: padded lanes keep gamma = beta = 0 => a = b = 0 => output 0.

        # Pass 2: folded normalize y*a + b, ReLU, store (bf16 lane-dense).
        for t in range(nchunks):
            r = t * chunk
            o_ref[r:r + chunk, :] = jnp.maximum(
                y_scr[r:r + chunk, :] * a + b, 0.0).astype(o_ref.dtype)
    else:
        bias = ab_ref[1:2, :]
        for t in range(nchunks):
            r = t * chunk
            y = jnp.dot(p_ref[r:r + chunk, :], w_ref[...],
                        preferred_element_type=jnp.float32) + bias
            if mode == "bias_tanh":
                y = jnp.tanh(y)
            o_ref[r:r + chunk, :] = y.astype(o_ref.dtype)


def fused_stage(patches, w_mat, scale, shift, mode):
    """patches (M, K), w_mat (K, G, C), scale/shift (C,) -> (M, G*Cp)."""
    M, K = patches.shape
    _, G, C = w_mat.shape
    Cp = _round_up(C, LANE)
    Kp = _round_up(K, LANE)
    GCp = G * Cp

    # bf16 operands, zero padded: K -> Kp (lane-dense LHS loads, 16-sublane
    # aligned bf16 RHS), C -> Cp per lane group (lane-dense unmasked stores).
    w = jnp.pad(w_mat.astype(jnp.bfloat16),
                ((0, Kp - K), (0, 0), (0, Cp - C))).reshape(Kp, GCp)
    p = jnp.pad(patches.astype(jnp.bfloat16), ((0, 0), (0, Kp - K)))
    ab = jnp.stack([jnp.pad(scale.astype(jnp.float32), (0, Cp - C)),
                    jnp.pad(shift.astype(jnp.float32), (0, Cp - C))])

    out_dtype = jnp.float32 if mode == "bias_tanh" else jnp.bfloat16

    # Row chunking bounds the f32 live set to ~16 vregs per chunk.
    chunk = min(M, max(8, (64 * 1024) // (4 * GCp)))
    if M % chunk:
        chunk = M
    nchunks = M // chunk

    kernel = functools.partial(_stage_kernel, mode, G, nchunks, chunk)
    scratch = [pltpu.VMEM((M, GCp), jnp.float32)] if mode == "bn_relu" else []

    out_bytes = M * GCp * (4 if out_dtype == jnp.float32 else 2)
    cost = pl.CostEstimate(
        flops=2 * M * Kp * GCp,
        transcendentals=(M * GCp if mode == "bias_tanh" else Cp),
        bytes_accessed=2 * p.size + 2 * w.size + 4 * ab.size + out_bytes)

    return pl.pallas_call(
        kernel,
        out_shape=jax.ShapeDtypeStruct((M, GCp), out_dtype),
        grid=(1,),
        in_specs=[
            pl.BlockSpec((M, Kp), lambda i: (0, 0)),
            pl.BlockSpec((Kp, GCp), lambda i: (0, 0)),
            pl.BlockSpec((2, Cp), lambda i: (0, 0)),
        ],
        out_specs=pl.BlockSpec((M, GCp), lambda i: (0, 0)),
        scratch_shapes=scratch,
        compiler_params=pltpu.CompilerParams(
            dimension_semantics=("arbitrary",)),
        cost_estimate=cost,
    )(p, w, ab)


# ------------------------------ JAX glue (NHWC) -------------------------------
def im2col_nhwc(x, kh, kw, stride, pad):
    """x: (N,H,W,C) -> patches (N*Ho*Wo, kh*kw*C), column order (i, j, c)."""
    N, H, W, C = x.shape
    Ho = (H + 2 * pad - kh) // stride + 1
    Wo = (W + 2 * pad - kw) // stride + 1
    xp = jnp.pad(x, ((0, 0), (pad, pad), (pad, pad), (0, 0)))
    cols = []
    for i in range(kh):
        for j in range(kw):
            cols.append(xp[:, i:i + stride * Ho:stride,
                           j:j + stride * Wo:stride, :])
    patches = jnp.concatenate(cols, axis=-1)          # (N, Ho, Wo, kh*kw*C)
    return patches.reshape(N * Ho * Wo, kh * kw * C), Ho, Wo


def conv_w_to_mat(w):
    """Conv2d weight (Co, Ci, kh, kw) -> (kh*kw*Ci, 1, Co), rows (i, j, ci)."""
    co = w.shape[0]
    return jnp.transpose(w, (2, 3, 1, 0)).reshape(-1, 1, co)


def convt_s1_w_to_mat(w):
    """ConvTranspose2d weight (Ci, Co, kh, kw), stride 1 -> equivalent-conv
    matrix (kh*kw*Ci, 1, Co): flip spatially, swap in/out channels."""
    co = w.shape[1]
    wf = w[:, :, ::-1, ::-1]
    return jnp.transpose(wf, (2, 3, 0, 1)).reshape(-1, 1, co)


def tconv_s2_w_to_mat(w):
    """ConvTranspose2d weight (Ci, Co, 4, 4), stride 2, pad 1 -> (9*Ci, 4, Co).

    The transposed conv is lowered to ONE stride-1 3x3 conv over the 1-padded
    input producing 4 sub-pixel output phases g = rh*2 + rw (pixel shuffle
    afterwards).  Phase (rh, rw) only touches taps (i, j) with i in {rh,rh+1},
    j in {rw,rw+1}; the remaining taps are zero (negligible extra MXU work at
    these sizes, bought: one patch matrix + one lane-dense 4*Cp-wide matmul).
    """
    Ci, Co = w.shape[0], w.shape[1]
    mat = jnp.zeros((3, 3, Ci, 4, Co), w.dtype)
    for rh in range(2):
        for rw in range(2):
            g = rh * 2 + rw
            for dh in range(2):
                for dw in range(2):
                    mat = mat.at[rh + dh, rw + dw, :, g, :].set(
                        w[:, :, 3 - rh - 2 * dh, 3 - rw - 2 * dw])
    return mat.reshape(9 * Ci, 4, Co)


# ------------------------------ stage wrappers --------------------------------
def conv_stage(x, w_mat, scale, shift, k, stride, pad, mode):
    N = x.shape[0]
    C = w_mat.shape[-1]
    patches, Ho, Wo = im2col_nhwc(x, k, k, stride, pad)
    if scale is None:                       # non-BN stage: no scale multiply
        scale = jnp.zeros((C,), jnp.float32)
    y = fused_stage(patches, w_mat, scale, shift, mode)      # (M, Cp)
    Cp = y.shape[-1]
    return y.reshape(N, Ho, Wo, Cp)[..., :C]


def tconv_s2_stage(x, w, gamma, beta):
    """ConvTranspose2d(k=4, s=2, p=1) + BN + ReLU via sub-pixel phases."""
    N, H, W, _ = x.shape
    Co = w.shape[1]
    patches, _, _ = im2col_nhwc(x, 3, 3, 1, 1)               # (N*H*W, 9*Ci)
    y = fused_stage(patches, tconv_s2_w_to_mat(w), gamma, beta, "bn_relu")
    Cp = y.shape[-1] // 4
    # Pixel shuffle: output lanes are (rh, rw, c); the rw interleave is already
    # folded into the kernel's lane layout, only rh needs interleaving here.
    # TODO(synk): folding the rh interleave too needs an in-kernel
    #   (M, 2*Cp) -> (N*H, W, 2*Cp) reshape whose lowering is shape-dependent;
    #   kept as one tiny XLA transpose for robustness.
    y = y.reshape(N, H, W, 2, 2, Cp)
    y = jnp.transpose(y, (0, 1, 3, 2, 4, 5))                 # (N, H, rh, W, rw, Cp)
    return y[..., :Co].reshape(N, 2 * H, 2 * W, Co)


# ------------------------------ forward pass ---------------------------------
def generator_block_forward(z, params, injection=None):
    if injection is None:
        injection = 0.0
    x = jnp.transpose(z + injection, (0, 2, 3, 1))           # NCHW -> NHWC once

    # Conv bias under BN is exactly cancelled by the batch-mean subtraction.
    x = conv_stage(x, conv_w_to_mat(params["conv1_w"]),
                   params["bn1_g"], params["bn1_b"], 4, 2, 1, "bn_relu")
    x = conv_stage(x, conv_w_to_mat(params["conv2_w"]),
                   params["bn2_g"], params["bn2_b"], 4, 2, 1, "bn_relu")
    x = conv_stage(x, conv_w_to_mat(params["conv3_w"]),
                   None, params["conv3_b"], 3, 1, 1, "bias")
    x = tconv_s2_stage(x, params["t1_w"], params["bn3_g"], params["bn3_b"])
    x = tconv_s2_stage(x, params["t2_w"], params["bn4_g"], params["bn4_b"])
    x = conv_stage(x, convt_s1_w_to_mat(params["t3_w"]),
                   None, params["t3_b"], 3, 1, 1, "bias_tanh")
    return jnp.transpose(x, (0, 3, 1, 2))                    # NHWC -> NCHW


# -------------------------- parameter construction ---------------------------
def init_params(key, z_dim, channels_img, features_g):
    ks = jax.random.split(key, 20)
    w = lambda k, s: 0.1 * jax.random.normal(k, s, dtype=jnp.float32)
    fg4, fg2 = 4 * features_g, 2 * features_g
    p = {}
    p["conv1_w"] = w(ks[0], (fg4, z_dim, 4, 4));        p["conv1_b"] = w(ks[1], (fg4,))
    p["bn1_g"] = 1.0 + w(ks[2], (fg4,));                p["bn1_b"] = w(ks[3], (fg4,))
    p["conv2_w"] = w(ks[4], (fg2, fg4, 4, 4));          p["conv2_b"] = w(ks[5], (fg2,))
    p["bn2_g"] = 1.0 + w(ks[6], (fg2,));                p["bn2_b"] = w(ks[7], (fg2,))
    p["conv3_w"] = w(ks[8], (channels_img, fg2, 3, 3)); p["conv3_b"] = w(ks[9], (channels_img,))
    p["t1_w"] = w(ks[10], (channels_img, fg2, 4, 4));   p["t1_b"] = w(ks[11], (fg2,))
    p["bn3_g"] = 1.0 + w(ks[12], (fg2,));               p["bn3_b"] = w(ks[13], (fg2,))
    p["t2_w"] = w(ks[14], (fg2, fg4, 4, 4));            p["t2_b"] = w(ks[15], (fg4,))
    p["bn4_g"] = 1.0 + w(ks[16], (fg4,));               p["bn4_b"] = w(ks[17], (fg4,))
    p["t3_w"] = w(ks[18], (fg4, z_dim, 3, 3));          p["t3_b"] = w(ks[19], (z_dim,))
    return p


# --------------------------- pure-JAX reference -------------------------------
def _r(x):
    # mirror the kernel's bf16 operands / bf16 intermediate activations
    return x.astype(jnp.bfloat16).astype(jnp.float32)


def ref_forward(z, params, injection=None):
    if injection is None:
        injection = 0.0
    x = z + injection
    dn = ("NCHW", "OIHW", "NCHW")

    def conv(x, w, b, s, p):
        y = lax.conv_general_dilated(_r(x), _r(w), (s, s), ((p, p), (p, p)),
                                     dimension_numbers=dn)
        return y + b[None, :, None, None]

    def convt(x, w, b, s, p):
        k = w.shape[2]
        w_eq = jnp.transpose(w[:, :, ::-1, ::-1], (1, 0, 2, 3))
        pp = k - 1 - p
        y = lax.conv_general_dilated(_r(x), _r(w_eq), (1, 1),
                                     ((pp, pp), (pp, pp)), lhs_dilation=(s, s),
                                     dimension_numbers=dn)
        return y + b[None, :, None, None]

    def bn_relu(x, g, bt):
        m = jnp.mean(x, axis=(0, 2, 3), keepdims=True)
        v = jnp.mean((x - m) ** 2, axis=(0, 2, 3), keepdims=True)
        y = (x - m) * lax.rsqrt(v + EPS) * g[None, :, None, None] + bt[None, :, None, None]
        return jnp.maximum(y, 0.0)

    x = _r(bn_relu(conv(x, params["conv1_w"], params["conv1_b"], 2, 1),
                   params["bn1_g"], params["bn1_b"]))
    x = _r(bn_relu(conv(x, params["conv2_w"], params["conv2_b"], 2, 1),
                   params["bn2_g"], params["bn2_b"]))
    x = _r(conv(x, params["conv3_w"], params["conv3_b"], 1, 1))
    x = _r(bn_relu(convt(x, params["t1_w"], params["t1_b"], 2, 1),
                   params["bn3_g"], params["bn3_b"]))
    x = _r(bn_relu(convt(x, params["t2_w"], params["t2_b"], 2, 1),
                   params["bn4_g"], params["bn4_b"]))
    x = jnp.tanh(convt(x, params["t3_w"], params["t3_b"], 1, 1))
    return x


if __name__ == "__main__":
    z_dim, channels_img, features_g = 4, 3, 8
    N, H, W = 2, 16, 16

    key = jax.random.PRNGKey(0)
    kz, kp = jax.random.split(key)
    z = jax.random.normal(kz, (N, z_dim, H, W), dtype=jnp.float32)
    params = init_params(kp, z_dim, channels_img, features_g)

    out = jax.jit(lambda zz: generator_block_forward(zz, params))(z)
    out = jax.block_until_ready(out)

    ref = ref_forward(z, params)
    assert out.shape == (N, z_dim, H, W), out.shape
    err = float(jnp.max(jnp.abs(out - ref)))
    assert err < 1e-2, err

    print("KERNEL_OK")
</pallas_src>

<mosaic_0001>
module attributes {stable_mosaic.version = 11 : i64} {
  func.func @_stage_kernel(%arg0: i32, %arg1: memref<128x128xbf16, #tpu.memory_space<vmem>>, %arg2: memref<128x128xbf16, #tpu.memory_space<vmem>>, %arg3: memref<2x128xf32, #tpu.memory_space<vmem>>, %arg4: memref<128x128xbf16, #tpu.memory_space<vmem>>, %arg5: memref<128x128xf32, #tpu.memory_space<vmem>>) attributes {dimension_semantics = [#tpu.dimension_semantics<arbitrary>], iteration_bounds = array<i64: 1>, scalar_prefetch = 0 : i64, scratch_operands = 1 : i64, tpu.core_type = #tpu.core_type<tc>, window_params = [{pipeline_mode = #tpu.pipeline_mode<synchronous>, transform_indices = @transform_0, window_bounds = array<i64: 128, 128>}, {pipeline_mode = #tpu.pipeline_mode<synchronous>, transform_indices = @transform_1, window_bounds = array<i64: 128, 128>}, {pipeline_mode = #tpu.pipeline_mode<synchronous>, transform_indices = @transform_2, window_bounds = array<i64: 2, 128>}, {pipeline_mode = #tpu.pipeline_mode<synchronous>, transform_indices = @transform_3, window_bounds = array<i64: 128, 128>}]} {
    %cst = arith.constant 0.000000e+00 : f32
    %0 = vector.broadcast %cst : f32 to vector<1x128xf32>
    %cst_0 = arith.constant 0.000000e+00 : f32
    %1 = vector.broadcast %cst_0 : f32 to vector<1x128xf32>
    %c0 = arith.constant 0 : index
    %c0_1 = arith.constant 0 : index
    %2 = vector.load %arg1[%c0, %c0_1] : memref<128x128xbf16, #tpu.memory_space<vmem>>, vector<128x128xbf16>
    %c0_2 = arith.constant 0 : index
    %c0_3 = arith.constant 0 : index
    %3 = vector.load %arg2[%c0_2, %c0_3] : memref<128x128xbf16, #tpu.memory_space<vmem>>, vector<128x128xbf16>
    %cst_4 = arith.constant dense<0.000000e+00> : vector<128x128xf32>
    %4 = tpu.matmul %2, %3, %cst_4 {dimension_numbers = #tpu.dot_dimension_numbers<[1], [0], [0], [1], [0, 0, 1, 1], [], []>} : vector<128x128xbf16>, vector<128x128xbf16>, vector<128x128xf32> -> vector<128x128xf32>
    %c0_5 = arith.constant 0 : index
    %c0_6 = arith.constant 0 : index
    %5 = vector.load %arg5[%c0_5, %c0_6] : memref<128x128xf32, #tpu.memory_space<vmem>>, vector<128x128xf32>
    tpu.vector_store %arg5[%c0_5, %c0_6], %4 {strides = array<i32>} : memref<128x128xf32, #tpu.memory_space<vmem>>, vector<128x128xf32>,
    %cst_7 = arith.constant dense<0.000000e+00> : vector<128xf32>
    %6 = vector.multi_reduction <add>, %4, %cst_7 [0] : vector<128x128xf32> to vector<128xf32>
    %7 = vector.shape_cast %6 : vector<128xf32> to vector<1x128xf32>
    %8 = arith.addf %0, %7 : vector<1x128xf32>
    %9 = arith.mulf %4, %4 : vector<128x128xf32>
    %cst_8 = arith.constant dense<0.000000e+00> : vector<128xf32>
    %10 = vector.multi_reduction <add>, %9, %cst_8 [0] : vector<128x128xf32> to vector<128xf32>
    %11 = vector.shape_cast %10 : vector<128xf32> to vector<1x128xf32>
    %12 = arith.addf %1, %11 : vector<1x128xf32>
    %cst_9 = arith.constant 7.812500e-03 : f32
    %13 = vector.broadcast %cst_9 : f32 to vector<1x128xf32>
    %14 = arith.mulf %8, %13 : vector<1x128xf32>
    %cst_10 = arith.constant 7.812500e-03 : f32
    %15 = vector.broadcast %cst_10 : f32 to vector<1x128xf32>
    %16 = arith.mulf %12, %15 : vector<1x128xf32>
    %17 = arith.mulf %14, %14 : vector<1x128xf32>
    %18 = arith.subf %16, %17 : vector<1x128xf32>
    %cst_11 = arith.constant 0.000000e+00 : f32
    %19 = vector.broadcast %cst_11 : f32 to vector<1x128xf32>
    %20 = arith.maximumf %18, %19 : vector<1x128xf32>
    %cst_12 = arith.constant 9.99999974E-6 : f32
    %21 = vector.broadcast %cst_12 : f32 to vector<1x128xf32>
    %22 = arith.addf %20, %21 : vector<1x128xf32>
    %23 = math.rsqrt %22 : vector<1x128xf32>
    %c0_13 = arith.constant 0 : index
    %c0_14 = arith.constant 0 : index
    %24 = vector.load %arg3[%c0_13, %c0_14] : memref<2x128xf32, #tpu.memory_space<vmem>>, vector<1x128xf32>
    %25 = arith.mulf %23, %24 : vector<1x128xf32>
    %c1 = arith.constant 1 : index
    %c0_15 = arith.constant 0 : index
    %26 = vector.load %arg3[%c1, %c0_15] : memref<2x128xf32, #tpu.memory_space<vmem>>, vector<1x128xf32>
    %27 = arith.mulf %14, %25 : vector<1x128xf32>
    %28 = arith.subf %26, %27 : vector<1x128xf32>
    %c0_16 = arith.constant 0 : index
    %c0_17 = arith.constant 0 : index
    %29 = vector.load %arg5[%c0_16, %c0_17] : memref<128x128xf32, #tpu.memory_space<vmem>>, vector<128x128xf32>
    %30 = vector.broadcast %25 : vector<1x128xf32> to vector<128x128xf32>
    %31 = arith.mulf %29, %30 : vector<128x128xf32>
    %32 = vector.broadcast %28 : vector<1x128xf32> to vector<128x128xf32>
    %33 = arith.addf %31, %32 : vector<128x128xf32>
    %cst_18 = arith.constant 0.000000e+00 : f32
    %34 = vector.broadcast %cst_18 : f32 to vector<128x128xf32>
    %35 = arith.maximumf %33, %34 : vector<128x128xf32>
    %36 = arith.truncf %35 : vector<128x128xf32> to vector<128x128xbf16>
    %c0_19 = arith.constant 0 : index
    %c0_20 = arith.constant 0 : index
    %37 = vector.load %arg4[%c0_19, %c0_20] : memref<128x128xbf16, #tpu.memory_space<vmem>>, vector<128x128xbf16>
    tpu.vector_store %arg4[%c0_19, %c0_20], %36 {strides = array<i32>} : memref<128x128xbf16, #tpu.memory_space<vmem>>, vector<128x128xbf16>,
    return
  }
  func.func @transform_0(%arg0: i32) -> (i32, i32) {
    %c0_i32 = arith.constant 0 : i32
    %c0_i32_0 = arith.constant 0 : i32
    %c0_i32_1 = arith.constant 0 : i32
    return %c0_i32, %c0_i32_0 : i32, i32
  }
  func.func @transform_1(%arg0: i32) -> (i32, i32) {
    %c0_i32 = arith.constant 0 : i32
    %c0_i32_0 = arith.constant 0 : i32
    %c0_i32_1 = arith.constant 0 : i32
    return %c0_i32, %c0_i32_0 : i32, i32
  }
  func.func @transform_2(%arg0: i32) -> (i32, i32) {
    %c0_i32 = arith.constant 0 : i32
    %c0_i32_0 = arith.constant 0 : i32
    %c0_i32_1 = arith.constant 0 : i32
    return %c0_i32, %c0_i32_0 : i32, i32
  }
  func.func @transform_3(%arg0: i32) -> (i32, i32) {
    %c0_i32 = arith.constant 0 : i32
    %c0_i32_0 = arith.constant 0 : i32
    %c0_i32_1 = arith.constant 0 : i32
    return %c0_i32, %c0_i32_0 : i32, i32
  }
}

module attributes {stable_mosaic.version = 11 : i64} {
  func.func @_stage_kernel(%arg0: i32, %arg1: memref<32x512xbf16, #tpu.memory_space<vmem>>, %arg2: memref<512x128xbf16, #tpu.memory_space<vmem>>, %arg3: memref<2x128xf32, #tpu.memory_space<vmem>>, %arg4: memref<32x128xbf16, #tpu.memory_space<vmem>>, %arg5: memref<32x128xf32, #tpu.memory_space<vmem>>) attributes {dimension_semantics = [#tpu.dimension_semantics<arbitrary>], iteration_bounds = array<i64: 1>, scalar_prefetch = 0 : i64, scratch_operands = 1 : i64, tpu.core_type = #tpu.core_type<tc>, window_params = [{pipeline_mode = #tpu.pipeline_mode<synchronous>, transform_indices = @transform_0, window_bounds = array<i64: 32, 512>}, {pipeline_mode = #tpu.pipeline_mode<synchronous>, transform_indices = @transform_1, window_bounds = array<i64: 512, 128>}, {pipeline_mode = #tpu.pipeline_mode<synchronous>, transform_indices = @transform_2, window_bounds = array<i64: 2, 128>}, {pipeline_mode = #tpu.pipeline_mode<synchronous>, transform_indices = @transform_3, window_bounds = array<i64: 32, 128>}]} {
    %cst = arith.constant 0.000000e+00 : f32
    %0 = vector.broadcast %cst : f32 to vector<1x128xf32>
    %cst_0 = arith.constant 0.000000e+00 : f32
    %1 = vector.broadcast %cst_0 : f32 to vector<1x128xf32>
    %c0 = arith.constant 0 : index
    %c0_1 = arith.constant 0 : index
    %2 = vector.load %arg1[%c0, %c0_1] : memref<32x512xbf16, #tpu.memory_space<vmem>>, vector<32x512xbf16>
    %c0_2 = arith.constant 0 : index
    %c0_3 = arith.constant 0 : index
    %3 = vector.load %arg2[%c0_2, %c0_3] : memref<512x128xbf16, #tpu.memory_space<vmem>>, vector<512x128xbf16>
    %cst_4 = arith.constant dense<0.000000e+00> : vector<32x128xf32>
    %4 = tpu.matmul %2, %3, %cst_4 {dimension_numbers = #tpu.dot_dimension_numbers<[1], [0], [0], [1], [0, 0, 1, 1], [], []>} : vector<32x512xbf16>, vector<512x128xbf16>, vector<32x128xf32> -> vector<32x128xf32>
    %c0_5 = arith.constant 0 : index
    %c0_6 = arith.constant 0 : index
    %5 = vector.load %arg5[%c0_5, %c0_6] : memref<32x128xf32, #tpu.memory_space<vmem>>, vector<32x128xf32>
    tpu.vector_store %arg5[%c0_5, %c0_6], %4 {strides = array<i32>} : memref<32x128xf32, #tpu.memory_space<vmem>>, vector<32x128xf32>,
    %cst_7 = arith.constant dense<0.000000e+00> : vector<128xf32>
    %6 = vector.multi_reduction <add>, %4, %cst_7 [0] : vector<32x128xf32> to vector<128xf32>
    %7 = vector.shape_cast %6 : vector<128xf32> to vector<1x128xf32>
    %8 = arith.addf %0, %7 : vector<1x128xf32>
    %9 = arith.mulf %4, %4 : vector<32x128xf32>
    %cst_8 = arith.constant dense<0.000000e+00> : vector<128xf32>
    %10 = vector.multi_reduction <add>, %9, %cst_8 [0] : vector<32x128xf32> to vector<128xf32>
    %11 = vector.shape_cast %10 : vector<128xf32> to vector<1x128xf32>
    %12 = arith.addf %1, %11 : vector<1x128xf32>
    %cst_9 = arith.constant 3.125000e-02 : f32
    %13 = vector.broadcast %cst_9 : f32 to vector<1x128xf32>
    %14 = arith.mulf %8, %13 : vector<1x128xf32>
    %cst_10 = arith.constant 3.125000e-02 : f32
    %15 = vector.broadcast %cst_10 : f32 to vector<1x128xf32>
    %16 = arith.mulf %12, %15 : vector<1x128xf32>
    %17 = arith.mulf %14, %14 : vector<1x128xf32>
    %18 = arith.subf %16, %17 : vector<1x128xf32>
    %cst_11 = arith.constant 0.000000e+00 : f32
    %19 = vector.broadcast %cst_11 : f32 to vector<1x128xf32>
    %20 = arith.maximumf %18, %19 : vector<1x128xf32>
    %cst_12 = arith.constant 9.99999974E-6 : f32
    %21 = vector.broadcast %cst_12 : f32 to vector<1x128xf32>
    %22 = arith.addf %20, %21 : vector<1x128xf32>
    %23 = math.rsqrt %22 : vector<1x128xf32>
    %c0_13 = arith.constant 0 : index
    %c0_14 = arith.constant 0 : index
    %24 = vector.load %arg3[%c0_13, %c0_14] : memref<2x128xf32, #tpu.memory_space<vmem>>, vector<1x128xf32>
    %25 = arith.mulf %23, %24 : vector<1x128xf32>
    %c1 = arith.constant 1 : index
    %c0_15 = arith.constant 0 : index
    %26 = vector.load %arg3[%c1, %c0_15] : memref<2x128xf32, #tpu.memory_space<vmem>>, vector<1x128xf32>
    %27 = arith.mulf %14, %25 : vector<1x128xf32>
    %28 = arith.subf %26, %27 : vector<1x128xf32>
    %c0_16 = arith.constant 0 : index
    %c0_17 = arith.constant 0 : index
    %29 = vector.load %arg5[%c0_16, %c0_17] : memref<32x128xf32, #tpu.memory_space<vmem>>, vector<32x128xf32>
    %30 = vector.broadcast %25 : vector<1x128xf32> to vector<32x128xf32>
    %31 = arith.mulf %29, %30 : vector<32x128xf32>
    %32 = vector.broadcast %28 : vector<1x128xf32> to vector<32x128xf32>
    %33 = arith.addf %31, %32 : vector<32x128xf32>
    %cst_18 = arith.constant 0.000000e+00 : f32
    %34 = vector.broadcast %cst_18 : f32 to vector<32x128xf32>
    %35 = arith.maximumf %33, %34 : vector<32x128xf32>
    %36 = arith.truncf %35 : vector<32x128xf32> to vector<32x128xbf16>
    %c0_19 = arith.constant 0 : index
    %c0_20 = arith.constant 0 : index
    %37 = vector.load %arg4[%c0_19, %c0_20] : memref<32x128xbf16, #tpu.memory_space<vmem>>, vector<32x128xbf16>
    tpu.vector_store %arg4[%c0_19, %c0_20], %36 {strides = array<i32>} : memref<32x128xbf16, #tpu.memory_space<vmem>>, vector<32x128xbf16>,
    return
  }
  func.func @transform_0(%arg0: i32) -> (i32, i32) {
    %c0_i32 = arith.constant 0 : i32
    %c0_i32_0 = arith.constant 0 : i32
    %c0_i32_1 = arith.constant 0 : i32
    return %c0_i32, %c0_i32_0 : i32, i32
  }
  func.func @transform_1(%arg0: i32) -> (i32, i32) {
    %c0_i32 = arith.constant 0 : i32
    %c0_i32_0 = arith.constant 0 : i32
    %c0_i32_1 = arith.constant 0 : i32
    return %c0_i32, %c0_i32_0 : i32, i32
  }
  func.func @transform_2(%arg0: i32) -> (i32, i32) {
    %c0_i32 = arith.constant 0 : i32
    %c0_i32_0 = arith.constant 0 : i32
    %c0_i32_1 = arith.constant 0 : i32
    return %c0_i32, %c0_i32_0 : i32, i32
  }
  func.func @transform_3(%arg0: i32) -> (i32, i32) {
    %c0_i32 = arith.constant 0 : i32
    %c0_i32_0 = arith.constant 0 : i32
    %c0_i32_1 = arith.constant 0 : i32
    return %c0_i32, %c0_i32_0 : i32, i32
  }
}

module attributes {stable_mosaic.version = 11 : i64} {
  func.func @_stage_kernel(%arg0: i32, %arg1: memref<32x256xbf16, #tpu.memory_space<vmem>>, %arg2: memref<256x128xbf16, #tpu.memory_space<vmem>>, %arg3: memref<2x128xf32, #tpu.memory_space<vmem>>, %arg4: memref<32x128xbf16, #tpu.memory_space<vmem>>) attributes {dimension_semantics = [#tpu.dimension_semantics<arbitrary>], iteration_bounds = array<i64: 1>, scalar_prefetch = 0 : i64, scratch_operands = 0 : i64, tpu.core_type = #tpu.core_type<tc>, window_params = [{pipeline_mode = #tpu.pipeline_mode<synchronous>, transform_indices = @transform_0, window_bounds = array<i64: 32, 256>}, {pipeline_mode = #tpu.pipeline_mode<synchronous>, transform_indices = @transform_1, window_bounds = array<i64: 256, 128>}, {pipeline_mode = #tpu.pipeline_mode<synchronous>, transform_indices = @transform_2, window_bounds = array<i64: 2, 128>}, {pipeline_mode = #tpu.pipeline_mode<synchronous>, transform_indices = @transform_3, window_bounds = array<i64: 32, 128>}]} {
    %c1 = arith.constant 1 : index
    %c0 = arith.constant 0 : index
    %0 = vector.load %arg3[%c1, %c0] : memref<2x128xf32, #tpu.memory_space<vmem>>, vector<1x128xf32>
    %c0_0 = arith.constant 0 : index
    %c0_1 = arith.constant 0 : index
    %1 = vector.load %arg1[%c0_0, %c0_1] : memref<32x256xbf16, #tpu.memory_space<vmem>>, vector<32x256xbf16>
    %c0_2 = arith.constant 0 : index
    %c0_3 = arith.constant 0 : index
    %2 = vector.load %arg2[%c0_2, %c0_3] : memref<256x128xbf16, #tpu.memory_space<vmem>>, vector<256x128xbf16>
    %cst = arith.constant dense<0.000000e+00> : vector<32x128xf32>
    %3 = tpu.matmul %1, %2, %cst {dimension_numbers = #tpu.dot_dimension_numbers<[1], [0], [0], [1], [0, 0, 1, 1], [], []>} : vector<32x256xbf16>, vector<256x128xbf16>, vector<32x128xf32> -> vector<32x128xf32>
    %4 = vector.broadcast %0 : vector<1x128xf32> to vector<32x128xf32>
    %5 = arith.addf %3, %4 : vector<32x128xf32>
    %6 = arith.truncf %5 : vector<32x128xf32> to vector<32x128xbf16>
    %c0_4 = arith.constant 0 : index
    %c0_5 = arith.constant 0 : index
    %7 = vector.load %arg4[%c0_4, %c0_5] : memref<32x128xbf16, #tpu.memory_space<vmem>>, vector<32x128xbf16>
    tpu.vector_store %arg4[%c0_4, %c0_5], %6 {strides = array<i32>} : memref<32x128xbf16, #tpu.memory_space<vmem>>, vector<32x128xbf16>,
    return
  }
  func.func @transform_0(%arg0: i32) -> (i32, i32) {
    %c0_i32 = arith.constant 0 : i32
    %c0_i32_0 = arith.constant 0 : i32
    %c0_i32_1 = arith.constant 0 : i32
    return %c0_i32, %c0_i32_0 : i32, i32
  }
  func.func @transform_1(%arg0: i32) -> (i32, i32) {
    %c0_i32 = arith.constant 0 : i32
    %c0_i32_0 = arith.constant 0 : i32
    %c0_i32_1 = arith.constant 0 : i32
    return %c0_i32, %c0_i32_0 : i32, i32
  }
  func.func @transform_2(%arg0: i32) -> (i32, i32) {
    %c0_i32 = arith.constant 0 : i32
    %c0_i32_0 = arith.constant 0 : i32
    %c0_i32_1 = arith.constant 0 : i32
    return %c0_i32, %c0_i32_0 : i32, i32
  }
  func.func @transform_3(%arg0: i32) -> (i32, i32) {
    %c0_i32 = arith.constant 0 : i32
    %c0_i32_0 = arith.constant 0 : i32
    %c0_i32_1 = arith.constant 0 : i32
    return %c0_i32, %c0_i32_0 : i32, i32
  }
}

module attributes {stable_mosaic.version = 11 : i64} {
  func.func @_stage_kernel(%arg0: i32, %arg1: memref<32x128xbf16, #tpu.memory_space<vmem>>, %arg2: memref<128x512xbf16, #tpu.memory_space<vmem>>, %arg3: memref<2x128xf32, #tpu.memory_space<vmem>>, %arg4: memref<32x512xbf16, #tpu.memory_space<vmem>>, %arg5: memref<32x512xf32, #tpu.memory_space<vmem>>) attributes {dimension_semantics = [#tpu.dimension_semantics<arbitrary>], iteration_bounds = array<i64: 1>, scalar_prefetch = 0 : i64, scratch_operands = 1 : i64, tpu.core_type = #tpu.core_type<tc>, window_params = [{pipeline_mode = #tpu.pipeline_mode<synchronous>, transform_indices = @transform_0, window_bounds = array<i64: 32, 128>}, {pipeline_mode = #tpu.pipeline_mode<synchronous>, transform_indices = @transform_1, window_bounds = array<i64: 128, 512>}, {pipeline_mode = #tpu.pipeline_mode<synchronous>, transform_indices = @transform_2, window_bounds = array<i64: 2, 128>}, {pipeline_mode = #tpu.pipeline_mode<synchronous>, transform_indices = @transform_3, window_bounds = array<i64: 32, 512>}]} {
    %cst = arith.constant 0.000000e+00 : f32
    %0 = vector.broadcast %cst : f32 to vector<1x512xf32>
    %cst_0 = arith.constant 0.000000e+00 : f32
    %1 = vector.broadcast %cst_0 : f32 to vector<1x512xf32>
    %c0 = arith.constant 0 : index
    %c0_1 = arith.constant 0 : index
    %2 = vector.load %arg1[%c0, %c0_1] : memref<32x128xbf16, #tpu.memory_space<vmem>>, vector<32x128xbf16>
    %c0_2 = arith.constant 0 : index
    %c0_3 = arith.constant 0 : index
    %3 = vector.load %arg2[%c0_2, %c0_3] : memref<128x512xbf16, #tpu.memory_space<vmem>>, vector<128x512xbf16>
    %cst_4 = arith.constant dense<0.000000e+00> : vector<32x512xf32>
    %4 = tpu.matmul %2, %3, %cst_4 {dimension_numbers = #tpu.dot_dimension_numbers<[1], [0], [0], [1], [0, 0, 1, 1], [], []>} : vector<32x128xbf16>, vector<128x512xbf16>, vector<32x512xf32> -> vector<32x512xf32>
    %c0_5 = arith.constant 0 : index
    %c0_6 = arith.constant 0 : index
    %5 = vector.load %arg5[%c0_5, %c0_6] : memref<32x512xf32, #tpu.memory_space<vmem>>, vector<32x512xf32>
    tpu.vector_store %arg5[%c0_5, %c0_6], %4 {strides = array<i32>} : memref<32x512xf32, #tpu.memory_space<vmem>>, vector<32x512xf32>,
    %cst_7 = arith.constant dense<0.000000e+00> : vector<512xf32>
    %6 = vector.multi_reduction <add>, %4, %cst_7 [0] : vector<32x512xf32> to vector<512xf32>
    %7 = vector.shape_cast %6 : vector<512xf32> to vector<1x512xf32>
    %8 = arith.addf %0, %7 : vector<1x512xf32>
    %9 = arith.mulf %4, %4 : vector<32x512xf32>
    %cst_8 = arith.constant dense<0.000000e+00> : vector<512xf32>
    %10 = vector.multi_reduction <add>, %9, %cst_8 [0] : vector<32x512xf32> to vector<512xf32>
    %11 = vector.shape_cast %10 : vector<512xf32> to vector<1x512xf32>
    %12 = arith.addf %1, %11 : vector<1x512xf32>
    %13 = vector.extract_strided_slice %8 {offsets = [0, 0], sizes = [1, 128], strides = [1, 1]} : vector<1x512xf32> to vector<1x128xf32>
    %cst_9 = arith.constant 0.000000e+00 : f32
    %14 = vector.broadcast %cst_9 : f32 to vector<1x128xf32>
    %15 = arith.addf %14, %13 : vector<1x128xf32>
    %16 = vector.extract_strided_slice %8 {offsets = [0, 128], sizes = [1, 128], strides = [1, 1]} : vector<1x512xf32> to vector<1x128xf32>
    %17 = arith.addf %15, %16 : vector<1x128xf32>
    %18 = vector.extract_strided_slice %8 {offsets = [0, 256], sizes = [1, 128], strides = [1, 1]} : vector<1x512xf32> to vector<1x128xf32>
    %19 = arith.addf %17, %18 : vector<1x128xf32>
    %20 = vector.extract_strided_slice %8 {offsets = [0, 384], sizes = [1, 128], strides = [1, 1]} : vector<1x512xf32> to vector<1x128xf32>
    %21 = arith.addf %19, %20 : vector<1x128xf32>
    %22 = vector.extract_strided_slice %12 {offsets = [0, 0], sizes = [1, 128], strides = [1, 1]} : vector<1x512xf32> to vector<1x128xf32>
    %cst_10 = arith.constant 0.000000e+00 : f32
    %23 = vector.broadcast %cst_10 : f32 to vector<1x128xf32>
    %24 = arith.addf %23, %22 : vector<1x128xf32>
    %25 = vector.extract_strided_slice %12 {offsets = [0, 128], sizes = [1, 128], strides = [1, 1]} : vector<1x512xf32> to vector<1x128xf32>
    %26 = arith.addf %24, %25 : vector<1x128xf32>
    %27 = vector.extract_strided_slice %12 {offsets = [0, 256], sizes = [1, 128], strides = [1, 1]} : vector<1x512xf32> to vector<1x128xf32>
    %28 = arith.addf %26, %27 : vector<1x128xf32>
    %29 = vector.extract_strided_slice %12 {offsets = [0, 384], sizes = [1, 128], strides = [1, 1]} : vector<1x512xf32> to vector<1x128xf32>
    %30 = arith.addf %28, %29 : vector<1x128xf32>
    %cst_11 = arith.constant 7.812500e-03 : f32
    %31 = vector.broadcast %cst_11 : f32 to vector<1x128xf32>
    %32 = arith.mulf %21, %31 : vector<1x128xf32>
    %cst_12 = arith.constant 7.812500e-03 : f32
    %33 = vector.broadcast %cst_12 : f32 to vector<1x128xf32>
    %34 = arith.mulf %30, %33 : vector<1x128xf32>
    %35 = arith.mulf %32, %32 : vector<1x128xf32>
    %36 = arith.subf %34, %35 : vector<1x128xf32>
    %cst_13 = arith.constant 0.000000e+00 : f32
    %37 = vector.broadcast %cst_13 : f32 to vector<1x128xf32>
    %38 = arith.maximumf %36, %37 : vector<1x128xf32>
    %cst_14 = arith.constant 9.99999974E-6 : f32
    %39 = vector.broadcast %cst_14 : f32 to vector<1x128xf32>
    %40 = arith.addf %38, %39 : vector<1x128xf32>
    %41 = math.rsqrt %40 : vector<1x128xf32>
    %c0_15 = arith.constant 0 : index
    %c0_16 = arith.constant 0 : index
    %42 = vector.load %arg3[%c0_15, %c0_16] : memref<2x128xf32, #tpu.memory_space<vmem>>, vector<1x128xf32>
    %43 = arith.mulf %41, %42 : vector<1x128xf32>
    %c1 = arith.constant 1 : index
    %c0_17 = arith.constant 0 : index
    %44 = vector.load %arg3[%c1, %c0_17] : memref<2x128xf32, #tpu.memory_space<vmem>>, vector<1x128xf32>
    %45 = arith.mulf %32, %43 : vector<1x128xf32>
    %46 = arith.subf %44, %45 : vector<1x128xf32>
    %47 = tpu.concatenate %43, %43, %43, %43 in 1 : vector<1x128xf32>, vector<1x128xf32>, vector<1x128xf32>, vector<1x128xf32> -> vector<1x512xf32>
    %48 = tpu.concatenate %46, %46, %46, %46 in 1 : vector<1x128xf32>, vector<1x128xf32>, vector<1x128xf32>, vector<1x128xf32> -> vector<1x512xf32>
    %c0_18 = arith.constant 0 : index
    %c0_19 = arith.constant 0 : index
    %49 = vector.load %arg5[%c0_18, %c0_19] : memref<32x512xf32, #tpu.memory_space<vmem>>, vector<32x512xf32>
    %50 = vector.broadcast %47 : vector<1x512xf32> to vector<32x512xf32>
    %51 = arith.mulf %49, %50 : vector<32x512xf32>
    %52 = vector.broadcast %48 : vector<1x512xf32> to vector<32x512xf32>
    %53 = arith.addf %51, %52 : vector<32x512xf32>
    %cst_20 = arith.constant 0.000000e+00 : f32
    %54 = vector.broadcast %cst_20 : f32 to vector<32x512xf32>
    %55 = arith.maximumf %53, %54 : vector<32x512xf32>
    %56 = arith.truncf %55 : vector<32x512xf32> to vector<32x512xbf16>
    %c0_21 = arith.constant 0 : index
    %c0_22 = arith.constant 0 : index
    %57 = vector.load %arg4[%c0_21, %c0_22] : memref<32x512xbf16, #tpu.memory_space<vmem>>, vector<32x512xbf16>
    tpu.vector_store %arg4[%c0_21, %c0_22], %56 {strides = array<i32>} : memref<32x512xbf16, #tpu.memory_space<vmem>>, vector<32x512xbf16>,
    return
  }
  func.func @transform_0(%arg0: i32) -> (i32, i32) {
    %c0_i32 = arith.constant 0 : i32
    %c0_i32_0 = arith.constant 0 : i32
    %c0_i32_1 = arith.constant 0 : i32
    return %c0_i32, %c0_i32_0 : i32, i32
  }
  func.func @transform_1(%arg0: i32) -> (i32, i32) {
    %c0_i32 = arith.constant 0 : i32
    %c0_i32_0 = arith.constant 0 : i32
    %c0_i32_1 = arith.constant 0 : i32
    return %c0_i32, %c0_i32_0 : i32, i32
  }
  func.func @transform_2(%arg0: i32) -> (i32, i32) {
    %c0_i32 = arith.constant 0 : i32
    %c0_i32_0 = arith.constant 0 : i32
    %c0_i32_1 = arith.constant 0 : i32
    return %c0_i32, %c0_i32_0 : i32, i32
  }
  func.func @transform_3(%arg0: i32) -> (i32, i32) {
    %c0_i32 = arith.constant 0 : i32
    %c0_i32_0 = arith.constant 0 : i32
    %c0_i32_1 = arith.constant 0 : i32
    return %c0_i32, %c0_i32_0 : i32, i32
  }
}

module attributes {stable_mosaic.version = 11 : i64} {
  func.func @_stage_kernel(%arg0: i32, %arg1: memref<128x256xbf16, #tpu.memory_space<vmem>>, %arg2: memref<256x512xbf16, #tpu.memory_space<vmem>>, %arg3: memref<2x128xf32, #tpu.memory_space<vmem>>, %arg4: memref<128x512xbf16, #tpu.memory_space<vmem>>, %arg5: memref<128x512xf32, #tpu.memory_space<vmem>>) attributes {dimension_semantics = [#tpu.dimension_semantics<arbitrary>], iteration_bounds = array<i64: 1>, scalar_prefetch = 0 : i64, scratch_operands = 1 : i64, tpu.core_type = #tpu.core_type<tc>, window_params = [{pipeline_mode = #tpu.pipeline_mode<synchronous>, transform_indices = @transform_0, window_bounds = array<i64: 128, 256>}, {pipeline_mode = #tpu.pipeline_mode<synchronous>, transform_indices = @transform_1, window_bounds = array<i64: 256, 512>}, {pipeline_mode = #tpu.pipeline_mode<synchronous>, transform_indices = @transform_2, window_bounds = array<i64: 2, 128>}, {pipeline_mode = #tpu.pipeline_mode<synchronous>, transform_indices = @transform_3, window_bounds = array<i64: 128, 512>}]} {
    %cst = arith.constant 0.000000e+00 : f32
    %0 = vector.broadcast %cst : f32 to vector<1x512xf32>
    %cst_0 = arith.constant 0.000000e+00 : f32
    %1 = vector.broadcast %cst_0 : f32 to vector<1x512xf32>
    %c0 = arith.constant 0 : index
    %c0_1 = arith.constant 0 : index
    %2 = vector.load %arg1[%c0, %c0_1] : memref<128x256xbf16, #tpu.memory_space<vmem>>, vector<32x256xbf16>
    %c0_2 = arith.constant 0 : index
    %c0_3 = arith.constant 0 : index
    %3 = vector.load %arg2[%c0_2, %c0_3] : memref<256x512xbf16, #tpu.memory_space<vmem>>, vector<256x512xbf16>
    %cst_4 = arith.constant dense<0.000000e+00> : vector<32x512xf32>
    %4 = tpu.matmul %2, %3, %cst_4 {dimension_numbers = #tpu.dot_dimension_numbers<[1], [0], [0], [1], [0, 0, 1, 1], [], []>} : vector<32x256xbf16>, vector<256x512xbf16>, vector<32x512xf32> -> vector<32x512xf32>
    %c0_5 = arith.constant 0 : index
    %c0_6 = arith.constant 0 : index
    %5 = vector.load %arg5[%c0_5, %c0_6] : memref<128x512xf32, #tpu.memory_space<vmem>>, vector<32x512xf32>
    tpu.vector_store %arg5[%c0_5, %c0_6], %4 {strides = array<i32>} : memref<128x512xf32, #tpu.memory_space<vmem>>, vector<32x512xf32>,
    %cst_7 = arith.constant dense<0.000000e+00> : vector<512xf32>
    %6 = vector.multi_reduction <add>, %4, %cst_7 [0] : vector<32x512xf32> to vector<512xf32>
    %7 = vector.shape_cast %6 : vector<512xf32> to vector<1x512xf32>
    %8 = arith.addf %0, %7 : vector<1x512xf32>
    %9 = arith.mulf %4, %4 : vector<32x512xf32>
    %cst_8 = arith.constant dense<0.000000e+00> : vector<512xf32>
    %10 = vector.multi_reduction <add>, %9, %cst_8 [0] : vector<32x512xf32> to vector<512xf32>
    %11 = vector.shape_cast %10 : vector<512xf32> to vector<1x512xf32>
    %12 = arith.addf %1, %11 : vector<1x512xf32>
    %c32 = arith.constant 32 : index
    %c0_9 = arith.constant 0 : index
    %13 = vector.load %arg1[%c32, %c0_9] : memref<128x256xbf16, #tpu.memory_space<vmem>>, vector<32x256xbf16>
    %c0_10 = arith.constant 0 : index
    %c0_11 = arith.constant 0 : index
    %14 = vector.load %arg2[%c0_10, %c0_11] : memref<256x512xbf16, #tpu.memory_space<vmem>>, vector<256x512xbf16>
    %cst_12 = arith.constant dense<0.000000e+00> : vector<32x512xf32>
    %15 = tpu.matmul %13, %14, %cst_12 {dimension_numbers = #tpu.dot_dimension_numbers<[1], [0], [0], [1], [0, 0, 1, 1], [], []>} : vector<32x256xbf16>, vector<256x512xbf16>, vector<32x512xf32> -> vector<32x512xf32>
    %c32_13 = arith.constant 32 : index
    %c0_14 = arith.constant 0 : index
    %16 = vector.load %arg5[%c32_13, %c0_14] : memref<128x512xf32, #tpu.memory_space<vmem>>, vector<32x512xf32>
    tpu.vector_store %arg5[%c32_13, %c0_14], %15 {strides = array<i32>} : memref<128x512xf32, #tpu.memory_space<vmem>>, vector<32x512xf32>,
    %cst_15 = arith.constant dense<0.000000e+00> : vector<512xf32>
    %17 = vector.multi_reduction <add>, %15, %cst_15 [0] : vector<32x512xf32> to vector<512xf32>
    %18 = vector.shape_cast %17 : vector<512xf32> to vector<1x512xf32>
    %19 = arith.addf %8, %18 : vector<1x512xf32>
    %20 = arith.mulf %15, %15 : vector<32x512xf32>
    %cst_16 = arith.constant dense<0.000000e+00> : vector<512xf32>
    %21 = vector.multi_reduction <add>, %20, %cst_16 [0] : vector<32x512xf32> to vector<512xf32>
    %22 = vector.shape_cast %21 : vector<512xf32> to vector<1x512xf32>
    %23 = arith.addf %12, %22 : vector<1x512xf32>
    %c64 = arith.constant 64 : index
    %c0_17 = arith.constant 0 : index
    %24 = vector.load %arg1[%c64, %c0_17] : memref<128x256xbf16, #tpu.memory_space<vmem>>, vector<32x256xbf16>
    %c0_18 = arith.constant 0 : index
    %c0_19 = arith.constant 0 : index
    %25 = vector.load %arg2[%c0_18, %c0_19] : memref<256x512xbf16, #tpu.memory_space<vmem>>, vector<256x512xbf16>
    %cst_20 = arith.constant dense<0.000000e+00> : vector<32x512xf32>
    %26 = tpu.matmul %24, %25, %cst_20 {dimension_numbers = #tpu.dot_dimension_numbers<[1], [0], [0], [1], [0, 0, 1, 1], [], []>} : vector<32x256xbf16>, vector<256x512xbf16>, vector<32x512xf32> -> vector<32x512xf32>
    %c64_21 = arith.constant 64 : index
    %c0_22 = arith.constant 0 : index
    %27 = vector.load %arg5[%c64_21, %c0_22] : memref<128x512xf32, #tpu.memory_space<vmem>>, vector<32x512xf32>
    tpu.vector_store %arg5[%c64_21, %c0_22], %26 {strides = array<i32>} : memref<128x512xf32, #tpu.memory_space<vmem>>, vector<32x512xf32>,
    %cst_23 = arith.constant dense<0.000000e+00> : vector<512xf32>
    %28 = vector.multi_reduction <add>, %26, %cst_23 [0] : vector<32x512xf32> to vector<512xf32>
    %29 = vector.shape_cast %28 : vector<512xf32> to vector<1x512xf32>
    %30 = arith.addf %19, %29 : vector<1x512xf32>
    %31 = arith.mulf %26, %26 : vector<32x512xf32>
    %cst_24 = arith.constant dense<0.000000e+00> : vector<512xf32>
    %32 = vector.multi_reduction <add>, %31, %cst_24 [0] : vector<32x512xf32> to vector<512xf32>
    %33 = vector.shape_cast %32 : vector<512xf32> to vector<1x512xf32>
    %34 = arith.addf %23, %33 : vector<1x512xf32>
    %c96 = arith.constant 96 : index
    %c0_25 = arith.constant 0 : index
    %35 = vector.load %arg1[%c96, %c0_25] : memref<128x256xbf16, #tpu.memory_space<vmem>>, vector<32x256xbf16>
    %c0_26 = arith.constant 0 : index
    %c0_27 = arith.constant 0 : index
    %36 = vector.load %arg2[%c0_26, %c0_27] : memref<256x512xbf16, #tpu.memory_space<vmem>>, vector<256x512xbf16>
    %cst_28 = arith.constant dense<0.000000e+00> : vector<32x512xf32>
    %37 = tpu.matmul %35, %36, %cst_28 {dimension_numbers = #tpu.dot_dimension_numbers<[1], [0], [0], [1], [0, 0, 1, 1], [], []>} : vector<32x256xbf16>, vector<256x512xbf16>, vector<32x512xf32> -> vector<32x512xf32>
    %c96_29 = arith.constant 96 : index
    %c0_30 = arith.constant 0 : index
    %38 = vector.load %arg5[%c96_29, %c0_30] : memref<128x512xf32, #tpu.memory_space<vmem>>, vector<32x512xf32>
    tpu.vector_store %arg5[%c96_29, %c0_30], %37 {strides = array<i32>} : memref<128x512xf32, #tpu.memory_space<vmem>>, vector<32x512xf32>,
    %cst_31 = arith.constant dense<0.000000e+00> : vector<512xf32>
    %39 = vector.multi_reduction <add>, %37, %cst_31 [0] : vector<32x512xf32> to vector<512xf32>
    %40 = vector.shape_cast %39 : vector<512xf32> to vector<1x512xf32>
    %41 = arith.addf %30, %40 : vector<1x512xf32>
    %42 = arith.mulf %37, %37 : vector<32x512xf32>
    %cst_32 = arith.constant dense<0.000000e+00> : vector<512xf32>
    %43 = vector.multi_reduction <add>, %42, %cst_32 [0] : vector<32x512xf32> to vector<512xf32>
    %44 = vector.shape_cast %43 : vector<512xf32> to vector<1x512xf32>
    %45 = arith.addf %34, %44 : vector<1x512xf32>
    %46 = vector.extract_strided_slice %41 {offsets = [0, 0], sizes = [1, 128], strides = [1, 1]} : vector<1x512xf32> to vector<1x128xf32>
    %cst_33 = arith.constant 0.000000e+00 : f32
    %47 = vector.broadcast %cst_33 : f32 to vector<1x128xf32>
    %48 = arith.addf %47, %46 : vector<1x128xf32>
    %49 = vector.extract_strided_slice %41 {offsets = [0, 128], sizes = [1, 128], strides = [1, 1]} : vector<1x512xf32> to vector<1x128xf32>
    %50 = arith.addf %48, %49 : vector<1x128xf32>
    %51 = vector.extract_strided_slice %41 {offsets = [0, 256], sizes = [1, 128], strides = [1, 1]} : vector<1x512xf32> to vector<1x128xf32>
    %52 = arith.addf %50, %51 : vector<1x128xf32>
    %53 = vector.extract_strided_slice %41 {offsets = [0, 384], sizes = [1, 128], strides = [1, 1]} : vector<1x512xf32> to vector<1x128xf32>
    %54 = arith.addf %52, %53 : vector<1x128xf32>
    %55 = vector.extract_strided_slice %45 {offsets = [0, 0], sizes = [1, 128], strides = [1, 1]} : vector<1x512xf32> to vector<1x128xf32>
    %cst_34 = arith.constant 0.000000e+00 : f32
    %56 = vector.broadcast %cst_34 : f32 to vector<1x128xf32>
    %57 = arith.addf %56, %55 : vector<1x128xf32>
    %58 = vector.extract_strided_slice %45 {offsets = [0, 128], sizes = [1, 128], strides = [1, 1]} : vector<1x512xf32> to vector<1x128xf32>
    %59 = arith.addf %57, %58 : vector<1x128xf32>
    %60 = vector.extract_strided_slice %45 {offsets = [0, 256], sizes = [1, 128], strides = [1, 1]} : vector<1x512xf32> to vector<1x128xf32>
    %61 = arith.addf %59, %60 : vector<1x128xf32>
    %62 = vector.extract_strided_slice %45 {offsets = [0, 384], sizes = [1, 128], strides = [1, 1]} : vector<1x512xf32> to vector<1x128xf32>
    %63 = arith.addf %61, %62 : vector<1x128xf32>
    %cst_35 = arith.constant 0.001953125 : f32
    %64 = vector.broadcast %cst_35 : f32 to vector<1x128xf32>
    %65 = arith.mulf %54, %64 : vector<1x128xf32>
    %cst_36 = arith.constant 0.001953125 : f32
    %66 = vector.broadcast %cst_36 : f32 to vector<1x128xf32>
    %67 = arith.mulf %63, %66 : vector<1x128xf32>
    %68 = arith.mulf %65, %65 : vector<1x128xf32>
    %69 = arith.subf %67, %68 : vector<1x128xf32>
    %cst_37 = arith.constant 0.000000e+00 : f32
    %70 = vector.broadcast %cst_37 : f32 to vector<1x128xf32>
    %71 = arith.maximumf %69, %70 : vector<1x128xf32>
    %cst_38 = arith.constant 9.99999974E-6 : f32
    %72 = vector.broadcast %cst_38 : f32 to vector<1x128xf32>
    %73 = arith.addf %71, %72 : vector<1x128xf32>
    %74 = math.rsqrt %73 : vector<1x128xf32>
    %c0_39 = arith.constant 0 : index
    %c0_40 = arith.constant 0 : index
    %75 = vector.load %arg3[%c0_39, %c0_40] : memref<2x128xf32, #tpu.memory_space<vmem>>, vector<1x128xf32>
    %76 = arith.mulf %74, %75 : vector<1x128xf32>
    %c1 = arith.constant 1 : index
    %c0_41 = arith.constant 0 : index
    %77 = vector.load %arg3[%c1, %c0_41] : memref<2x128xf32, #tpu.memory_space<vmem>>, vector<1x128xf32>
    %78 = arith.mulf %65, %76 : vector<1x128xf32>
    %79 = arith.subf %77, %78 : vector<1x128xf32>
    %80 = tpu.concatenate %76, %76, %76, %76 in 1 : vector<1x128xf32>, vector<1x128xf32>, vector<1x128xf32>, vector<1x128xf32> -> vector<1x512xf32>
    %81 = tpu.concatenate %79, %79, %79, %79 in 1 : vector<1x128xf32>, vector<1x128xf32>, vector<1x128xf32>, vector<1x128xf32> -> vector<1x512xf32>
    %c0_42 = arith.constant 0 : index
    %c0_43 = arith.constant 0 : index
    %82 = vector.load %arg5[%c0_42, %c0_43] : memref<128x512xf32, #tpu.memory_space<vmem>>, vector<32x512xf32>
    %83 = vector.broadcast %80 : vector<1x512xf32> to vector<32x512xf32>
    %84 = arith.mulf %82, %83 : vector<32x512xf32>
    %85 = vector.broadcast %81 : vector<1x512xf32> to vector<32x512xf32>
    %86 = arith.addf %84, %85 : vector<32x512xf32>
    %cst_44 = arith.constant 0.000000e+00 : f32
    %87 = vector.broadcast %cst_44 : f32 to vector<32x512xf32>
    %88 = arith.maximumf %86, %87 : vector<32x512xf32>
    %89 = arith.truncf %88 : vector<32x512xf32> to vector<32x512xbf16>
    %c0_45 = arith.constant 0 : index
    %c0_46 = arith.constant 0 : index
    %90 = vector.load %arg4[%c0_45, %c0_46] : memref<128x512xbf16, #tpu.memory_space<vmem>>, vector<32x512xbf16>
    tpu.vector_store %arg4[%c0_45, %c0_46], %89 {strides = array<i32>} : memref<128x512xbf16, #tpu.memory_space<vmem>>, vector<32x512xbf16>,
    %c32_47 = arith.constant 32 : index
    %c0_48 = arith.constant 0 : index
    %91 = vector.load %arg5[%c32_47, %c0_48] : memref<128x512xf32, #tpu.memory_space<vmem>>, vector<32x512xf32>
    %92 = vector.broadcast %80 : vector<1x512xf32> to vector<32x512xf32>
    %93 = arith.mulf %91, %92 : vector<32x512xf32>
    %94 = vector.broadcast %81 : vector<1x512xf32> to vector<32x512xf32>
    %95 = arith.addf %93, %94 : vector<32x512xf32>
    %cst_49 = arith.constant 0.000000e+00 : f32
    %96 = vector.broadcast %cst_49 : f32 to vector<32x512xf32>
    %97 = arith.maximumf %95, %96 : vector<32x512xf32>
    %98 = arith.truncf %97 : vector<32x512xf32> to vector<32x512xbf16>
    %c32_50 = arith.constant 32 : index
    %c0_51 = arith.constant 0 : index
    %99 = vector.load %arg4[%c32_50, %c0_51] : memref<128x512xbf16, #tpu.memory_space<vmem>>, vector<32x512xbf16>
    tpu.vector_store %arg4[%c32_50, %c0_51], %98 {strides = array<i32>} : memref<128x512xbf16, #tpu.memory_space<vmem>>, vector<32x512xbf16>,
    %c64_52 = arith.constant 64 : index
    %c0_53 = arith.constant 0 : index
    %100 = vector.load %arg5[%c64_52, %c0_53] : memref<128x512xf32, #tpu.memory_space<vmem>>, vector<32x512xf32>
    %101 = vector.broadcast %80 : vector<1x512xf32> to vector<32x512xf32>
    %102 = arith.mulf %100, %101 : vector<32x512xf32>
    %103 = vector.broadcast %81 : vector<1x512xf32> to vector<32x512xf32>
    %104 = arith.addf %102, %103 : vector<32x512xf32>
    %cst_54 = arith.constant 0.000000e+00 : f32
    %105 = vector.broadcast %cst_54 : f32 to vector<32x512xf32>
    %106 = arith.maximumf %104, %105 : vector<32x512xf32>
    %107 = arith.truncf %106 : vector<32x512xf32> to vector<32x512xbf16>
    %c64_55 = arith.constant 64 : index
    %c0_56 = arith.constant 0 : index
    %108 = vector.load %arg4[%c64_55, %c0_56] : memref<128x512xbf16, #tpu.memory_space<vmem>>, vector<32x512xbf16>
    tpu.vector_store %arg4[%c64_55, %c0_56], %107 {strides = array<i32>} : memref<128x512xbf16, #tpu.memory_space<vmem>>, vector<32x512xbf16>,
    %c96_57 = arith.constant 96 : index
    %c0_58 = arith.constant 0 : index
    %109 = vector.load %arg5[%c96_57, %c0_58] : memref<128x512xf32, #tpu.memory_space<vmem>>, vector<32x512xf32>
    %110 = vector.broadcast %80 : vector<1x512xf32> to vector<32x512xf32>
    %111 = arith.mulf %109, %110 : vector<32x512xf32>
    %112 = vector.broadcast %81 : vector<1x512xf32> to vector<32x512xf32>
    %113 = arith.addf %111, %112 : vector<32x512xf32>
    %cst_59 = arith.constant 0.000000e+00 : f32
    %114 = vector.broadcast %cst_59 : f32 to vector<32x512xf32>
    %115 = arith.maximumf %113, %114 : vector<32x512xf32>
    %116 = arith.truncf %115 : vector<32x512xf32> to vector<32x512xbf16>
    %c96_60 = arith.constant 96 : index
    %c0_61 = arith.constant 0 : index
    %117 = vector.load %arg4[%c96_60, %c0_61] : memref<128x512xbf16, #tpu.memory_space<vmem>>, vector<32x512xbf16>
    tpu.vector_store %arg4[%c96_60, %c0_61], %116 {strides = array<i32>} : memref<128x512xbf16, #tpu.memory_space<vmem>>, vector<32x512xbf16>,
    return
  }
  func.func @transform_0(%arg0: i32) -> (i32, i32) {
    %c0_i32 = arith.constant 0 : i32
    %c0_i32_0 = arith.constant 0 : i32
    %c0_i32_1 = arith.constant 0 : i32
    return %c0_i32, %c0_i32_0 : i32, i32
  }
  func.func @transform_1(%arg0: i32) -> (i32, i32) {
    %c0_i32 = arith.constant 0 : i32
    %c0_i32_0 = arith.constant 0 : i32
    %c0_i32_1 = arith.constant 0 : i32
    return %c0_i32, %c0_i32_0 : i32, i32
  }
  func.func @transform_2(%arg0: i32) -> (i32, i32) {
    %c0_i32 = arith.constant 0 : i32
    %c0_i32_0 = arith.constant 0 : i32
    %c0_i32_1 = arith.constant 0 : i32
    return %c0_i32, %c0_i32_0 : i32, i32
  }
  func.func @transform_3(%arg0: i32) -> (i32, i32) {
    %c0_i32 = arith.constant 0 : i32
    %c0_i32_0 = arith.constant 0 : i32
    %c0_i32_1 = arith.constant 0 : i32
    return %c0_i32, %c0_i32_0 : i32, i32
  }
}

module attributes {stable_mosaic.version = 11 : i64} {
  func.func @_stage_kernel(%arg0: i32, %arg1: memref<512x384xbf16, #tpu.memory_space<vmem>>, %arg2: memref<384x128xbf16, #tpu.memory_space<vmem>>, %arg3: memref<2x128xf32, #tpu.memory_space<vmem>>, %arg4: memref<512x128xf32, #tpu.memory_space<vmem>>) attributes {dimension_semantics = [#tpu.dimension_semantics<arbitrary>], iteration_bounds = array<i64: 1>, scalar_prefetch = 0 : i64, scratch_operands = 0 : i64, tpu.core_type = #tpu.core_type<tc>, window_params = [{pipeline_mode = #tpu.pipeline_mode<synchronous>, transform_indices = @transform_0, window_bounds = array<i64: 512, 384>}, {pipeline_mode = #tpu.pipeline_mode<synchronous>, transform_indices = @transform_1, window_bounds = array<i64: 384, 128>}, {pipeline_mode = #tpu.pipeline_mode<synchronous>, transform_indices = @transform_2, window_bounds = array<i64: 2, 128>}, {pipeline_mode = #tpu.pipeline_mode<synchronous>, transform_indices = @transform_3, window_bounds = array<i64: 512, 128>}]} {
    %c1 = arith.constant 1 : index
    %c0 = arith.constant 0 : index
    %0 = vector.load %arg3[%c1, %c0] : memref<2x128xf32, #tpu.memory_space<vmem>>, vector<1x128xf32>
    %c0_0 = arith.constant 0 : index
    %c0_1 = arith.constant 0 : index
    %1 = vector.load %arg1[%c0_0, %c0_1] : memref<512x384xbf16, #tpu.memory_space<vmem>>, vector<128x384xbf16>
    %c0_2 = arith.constant 0 : index
    %c0_3 = arith.constant 0 : index
    %2 = vector.load %arg2[%c0_2, %c0_3] : memref<384x128xbf16, #tpu.memory_space<vmem>>, vector<384x128xbf16>
    %cst = arith.constant dense<0.000000e+00> : vector<128x128xf32>
    %3 = tpu.matmul %1, %2, %cst {dimension_numbers = #tpu.dot_dimension_numbers<[1], [0], [0], [1], [0, 0, 1, 1], [], []>} : vector<128x384xbf16>, vector<384x128xbf16>, vector<128x128xf32> -> vector<128x128xf32>
    %4 = vector.broadcast %0 : vector<1x128xf32> to vector<128x128xf32>
    %5 = arith.addf %3, %4 : vector<128x128xf32>
    %6 = math.tanh %5 : vector<128x128xf32>
    %c0_4 = arith.constant 0 : index
    %c0_5 = arith.constant 0 : index
    %7 = vector.load %arg4[%c0_4, %c0_5] : memref<512x128xf32, #tpu.memory_space<vmem>>, vector<128x128xf32>
    tpu.vector_store %arg4[%c0_4, %c0_5], %6 {strides = array<i32>} : memref<512x128xf32, #tpu.memory_space<vmem>>, vector<128x128xf32>,
    %c128 = arith.constant 128 : index
    %c0_6 = arith.constant 0 : index
    %8 = vector.load %arg1[%c128, %c0_6] : memref<512x384xbf16, #tpu.memory_space<vmem>>, vector<128x384xbf16>
    %c0_7 = arith.constant 0 : index
    %c0_8 = arith.constant 0 : index
    %9 = vector.load %arg2[%c0_7, %c0_8] : memref<384x128xbf16, #tpu.memory_space<vmem>>, vector<384x128xbf16>
    %cst_9 = arith.constant dense<0.000000e+00> : vector<128x128xf32>
    %10 = tpu.matmul %8, %9, %cst_9 {dimension_numbers = #tpu.dot_dimension_numbers<[1], [0], [0], [1], [0, 0, 1, 1], [], []>} : vector<128x384xbf16>, vector<384x128xbf16>, vector<128x128xf32> -> vector<128x128xf32>
    %11 = vector.broadcast %0 : vector<1x128xf32> to vector<128x128xf32>
    %12 = arith.addf %10, %11 : vector<128x128xf32>
    %13 = math.tanh %12 : vector<128x128xf32>
    %c128_10 = arith.constant 128 : index
    %c0_11 = arith.constant 0 : index
    %14 = vector.load %arg4[%c128_10, %c0_11] : memref<512x128xf32, #tpu.memory_space<vmem>>, vector<128x128xf32>
    tpu.vector_store %arg4[%c128_10, %c0_11], %13 {strides = array<i32>} : memref<512x128xf32, #tpu.memory_space<vmem>>, vector<128x128xf32>,
    %c256 = arith.constant 256 : index
    %c0_12 = arith.constant 0 : index
    %15 = vector.load %arg1[%c256, %c0_12] : memref<512x384xbf16, #tpu.memory_space<vmem>>, vector<128x384xbf16>
    %c0_13 = arith.constant 0 : index
    %c0_14 = arith.constant 0 : index
    %16 = vector.load %arg2[%c0_13, %c0_14] : memref<384x128xbf16, #tpu.memory_space<vmem>>, vector<384x128xbf16>
    %cst_15 = arith.constant dense<0.000000e+00> : vector<128x128xf32>
    %17 = tpu.matmul %15, %16, %cst_15 {dimension_numbers = #tpu.dot_dimension_numbers<[1], [0], [0], [1], [0, 0, 1, 1], [], []>} : vector<128x384xbf16>, vector<384x128xbf16>, vector<128x128xf32> -> vector<128x128xf32>
    %18 = vector.broadcast %0 : vector<1x128xf32> to vector<128x128xf32>
    %19 = arith.addf %17, %18 : vector<128x128xf32>
    %20 = math.tanh %19 : vector<128x128xf32>
    %c256_16 = arith.constant 256 : index
    %c0_17 = arith.constant 0 : index
    %21 = vector.load %arg4[%c256_16, %c0_17] : memref<512x128xf32, #tpu.memory_space<vmem>>, vector<128x128xf32>
    tpu.vector_store %arg4[%c256_16, %c0_17], %20 {strides = array<i32>} : memref<512x128xf32, #tpu.memory_space<vmem>>, vector<128x128xf32>,
    %c384 = arith.constant 384 : index
    %c0_18 = arith.constant 0 : index
    %22 = vector.load %arg1[%c384, %c0_18] : memref<512x384xbf16, #tpu.memory_space<vmem>>, vector<128x384xbf16>
    %c0_19 = arith.constant 0 : index
    %c0_20 = arith.constant 0 : index
    %23 = vector.load %arg2[%c0_19, %c0_20] : memref<384x128xbf16, #tpu.memory_space<vmem>>, vector<384x128xbf16>
    %cst_21 = arith.constant dense<0.000000e+00> : vector<128x128xf32>
    %24 = tpu.matmul %22, %23, %cst_21 {dimension_numbers = #tpu.dot_dimension_numbers<[1], [0], [0], [1], [0, 0, 1, 1], [], []>} : vector<128x384xbf16>, vector<384x128xbf16>, vector<128x128xf32> -> vector<128x128xf32>
    %25 = vector.broadcast %0 : vector<1x128xf32> to vector<128x128xf32>
    %26 = arith.addf %24, %25 : vector<128x128xf32>
    %27 = math.tanh %26 : vector<128x128xf32>
    %c384_22 = arith.constant 384 : index
    %c0_23 = arith.constant 0 : index
    %28 = vector.load %arg4[%c384_22, %c0_23] : memref<512x128xf32, #tpu.memory_space<vmem>>, vector<128x128xf32>
    tpu.vector_store %arg4[%c384_22, %c0_23], %27 {strides = array<i32>} : memref<512x128xf32, #tpu.memory_space<vmem>>, vector<128x128xf32>,
    return
  }
  func.func @transform_0(%arg0: i32) -> (i32, i32) {
    %c0_i32 = arith.constant 0 : i32
    %c0_i32_0 = arith.constant 0 : i32
    %c0_i32_1 = arith.constant 0 : i32
    return %c0_i32, %c0_i32_0 : i32, i32
  }
  func.func @transform_1(%arg0: i32) -> (i32, i32) {
    %c0_i32 = arith.constant 0 : i32
    %c0_i32_0 = arith.constant 0 : i32
    %c0_i32_1 = arith.constant 0 : i32
    return %c0_i32, %c0_i32_0 : i32, i32
  }
  func.func @transform_2(%arg0: i32) -> (i32, i32) {
    %c0_i32 = arith.constant 0 : i32
    %c0_i32_0 = arith.constant 0 : i32
    %c0_i32_1 = arith.constant 0 : i32
    return %c0_i32, %c0_i32_0 : i32, i32
  }
  func.func @transform_3(%arg0: i32) -> (i32, i32) {
    %c0_i32 = arith.constant 0 : i32
    %c0_i32_0 = arith.constant 0 : i32
    %c0_i32_1 = arith.constant 0 : i32
    return %c0_i32, %c0_i32_0 : i32, i32
  }
}

</mosaic_0001>

<bundles_post_ra>
// kernel: _lambda_.6
= control target key start
LH: loop header
LB: loop body
LE: loop exit
PB: predicated region body
PF: predicated region fallthrough
CT: control target
= control target key end

     0   :  { %s731_s1 = inlined_call_operand.vmem [shape: bf16[128,128], index: 1, kind: input, shape index: {}]   ;;  %s732_s0 = inlined_call_operand.vmem [shape: bf16[128,128], index: 0, kind: input, shape index: {}]   ;;  %s733_s2 = inlined_call_operand.vmem [shape: f32[2,128], index: 2, kind: input, shape index: {}]   ;;  %s734_s3 = inlined_call_operand.vmem [shape: bf16[128,128], index: 3, kind: output, shape index: {}]  }
   0x1   :  { %v469_v0 = vld [vmem:[%s731_s1 + $0x38] sm:$0xff]  ;;  %v468_v1 = vld [vmem:[%s731_s1 + $0x30] sm:$0xff]  ;;  %v467_v2 = vld [vmem:[%s731_s1 + $0x28] sm:$0xff] }
   0x2   :  { %142 = vmatpush.bf16.msra.mxu0 %v469_v0  ;;  %517 = vmatpush.bf16.msra.mxu1 %v469_v0  ;;  %v466_v3 = vld [vmem:[%s731_s1 + $0x20] sm:$0xff]  ;;  %v465_v4 = vld [vmem:[%s731_s1 + $0x18] sm:$0xff]  ;;  %v464_v5 = vld [vmem:[%s731_s1 + $0x10] sm:$0xff] }
   0x3   :  { %518 = vmatpush.bf16.msra.mxu2 %v469_v0  ;;  %519 = vmatpush.bf16.msra.mxu3 %v469_v0  ;;  %v463_v6 = vld [vmem:[%s731_s1 + $0x8] sm:$0xff]  ;;  %v462_v7 = vld [vmem:[%s731_s1] sm:$0xff]  ;;  %v456_v9 = vld [vmem:[%s732_s0 + $0x10] sm:$0xff] }
   0x4   :  { %v454_v8 = vld [vmem:[%s732_s0] sm:$0xff]  ;;  %v460_v11 = vld [vmem:[%s732_s0 + $0x30] sm:$0xff]  ;;  %v455_v12 = vld [vmem:[%s732_s0 + $0x8] sm:$0xff] }
   0x5   :  { %v458_v10 = vld [vmem:[%s732_s0 + $0x20] sm:$0xff]  ;;  %v457_v13 = vld [vmem:[%s732_s0 + $0x18] sm:$0xff]  ;;  %v459_v14 = vld [vmem:[%s732_s0 + $0x28] sm:$0xff] }
   0x6   :  { %143 = vmatpush.bf16.msra.mxu0 %v468_v1  ;;  %520 = vmatpush.bf16.msra.mxu1 %v468_v1  ;;  %v461_v15 = vld [vmem:[%s732_s0 + $0x38] sm:$0xff] }
   0x7   :  { %521 = vmatpush.bf16.msra.mxu2 %v468_v1  ;;  %522 = vmatpush.bf16.msra.mxu3 %v468_v1 }
   0xa   :  { %144 = vmatpush.bf16.msra.mxu0 %v467_v2  ;;  %523 = vmatpush.bf16.msra.mxu1 %v467_v2 }
   0xb   :  { %524 = vmatpush.bf16.msra.mxu2 %v467_v2  ;;  %525 = vmatpush.bf16.msra.mxu3 %v467_v2 }
   0xe   :  { %145 = vmatpush.bf16.msra.mxu0 %v466_v3  ;;  %526 = vmatpush.bf16.msra.mxu1 %v466_v3 }
   0xf   :  { %527 = vmatpush.bf16.msra.mxu2 %v466_v3  ;;  %528 = vmatpush.bf16.msra.mxu3 %v466_v3 }
  0x12   :  { %146 = vmatpush.bf16.msra.mxu0 %v465_v4  ;;  %529 = vmatpush.bf16.msra.mxu1 %v465_v4 }
  0x13   :  { %530 = vmatpush.bf16.msra.mxu2 %v465_v4  ;;  %531 = vmatpush.bf16.msra.mxu3 %v465_v4 }
  0x16   :  { %147 = vmatpush.bf16.msra.mxu0 %v464_v5  ;;  %532 = vmatpush.bf16.msra.mxu1 %v464_v5 }
  0x17   :  { %533 = vmatpush.bf16.msra.mxu2 %v464_v5  ;;  %534 = vmatpush.bf16.msra.mxu3 %v464_v5 }
  0x1a   :  { %148 = vmatpush.bf16.msra.mxu0 %v463_v6  ;;  %535 = vmatpush.bf16.msra.mxu1 %v463_v6 }
  0x1b   :  { %536 = vmatpush.bf16.msra.mxu2 %v463_v6  ;;  %537 = vmatpush.bf16.msra.mxu3 %v463_v6 }
  0x1e   :  { %149 = vmatpush.bf16.msra.mxu0 %v462_v7  ;;  %538 = vmatpush.bf16.msra.mxu1 %v462_v7 }
  0x1f   :  { %539 = vmatpush.bf16.msra.mxu2 %v462_v7  ;;  %540 = vmatpush.bf16.msra.mxu3 %v462_v7 }
  0x21   :  { %150 = vmatmul.bf16.vlgmr.msra.gmra.mxu0 %v454_v8  ;;  %160 = vmatmul.bf16.vlgmr.msra.gmra.mxu1 %v456_v9 }
  0x22   :  { %170 = vmatmul.bf16.vlgmr.msra.gmra.mxu2 %v458_v10  ;;  %180 = vmatmul.bf16.vlgmr.msra.gmra.mxu3 %v460_v11 }
  0x31   :  { %155 = vmatmul.bf16.gmra.mxu0 %v455_v12  ;;  %165 = vmatmul.bf16.gmra.mxu1 %v457_v13 }
  0x32   :  { %175 = vmatmul.bf16.gmra.mxu2 %v459_v14  ;;  %185 = vmatmul.bf16.gmra.mxu3 %v461_v15 }
  0x9e   :  { %v611_v16 = vpop.f32.mrf.mxu0  ;;  %v613_v17 = vpop.f32.mrf.mxu1 }
  0x9f   :  { %v229_v26 = vmul.f32 %v611_v16, %v611_v16  ;;  %v233_v36 = vmul.f32 %v613_v17, %v613_v17 }
  0xa5   :  { %v617_v19 = vpop.f32.mrf.mxu2  ;;  %v623_v22 = vpop.f32.mrf.mxu3 }
  0xa6   :  { %v615_v18 = vpop.f32.mrf.mxu0  ;;  %v619_v20 = vpop.f32.mrf.mxu1  ;;  %v237_v50 = vmul.f32 %v617_v19, %v617_v19  ;;  %v241_v0 = vmul.f32 %v623_v22, %v623_v22 }
  0xa7   :  { %v230_v24 = vmul.f32 %v615_v18, %v615_v18  ;;  %v207_v27 = vadd.f32 %v615_v18, %v611_v16  ;;  %v234_v40 = vmul.f32 %v619_v20, %v619_v20 }
  0xa9   :  { %v245_v29 = vadd.f32 %v230_v24, %v229_v26 }
  0xad   :  { %v625_v23 = vpop.f32.mrf.mxu2  ;;  %v643_v35 = vpop.f32.mrf.mxu3 }
  0xae   :  { %v621_v21 = vpop.f32.mrf.mxu0  ;;  %v629_v25 = vpop.f32.mrf.mxu1  ;;  %v238_v54 = vmul.f32 %v625_v23, %v625_v23  ;;  %v242_v3 = vmul.f32 %v643_v35, %v643_v35 }
  0xaf   :  { %v231_v28 = vmul.f32 %v621_v21, %v621_v21  ;;  %v208_v30 = vadd.f32 %v207_v27, %v621_v21  ;;  %v235_v44 = vmul.f32 %v629_v25, %v629_v25 }
  0xb1   :  { %v246_v32 = vadd.f32 %v245_v29, %v231_v28 }
  0xb5   :  { %v648_v39 = vpop.f32.mrf.mxu2  ;;  %v664_v53 = vpop.f32.mrf.mxu3 }
  0xb6   :  { %v638_v31 = vpop.f32.mrf.mxu0  ;;  %v653_v43 = vpop.f32.mrf.mxu1  ;;  %v239_v59 = vmul.f32 %v648_v39, %v648_v39  ;;  %v243_v8 = vmul.f32 %v664_v53, %v664_v53 }
  0xb7   :  { %v209_v33 = vadd.f32 %v208_v30, %v638_v31  ;;  %v232_v34 = vmul.f32 %v638_v31, %v638_v31  ;;  %v236_v48 = vmul.f32 %v653_v43, %v653_v43 }
  0xb9   :  { %v210_v37 = vadd.f32 %v209_v33, %v613_v17  ;;  %v247_v38 = vadd.f32 %v246_v32, %v232_v34 }
  0xbb   :  { %v248_v41 = vadd.f32 %v247_v38, %v233_v36  ;;  %v211_v42 = vadd.f32 %v210_v37, %v619_v20 }
  0xbd   :  { %v212_v45 = vadd.f32 %v211_v42, %v629_v25  ;;  %v249_v46 = vadd.f32 %v248_v41, %v234_v40  ;;  %v669_v57 = vpop.f32.mrf.mxu2  ;;  %v188_v6 = vpop.f32.mrf.mxu3 }
  0xbe   :  { %v240_v63 = vmul.f32 %v669_v57, %v669_v57  ;;  %v244_v12 = vmul.f32 %v188_v6, %v188_v6 }
  0xbf   :  { %v213_v47 = vadd.f32 %v212_v45, %v653_v43  ;;  %v250_v49 = vadd.f32 %v249_v46, %v235_v44 }
  0xc1   :  { %v214_v51 = vadd.f32 %v213_v47, %v617_v19  ;;  %v251_v52 = vadd.f32 %v250_v49, %v236_v48 }
  0xc3   :  { %v252_v55 = vadd.f32 %v251_v52, %v237_v50  ;;  %v215_v56 = vadd.f32 %v214_v51, %v625_v23  ;;  %v283_v51 = vld [vmem:[%s733_s2] sm:$0x1] }
  0xc5   :  { %v216_v58 = vadd.f32 %v215_v56, %v648_v39  ;;  %v253_v60 = vadd.f32 %v252_v55, %v238_v54  ;;  %v285_v55 = vld [vmem:[%s733_s2 + $0x1] sm:$0x1] }
  0xc7   :  { %v254_v61 = vadd.f32 %v253_v60, %v239_v59  ;;  %v217_v62 = vadd.f32 %v216_v58, %v669_v57 }
  0xc9   :  { %v218_v1 = vadd.f32 %v217_v62, %v623_v22  ;;  %v255_v2 = vadd.f32 %v254_v61, %v240_v63 }
  0xcb   :  { %v256_v4 = vadd.f32 %v255_v2, %v241_v0  ;;  %v219_v5 = vadd.f32 %v218_v1, %v643_v35 }
  0xcd   :  { %v220_v7 = vadd.f32 %v219_v5, %v664_v53  ;;  %v257_v9 = vadd.f32 %v256_v4, %v242_v3 }
  0xcf   :  { %v258_v10 = vadd.f32 %v257_v9, %v243_v8  ;;  %v221_v11 = vadd.f32 %v220_v7, %v188_v6 }
  0xd1   :  { %v222_v13 = vrot.slane %v221_v11, 4  ;;  %v259_v14 = vadd.f32 %v258_v10, %v244_v12 }
  0xd3   :  { %v223_v15 = vadd.f32 %v222_v13, %v221_v11  ;;  %v260_v24 = vrot.slane %v259_v14, 4 }
  0xd5   :  { %v224_v26 = vrot.slane %v223_v15, 2  ;;  %v261_v27 = vadd.f32 %v260_v24, %v259_v14 }
  0xd7   :  { %v225_v28 = vadd.f32 %v224_v26, %v223_v15  ;;  %v262_v29 = vrot.slane %v261_v27, 2 }
  0xd9   :  { %v226_v30 = vrot.slane %v225_v28, 1  ;;  %v263_v32 = vadd.f32 %v262_v29, %v261_v27 }
  0xdb   :  { %v227_v33 = vadd.f32 %v226_v30, %v225_v28  ;;  %v264_v34 = vrot.slane %v263_v32, 1 }
  0xdd   :  { %v265_v36 = vadd.f32 %v264_v34, %v263_v32  ;;  %v267_v37 = vmul.f32 0.0078125, %v227_v33 }
  0xdf   :  { %v268_v38 = vmul.f32 0.0078125, %v265_v36  ;;  %v269_v40 = vmul.f32 %v267_v37, %v267_v37 }
  0xe1   :  { %v270_v41 = vsub.f32 %v268_v38, %v269_v40 }
  0xe3   :  { %v271_v42 = vmax.f32 %v270_v41, 0.0 }
  0xe5   :  { %v272_v44 = vadd.f32 1e-05, %v271_v42 }
  0xe7   :  { %541 = vrsqrt.f32 %v272_v44  ;;  %vm279_vm1 = vweird.f32 %v272_v44 }
  0xed   :  { %v542_v45 = vpop.eup %541 }
  0xee   :  { %v274_v46 = vmul.f32 %v542_v45, %v272_v44  ;;  %vm280_vm0 = vweird.f32 %v542_v45 }
  0xef   :  { %vm281_vm2 = vmor %vm279_vm1, %vm280_vm0 }
  0xf0   :  { %v275_v47 = vmul.f32 %v542_v45, %v274_v46 }
  0xf2   :  { %v276_v48 = vmul.f32 0.5, %v275_v47 }
  0xf4   :  { %v277_v49 = vsub.f32 1.5, %v276_v48 }
  0xf6   :  { %v278_v50 = vmul.f32 %v542_v45, %v277_v49 }
  0xf8   :  { %v282_v52 = vsel %vm281_vm2, %v542_v45, %v278_v50 }
  0xf9   :  { %v284_v54 = vmul.f32 %v283_v51, %v282_v52 }
  0xfb   :  { %v286_v56 = vmul.f32 %v284_v54, %v267_v37  ;;  %v304_v58 = vperm.slane %v284_v54, 0 }
  0xfd   :  { %v287_v59 = vsub.f32 %v285_v55, %v286_v56  ;;  %v305_v60 = vmul.f32 %v304_v58, %v611_v16  ;;  %v306_v61 = vmul.f32 %v304_v58, %v615_v18  ;;  %v307_v62 = vmul.f32 %v304_v58, %v621_v21 }
  0xfe   :  { %v308_v63 = vmul.f32 %v304_v58, %v638_v31  ;;  %v309_v0 = vmul.f32 %v304_v58, %v613_v17  ;;  %v310_v1 = vmul.f32 %v304_v58, %v619_v20  ;;  %v311_v2 = vmul.f32 %v304_v58, %v629_v25 }
  0xff   :  { %v312_v3 = vmul.f32 %v304_v58, %v653_v43  ;;  %v313_v4 = vmul.f32 %v304_v58, %v617_v19  ;;  %v314_v5 = vmul.f32 %v304_v58, %v625_v23  ;;  %v315_v16 = vmul.f32 %v304_v58, %v648_v39 }
 0x100   :  { %v316_v18 = vmul.f32 %v304_v58, %v669_v57  ;;  %v321_v7 = vperm.slane %v287_v59, 0  ;;  %v317_v21 = vmul.f32 %v304_v58, %v623_v22  ;;  %v318_v31 = vmul.f32 %v304_v58, %v643_v35 }
 0x101   :  { %v319_v17 = vmul.f32 %v304_v58, %v664_v53  ;;  %v320_v20 = vmul.f32 %v304_v58, %v188_v6 }
 0x102   :  { %v322_v8 = vadd.f32 %v321_v7, %v305_v60  ;;  %v323_v25 = vadd.f32 %v321_v7, %v306_v61  ;;  %v324_v9 = vadd.f32 %v321_v7, %v307_v62  ;;  %v325_v43 = vadd.f32 %v321_v7, %v308_v63 }
 0x103   :  { %v326_v10 = vadd.f32 %v321_v7, %v309_v0  ;;  %v327_v19 = vadd.f32 %v321_v7, %v310_v1  ;;  %v328_v11 = vadd.f32 %v321_v7, %v311_v2  ;;  %v329_v23 = vadd.f32 %v321_v7, %v312_v3 }
 0x104   :  { %v330_v12 = vadd.f32 %v321_v7, %v313_v4  ;;  %v331_v39 = vadd.f32 %v321_v7, %v314_v5  ;;  %v332_v13 = vadd.f32 %v321_v7, %v315_v16  ;;  %v333_v57 = vadd.f32 %v321_v7, %v316_v18 }
 0x105   :  { %v334_v14 = vadd.f32 %v321_v7, %v317_v21  ;;  %v335_v15 = vadd.f32 %v321_v7, %v318_v31  ;;  %v336_v22 = vadd.f32 %v321_v7, %v319_v17  ;;  %v337_v24 = vadd.f32 %v321_v7, %v320_v20 }
 0x106   :  { %v338_v35 = vmax.f32 %v322_v8, 0.0  ;;  %v339_v26 = vmax.f32 %v323_v25, 0.0  ;;  %v340_v53 = vmax.f32 %v324_v9, 0.0  ;;  %v341_v6 = vmax.f32 %v325_v43, 0.0 }
 0x107   :  { %v342_v27 = vmax.f32 %v326_v10, 0.0  ;;  %v343_v28 = vmax.f32 %v327_v19, 0.0  ;;  %v344_v29 = vmax.f32 %v328_v11, 0.0  ;;  %v345_v30 = vmax.f32 %v329_v23, 0.0 }
 0x108   :  { %v346_v32 = vmax.f32 %v330_v12, 0.0  ;;  %v347_v33 = vmax.f32 %v331_v39, 0.0  ;;  %v348_v34 = vmax.f32 %v332_v13, 0.0  ;;  %v349_v36 = vmax.f32 %v333_v57, 0.0 }
 0x109   :  { %v350_v37 = vmax.f32 %v334_v14, 0.0  ;;  %v351_v38 = vmax.f32 %v335_v15, 0.0  ;;  %v473_v40 = vpack.c.bf16 %v339_v26, %v338_v35  ;;  %v478_v41 = vpack.c.bf16 %v341_v6, %v340_v53 }
 0x10a   :  { %v483_v42 = vpack.c.bf16 %v343_v28, %v342_v27  ;;  %v352_v44 = vmax.f32 %v336_v22, 0.0  ;;  %v353_v45 = vmax.f32 %v337_v24, 0.0  ;;  %v488_v46 = vpack.c.bf16 %v345_v30, %v344_v29 }
 0x10b   :  { %474 = vst [vmem:[%s734_s3] sm:$0xff] %v473_v40   ;;  %v493_v47 = vpack.c.bf16 %v347_v33, %v346_v32  ;;  %v498_v48 = vpack.c.bf16 %v349_v36, %v348_v34  ;;  %v503_v49 = vpack.c.bf16 %v351_v38, %v350_v37 }
 0x10c   :  { %510 = vst [vmem:[%s734_s3 + $0x8] sm:$0xff] %v478_v41   ;;  %v508_v50 = vpack.c.bf16 %v353_v45, %v352_v44 }
 0x10d   :  { %511 = vst [vmem:[%s734_s3 + $0x10] sm:$0xff] %v483_v42  }
 0x10e   :  { %512 = vst [vmem:[%s734_s3 + $0x18] sm:$0xff] %v488_v46  }
 0x10f   :  { %513 = vst [vmem:[%s734_s3 + $0x20] sm:$0xff] %v493_v47  }
 0x110   :  { %514 = vst [vmem:[%s734_s3 + $0x28] sm:$0xff] %v498_v48  }
 0x111   :  { %515 = vst [vmem:[%s734_s3 + $0x30] sm:$0xff] %v503_v49  }
 0x112   :  { %516 = vst [vmem:[%s734_s3 + $0x38] sm:$0xff] %v508_v50  }

// kernel: _lambda_.7
= control target key start
LH: loop header
LB: loop body
LE: loop exit
PB: predicated region body
PF: predicated region fallthrough
CT: control target
= control target key end

     0   :  { %s862_s1 = inlined_call_operand.vmem [shape: bf16[512,128], index: 1, kind: input, shape index: {}]   ;;  %s863_s0 = inlined_call_operand.vmem [shape: bf16[32,512], index: 0, kind: input, shape index: {}]   ;;  %s864_s2 = inlined_call_operand.vmem [shape: f32[2,128], index: 2, kind: input, shape index: {}]   ;;  %s865_s3 = inlined_call_operand.vmem [shape: bf16[32,128], index: 3, kind: output, shape index: {}]  }
   0x1   :  { %v648_v0 = vld [vmem:[%s862_s1 + $0x38] sm:$0xff]  ;;  %v647_v4 = vld [vmem:[%s862_s1 + $0x30] sm:$0xff]  ;;  %v646_v8 = vld [vmem:[%s862_s1 + $0x28] sm:$0xff] }
   0x2   :  { %v656_v1 = vld [vmem:[%s862_s1 + $0x78] sm:$0xff]  ;;  %318 = vmatpush.bf16.msra.mxu0 %v648_v0  ;;  %v655_v5 = vld [vmem:[%s862_s1 + $0x70] sm:$0xff]  ;;  %v654_v9 = vld [vmem:[%s862_s1 + $0x68] sm:$0xff] }
   0x3   :  { %v664_v2 = vld [vmem:[%s862_s1 + $0xb8] sm:$0xff]  ;;  %337 = vmatpush.bf16.msra.mxu1 %v656_v1  ;;  %v663_v6 = vld [vmem:[%s862_s1 + $0xb0] sm:$0xff]  ;;  %v662_v10 = vld [vmem:[%s862_s1 + $0xa8] sm:$0xff] }
   0x4   :  { %v672_v3 = vld [vmem:[%s862_s1 + $0xf8] sm:$0xff]  ;;  %356 = vmatpush.bf16.msra.mxu2 %v664_v2  ;;  %v671_v7 = vld [vmem:[%s862_s1 + $0xf0] sm:$0xff]  ;;  %v670_v11 = vld [vmem:[%s862_s1 + $0xe8] sm:$0xff] }
   0x5   :  { %375 = vmatpush.bf16.msra.mxu3 %v672_v3  ;;  %v645_v12 = vld [vmem:[%s862_s1 + $0x20] sm:$0xff]  ;;  %v644_v16 = vld [vmem:[%s862_s1 + $0x18] sm:$0xff]  ;;  %v643_v20 = vld [vmem:[%s862_s1 + $0x10] sm:$0xff] }
   0x6   :  { %319 = vmatpush.bf16.msra.mxu0 %v647_v4  ;;  %v653_v13 = vld [vmem:[%s862_s1 + $0x60] sm:$0xff]  ;;  %v652_v17 = vld [vmem:[%s862_s1 + $0x58] sm:$0xff]  ;;  %v651_v21 = vld [vmem:[%s862_s1 + $0x50] sm:$0xff] }
   0x7   :  { %338 = vmatpush.bf16.msra.mxu1 %v655_v5  ;;  %v661_v14 = vld [vmem:[%s862_s1 + $0xa0] sm:$0xff]  ;;  %v660_v18 = vld [vmem:[%s862_s1 + $0x98] sm:$0xff]  ;;  %v659_v22 = vld [vmem:[%s862_s1 + $0x90] sm:$0xff] }
   0x8   :  { %357 = vmatpush.bf16.msra.mxu2 %v663_v6  ;;  %v669_v15 = vld [vmem:[%s862_s1 + $0xe0] sm:$0xff]  ;;  %v668_v19 = vld [vmem:[%s862_s1 + $0xd8] sm:$0xff]  ;;  %v667_v23 = vld [vmem:[%s862_s1 + $0xd0] sm:$0xff] }
   0x9   :  { %376 = vmatpush.bf16.msra.mxu3 %v671_v7  ;;  %v642_v24 = vld [vmem:[%s862_s1 + $0x8] sm:$0xff]  ;;  %v641_v28 = vld [vmem:[%s862_s1] sm:$0xff]  ;;  %v635_v33 = vld [vmem:[%s863_s0 + $0xc] sm:$0xf0] }
   0xa   :  { %320 = vmatpush.bf16.msra.mxu0 %v646_v8  ;;  %v650_v25 = vld [vmem:[%s862_s1 + $0x48] sm:$0xff]  ;;  %v649_v29 = vld [vmem:[%s862_s1 + $0x40] sm:$0xff]  ;;  %v477_v35 = vld [vmem:[%s863_s0 + $0x10] sm:$0xf0] }
   0xb   :  { %339 = vmatpush.bf16.msra.mxu1 %v654_v9  ;;  %v658_v26 = vld [vmem:[%s862_s1 + $0x88] sm:$0xff]  ;;  %v657_v30 = vld [vmem:[%s862_s1 + $0x80] sm:$0xff]  ;;  %v636_v37 = vld [vmem:[%s863_s0 + $0x14] sm:$0xf0] }
   0xc   :  { %358 = vmatpush.bf16.msra.mxu2 %v662_v10  ;;  %v666_v27 = vld [vmem:[%s862_s1 + $0xc8] sm:$0xff]  ;;  %v665_v31 = vld [vmem:[%s862_s1 + $0xc0] sm:$0xff]  ;;  %v485_v39 = vld [vmem:[%s863_s0 + $0x18] sm:$0xf0] }
   0xd   :  { %377 = vmatpush.bf16.msra.mxu3 %v670_v11  ;;  %v475_v32 = vld [vmem:[%s863_s0] sm:$0xf]  ;;  %v633_v34 = vld [vmem:[%s863_s0 + $0x4] sm:$0xf]  ;;  %v483_v36 = vld [vmem:[%s863_s0 + $0x8] sm:$0xf] }
   0xe   :  { %321 = vmatpush.bf16.msra.mxu0 %v645_v12  ;;  %v634_v38 = vld [vmem:[%s863_s0 + $0xc] sm:$0xf]  ;;  %v476_v40 = vor.u32 %v635_v33, %v475_v32  ;;  %v480_v41 = vor.u32 %v633_v34, %v477_v35  ;;  %v484_v42 = vor.u32 %v636_v37, %v483_v36  ;;  %v491_v44 = vld [vmem:[%s863_s0 + $0x20] sm:$0xf]  ;;  %v639_v45 = vld [vmem:[%s863_s0 + $0x2c] sm:$0xf0] }
   0xf   :  { %340 = vmatpush.bf16.msra.mxu1 %v653_v13  ;;  %v488_v43 = vor.u32 %v634_v38, %v485_v39  ;;  %v637_v46 = vld [vmem:[%s863_s0 + $0x24] sm:$0xf]  ;;  %v493_v47 = vld [vmem:[%s863_s0 + $0x30] sm:$0xf0]  ;;  %v499_v48 = vld [vmem:[%s863_s0 + $0x28] sm:$0xf]  ;;  %v492_v52 = vor.u32 %v639_v45, %v491_v44 }
  0x10   :  { %359 = vmatpush.bf16.msra.mxu2 %v661_v14  ;;  %v640_v49 = vld [vmem:[%s863_s0 + $0x34] sm:$0xf0]  ;;  %v638_v50 = vld [vmem:[%s863_s0 + $0x2c] sm:$0xf]  ;;  %v501_v51 = vld [vmem:[%s863_s0 + $0x38] sm:$0xf0]  ;;  %v496_v53 = vor.u32 %v637_v46, %v493_v47 }
  0x11   :  { %378 = vmatpush.bf16.msra.mxu3 %v669_v15  ;;  %v500_v54 = vor.u32 %v640_v49, %v499_v48  ;;  %v504_v55 = vor.u32 %v638_v50, %v501_v51 }
  0x12   :  { %322 = vmatpush.bf16.msra.mxu0 %v644_v16 }
  0x13   :  { %341 = vmatpush.bf16.msra.mxu1 %v652_v17 }
  0x14   :  { %360 = vmatpush.bf16.msra.mxu2 %v660_v18 }
  0x15   :  { %379 = vmatpush.bf16.msra.mxu3 %v668_v19 }
  0x16   :  { %323 = vmatpush.bf16.msra.mxu0 %v643_v20 }
  0x17   :  { %342 = vmatpush.bf16.msra.mxu1 %v651_v21 }
  0x18   :  { %361 = vmatpush.bf16.msra.mxu2 %v659_v22 }
  0x19   :  { %380 = vmatpush.bf16.msra.mxu3 %v667_v23 }
  0x1a   :  { %324 = vmatpush.bf16.msra.mxu0 %v642_v24 }
  0x1b   :  { %343 = vmatpush.bf16.msra.mxu1 %v650_v25 }
  0x1c   :  { %362 = vmatpush.bf16.msra.mxu2 %v658_v26 }
  0x1d   :  { %381 = vmatpush.bf16.msra.mxu3 %v666_v27 }
  0x1e   :  { %325 = vmatpush.bf16.msra.mxu0 %v641_v28 }
  0x1f   :  { %344 = vmatpush.bf16.msra.mxu1 %v649_v29 }
  0x20   :  { %363 = vmatpush.bf16.msra.mxu2 %v657_v30 }
  0x21   :  { %382 = vmatpush.bf16.msra.mxu3 %v665_v31  ;;  %326 = vmatmul.bf16.vlgmr.msra.gmra.mxu0 %v476_v40 }
  0x22   :  { %345 = vmatmul.bf16.vlgmr.msra.gmra.mxu1 %v480_v41 }
  0x23   :  { %364 = vmatmul.bf16.vlgmr.msra.gmra.mxu2 %v484_v42 }
  0x24   :  { %383 = vmatmul.bf16.vlgmr.msra.gmra.mxu3 %v488_v43 }
  0x31   :  { %331 = vmatmul.bf16.gmra.mxu0 %v492_v52 }
  0x32   :  { %350 = vmatmul.bf16.gmra.mxu1 %v496_v53 }
  0x33   :  { %369 = vmatmul.bf16.gmra.mxu2 %v500_v54  ;;  %v438_v54 = vld [vmem:[%s864_s2] sm:$0x1] }
  0x34   :  { %388 = vmatmul.bf16.gmra.mxu3 %v504_v55 }
  0x9e   :  { %v327_v56 = vpop.f32.mrf.mxu0 }
  0x9f   :  { %v346_v57 = vpop.f32.mrf.mxu1 }
  0xa0   :  { %v347_v2 = vadd.f32 %v346_v57, %v327_v56  ;;  %v440_v57 = vld [vmem:[%s864_s2 + $0x1] sm:$0x1] }
  0xa6   :  { %v365_v58 = vpop.f32.mrf.mxu2  ;;  %v329_v60 = vpop.f32.mrf.mxu0 }
  0xa7   :  { %v384_v59 = vpop.f32.mrf.mxu3  ;;  %v348_v61 = vpop.f32.mrf.mxu1  ;;  %v366_v8 = vadd.f32 %v365_v58, %v347_v2 }
  0xa8   :  { %v349_v3 = vadd.f32 %v348_v61, %v329_v60 }
  0xa9   :  { %v385_v13 = vadd.f32 %v384_v59, %v366_v8 }
  0xab   :  { %v408_v18 = vmul.f32 %v385_v13, %v385_v13 }
  0xae   :  { %v367_v62 = vpop.f32.mrf.mxu2  ;;  %v332_v0 = vpop.f32.mrf.mxu0 }
  0xaf   :  { %v386_v63 = vpop.f32.mrf.mxu3  ;;  %v351_v1 = vpop.f32.mrf.mxu1  ;;  %v368_v5 = vadd.f32 %v367_v62, %v349_v3 }
  0xb0   :  { %v352_v4 = vadd.f32 %v351_v1, %v332_v0 }
  0xb1   :  { %v387_v10 = vadd.f32 %v386_v63, %v368_v5 }
  0xb3   :  { %v409_v15 = vmul.f32 %v387_v10, %v387_v10  ;;  %v398_v19 = vadd.f32 %v387_v10, %v385_v13 }
  0xb5   :  { %v412_v23 = vadd.f32 %v409_v15, %v408_v18 }
  0xb6   :  { %v370_v6 = vpop.f32.mrf.mxu2  ;;  %v334_v11 = vpop.f32.mrf.mxu0 }
  0xb7   :  { %v389_v7 = vpop.f32.mrf.mxu3  ;;  %v371_v9 = vadd.f32 %v370_v6, %v352_v4  ;;  %v353_v12 = vpop.f32.mrf.mxu1 }
  0xb8   :  { %v354_v16 = vadd.f32 %v353_v12, %v334_v11 }
  0xb9   :  { %v390_v14 = vadd.f32 %v389_v7, %v371_v9 }
  0xbb   :  { %v410_v20 = vmul.f32 %v390_v14, %v390_v14  ;;  %v399_v24 = vadd.f32 %v398_v19, %v390_v14 }
  0xbd   :  { %v413_v26 = vadd.f32 %v412_v23, %v410_v20 }
  0xbe   :  { %v372_v17 = vpop.f32.mrf.mxu2 }
  0xbf   :  { %v373_v21 = vadd.f32 %v372_v17, %v354_v16  ;;  %v391_v22 = vpop.f32.mrf.mxu3 }
  0xc1   :  { %v392_v25 = vadd.f32 %v391_v22, %v373_v21 }
  0xc3   :  { %v400_v27 = vadd.f32 %v399_v24, %v392_v25  ;;  %v411_v28 = vmul.f32 %v392_v25, %v392_v25 }
  0xc5   :  { %v401_v29 = vrot.slane %v400_v27, 4  ;;  %v414_v30 = vadd.f32 %v413_v26, %v411_v28 }
  0xc7   :  { %v402_v31 = vadd.f32 %v401_v29, %v400_v27  ;;  %v415_v32 = vrot.slane %v414_v30, 4 }
  0xc9   :  { %v403_v33 = vrot.slane %v402_v31, 2  ;;  %v416_v34 = vadd.f32 %v415_v32, %v414_v30 }
  0xcb   :  { %v404_v35 = vadd.f32 %v403_v33, %v402_v31  ;;  %v417_v36 = vrot.slane %v416_v34, 2 }
  0xcd   :  { %v405_v37 = vrot.slane %v404_v35, 1  ;;  %v418_v38 = vadd.f32 %v417_v36, %v416_v34 }
  0xcf   :  { %v406_v39 = vadd.f32 %v405_v37, %v404_v35  ;;  %v419_v40 = vrot.slane %v418_v38, 1 }
  0xd1   :  { %v420_v41 = vadd.f32 %v419_v40, %v418_v38  ;;  %v422_v42 = vmul.f32 0.03125, %v406_v39 }
  0xd3   :  { %v423_v43 = vmul.f32 0.03125, %v420_v41  ;;  %v424_v44 = vmul.f32 %v422_v42, %v422_v42 }
  0xd5   :  { %v425_v45 = vsub.f32 %v423_v43, %v424_v44 }
  0xd7   :  { %v426_v46 = vmax.f32 %v425_v45, 0.0 }
  0xd9   :  { %v427_v47 = vadd.f32 1e-05, %v426_v46 }
  0xdb   :  { %684 = vrsqrt.f32 %v427_v47  ;;  %vm434_vm1 = vweird.f32 %v427_v47 }
  0xe1   :  { %v685_v48 = vpop.eup %684 }
  0xe2   :  { %v429_v49 = vmul.f32 %v685_v48, %v427_v47  ;;  %vm435_vm0 = vweird.f32 %v685_v48 }
  0xe3   :  { %vm436_vm2 = vmor %vm434_vm1, %vm435_vm0 }
  0xe4   :  { %v430_v50 = vmul.f32 %v685_v48, %v429_v49 }
  0xe6   :  { %v431_v51 = vmul.f32 0.5, %v430_v50 }
  0xe8   :  { %v432_v52 = vsub.f32 1.5, %v431_v51 }
  0xea   :  { %v433_v53 = vmul.f32 %v685_v48, %v432_v52 }
  0xec   :  { %v437_v55 = vsel %vm436_vm2, %v685_v48, %v433_v53 }
  0xed   :  { %v439_v56 = vmul.f32 %v438_v54, %v437_v55 }
  0xef   :  { %v441_v58 = vmul.f32 %v439_v56, %v422_v42  ;;  %v447_v59 = vperm.slane %v439_v56, 0 }
  0xf1   :  { %v442_v60 = vsub.f32 %v440_v57, %v441_v58  ;;  %v448_v61 = vmul.f32 %v447_v59, %v385_v13  ;;  %v449_v62 = vmul.f32 %v447_v59, %v387_v10  ;;  %v450_v63 = vmul.f32 %v447_v59, %v390_v14 }
  0xf2   :  { %v451_v0 = vmul.f32 %v447_v59, %v392_v25 }
  0xf3   :  { %v452_v1 = vperm.slane %v442_v60, 0 }
  0xf5   :  { %v453_v2 = vadd.f32 %v452_v1, %v448_v61  ;;  %v454_v3 = vadd.f32 %v452_v1, %v449_v62  ;;  %v455_v4 = vadd.f32 %v452_v1, %v450_v63  ;;  %v456_v5 = vadd.f32 %v452_v1, %v451_v0 }
  0xf7   :  { %v457_v6 = vmax.f32 %v453_v2, 0.0  ;;  %v458_v7 = vmax.f32 %v454_v3, 0.0  ;;  %v459_v8 = vmax.f32 %v455_v4, 0.0  ;;  %v460_v9 = vmax.f32 %v456_v5, 0.0 }
  0xf9   :  { %v676_v11 = vpack.c.bf16 %v458_v7, %v457_v6  ;;  %v681_v12 = vpack.c.bf16 %v460_v9, %v459_v8 }
  0xfb   :  { %677 = vst [vmem:[%s865_s3] sm:$0xff] %v676_v11  }
  0xfc   :  { %683 = vst [vmem:[%s865_s3 + $0x8] sm:$0xff] %v681_v12  }

// kernel: _lambda_.8
= control target key start
LH: loop header
LB: loop body
LE: loop exit
PB: predicated region body
PF: predicated region fallthrough
CT: control target
= control target key end

     0   :  { %s447_s1 = inlined_call_operand.vmem [shape: bf16[256,128], index: 1, kind: input, shape index: {}]   ;;  %s448_s2 = inlined_call_operand.vmem [shape: f32[2,128], index: 2, kind: input, shape index: {}]   ;;  %s449_s0 = inlined_call_operand.vmem [shape: bf16[32,256], index: 0, kind: input, shape index: {}]   ;;  %s450_s3 = inlined_call_operand.vmem [shape: bf16[32,128], index: 3, kind: output, shape index: {}]  }
   0x1   :  { %v309_v0 = vld [vmem:[%s447_s1 + $0x38] sm:$0xff]  ;;  %v308_v2 = vld [vmem:[%s447_s1 + $0x30] sm:$0xff]  ;;  %v307_v4 = vld [vmem:[%s447_s1 + $0x28] sm:$0xff] }
   0x2   :  { %v317_v1 = vld [vmem:[%s447_s1 + $0x78] sm:$0xff]  ;;  %168 = vmatpush.bf16.msra.mxu0 %v309_v0  ;;  %329 = vmatpush.bf16.msra.mxu2 %v309_v0  ;;  %v316_v3 = vld [vmem:[%s447_s1 + $0x70] sm:$0xff]  ;;  %v315_v5 = vld [vmem:[%s447_s1 + $0x68] sm:$0xff] }
   0x3   :  { %187 = vmatpush.bf16.msra.mxu1 %v317_v1  ;;  %337 = vmatpush.bf16.msra.mxu3 %v317_v1  ;;  %v306_v6 = vld [vmem:[%s447_s1 + $0x20] sm:$0xff]  ;;  %v305_v8 = vld [vmem:[%s447_s1 + $0x18] sm:$0xff]  ;;  %v304_v10 = vld [vmem:[%s447_s1 + $0x10] sm:$0xff] }
   0x4   :  { %v314_v7 = vld [vmem:[%s447_s1 + $0x60] sm:$0xff]  ;;  %v313_v9 = vld [vmem:[%s447_s1 + $0x58] sm:$0xff]  ;;  %v312_v11 = vld [vmem:[%s447_s1 + $0x50] sm:$0xff] }
   0x5   :  { %v303_v12 = vld [vmem:[%s447_s1 + $0x8] sm:$0xff]  ;;  %v302_v14 = vld [vmem:[%s447_s1] sm:$0xff]  ;;  %v228_v18 = vld [vmem:[%s449_s0 + $0x10] sm:$0xf] }
   0x6   :  { %169 = vmatpush.bf16.msra.mxu0 %v308_v2  ;;  %330 = vmatpush.bf16.msra.mxu2 %v308_v2  ;;  %v311_v13 = vld [vmem:[%s447_s1 + $0x48] sm:$0xff]  ;;  %v310_v15 = vld [vmem:[%s447_s1 + $0x40] sm:$0xff]  ;;  %v301_v19 = vld [vmem:[%s449_s0 + $0x14] sm:$0xf0] }
   0x7   :  { %188 = vmatpush.bf16.msra.mxu1 %v316_v3  ;;  %338 = vmatpush.bf16.msra.mxu3 %v316_v3  ;;  %v220_v16 = vld [vmem:[%s449_s0] sm:$0xf]  ;;  %v299_v17 = vld [vmem:[%s449_s0 + $0x4] sm:$0xf0]  ;;  %v298_v20 = vld [vmem:[%s449_s0 + $0x4] sm:$0xf]  ;;  %v229_v25 = vor.u32 %v301_v19, %v228_v18 }
   0x8   :  { %v222_v21 = vld [vmem:[%s449_s0 + $0x8] sm:$0xf0]  ;;  %v300_v22 = vld [vmem:[%s449_s0 + $0x14] sm:$0xf]  ;;  %v230_v23 = vld [vmem:[%s449_s0 + $0x18] sm:$0xf0]  ;;  %v221_v24 = vor.u32 %v299_v17, %v220_v16 }
   0x9   :  { %v225_v26 = vor.u32 %v298_v20, %v222_v21  ;;  %v233_v27 = vor.u32 %v300_v22, %v230_v23  ;;  %v345_v30 = vld [vmem:[%s448_s2 + $0x1] ss:$0 sm:$0xff] }
   0xa   :  { %170 = vmatpush.bf16.msra.mxu0 %v307_v4  ;;  %331 = vmatpush.bf16.msra.mxu2 %v307_v4 }
   0xb   :  { %189 = vmatpush.bf16.msra.mxu1 %v315_v5  ;;  %339 = vmatpush.bf16.msra.mxu3 %v315_v5 }
   0xe   :  { %171 = vmatpush.bf16.msra.mxu0 %v306_v6  ;;  %332 = vmatpush.bf16.msra.mxu2 %v306_v6 }
   0xf   :  { %190 = vmatpush.bf16.msra.mxu1 %v314_v7  ;;  %340 = vmatpush.bf16.msra.mxu3 %v314_v7 }
  0x12   :  { %172 = vmatpush.bf16.msra.mxu0 %v305_v8  ;;  %333 = vmatpush.bf16.msra.mxu2 %v305_v8 }
  0x13   :  { %191 = vmatpush.bf16.msra.mxu1 %v313_v9  ;;  %341 = vmatpush.bf16.msra.mxu3 %v313_v9 }
  0x16   :  { %173 = vmatpush.bf16.msra.mxu0 %v304_v10  ;;  %334 = vmatpush.bf16.msra.mxu2 %v304_v10 }
  0x17   :  { %192 = vmatpush.bf16.msra.mxu1 %v312_v11  ;;  %342 = vmatpush.bf16.msra.mxu3 %v312_v11 }
  0x1a   :  { %174 = vmatpush.bf16.msra.mxu0 %v303_v12  ;;  %335 = vmatpush.bf16.msra.mxu2 %v303_v12 }
  0x1b   :  { %193 = vmatpush.bf16.msra.mxu1 %v311_v13  ;;  %343 = vmatpush.bf16.msra.mxu3 %v311_v13 }
  0x1e   :  { %175 = vmatpush.bf16.msra.mxu0 %v302_v14  ;;  %336 = vmatpush.bf16.msra.mxu2 %v302_v14 }
  0x1f   :  { %194 = vmatpush.bf16.msra.mxu1 %v310_v15  ;;  %344 = vmatpush.bf16.msra.mxu3 %v310_v15 }
  0x21   :  { %176 = vmatmul.bf16.vlgmr.msra.gmra.mxu0 %v221_v24  ;;  %181 = vmatmul.bf16.vlgmr.msra.gmra.mxu2 %v229_v25 }
  0x22   :  { %195 = vmatmul.bf16.vlgmr.msra.gmra.mxu1 %v225_v26  ;;  %200 = vmatmul.bf16.vlgmr.msra.gmra.mxu3 %v233_v27 }
  0x9e   :  { %v177_v28 = vpop.f32.mrf.mxu0 }
  0x9f   :  { %v196_v29 = vpop.f32.mrf.mxu1  ;;  %v178_v32 = vadd.f32 %v345_v30, %v177_v28 }
  0xa1   :  { %v197_v37 = vadd.f32 %v196_v29, %v178_v32 }
  0xa4   :  { %v182_v31 = vpop.f32.mrf.mxu2 }
  0xa5   :  { %v201_v33 = vpop.f32.mrf.mxu3  ;;  %v183_v39 = vadd.f32 %v345_v30, %v182_v31 }
  0xa6   :  { %v179_v34 = vpop.f32.mrf.mxu0 }
  0xa7   :  { %v180_v35 = vadd.f32 %v345_v30, %v179_v34  ;;  %v198_v36 = vpop.f32.mrf.mxu1  ;;  %v202_v44 = vadd.f32 %v201_v33, %v183_v39 }
  0xa9   :  { %v199_v38 = vadd.f32 %v198_v36, %v180_v35 }
  0xab   :  { %v321_v40 = vpack.c.bf16 %v199_v38, %v197_v37 }
  0xac   :  { %v184_v41 = vpop.f32.mrf.mxu2 }
  0xad   :  { %322 = vst [vmem:[%s450_s3] sm:$0xff] %v321_v40   ;;  %v185_v42 = vadd.f32 %v345_v30, %v184_v41  ;;  %v203_v43 = vpop.f32.mrf.mxu3 }
  0xaf   :  { %v204_v45 = vadd.f32 %v203_v43, %v185_v42 }
  0xb1   :  { %v326_v46 = vpack.c.bf16 %v204_v45, %v202_v44 }
  0xb3   :  { %328 = vst [vmem:[%s450_s3 + $0x8] sm:$0xff] %v326_v46  }

// kernel: _lambda_.9
= control target key start
LH: loop header
LB: loop body
LE: loop exit
PB: predicated region body
PF: predicated region fallthrough
CT: control target
= control target key end

     0   :  { %s1041_s1 = inlined_call_operand.vmem [shape: bf16[128,512], index: 1, kind: input, shape index: {}]   ;;  %s1042_s0 = inlined_call_operand.vmem [shape: bf16[32,128], index: 0, kind: input, shape index: {}]   ;;  %s1043_s2 = inlined_call_operand.vmem [shape: f32[2,128], index: 2, kind: input, shape index: {}]   ;;  %s1044_s3 = inlined_call_operand.vmem [shape: bf16[32,512], index: 3, kind: output, shape index: {}]  }
   0x1   :  { %v647_v0 = vld [vmem:[%s1041_s1 + $0xe0] sm:$0xf]  ;;  %v693_v1 = vld [vmem:[%s1041_s1 + $0xec] sm:$0xf0]  ;;  %v691_v2 = vld [vmem:[%s1041_s1 + $0xe4] sm:$0xf] }
   0x2   :  { %v648_v3 = vor.u32 %v693_v1, %v647_v0  ;;  %v649_v4 = vld [vmem:[%s1041_s1 + $0xf0] sm:$0xf0]  ;;  %v655_v5 = vld [vmem:[%s1041_s1 + $0xe8] sm:$0xf]  ;;  %v694_v6 = vld [vmem:[%s1041_s1 + $0xf4] sm:$0xf0] }
   0x3   :  { %v652_v7 = vor.u32 %v691_v2, %v649_v4  ;;  %v656_v8 = vor.u32 %v694_v6, %v655_v5  ;;  %v692_v9 = vld [vmem:[%s1041_s1 + $0xec] sm:$0xf]  ;;  %v657_v10 = vld [vmem:[%s1041_s1 + $0xf8] sm:$0xf0]  ;;  %v631_v11 = vld [vmem:[%s1041_s1 + $0xc0] sm:$0xf] }
   0x4   :  { %222 = vmatpush.bf16.msra.mxu0 %v648_v3  ;;  %v660_v12 = vor.u32 %v692_v9, %v657_v10  ;;  %v689_v13 = vld [vmem:[%s1041_s1 + $0xcc] sm:$0xf0]  ;;  %v687_v14 = vld [vmem:[%s1041_s1 + $0xc4] sm:$0xf]  ;;  %v633_v15 = vld [vmem:[%s1041_s1 + $0xd0] sm:$0xf0] }
   0x5   :  { %241 = vmatpush.bf16.msra.mxu1 %v652_v7  ;;  %260 = vmatpush.bf16.msra.mxu2 %v656_v8  ;;  %v632_v16 = vor.u32 %v689_v13, %v631_v11  ;;  %v636_v17 = vor.u32 %v687_v14, %v633_v15  ;;  %v639_v18 = vld [vmem:[%s1041_s1 + $0xc8] sm:$0xf]  ;;  %v690_v19 = vld [vmem:[%s1041_s1 + $0xd4] sm:$0xf0]  ;;  %v688_v20 = vld [vmem:[%s1041_s1 + $0xcc] sm:$0xf] }
   0x6   :  { %279 = vmatpush.bf16.msra.mxu3 %v660_v12  ;;  %v640_v21 = vor.u32 %v690_v19, %v639_v18  ;;  %v641_v22 = vld [vmem:[%s1041_s1 + $0xd8] sm:$0xf0]  ;;  %v615_v23 = vld [vmem:[%s1041_s1 + $0xa0] sm:$0xf]  ;;  %v685_v24 = vld [vmem:[%s1041_s1 + $0xac] sm:$0xf0] }
   0x7   :  { %v644_v25 = vor.u32 %v688_v20, %v641_v22  ;;  %v683_v26 = vld [vmem:[%s1041_s1 + $0xa4] sm:$0xf]  ;;  %v617_v27 = vld [vmem:[%s1041_s1 + $0xb0] sm:$0xf0]  ;;  %v623_v28 = vld [vmem:[%s1041_s1 + $0xa8] sm:$0xf]  ;;  %v616_v29 = vor.u32 %v685_v24, %v615_v23 }
   0x8   :  { %223 = vmatpush.bf16.msra.mxu0 %v632_v16  ;;  %v686_v30 = vld [vmem:[%s1041_s1 + $0xb4] sm:$0xf0]  ;;  %v684_v31 = vld [vmem:[%s1041_s1 + $0xac] sm:$0xf]  ;;  %v625_v32 = vld [vmem:[%s1041_s1 + $0xb8] sm:$0xf0]  ;;  %v620_v33 = vor.u32 %v683_v26, %v617_v27 }
   0x9   :  { %242 = vmatpush.bf16.msra.mxu1 %v636_v17  ;;  %261 = vmatpush.bf16.msra.mxu2 %v640_v21  ;;  %v624_v34 = vor.u32 %v686_v30, %v623_v28  ;;  %v599_v35 = vld [vmem:[%s1041_s1 + $0x80] sm:$0xf]  ;;  %v681_v36 = vld [vmem:[%s1041_s1 + $0x8c] sm:$0xf0]  ;;  %v679_v37 = vld [vmem:[%s1041_s1 + $0x84] sm:$0xf]  ;;  %v628_v38 = vor.u32 %v684_v31, %v625_v32 }
   0xa   :  { %280 = vmatpush.bf16.msra.mxu3 %v644_v25  ;;  %v601_v39 = vld [vmem:[%s1041_s1 + $0x90] sm:$0xf0]  ;;  %v607_v40 = vld [vmem:[%s1041_s1 + $0x88] sm:$0xf]  ;;  %v682_v41 = vld [vmem:[%s1041_s1 + $0x94] sm:$0xf0]  ;;  %v600_v44 = vor.u32 %v681_v36, %v599_v35 }
   0xb   :  { %v680_v42 = vld [vmem:[%s1041_s1 + $0x8c] sm:$0xf]  ;;  %v609_v43 = vld [vmem:[%s1041_s1 + $0x98] sm:$0xf0]  ;;  %v604_v45 = vor.u32 %v679_v37, %v601_v39  ;;  %v608_v46 = vor.u32 %v682_v41, %v607_v40  ;;  %v583_v47 = vld [vmem:[%s1041_s1 + $0x60] sm:$0xf] }
   0xc   :  { %224 = vmatpush.bf16.msra.mxu0 %v616_v29  ;;  %v677_v48 = vld [vmem:[%s1041_s1 + $0x6c] sm:$0xf0]  ;;  %v675_v49 = vld [vmem:[%s1041_s1 + $0x64] sm:$0xf]  ;;  %v612_v50 = vor.u32 %v680_v42, %v609_v43  ;;  %v585_v51 = vld [vmem:[%s1041_s1 + $0x70] sm:$0xf0] }
   0xd   :  { %243 = vmatpush.bf16.msra.mxu1 %v620_v33  ;;  %262 = vmatpush.bf16.msra.mxu2 %v624_v34  ;;  %v591_v52 = vld [vmem:[%s1041_s1 + $0x68] sm:$0xf]  ;;  %v678_v53 = vld [vmem:[%s1041_s1 + $0x74] sm:$0xf0]  ;;  %v676_v54 = vld [vmem:[%s1041_s1 + $0x6c] sm:$0xf]  ;;  %v584_v56 = vor.u32 %v677_v48, %v583_v47  ;;  %v588_v57 = vor.u32 %v675_v49, %v585_v51 }
   0xe   :  { %281 = vmatpush.bf16.msra.mxu3 %v628_v38  ;;  %v593_v55 = vld [vmem:[%s1041_s1 + $0x78] sm:$0xf0]  ;;  %v592_v58 = vor.u32 %v678_v53, %v591_v52  ;;  %v567_v59 = vld [vmem:[%s1041_s1 + $0x40] sm:$0xf]  ;;  %v673_v60 = vld [vmem:[%s1041_s1 + $0x4c] sm:$0xf0] }
   0xf   :  { %v671_v61 = vld [vmem:[%s1041_s1 + $0x44] sm:$0xf]  ;;  %v596_v62 = vor.u32 %v676_v54, %v593_v55  ;;  %v569_v63 = vld [vmem:[%s1041_s1 + $0x50] sm:$0xf0]  ;;  %v575_v0 = vld [vmem:[%s1041_s1 + $0x48] sm:$0xf]  ;;  %v568_v4 = vor.u32 %v673_v60, %v567_v59 }
  0x10   :  { %225 = vmatpush.bf16.msra.mxu0 %v600_v44  ;;  %v674_v1 = vld [vmem:[%s1041_s1 + $0x54] sm:$0xf0]  ;;  %v672_v2 = vld [vmem:[%s1041_s1 + $0x4c] sm:$0xf]  ;;  %v577_v3 = vld [vmem:[%s1041_s1 + $0x58] sm:$0xf0]  ;;  %v572_v5 = vor.u32 %v671_v61, %v569_v63 }
  0x11   :  { %244 = vmatpush.bf16.msra.mxu1 %v604_v45  ;;  %263 = vmatpush.bf16.msra.mxu2 %v608_v46  ;;  %v576_v6 = vor.u32 %v674_v1, %v575_v0  ;;  %v551_v7 = vld [vmem:[%s1041_s1 + $0x20] sm:$0xf]  ;;  %v669_v8 = vld [vmem:[%s1041_s1 + $0x2c] sm:$0xf0]  ;;  %v667_v9 = vld [vmem:[%s1041_s1 + $0x24] sm:$0xf]  ;;  %v580_v10 = vor.u32 %v672_v2, %v577_v3 }
  0x12   :  { %282 = vmatpush.bf16.msra.mxu3 %v612_v50  ;;  %v553_v11 = vld [vmem:[%s1041_s1 + $0x30] sm:$0xf0]  ;;  %v559_v12 = vld [vmem:[%s1041_s1 + $0x28] sm:$0xf]  ;;  %v670_v13 = vld [vmem:[%s1041_s1 + $0x34] sm:$0xf0]  ;;  %v552_v16 = vor.u32 %v669_v8, %v551_v7 }
  0x13   :  { %v668_v14 = vld [vmem:[%s1041_s1 + $0x2c] sm:$0xf]  ;;  %v561_v15 = vld [vmem:[%s1041_s1 + $0x38] sm:$0xf0]  ;;  %v556_v17 = vor.u32 %v667_v9, %v553_v11  ;;  %v560_v18 = vor.u32 %v670_v13, %v559_v12  ;;  %v535_v19 = vld [vmem:[%s1041_s1] sm:$0xf] }
  0x14   :  { %226 = vmatpush.bf16.msra.mxu0 %v584_v56  ;;  %v665_v20 = vld [vmem:[%s1041_s1 + $0xc] sm:$0xf0]  ;;  %v663_v21 = vld [vmem:[%s1041_s1 + $0x4] sm:$0xf]  ;;  %v564_v22 = vor.u32 %v668_v14, %v561_v15  ;;  %v537_v23 = vld [vmem:[%s1041_s1 + $0x10] sm:$0xf0] }
  0x15   :  { %245 = vmatpush.bf16.msra.mxu1 %v588_v57  ;;  %264 = vmatpush.bf16.msra.mxu2 %v592_v58  ;;  %v543_v24 = vld [vmem:[%s1041_s1 + $0x8] sm:$0xf]  ;;  %v666_v25 = vld [vmem:[%s1041_s1 + $0x14] sm:$0xf0]  ;;  %v664_v26 = vld [vmem:[%s1041_s1 + $0xc] sm:$0xf]  ;;  %v536_v28 = vor.u32 %v665_v20, %v535_v19  ;;  %v540_v29 = vor.u32 %v663_v21, %v537_v23 }
  0x16   :  { %283 = vmatpush.bf16.msra.mxu3 %v596_v62  ;;  %v545_v27 = vld [vmem:[%s1041_s1 + $0x18] sm:$0xf0]  ;;  %v544_v30 = vor.u32 %v666_v25, %v543_v24  ;;  %v661_v32 = vld [vmem:[%s1042_s0] sm:$0xff]  ;;  %v662_v33 = vld [vmem:[%s1042_s0 + $0x8] sm:$0xff] }
  0x17   :  { %v548_v31 = vor.u32 %v664_v26, %v545_v27 }
  0x18   :  { %227 = vmatpush.bf16.msra.mxu0 %v568_v4 }
  0x19   :  { %246 = vmatpush.bf16.msra.mxu1 %v572_v5  ;;  %265 = vmatpush.bf16.msra.mxu2 %v576_v6 }
  0x1a   :  { %284 = vmatpush.bf16.msra.mxu3 %v580_v10 }
  0x1c   :  { %228 = vmatpush.bf16.msra.mxu0 %v552_v16 }
  0x1d   :  { %247 = vmatpush.bf16.msra.mxu1 %v556_v17  ;;  %266 = vmatpush.bf16.msra.mxu2 %v560_v18 }
  0x1e   :  { %285 = vmatpush.bf16.msra.mxu3 %v564_v22 }
  0x20   :  { %229 = vmatpush.bf16.msra.mxu0 %v536_v28 }
  0x21   :  { %248 = vmatpush.bf16.msra.mxu1 %v540_v29  ;;  %267 = vmatpush.bf16.msra.mxu2 %v544_v30 }
  0x22   :  { %286 = vmatpush.bf16.msra.mxu3 %v548_v31 }
  0x23   :  { %230 = vmatmul.bf16.vlgmr.msra.gmra.mxu0 %v661_v32 }
  0x24   :  { %249 = vmatmul.bf16.vlgmr.msra.gmra.mxu1 %v661_v32  ;;  %268 = vmatmul.bf16.vlgmr.msra.gmra.mxu2 %v661_v32 }
  0x25   :  { %287 = vmatmul.bf16.vlgmr.msra.gmra.mxu3 %v661_v32 }
  0x33   :  { %235 = vmatmul.bf16.gmra.mxu0 %v662_v33 }
  0x34   :  { %254 = vmatmul.bf16.gmra.mxu1 %v662_v33  ;;  %273 = vmatmul.bf16.gmra.mxu2 %v662_v33 }
  0x35   :  { %292 = vmatmul.bf16.gmra.mxu3 %v662_v33 }
  0xa0   :  { %v915_v34 = vpop.f32.mrf.mxu0 }
  0xa1   :  { %v917_v35 = vpop.f32.mrf.mxu1  ;;  %v354_v46 = vmul.f32 %v915_v34, %v915_v34 }
  0xa2   :  { %v355_v49 = vmul.f32 %v917_v35, %v917_v35 }
  0xa7   :  { %v919_v36 = vpop.f32.mrf.mxu2 }
  0xa8   :  { %v921_v37 = vpop.f32.mrf.mxu3  ;;  %v923_v38 = vpop.f32.mrf.mxu0  ;;  %v356_v55 = vmul.f32 %v919_v36, %v919_v36 }
  0xa9   :  { %v925_v39 = vpop.f32.mrf.mxu1  ;;  %v358_v44 = vmul.f32 %v923_v38, %v923_v38  ;;  %v314_v47 = vadd.f32 %v923_v38, %v915_v34  ;;  %v357_v2 = vmul.f32 %v921_v37, %v921_v37 }
  0xaa   :  { %v359_v45 = vmul.f32 %v925_v39, %v925_v39  ;;  %v323_v50 = vadd.f32 %v925_v39, %v917_v35 }
  0xab   :  { %v370_v52 = vadd.f32 %v358_v44, %v354_v46 }
  0xac   :  { %v379_v56 = vadd.f32 %v359_v45, %v355_v49 }
  0xaf   :  { %v927_v40 = vpop.f32.mrf.mxu2 }
  0xb0   :  { %v929_v41 = vpop.f32.mrf.mxu3  ;;  %v931_v42 = vpop.f32.mrf.mxu0  ;;  %v360_v57 = vmul.f32 %v927_v40, %v927_v40  ;;  %v332_v10 = vadd.f32 %v927_v40, %v919_v36 }
  0xb1   :  { %v933_v43 = vpop.f32.mrf.mxu1  ;;  %v362_v48 = vmul.f32 %v931_v42, %v931_v42  ;;  %v315_v53 = vadd.f32 %v314_v47, %v931_v42  ;;  %v361_v61 = vmul.f32 %v929_v41, %v929_v41  ;;  %v341_v11 = vadd.f32 %v929_v41, %v921_v37 }
  0xb2   :  { %v363_v51 = vmul.f32 %v933_v43, %v933_v43  ;;  %v324_v58 = vadd.f32 %v323_v50, %v933_v43  ;;  %v388_v14 = vadd.f32 %v360_v57, %v356_v55 }
  0xb3   :  { %v371_v62 = vadd.f32 %v370_v52, %v362_v48  ;;  %v397_v15 = vadd.f32 %v361_v61, %v357_v2 }
  0xb4   :  { %v380_v3 = vadd.f32 %v379_v56, %v363_v51 }
  0xb7   :  { %v952_v54 = vpop.f32.mrf.mxu2 }
  0xb8   :  { %v959_v59 = vpop.f32.mrf.mxu3  ;;  %v961_v60 = vpop.f32.mrf.mxu0  ;;  %v364_v6 = vmul.f32 %v952_v54, %v952_v54  ;;  %v333_v18 = vadd.f32 %v332_v10, %v952_v54 }
  0xb9   :  { %v316_v63 = vadd.f32 %v315_v53, %v961_v60  ;;  %v366_v0 = vmul.f32 %v961_v60, %v961_v60  ;;  %v968_v1 = vpop.f32.mrf.mxu1  ;;  %v365_v7 = vmul.f32 %v959_v59, %v959_v59  ;;  %v342_v19 = vadd.f32 %v341_v11, %v959_v59 }
  0xba   :  { %v325_v4 = vadd.f32 %v324_v58, %v968_v1  ;;  %v367_v5 = vmul.f32 %v968_v1, %v968_v1  ;;  %v389_v22 = vadd.f32 %v388_v14, %v364_v6 }
  0xbb   :  { %v317_v8 = vrot.slane %v316_v63, 4  ;;  %v372_v9 = vadd.f32 %v371_v62, %v366_v0  ;;  %v398_v23 = vadd.f32 %v397_v15, %v365_v7 }
  0xbc   :  { %v326_v12 = vrot.slane %v325_v4, 4  ;;  %v381_v13 = vadd.f32 %v380_v3, %v367_v5 }
  0xbd   :  { %v318_v16 = vadd.f32 %v317_v8, %v316_v63  ;;  %v373_v17 = vrot.slane %v372_v9, 4 }
  0xbe   :  { %v327_v20 = vadd.f32 %v326_v12, %v325_v4  ;;  %v382_v21 = vrot.slane %v381_v13, 4 }
  0xbf   :  { %v319_v24 = vrot.slane %v318_v16, 2  ;;  %v374_v25 = vadd.f32 %v373_v17, %v372_v9  ;;  %v985_v26 = vpop.f32.mrf.mxu2 }
  0xc0   :  { %v328_v27 = vrot.slane %v327_v20, 2  ;;  %v383_v28 = vadd.f32 %v382_v21, %v381_v13  ;;  %v334_v29 = vadd.f32 %v333_v18, %v985_v26  ;;  %v368_v30 = vmul.f32 %v985_v26, %v985_v26  ;;  %v990_v31 = vpop.f32.mrf.mxu3 }
  0xc1   :  { %v320_v32 = vadd.f32 %v319_v24, %v318_v16  ;;  %v375_v33 = vrot.slane %v374_v25, 2  ;;  %v343_v44 = vadd.f32 %v342_v19, %v990_v31  ;;  %v369_v45 = vmul.f32 %v990_v31, %v990_v31 }
  0xc2   :  { %v329_v46 = vadd.f32 %v328_v27, %v327_v20  ;;  %v384_v47 = vrot.slane %v383_v28, 2  ;;  %v335_v48 = vrot.slane %v334_v29, 4  ;;  %v390_v49 = vadd.f32 %v389_v22, %v368_v30 }
  0xc3   :  { %v321_v50 = vrot.slane %v320_v32, 1  ;;  %v376_v51 = vadd.f32 %v375_v33, %v374_v25  ;;  %v344_v52 = vrot.slane %v343_v44, 4  ;;  %v399_v53 = vadd.f32 %v398_v23, %v369_v45 }
  0xc4   :  { %v330_v55 = vrot.slane %v329_v46, 1  ;;  %v385_v56 = vadd.f32 %v384_v47, %v383_v28  ;;  %v336_v57 = vadd.f32 %v335_v48, %v334_v29  ;;  %v391_v58 = vrot.slane %v390_v49, 4 }
  0xc5   :  { %v345_v61 = vadd.f32 %v344_v52, %v343_v44  ;;  %v400_v62 = vrot.slane %v399_v53, 4  ;;  %v377_v63 = vrot.slane %v376_v51, 1  ;;  %v322_v6 = vadd.f32 %v321_v50, %v320_v32 }
  0xc6   :  { %v386_v0 = vrot.slane %v385_v56, 1  ;;  %v337_v2 = vrot.slane %v336_v57, 2  ;;  %v392_v3 = vadd.f32 %v391_v58, %v390_v49  ;;  %v331_v7 = vadd.f32 %v330_v55, %v329_v46  ;;  %v434_v55 = vld [vmem:[%s1043_s2] sm:$0x1]  ;;  %v436_v58 = vld [vmem:[%s1043_s2 + $0x1] sm:$0x1] }
  0xc7   :  { %v346_v4 = vrot.slane %v345_v61, 2  ;;  %v401_v5 = vadd.f32 %v400_v62, %v399_v53  ;;  %v378_v12 = vadd.f32 %v377_v63, %v376_v51 }
  0xc8   :  { %v338_v8 = vadd.f32 %v337_v2, %v336_v57  ;;  %v393_v9 = vrot.slane %v392_v3, 2  ;;  %v387_v13 = vadd.f32 %v386_v0, %v385_v56  ;;  %v411_v18 = vadd.f32 %v331_v7, %v322_v6 }
  0xc9   :  { %v347_v10 = vadd.f32 %v346_v4, %v345_v61  ;;  %v402_v11 = vrot.slane %v401_v5, 2 }
  0xca   :  { %v339_v14 = vrot.slane %v338_v8, 1  ;;  %v394_v15 = vadd.f32 %v393_v9, %v392_v3  ;;  %v415_v22 = vadd.f32 %v387_v13, %v378_v12 }
  0xcb   :  { %v348_v16 = vrot.slane %v347_v10, 1  ;;  %v403_v17 = vadd.f32 %v402_v11, %v401_v5 }
  0xcc   :  { %v340_v19 = vadd.f32 %v339_v14, %v338_v8  ;;  %v395_v20 = vrot.slane %v394_v15, 1 }
  0xcd   :  { %v404_v21 = vrot.slane %v403_v17, 1  ;;  %v349_v25 = vadd.f32 %v348_v16, %v347_v10 }
  0xce   :  { %v396_v23 = vadd.f32 %v395_v20, %v394_v15  ;;  %v412_v24 = vadd.f32 %v411_v18, %v340_v19 }
  0xcf   :  { %v405_v28 = vadd.f32 %v404_v21, %v403_v17 }
  0xd0   :  { %v416_v27 = vadd.f32 %v415_v22, %v396_v23  ;;  %v413_v29 = vadd.f32 %v412_v24, %v349_v25 }
  0xd2   :  { %v417_v30 = vadd.f32 %v416_v27, %v405_v28  ;;  %v418_v32 = vmul.f32 0.0078125, %v413_v29 }
  0xd4   :  { %v419_v33 = vmul.f32 0.0078125, %v417_v30  ;;  %v420_v44 = vmul.f32 %v418_v32, %v418_v32 }
  0xd6   :  { %v421_v45 = vsub.f32 %v419_v33, %v420_v44 }
  0xd8   :  { %v422_v46 = vmax.f32 %v421_v45, 0.0 }
  0xda   :  { %v423_v47 = vadd.f32 1e-05, %v422_v46 }
  0xdc   :  { %695 = vrsqrt.f32 %v423_v47  ;;  %vm430_vm1 = vweird.f32 %v423_v47 }
  0xe2   :  { %v696_v48 = vpop.eup %695 }
  0xe3   :  { %v425_v49 = vmul.f32 %v696_v48, %v423_v47  ;;  %vm431_vm0 = vweird.f32 %v696_v48 }
  0xe4   :  { %vm432_vm2 = vmor %vm430_vm1, %vm431_vm0 }
  0xe5   :  { %v426_v50 = vmul.f32 %v696_v48, %v425_v49 }
  0xe7   :  { %v427_v51 = vmul.f32 0.5, %v426_v50 }
  0xe9   :  { %v428_v52 = vsub.f32 1.5, %v427_v51 }
  0xeb   :  { %v429_v53 = vmul.f32 %v696_v48, %v428_v52 }
  0xed   :  { %v433_v56 = vsel %vm432_vm2, %v696_v48, %v429_v53 }
  0xee   :  { %v435_v57 = vmul.f32 %v434_v55, %v433_v56 }
  0xf0   :  { %v437_v61 = vmul.f32 %v435_v57, %v418_v32  ;;  %v455_v62 = vperm.slane %v435_v57, 0 }
  0xf2   :  { %v438_v63 = vsub.f32 %v436_v58, %v437_v61  ;;  %v456_v0 = vmul.f32 %v455_v62, %v915_v34  ;;  %v457_v2 = vmul.f32 %v455_v62, %v917_v35  ;;  %v458_v3 = vmul.f32 %v455_v62, %v919_v36 }
  0xf3   :  { %v459_v4 = vmul.f32 %v455_v62, %v921_v37  ;;  %v460_v5 = vmul.f32 %v455_v62, %v923_v38  ;;  %v461_v6 = vmul.f32 %v455_v62, %v925_v39  ;;  %v462_v7 = vmul.f32 %v455_v62, %v927_v40 }
  0xf4   :  { %v463_v8 = vmul.f32 %v455_v62, %v929_v41  ;;  %v464_v9 = vmul.f32 %v455_v62, %v931_v42  ;;  %v465_v10 = vmul.f32 %v455_v62, %v933_v43  ;;  %v466_v34 = vmul.f32 %v455_v62, %v952_v54 }
  0xf5   :  { %v467_v35 = vmul.f32 %v455_v62, %v959_v59  ;;  %v472_v11 = vperm.slane %v438_v63, 0  ;;  %v468_v36 = vmul.f32 %v455_v62, %v961_v60  ;;  %v469_v37 = vmul.f32 %v455_v62, %v968_v1 }
  0xf6   :  { %v470_v38 = vmul.f32 %v455_v62, %v985_v26  ;;  %v471_v39 = vmul.f32 %v455_v62, %v990_v31 }
  0xf7   :  { %v473_v40 = vadd.f32 %v472_v11, %v456_v0  ;;  %v474_v12 = vadd.f32 %v472_v11, %v457_v2  ;;  %v475_v41 = vadd.f32 %v472_v11, %v458_v3  ;;  %v476_v13 = vadd.f32 %v472_v11, %v459_v4 }
  0xf8   :  { %v477_v42 = vadd.f32 %v472_v11, %v460_v5  ;;  %v478_v14 = vadd.f32 %v472_v11, %v461_v6  ;;  %v479_v43 = vadd.f32 %v472_v11, %v462_v7  ;;  %v480_v15 = vadd.f32 %v472_v11, %v463_v8 }
  0xf9   :  { %v481_v54 = vadd.f32 %v472_v11, %v464_v9  ;;  %v482_v16 = vadd.f32 %v472_v11, %v465_v10  ;;  %v483_v59 = vadd.f32 %v472_v11, %v466_v34  ;;  %v484_v17 = vadd.f32 %v472_v11, %v467_v35 }
  0xfa   :  { %v485_v18 = vadd.f32 %v472_v11, %v468_v36  ;;  %v486_v60 = vadd.f32 %v472_v11, %v469_v37  ;;  %v487_v19 = vadd.f32 %v472_v11, %v470_v38  ;;  %v488_v1 = vadd.f32 %v472_v11, %v471_v39 }
  0xfb   :  { %v489_v20 = vmax.f32 %v473_v40, 0.0  ;;  %v490_v26 = vmax.f32 %v474_v12, 0.0  ;;  %v491_v21 = vmax.f32 %v475_v41, 0.0  ;;  %v492_v31 = vmax.f32 %v476_v13, 0.0 }
  0xfc   :  { %v493_v22 = vmax.f32 %v477_v42, 0.0  ;;  %v494_v23 = vmax.f32 %v478_v14, 0.0  ;;  %v495_v24 = vmax.f32 %v479_v43, 0.0  ;;  %v496_v25 = vmax.f32 %v480_v15, 0.0 }
  0xfd   :  { %v497_v27 = vmax.f32 %v481_v54, 0.0  ;;  %v498_v28 = vmax.f32 %v482_v16, 0.0  ;;  %v499_v29 = vmax.f32 %v483_v59, 0.0  ;;  %v500_v30 = vmax.f32 %v484_v17, 0.0 }
  0xfe   :  { %v501_v32 = vmax.f32 %v485_v18, 0.0  ;;  %v502_v33 = vmax.f32 %v486_v60, 0.0  ;;  %v505_v44 = vpack.c.bf16 %v490_v26, %v489_v20  ;;  %v506_v45 = vpack.c.bf16 %v492_v31, %v491_v21 }
  0xff   :  { %v507_v46 = vpack.c.bf16 %v494_v23, %v493_v22  ;;  %v508_v47 = vpack.c.bf16 %v496_v25, %v495_v24  ;;  %v503_v48 = vmax.f32 %v487_v19, 0.0  ;;  %v504_v49 = vmax.f32 %v488_v1, 0.0 }
 0x100   :  { %v509_v50 = vpack.c.bf16 %v498_v28, %v497_v27  ;;  %513 = vst [vmem:[%s1044_s3] sm:$0xff] %v505_v44  ;;  %v510_v51 = vpack.c.bf16 %v500_v30, %v499_v29  ;;  %v511_v52 = vpack.c.bf16 %v502_v33, %v501_v32 }
 0x101   :  { %514 = vst [vmem:[%s1044_s3 + $0x8] sm:$0xff] %v506_v45  ;;  %v512_v53 = vpack.c.bf16 %v504_v49, %v503_v48 }
 0x102   :  { %515 = vst [vmem:[%s1044_s3 + $0x10] sm:$0xff] %v507_v46 }
 0x103   :  { %516 = vst [vmem:[%s1044_s3 + $0x18] sm:$0xff] %v508_v47 }
 0x104   :  { %517 = vst [vmem:[%s1044_s3 + $0x20] sm:$0xff] %v509_v50 }
 0x105   :  { %518 = vst [vmem:[%s1044_s3 + $0x28] sm:$0xff] %v510_v51 }
 0x106   :  { %519 = vst [vmem:[%s1044_s3 + $0x30] sm:$0xff] %v511_v52 }
 0x107   :  { %520 = vst [vmem:[%s1044_s3 + $0x38] sm:$0xff] %v512_v53 }

// kernel: _lambda_.10
= control target key start
LH: loop header
LB: loop body
LE: loop exit
PB: predicated region body
PF: predicated region fallthrough
CT: control target
= control target key end

     0   :  { %s6899_s1 = inlined_call_operand.vmem [shape: bf16[256,512], index: 1, kind: input, shape index: {}]   ;;  %s6900_s0 = inlined_call_operand.vmem [shape: bf16[128,256], index: 0, kind: input, shape index: {}]   ;;  %s6901_s2 = inlined_call_operand.vmem [shape: f32[2,128], index: 2, kind: input, shape index: {}]   ;;  %s6902_s3 = inlined_call_operand.vmem [shape: bf16[128,512], index: 3, kind: output, shape index: {}]  }
   0x1   :  { %v3187_v0 = vld [vmem:[%s6899_s1 + $0xe0] sm:$0xf]  ;;  %v4179_v1 = vld [vmem:[%s6899_s1 + $0xec] sm:$0xf0]  ;;  %v4177_v5 = vld [vmem:[%s6899_s1 + $0xe4] sm:$0xf] }
   0x2   :  { %v3315_v2 = vld [vmem:[%s6899_s1 + $0x1e0] sm:$0xf]  ;;  %v3188_v3 = vor.u32 %v4179_v1, %v3187_v0  ;;  %v4211_v4 = vld [vmem:[%s6899_s1 + $0x1ec] sm:$0xf0]  ;;  %v3189_v6 = vld [vmem:[%s6899_s1 + $0xf0] sm:$0xf0] }
   0x3   :  { %v3316_v7 = vor.u32 %v4211_v4, %v3315_v2  ;;  %v3192_v8 = vor.u32 %v4177_v5, %v3189_v6  ;;  %v4209_v9 = vld [vmem:[%s6899_s1 + $0x1e4] sm:$0xf]  ;;  %v3317_v10 = vld [vmem:[%s6899_s1 + $0x1f0] sm:$0xf0]  ;;  %v3171_v11 = vld [vmem:[%s6899_s1 + $0xc0] sm:$0xf] }
   0x4   :  { %422 = vmatpush.bf16.msra.mxu0 %v3188_v3  ;;  %v3320_v12 = vor.u32 %v4209_v9, %v3317_v10  ;;  %v4175_v13 = vld [vmem:[%s6899_s1 + $0xcc] sm:$0xf0]  ;;  %v3299_v14 = vld [vmem:[%s6899_s1 + $0x1c0] sm:$0xf]  ;;  %v4173_v18 = vld [vmem:[%s6899_s1 + $0xc4] sm:$0xf] }
   0x5   :  { %v4207_v15 = vld [vmem:[%s6899_s1 + $0x1cc] sm:$0xf0]  ;;  %441 = vmatpush.bf16.msra.mxu1 %v3316_v7  ;;  %460 = vmatpush.bf16.msra.mxu2 %v3192_v8  ;;  %v3172_v16 = vor.u32 %v4175_v13, %v3171_v11  ;;  %v3173_v19 = vld [vmem:[%s6899_s1 + $0xd0] sm:$0xf0]  ;;  %v4205_v20 = vld [vmem:[%s6899_s1 + $0x1c4] sm:$0xf] }
   0x6   :  { %v3300_v17 = vor.u32 %v4207_v15, %v3299_v14  ;;  %479 = vmatpush.bf16.msra.mxu3 %v3320_v12  ;;  %v3176_v21 = vor.u32 %v4173_v18, %v3173_v19  ;;  %v3301_v22 = vld [vmem:[%s6899_s1 + $0x1d0] sm:$0xf0]  ;;  %v3155_v23 = vld [vmem:[%s6899_s1 + $0xa0] sm:$0xf]  ;;  %v4171_v24 = vld [vmem:[%s6899_s1 + $0xac] sm:$0xf0] }
   0x7   :  { %v3304_v25 = vor.u32 %v4205_v20, %v3301_v22  ;;  %v3283_v26 = vld [vmem:[%s6899_s1 + $0x1a0] sm:$0xf]  ;;  %v4203_v27 = vld [vmem:[%s6899_s1 + $0x1ac] sm:$0xf0]  ;;  %v4169_v28 = vld [vmem:[%s6899_s1 + $0xa4] sm:$0xf]  ;;  %v3156_v29 = vor.u32 %v4171_v24, %v3155_v23 }
   0x8   :  { %423 = vmatpush.bf16.msra.mxu0 %v3172_v16  ;;  %v3157_v30 = vld [vmem:[%s6899_s1 + $0xb0] sm:$0xf0]  ;;  %v4201_v31 = vld [vmem:[%s6899_s1 + $0x1a4] sm:$0xf]  ;;  %v3284_v33 = vor.u32 %v4203_v27, %v3283_v26  ;;  %v3139_v35 = vld [vmem:[%s6899_s1 + $0x80] sm:$0xf] }
   0x9   :  { %v3285_v32 = vld [vmem:[%s6899_s1 + $0x1b0] sm:$0xf0]  ;;  %442 = vmatpush.bf16.msra.mxu1 %v3300_v17  ;;  %461 = vmatpush.bf16.msra.mxu2 %v3176_v21  ;;  %v3160_v34 = vor.u32 %v4169_v28, %v3157_v30  ;;  %v4167_v36 = vld [vmem:[%s6899_s1 + $0x8c] sm:$0xf0]  ;;  %v3267_v37 = vld [vmem:[%s6899_s1 + $0x180] sm:$0xf] }
   0xa   :  { %480 = vmatpush.bf16.msra.mxu3 %v3304_v25  ;;  %v3288_v38 = vor.u32 %v4201_v31, %v3285_v32  ;;  %v4199_v39 = vld [vmem:[%s6899_s1 + $0x18c] sm:$0xf0]  ;;  %v4165_v40 = vld [vmem:[%s6899_s1 + $0x84] sm:$0xf]  ;;  %v3141_v41 = vld [vmem:[%s6899_s1 + $0x90] sm:$0xf0]  ;;  %v3140_v44 = vor.u32 %v4167_v36, %v3139_v35 }
   0xb   :  { %v4197_v42 = vld [vmem:[%s6899_s1 + $0x184] sm:$0xf]  ;;  %v3269_v43 = vld [vmem:[%s6899_s1 + $0x190] sm:$0xf0]  ;;  %v3268_v45 = vor.u32 %v4199_v39, %v3267_v37  ;;  %v3144_v46 = vor.u32 %v4165_v40, %v3141_v41  ;;  %v3123_v47 = vld [vmem:[%s6899_s1 + $0x60] sm:$0xf] }
   0xc   :  { %424 = vmatpush.bf16.msra.mxu0 %v3156_v29  ;;  %v4163_v48 = vld [vmem:[%s6899_s1 + $0x6c] sm:$0xf0]  ;;  %v3251_v49 = vld [vmem:[%s6899_s1 + $0x160] sm:$0xf]  ;;  %v3272_v50 = vor.u32 %v4197_v42, %v3269_v43  ;;  %v4161_v52 = vld [vmem:[%s6899_s1 + $0x64] sm:$0xf] }
   0xd   :  { %443 = vmatpush.bf16.msra.mxu1 %v3284_v33  ;;  %462 = vmatpush.bf16.msra.mxu2 %v3160_v34  ;;  %v4195_v51 = vld [vmem:[%s6899_s1 + $0x16c] sm:$0xf0]  ;;  %v3125_v53 = vld [vmem:[%s6899_s1 + $0x70] sm:$0xf0]  ;;  %v4193_v54 = vld [vmem:[%s6899_s1 + $0x164] sm:$0xf]  ;;  %v3124_v56 = vor.u32 %v4163_v48, %v3123_v47 }
   0xe   :  { %481 = vmatpush.bf16.msra.mxu3 %v3288_v38  ;;  %v3253_v55 = vld [vmem:[%s6899_s1 + $0x170] sm:$0xf0]  ;;  %v3252_v57 = vor.u32 %v4195_v51, %v3251_v49  ;;  %v3128_v58 = vor.u32 %v4161_v52, %v3125_v53  ;;  %v3107_v59 = vld [vmem:[%s6899_s1 + $0x40] sm:$0xf]  ;;  %v4159_v60 = vld [vmem:[%s6899_s1 + $0x4c] sm:$0xf0] }
   0xf   :  { %v3235_v61 = vld [vmem:[%s6899_s1 + $0x140] sm:$0xf]  ;;  %v3256_v62 = vor.u32 %v4193_v54, %v3253_v55  ;;  %v4191_v63 = vld [vmem:[%s6899_s1 + $0x14c] sm:$0xf0]  ;;  %v4157_v0 = vld [vmem:[%s6899_s1 + $0x44] sm:$0xf]  ;;  %v3108_v4 = vor.u32 %v4159_v60, %v3107_v59 }
  0x10   :  { %425 = vmatpush.bf16.msra.mxu0 %v3140_v44  ;;  %v3109_v1 = vld [vmem:[%s6899_s1 + $0x50] sm:$0xf0]  ;;  %v4189_v2 = vld [vmem:[%s6899_s1 + $0x144] sm:$0xf]  ;;  %v3236_v5 = vor.u32 %v4191_v63, %v3235_v61  ;;  %v3091_v7 = vld [vmem:[%s6899_s1 + $0x20] sm:$0xf] }
  0x11   :  { %444 = vmatpush.bf16.msra.mxu1 %v3268_v45  ;;  %463 = vmatpush.bf16.msra.mxu2 %v3144_v46  ;;  %v3237_v3 = vld [vmem:[%s6899_s1 + $0x150] sm:$0xf0]  ;;  %v3112_v6 = vor.u32 %v4157_v0, %v3109_v1  ;;  %v4155_v8 = vld [vmem:[%s6899_s1 + $0x2c] sm:$0xf0]  ;;  %v3219_v9 = vld [vmem:[%s6899_s1 + $0x120] sm:$0xf] }
  0x12   :  { %482 = vmatpush.bf16.msra.mxu3 %v3272_v50  ;;  %v3240_v10 = vor.u32 %v4189_v2, %v3237_v3  ;;  %v4187_v11 = vld [vmem:[%s6899_s1 + $0x12c] sm:$0xf0]  ;;  %v4153_v12 = vld [vmem:[%s6899_s1 + $0x24] sm:$0xf]  ;;  %v3093_v13 = vld [vmem:[%s6899_s1 + $0x30] sm:$0xf0]  ;;  %v3092_v16 = vor.u32 %v4155_v8, %v3091_v7 }
  0x13   :  { %v4185_v14 = vld [vmem:[%s6899_s1 + $0x124] sm:$0xf]  ;;  %v3221_v15 = vld [vmem:[%s6899_s1 + $0x130] sm:$0xf0]  ;;  %v3075_v17 = vld [vmem:[%s6899_s1] sm:$0xf]  ;;  %v3220_v19 = vor.u32 %v4187_v11, %v3219_v9  ;;  %v3096_v20 = vor.u32 %v4153_v12, %v3093_v13 }
  0x14   :  { %426 = vmatpush.bf16.msra.mxu0 %v3124_v56  ;;  %v4151_v18 = vld [vmem:[%s6899_s1 + $0xc] sm:$0xf0]  ;;  %v3203_v21 = vld [vmem:[%s6899_s1 + $0x100] sm:$0xf]  ;;  %v4149_v23 = vld [vmem:[%s6899_s1 + $0x4] sm:$0xf]  ;;  %v3224_v24 = vor.u32 %v4185_v14, %v3221_v15 }
  0x15   :  { %445 = vmatpush.bf16.msra.mxu1 %v3252_v57  ;;  %464 = vmatpush.bf16.msra.mxu2 %v3128_v58  ;;  %v4183_v22 = vld [vmem:[%s6899_s1 + $0x10c] sm:$0xf0]  ;;  %v3077_v25 = vld [vmem:[%s6899_s1 + $0x10] sm:$0xf0]  ;;  %v4181_v26 = vld [vmem:[%s6899_s1 + $0x104] sm:$0xf]  ;;  %v3076_v31 = vor.u32 %v4151_v18, %v3075_v17 }
  0x16   :  { %483 = vmatpush.bf16.msra.mxu3 %v3256_v62  ;;  %v3205_v27 = vld [vmem:[%s6899_s1 + $0x110] sm:$0xf0]  ;;  %v3059_v28 = vld [vmem:[%s6900_s0] sm:$0xf]  ;;  %v4178_v29 = vld [vmem:[%s6899_s1 + $0xec] sm:$0xf]  ;;  %v3204_v35 = vor.u32 %v4183_v22, %v3203_v21  ;;  %v3080_v36 = vor.u32 %v4149_v23, %v3077_v25 }
  0x17   :  { %v3197_v30 = vld [vmem:[%s6899_s1 + $0xf8] sm:$0xf0]  ;;  %v4146_v32 = vld [vmem:[%s6900_s0 + $0x4] sm:$0xf0]  ;;  %v4210_v33 = vld [vmem:[%s6899_s1 + $0x1ec] sm:$0xf]  ;;  %v3208_v39 = vor.u32 %v4181_v26, %v3205_v27 }
  0x18   :  { %427 = vmatpush.bf16.msra.mxu0 %v3108_v4  ;;  %v3325_v34 = vld [vmem:[%s6899_s1 + $0x1f8] sm:$0xf0]  ;;  %v4145_v37 = vld [vmem:[%s6900_s0 + $0x4] sm:$0xf]  ;;  %v3061_v38 = vld [vmem:[%s6900_s0 + $0x8] sm:$0xf0]  ;;  %v3200_v40 = vor.u32 %v4178_v29, %v3197_v30  ;;  %v4664_v44 = vor.u32 %v4146_v32, %v3059_v28 }
  0x19   :  { %446 = vmatpush.bf16.msra.mxu1 %v3236_v5  ;;  %465 = vmatpush.bf16.msra.mxu2 %v3112_v6  ;;  %v3195_v41 = vld [vmem:[%s6899_s1 + $0xe8] sm:$0xf]  ;;  %v4180_v42 = vld [vmem:[%s6899_s1 + $0xf4] sm:$0xf0]  ;;  %v3328_v45 = vor.u32 %v4210_v33, %v3325_v34  ;;  %v4174_v47 = vld [vmem:[%s6899_s1 + $0xcc] sm:$0xf]  ;;  %v4675_v49 = vor.u32 %v4145_v37, %v3061_v38 }
  0x1a   :  { %484 = vmatpush.bf16.msra.mxu3 %v3240_v10  ;;  %v3323_v43 = vld [vmem:[%s6899_s1 + $0x1e8] sm:$0xf]  ;;  %v4212_v46 = vld [vmem:[%s6899_s1 + $0x1f4] sm:$0xf0]  ;;  %v3181_v48 = vld [vmem:[%s6899_s1 + $0xd8] sm:$0xf0]  ;;  %v3196_v52 = vor.u32 %v4180_v42, %v3195_v41 }
  0x1b   :  { %v4206_v50 = vld [vmem:[%s6899_s1 + $0x1cc] sm:$0xf]  ;;  %v3309_v51 = vld [vmem:[%s6899_s1 + $0x1d8] sm:$0xf0]  ;;  %v3324_v53 = vor.u32 %v4212_v46, %v3323_v43  ;;  %v3184_v54 = vor.u32 %v4174_v47, %v3181_v48  ;;  %v3179_v55 = vld [vmem:[%s6899_s1 + $0xc8] sm:$0xf] }
  0x1c   :  { %428 = vmatpush.bf16.msra.mxu0 %v3092_v16  ;;  %v4176_v56 = vld [vmem:[%s6899_s1 + $0xd4] sm:$0xf0]  ;;  %v3307_v57 = vld [vmem:[%s6899_s1 + $0x1c8] sm:$0xf]  ;;  %v3312_v58 = vor.u32 %v4206_v50, %v3309_v51  ;;  %v4170_v60 = vld [vmem:[%s6899_s1 + $0xac] sm:$0xf] }
  0x1d   :  { %447 = vmatpush.bf16.msra.mxu1 %v3220_v19  ;;  %466 = vmatpush.bf16.msra.mxu2 %v3096_v20  ;;  %v4208_v59 = vld [vmem:[%s6899_s1 + $0x1d4] sm:$0xf0]  ;;  %v3165_v61 = vld [vmem:[%s6899_s1 + $0xb8] sm:$0xf0]  ;;  %v4202_v62 = vld [vmem:[%s6899_s1 + $0x1ac] sm:$0xf]  ;;  %v3180_v0 = vor.u32 %v4176_v56, %v3179_v55 }
  0x1e   :  { %485 = vmatpush.bf16.msra.mxu3 %v3224_v24  ;;  %v3293_v63 = vld [vmem:[%s6899_s1 + $0x1b8] sm:$0xf0]  ;;  %v3308_v1 = vor.u32 %v4208_v59, %v3307_v57  ;;  %v3168_v2 = vor.u32 %v4170_v60, %v3165_v61  ;;  %v3163_v3 = vld [vmem:[%s6899_s1 + $0xa8] sm:$0xf]  ;;  %v4172_v4 = vld [vmem:[%s6899_s1 + $0xb4] sm:$0xf0] }
  0x1f   :  { %v3291_v5 = vld [vmem:[%s6899_s1 + $0x1a8] sm:$0xf]  ;;  %v3296_v6 = vor.u32 %v4202_v62, %v3293_v63  ;;  %v4204_v7 = vld [vmem:[%s6899_s1 + $0x1b4] sm:$0xf0]  ;;  %v4166_v8 = vld [vmem:[%s6899_s1 + $0x8c] sm:$0xf]  ;;  %v3164_v12 = vor.u32 %v4172_v4, %v3163_v3 }
  0x20   :  { %429 = vmatpush.bf16.msra.mxu0 %v3076_v31  ;;  %v3149_v9 = vld [vmem:[%s6899_s1 + $0x98] sm:$0xf0]  ;;  %v4198_v10 = vld [vmem:[%s6899_s1 + $0x18c] sm:$0xf]  ;;  %v3147_v13 = vld [vmem:[%s6899_s1 + $0x88] sm:$0xf]  ;;  %v3292_v14 = vor.u32 %v4204_v7, %v3291_v5 }
  0x21   :  { %448 = vmatpush.bf16.msra.mxu1 %v3204_v35  ;;  %467 = vmatpush.bf16.msra.mxu2 %v3080_v36  ;;  %v3277_v11 = vld [vmem:[%s6899_s1 + $0x198] sm:$0xf0]  ;;  %v3152_v15 = vor.u32 %v4166_v8, %v3149_v9  ;;  %v4168_v16 = vld [vmem:[%s6899_s1 + $0x94] sm:$0xf0]  ;;  %v3275_v17 = vld [vmem:[%s6899_s1 + $0x188] sm:$0xf] }
  0x22   :  { %486 = vmatpush.bf16.msra.mxu3 %v3208_v39  ;;  %v4200_v18 = vld [vmem:[%s6899_s1 + $0x194] sm:$0xf0]  ;;  %v3280_v19 = vor.u32 %v4198_v10, %v3277_v11  ;;  %v3067_v20 = vld [vmem:[%s6900_s0 + $0x10] sm:$0xf]  ;;  %v4162_v21 = vld [vmem:[%s6899_s1 + $0x6c] sm:$0xf]  ;;  %v3148_v26 = vor.u32 %v4168_v16, %v3147_v13 }
  0x23   :  { %430 = vmatmul.bf16.vlgmr.msra.gmra.mxu0 %v4664_v44  ;;  %v3133_v22 = vld [vmem:[%s6899_s1 + $0x78] sm:$0xf0]  ;;  %v4148_v23 = vld [vmem:[%s6900_s0 + $0x14] sm:$0xf0]  ;;  %v4194_v24 = vld [vmem:[%s6899_s1 + $0x16c] sm:$0xf]  ;;  %v3276_v29 = vor.u32 %v4200_v18, %v3275_v17 }
  0x24   :  { %449 = vmatmul.bf16.vlgmr.msra.gmra.mxu1 %v4675_v49  ;;  %468 = vmatmul.bf16.vlgmr.msra.gmra.mxu2 %v4664_v44  ;;  %v3261_v25 = vld [vmem:[%s6899_s1 + $0x178] sm:$0xf0]  ;;  %v4147_v27 = vld [vmem:[%s6900_s0 + $0x14] sm:$0xf]  ;;  %v3136_v30 = vor.u32 %v4162_v21, %v3133_v22  ;;  %v3131_v31 = vld [vmem:[%s6899_s1 + $0x68] sm:$0xf]  ;;  %v4780_v34 = vor.u32 %v4148_v23, %v3067_v20 }
  0x25   :  { %536 = vmatpush.bf16.msrb.mxu2 %v3200_v40  ;;  %487 = vmatmul.bf16.vlgmr.msra.gmra.mxu3 %v4675_v49  ;;  %v3069_v28 = vld [vmem:[%s6900_s0 + $0x18] sm:$0xf0]  ;;  %v4164_v32 = vld [vmem:[%s6899_s1 + $0x74] sm:$0xf0]  ;;  %v3259_v33 = vld [vmem:[%s6899_s1 + $0x168] sm:$0xf]  ;;  %v3264_v35 = vor.u32 %v4194_v24, %v3261_v25 }
  0x26   :  { %555 = vmatpush.bf16.msrb.mxu3 %v3328_v45  ;;  %498 = vmatpush.bf16.msrb.mxu0 %v3196_v52  ;;  %v4196_v36 = vld [vmem:[%s6899_s1 + $0x174] sm:$0xf0]  ;;  %v4158_v37 = vld [vmem:[%s6899_s1 + $0x4c] sm:$0xf]  ;;  %v3117_v38 = vld [vmem:[%s6899_s1 + $0x58] sm:$0xf0]  ;;  %v4791_v39 = vor.u32 %v4147_v27, %v3069_v28  ;;  %v3132_v42 = vor.u32 %v4164_v32, %v3131_v31 }
  0x27   :  { %517 = vmatpush.bf16.msrb.mxu1 %v3324_v53  ;;  %v4190_v40 = vld [vmem:[%s6899_s1 + $0x14c] sm:$0xf]  ;;  %v3245_v41 = vld [vmem:[%s6899_s1 + $0x158] sm:$0xf0]  ;;  %v3260_v43 = vor.u32 %v4196_v36, %v3259_v33  ;;  %v3120_v45 = vor.u32 %v4158_v37, %v3117_v38  ;;  %v3115_v46 = vld [vmem:[%s6899_s1 + $0x48] sm:$0xf] }
  0x28   :  { %v4160_v47 = vld [vmem:[%s6899_s1 + $0x54] sm:$0xf0]  ;;  %v3243_v48 = vld [vmem:[%s6899_s1 + $0x148] sm:$0xf]  ;;  %v3248_v50 = vor.u32 %v4190_v40, %v3245_v41  ;;  %v4154_v52 = vld [vmem:[%s6899_s1 + $0x2c] sm:$0xf] }
  0x29   :  { %537 = vmatpush.bf16.msrb.mxu2 %v3184_v54  ;;  %v4192_v51 = vld [vmem:[%s6899_s1 + $0x154] sm:$0xf0]  ;;  %v3101_v53 = vld [vmem:[%s6899_s1 + $0x38] sm:$0xf0]  ;;  %v4186_v54 = vld [vmem:[%s6899_s1 + $0x12c] sm:$0xf]  ;;  %v3116_v56 = vor.u32 %v4160_v47, %v3115_v46 }
  0x2a   :  { %556 = vmatpush.bf16.msrb.mxu3 %v3312_v58  ;;  %499 = vmatpush.bf16.msrb.mxu0 %v3180_v0  ;;  %v3229_v55 = vld [vmem:[%s6899_s1 + $0x138] sm:$0xf0]  ;;  %v3099_v57 = vld [vmem:[%s6899_s1 + $0x28] sm:$0xf]  ;;  %v3244_v58 = vor.u32 %v4192_v51, %v3243_v48  ;;  %v3104_v59 = vor.u32 %v4154_v52, %v3101_v53  ;;  %v4156_v60 = vld [vmem:[%s6899_s1 + $0x34] sm:$0xf0] }
  0x2b   :  { %518 = vmatpush.bf16.msrb.mxu1 %v3308_v1  ;;  %v3227_v61 = vld [vmem:[%s6899_s1 + $0x128] sm:$0xf]  ;;  %v4188_v62 = vld [vmem:[%s6899_s1 + $0x134] sm:$0xf0]  ;;  %v3232_v63 = vor.u32 %v4186_v54, %v3229_v55  ;;  %v4150_v0 = vld [vmem:[%s6899_s1 + $0xc] sm:$0xf] }
  0x2c   :  { %v3085_v1 = vld [vmem:[%s6899_s1 + $0x18] sm:$0xf0]  ;;  %v4245_v4 = vld [vmem:[%s6899_s1 + $0xe4] sm:$0xf]  ;;  %v3461_v5 = vld [vmem:[%s6899_s1 + $0xf0] sm:$0xf0]  ;;  %v3228_v10 = vor.u32 %v4188_v62, %v3227_v61 }
  0x2d   :  { %538 = vmatpush.bf16.msrb.mxu2 %v3168_v2  ;;  %v4182_v2 = vld [vmem:[%s6899_s1 + $0x10c] sm:$0xf]  ;;  %v3213_v3 = vld [vmem:[%s6899_s1 + $0x118] sm:$0xf0]  ;;  %v3083_v7 = vld [vmem:[%s6899_s1 + $0x8] sm:$0xf]  ;;  %v3088_v11 = vor.u32 %v4150_v0, %v3085_v1  ;;  %v3464_v16 = vor.u32 %v4245_v4, %v3461_v5 }
  0x2e   :  { %557 = vmatpush.bf16.msrb.mxu3 %v3296_v6  ;;  %500 = vmatpush.bf16.msrb.mxu0 %v3164_v12  ;;  %v3100_v6 = vor.u32 %v4156_v60, %v3099_v57  ;;  %v4277_v8 = vld [vmem:[%s6899_s1 + $0x1e4] sm:$0xf]  ;;  %v3589_v9 = vld [vmem:[%s6899_s1 + $0x1f0] sm:$0xf0]  ;;  %v4152_v12 = vld [vmem:[%s6899_s1 + $0x14] sm:$0xf0] }
  0x2f   :  { %519 = vmatpush.bf16.msrb.mxu1 %v3292_v14  ;;  %v3211_v13 = vld [vmem:[%s6899_s1 + $0x108] sm:$0xf]  ;;  %v4184_v14 = vld [vmem:[%s6899_s1 + $0x114] sm:$0xf0]  ;;  %v3459_v17 = vld [vmem:[%s6899_s1 + $0xe0] sm:$0xf]  ;;  %v3592_v20 = vor.u32 %v4277_v8, %v3589_v9  ;;  %v3084_v24 = vor.u32 %v4152_v12, %v3083_v7 }
  0x30   :  { %v4247_v18 = vld [vmem:[%s6899_s1 + $0xec] sm:$0xf0]  ;;  %v4241_v22 = vld [vmem:[%s6899_s1 + $0xc4] sm:$0xf]  ;;  %v3445_v23 = vld [vmem:[%s6899_s1 + $0xd0] sm:$0xf0]  ;;  %v3212_v25 = vor.u32 %v4184_v14, %v3211_v13 }
  0x31   :  { %539 = vmatpush.bf16.msrb.mxu2 %v3152_v15  ;;  %v3216_v15 = vor.u32 %v4182_v2, %v3213_v3  ;;  %v4279_v21 = vld [vmem:[%s6899_s1 + $0x1ec] sm:$0xf0]  ;;  %v4273_v27 = vld [vmem:[%s6899_s1 + $0x1c4] sm:$0xf]  ;;  %v3573_v28 = vld [vmem:[%s6899_s1 + $0x1d0] sm:$0xf0] }
  0x32   :  { %558 = vmatpush.bf16.msrb.mxu3 %v3280_v19  ;;  %501 = vmatpush.bf16.msrb.mxu0 %v3148_v26  ;;  %v3587_v19 = vld [vmem:[%s6899_s1 + $0x1e0] sm:$0xf]  ;;  %v3460_v26 = vor.u32 %v4247_v18, %v3459_v17  ;;  %v4243_v32 = vld [vmem:[%s6899_s1 + $0xcc] sm:$0xf0]  ;;  %v4237_v36 = vld [vmem:[%s6899_s1 + $0xa4] sm:$0xf]  ;;  %v3576_v38 = vor.u32 %v4273_v27, %v3573_v28 }
  0x33   :  { %520 = vmatpush.bf16.msrb.mxu1 %v3276_v29  ;;  %435 = vmatmul.bf16.gmra.mxu0 %v4780_v34  ;;  %v3588_v29 = vor.u32 %v4279_v21, %v3587_v19  ;;  %v3443_v31 = vld [vmem:[%s6899_s1 + $0xc0] sm:$0xf]  ;;  %v3429_v37 = vld [vmem:[%s6899_s1 + $0xb0] sm:$0xf0]  ;;  %v4269_v41 = vld [vmem:[%s6899_s1 + $0x1a4] sm:$0xf] }
  0x34   :  { %454 = vmatmul.bf16.gmra.mxu1 %v4791_v39  ;;  %473 = vmatmul.bf16.gmra.mxu2 %v4780_v34  ;;  %v3571_v33 = vld [vmem:[%s6899_s1 + $0x1c0] sm:$0xf]  ;;  %v3444_v40 = vor.u32 %v4243_v32, %v3443_v31  ;;  %v4239_v47 = vld [vmem:[%s6899_s1 + $0xac] sm:$0xf0]  ;;  %v4233_v51 = vld [vmem:[%s6899_s1 + $0x84] sm:$0xf] }
  0x35   :  { %540 = vmatpush.bf16.msrb.mxu2 %v3136_v30  ;;  %492 = vmatmul.bf16.gmra.mxu3 %v4791_v39  ;;  %v3448_v30 = vor.u32 %v4241_v22, %v3445_v23  ;;  %v3427_v46 = vld [vmem:[%s6899_s1 + $0xa0] sm:$0xf]  ;;  %v3413_v52 = vld [vmem:[%s6899_s1 + $0x90] sm:$0xf0]  ;;  %v4265_v54 = vld [vmem:[%s6899_s1 + $0x184] sm:$0xf] }
  0x36   :  { %559 = vmatpush.bf16.msrb.mxu3 %v3264_v35  ;;  %502 = vmatpush.bf16.msrb.mxu0 %v3132_v42  ;;  %v4275_v35 = vld [vmem:[%s6899_s1 + $0x1cc] sm:$0xf0]  ;;  %v3557_v42 = vld [vmem:[%s6899_s1 + $0x1b0] sm:$0xf0]  ;;  %v3555_v48 = vld [vmem:[%s6899_s1 + $0x1a0] sm:$0xf]  ;;  %v3416_v57 = vor.u32 %v4233_v51, %v3413_v52 }
  0x37   :  { %521 = vmatpush.bf16.msrb.mxu1 %v3260_v43  ;;  %v3572_v43 = vor.u32 %v4275_v35, %v3571_v33  ;;  %v3560_v53 = vor.u32 %v4269_v41, %v3557_v42  ;;  %v3541_v55 = vld [vmem:[%s6899_s1 + $0x190] sm:$0xf0]  ;;  %v4267_v60 = vld [vmem:[%s6899_s1 + $0x18c] sm:$0xf0]  ;;  %v4229_v61 = vld [vmem:[%s6899_s1 + $0x64] sm:$0xf] }
  0x38   :  { %v3397_v62 = vld [vmem:[%s6899_s1 + $0x70] sm:$0xf0]  ;;  %v4261_v1 = vld [vmem:[%s6899_s1 + $0x164] sm:$0xf]  ;;  %v3395_v5 = vld [vmem:[%s6899_s1 + $0x60] sm:$0xf] }
  0x39   :  { %541 = vmatpush.bf16.msrb.mxu2 %v3120_v45  ;;  %v3432_v45 = vor.u32 %v4237_v36, %v3429_v37  ;;  %v3525_v2 = vld [vmem:[%s6899_s1 + $0x170] sm:$0xf0]  ;;  %v3400_v4 = vor.u32 %v4229_v61, %v3397_v62  ;;  %v3523_v7 = vld [vmem:[%s6899_s1 + $0x160] sm:$0xf]  ;;  %v4263_v8 = vld [vmem:[%s6899_s1 + $0x16c] sm:$0xf0] }
  0x3a   :  { %560 = vmatpush.bf16.msrb.mxu3 %v3248_v50  ;;  %503 = vmatpush.bf16.msrb.mxu0 %v3116_v56  ;;  %v4271_v50 = vld [vmem:[%s6899_s1 + $0x1ac] sm:$0xf0]  ;;  %v4225_v9 = vld [vmem:[%s6899_s1 + $0x44] sm:$0xf]  ;;  %v3509_v14 = vld [vmem:[%s6899_s1 + $0x150] sm:$0xf0] }
  0x3b   :  { %522 = vmatpush.bf16.msrb.mxu1 %v3244_v58  ;;  %v3556_v56 = vor.u32 %v4271_v50, %v3555_v48  ;;  %v4235_v58 = vld [vmem:[%s6899_s1 + $0x8c] sm:$0xf0]  ;;  %v4257_v13 = vld [vmem:[%s6899_s1 + $0x144] sm:$0xf]  ;;  %v3379_v17 = vld [vmem:[%s6899_s1 + $0x40] sm:$0xf] }
  0x3c   :  { %v4227_v18 = vld [vmem:[%s6899_s1 + $0x4c] sm:$0xf0]  ;;  %v3507_v19 = vld [vmem:[%s6899_s1 + $0x140] sm:$0xf]  ;;  %v4221_v21 = vld [vmem:[%s6899_s1 + $0x24] sm:$0xf]  ;;  %v3512_v23 = vor.u32 %v4257_v13, %v3509_v14 }
  0x3d   :  { %542 = vmatpush.bf16.msrb.mxu2 %v3104_v59  ;;  %v3539_v59 = vld [vmem:[%s6899_s1 + $0x180] sm:$0xf]  ;;  %v3365_v22 = vld [vmem:[%s6899_s1 + $0x30] sm:$0xf0]  ;;  %v4255_v32 = vld [vmem:[%s6899_s1 + $0x12c] sm:$0xf0] }
  0x3e   :  { %561 = vmatpush.bf16.msrb.mxu3 %v3232_v63  ;;  %504 = vmatpush.bf16.msrb.mxu0 %v3100_v6  ;;  %v3544_v63 = vor.u32 %v4265_v54, %v3541_v55  ;;  %v3540_v3 = vor.u32 %v4267_v60, %v3539_v59  ;;  %v4231_v6 = vld [vmem:[%s6899_s1 + $0x6c] sm:$0xf0]  ;;  %v3368_v28 = vor.u32 %v4221_v21, %v3365_v22  ;;  %v3491_v31 = vld [vmem:[%s6899_s1 + $0x120] sm:$0xf]  ;;  %v4217_v33 = vld [vmem:[%s6899_s1 + $0x4] sm:$0xf] }
  0x3f   :  { %523 = vmatpush.bf16.msrb.mxu1 %v3228_v10  ;;  %v3381_v10 = vld [vmem:[%s6899_s1 + $0x50] sm:$0xf0]  ;;  %v3396_v12 = vor.u32 %v4231_v6, %v3395_v5  ;;  %v3469_v36 = vld [vmem:[%s6899_s1 + $0xf8] sm:$0xf0]  ;;  %v3347_v41 = vld [vmem:[%s6899_s1] sm:$0xf]  ;;  %v3492_v42 = vor.u32 %v4255_v32, %v3491_v31 }
  0x40   :  { %v3349_v35 = vld [vmem:[%s6899_s1 + $0x10] sm:$0xf0]  ;;  %v4278_v50 = vld [vmem:[%s6899_s1 + $0x1ec] sm:$0xf]  ;;  %v3597_v51 = vld [vmem:[%s6899_s1 + $0x1f8] sm:$0xf0] }
  0x41   :  { %543 = vmatpush.bf16.msrb.mxu2 %v3088_v11  ;;  %v3528_v11 = vor.u32 %v4261_v1, %v3525_v2  ;;  %v3467_v52 = vld [vmem:[%s6899_s1 + $0xe8] sm:$0xf]  ;;  %v4280_v54 = vld [vmem:[%s6899_s1 + $0x1f4] sm:$0xf0]  ;;  %v3600_v59 = vor.u32 %v4278_v50, %v3597_v51  ;;  %v4274_v62 = vld [vmem:[%s6899_s1 + $0x1cc] sm:$0xf] }
  0x42   :  { %562 = vmatpush.bf16.msrb.mxu3 %v3216_v15  ;;  %505 = vmatpush.bf16.msrb.mxu0 %v3084_v24  ;;  %v3524_v15 = vor.u32 %v4263_v8, %v3523_v7  ;;  %v3380_v24 = vor.u32 %v4227_v18, %v3379_v17  ;;  %v4214_v1 = vld [vmem:[%s6900_s0 + $0x24] sm:$0xf0]  ;;  %v4213_v2 = vld [vmem:[%s6900_s0 + $0x24] sm:$0xf]  ;;  %v4244_v6 = vld [vmem:[%s6899_s1 + $0xd4] sm:$0xf0] }
  0x43   :  { %524 = vmatpush.bf16.msrb.mxu1 %v3212_v25  ;;  %v4253_v25 = vld [vmem:[%s6899_s1 + $0x124] sm:$0xf]  ;;  %v3451_v5 = vld [vmem:[%s6899_s1 + $0xc8] sm:$0xf]  ;;  %v4270_v13 = vld [vmem:[%s6899_s1 + $0x1ac] sm:$0xf] }
  0x44   :  { %544 = vmatmul.bf16.vlgmr.msrb.gmra.mxu2 %v4664_v44  ;;  %v3579_v8 = vld [vmem:[%s6899_s1 + $0x1c8] sm:$0xf]  ;;  %v3565_v14 = vld [vmem:[%s6899_s1 + $0x1b8] sm:$0xf0]  ;;  %v4236_v31 = vld [vmem:[%s6899_s1 + $0x94] sm:$0xf0] }
  0x45   :  { %1132 = vmatpush.bf16.msra.mxu2 %v3464_v16  ;;  %506 = vmatmul.bf16.vlgmr.msrb.gmra.mxu0 %v4664_v44  ;;  %v3428_v44 = vor.u32 %v4239_v47, %v3427_v46  ;;  %v3384_v16 = vor.u32 %v4225_v9, %v3381_v10  ;;  %v3475_v46 = vld [vmem:[%s6899_s1 + $0x100] sm:$0xf]  ;;  %v4251_v47 = vld [vmem:[%s6899_s1 + $0x10c] sm:$0xf0]  ;;  %v4276_v9 = vld [vmem:[%s6899_s1 + $0x1d4] sm:$0xf0]  ;;  %v3568_v21 = vor.u32 %v4270_v13, %v3565_v14 }
  0x46   :  { %1151 = vmatpush.bf16.msra.mxu3 %v3592_v20  ;;  %1094 = vmatpush.bf16.msra.mxu0 %v3460_v26  ;;  %v4259_v20 = vld [vmem:[%s6899_s1 + $0x14c] sm:$0xf0]  ;;  %v3493_v26 = vld [vmem:[%s6899_s1 + $0x130] sm:$0xf0]  ;;  %v4238_v10 = vld [vmem:[%s6899_s1 + $0xac] sm:$0xf]  ;;  %v3580_v17 = vor.u32 %v4276_v9, %v3579_v8 }
  0x47   :  { %1113 = vmatpush.bf16.msra.mxu1 %v3588_v29  ;;  %563 = vmatmul.bf16.vlgmr.msrb.gmra.mxu3 %v4675_v49  ;;  %v3508_v27 = vor.u32 %v4259_v20, %v3507_v19  ;;  %v3363_v29 = vld [vmem:[%s6899_s1 + $0x20] sm:$0xf]  ;;  %v3496_v37 = vor.u32 %v4253_v25, %v3493_v26  ;;  %v3435_v18 = vld [vmem:[%s6899_s1 + $0xa8] sm:$0xf]  ;;  %v4240_v19 = vld [vmem:[%s6899_s1 + $0xb4] sm:$0xf0] }
  0x48   :  { %525 = vmatmul.bf16.vlgmr.msrb.gmra.mxu1 %v4675_v49  ;;  %v3411_v49 = vld [vmem:[%s6899_s1 + $0x80] sm:$0xf]  ;;  %v3563_v22 = vld [vmem:[%s6899_s1 + $0x1a8] sm:$0xf]  ;;  %v3421_v25 = vld [vmem:[%s6899_s1 + $0x98] sm:$0xf0] }
  0x49   :  { %1133 = vmatpush.bf16.msra.mxu2 %v3448_v30  ;;  %v3412_v0 = vor.u32 %v4235_v58, %v3411_v49  ;;  %v4223_v30 = vld [vmem:[%s6899_s1 + $0x2c] sm:$0xf0]  ;;  %v3453_v49 = vld [vmem:[%s6899_s1 + $0xd8] sm:$0xf0]  ;;  %v3476_v58 = vor.u32 %v4251_v47, %v3475_v46  ;;  %v4266_v26 = vld [vmem:[%s6899_s1 + $0x18c] sm:$0xf] }
  0x4a   :  { %1152 = vmatpush.bf16.msra.mxu3 %v3576_v38  ;;  %1095 = vmatpush.bf16.msra.mxu0 %v3444_v40  ;;  %v3364_v38 = vor.u32 %v4223_v30, %v3363_v29  ;;  %v4249_v40 = vld [vmem:[%s6899_s1 + $0x104] sm:$0xf]  ;;  %v3419_v30 = vld [vmem:[%s6899_s1 + $0x88] sm:$0xf]  ;;  %v4226_v50 = vld [vmem:[%s6899_s1 + $0x4c] sm:$0xf] }
  0x4b   :  { %1114 = vmatpush.bf16.msra.mxu1 %v3572_v43  ;;  %v3352_v43 = vor.u32 %v4217_v33, %v3349_v35  ;;  %v3547_v35 = vld [vmem:[%s6899_s1 + $0x188] sm:$0xf]  ;;  %v3389_v51 = vld [vmem:[%s6899_s1 + $0x58] sm:$0xf0]  ;;  %v4224_v9 = vld [vmem:[%s6899_s1 + $0x34] sm:$0xf0] }
  0x4c   :  { %v3531_v47 = vld [vmem:[%s6899_s1 + $0x168] sm:$0xf]  ;;  %v4256_v14 = vld [vmem:[%s6899_s1 + $0x134] sm:$0xf0] }
  0x4d   :  { %1134 = vmatpush.bf16.msra.mxu2 %v3432_v45  ;;  %v4219_v45 = vld [vmem:[%s6899_s1 + $0xc] sm:$0xf0]  ;;  %v3371_v8 = vld [vmem:[%s6899_s1 + $0x28] sm:$0xf] }
  0x4e   :  { %1153 = vmatpush.bf16.msra.mxu3 %v3560_v53  ;;  %1096 = vmatpush.bf16.msra.mxu0 %v3428_v44  ;;  %v4248_v53 = vld [vmem:[%s6899_s1 + $0xf4] sm:$0xf0]  ;;  %v3595_v44 = vld [vmem:[%s6899_s1 + $0x1e8] sm:$0xf] }
  0x4f   :  { %1115 = vmatpush.bf16.msra.mxu1 %v3556_v56  ;;  %v3348_v56 = vor.u32 %v4219_v45, %v3347_v41  ;;  %v3468_v60 = vor.u32 %v4248_v53, %v3467_v52  ;;  %v3596_v61 = vor.u32 %v4280_v54, %v3595_v44  ;;  %v4258_v52 = vld [vmem:[%s6899_s1 + $0x14c] sm:$0xf]  ;;  %v3517_v53 = vld [vmem:[%s6899_s1 + $0x158] sm:$0xf0]  ;;  %v3339_v44 = vld [vmem:[%s6900_s0 + $0x30] sm:$0xf] }
  0x50   :  { %v4216_v54 = vld [vmem:[%s6900_s0 + $0x34] sm:$0xf0] }
  0x51   :  { %1135 = vmatpush.bf16.msra.mxu2 %v3416_v57  ;;  %v4242_v57 = vld [vmem:[%s6899_s1 + $0xcc] sm:$0xf] }
  0x52   :  { %1154 = vmatpush.bf16.msra.mxu3 %v3544_v63  ;;  %1097 = vmatpush.bf16.msra.mxu0 %v3412_v0  ;;  %v3581_v63 = vld [vmem:[%s6899_s1 + $0x1d8] sm:$0xf0]  ;;  %v3331_v0 = vld [vmem:[%s6900_s0 + $0x20] sm:$0xf] }
  0x53   :  { %1116 = vmatpush.bf16.msra.mxu1 %v3540_v3  ;;  %v3456_v3 = vor.u32 %v4242_v57, %v3453_v49  ;;  %v3584_v7 = vor.u32 %v4274_v62, %v3581_v63  ;;  %v3515_v62 = vld [vmem:[%s6899_s1 + $0x148] sm:$0xf]  ;;  %v4260_v63 = vld [vmem:[%s6899_s1 + $0x154] sm:$0xf0] }
  0x54   :  { %549 = vmatmul.bf16.gmra.mxu2 %v4780_v34 }
  0x55   :  { %1136 = vmatpush.bf16.msra.mxu2 %v3400_v4  ;;  %511 = vmatmul.bf16.gmra.mxu0 %v4780_v34  ;;  %v4246_v34 = vld [vmem:[%s6899_s1 + $0xec] sm:$0xf] }
  0x56   :  { %1155 = vmatpush.bf16.msra.mxu3 %v3528_v11  ;;  %1098 = vmatpush.bf16.msra.mxu0 %v3396_v12  ;;  %v3472_v48 = vor.u32 %v4246_v34, %v3469_v36  ;;  %v3333_v4 = vld [vmem:[%s6900_s0 + $0x28] sm:$0xf0]  ;;  %v5126_v11 = vor.u32 %v4214_v1, %v3331_v0  ;;  %v3437_v12 = vld [vmem:[%s6899_s1 + $0xb8] sm:$0xf0]  ;;  %v4268_v34 = vld [vmem:[%s6899_s1 + $0x194] sm:$0xf0]  ;;  %v5242_v1 = vor.u32 %v4216_v54, %v3339_v44 }
  0x57   :  { %1117 = vmatpush.bf16.msra.mxu1 %v3524_v15  ;;  %568 = vmatmul.bf16.gmra.mxu3 %v4791_v39  ;;  %v5137_v15 = vor.u32 %v4213_v2, %v3333_v4  ;;  %v3440_v20 = vor.u32 %v4238_v10, %v3437_v12  ;;  %v4230_v36 = vld [vmem:[%s6899_s1 + $0x6c] sm:$0xf]  ;;  %v3548_v41 = vor.u32 %v4268_v34, %v3547_v35  ;;  %v3373_v2 = vld [vmem:[%s6899_s1 + $0x38] sm:$0xf0]  ;;  %v3499_v10 = vld [vmem:[%s6899_s1 + $0x128] sm:$0xf] }
  0x58   :  { %530 = vmatmul.bf16.gmra.mxu1 %v4791_v39  ;;  %v3477_v39 = vld [vmem:[%s6899_s1 + $0x110] sm:$0xf0]  ;;  %v4222_v0 = vld [vmem:[%s6899_s1 + $0x2c] sm:$0xf]  ;;  %v3501_v4 = vld [vmem:[%s6899_s1 + $0x138] sm:$0xf0] }
  0x59   :  { %1137 = vmatpush.bf16.msra.mxu2 %v3384_v16  ;;  %v3480_v55 = vor.u32 %v4249_v40, %v3477_v39  ;;  %v3452_v16 = vor.u32 %v4244_v6, %v3451_v5  ;;  %v3533_v40 = vld [vmem:[%s6899_s1 + $0x178] sm:$0xf0]  ;;  %v3420_v39 = vor.u32 %v4236_v31, %v3419_v30  ;;  %v3376_v12 = vor.u32 %v4222_v0, %v3373_v2  ;;  %v4252_v31 = vld [vmem:[%s6899_s1 + $0x114] sm:$0xf0]  ;;  %v4305_v44 = vld [vmem:[%s6899_s1 + $0xa4] sm:$0xf] }
  0x5a   :  { %1156 = vmatpush.bf16.msra.mxu3 %v3512_v23  ;;  %1099 = vmatpush.bf16.msra.mxu0 %v3380_v24  ;;  %v4272_v23 = vld [vmem:[%s6899_s1 + $0x1b4] sm:$0xf0]  ;;  %v4234_v24 = vld [vmem:[%s6899_s1 + $0x8c] sm:$0xf]  ;;  %v3701_v54 = vld [vmem:[%s6899_s1 + $0xb0] sm:$0xf0] }
  0x5b   :  { %1118 = vmatpush.bf16.msra.mxu1 %v3508_v27  ;;  %v3549_v27 = vld [vmem:[%s6899_s1 + $0x198] sm:$0xf0]  ;;  %v3564_v29 = vor.u32 %v4272_v23, %v3563_v22  ;;  %v3424_v32 = vor.u32 %v4234_v24, %v3421_v25  ;;  %v4345_v22 = vld [vmem:[%s6899_s1 + $0x1e4] sm:$0xf]  ;;  %v3861_v23 = vld [vmem:[%s6899_s1 + $0x1f0] sm:$0xf0]  ;;  %v3372_v24 = vor.u32 %v4224_v9, %v3371_v8  ;;  %v3500_v25 = vor.u32 %v4256_v14, %v3499_v10 }
  0x5c   :  { %v3552_v33 = vor.u32 %v4266_v26, %v3549_v27  ;;  %v3355_v26 = vld [vmem:[%s6899_s1 + $0x8] sm:$0xf]  ;;  %v4220_v27 = vld [vmem:[%s6899_s1 + $0x14] sm:$0xf0]  ;;  %v3864_v34 = vor.u32 %v4345_v22, %v3861_v23  ;;  %v4301_v0 = vld [vmem:[%s6899_s1 + $0x84] sm:$0xf] }
  0x5d   :  { %1138 = vmatpush.bf16.msra.mxu2 %v3368_v28  ;;  %v3436_v28 = vor.u32 %v4240_v19, %v3435_v18  ;;  %v4250_v18 = vld [vmem:[%s6899_s1 + $0x10c] sm:$0xf]  ;;  %v3485_v19 = vld [vmem:[%s6899_s1 + $0x118] sm:$0xf0]  ;;  %v3685_v2 = vld [vmem:[%s6899_s1 + $0x90] sm:$0xf0] }
  0x5e   :  { %1157 = vmatpush.bf16.msra.mxu3 %v3496_v37  ;;  %1100 = vmatpush.bf16.msra.mxu0 %v3364_v38  ;;  %v3405_v37 = vld [vmem:[%s6899_s1 + $0x78] sm:$0xf0]  ;;  %v4262_v38 = vld [vmem:[%s6899_s1 + $0x16c] sm:$0xf]  ;;  %v3488_v30 = vor.u32 %v4250_v18, %v3485_v19  ;;  %v3683_v8 = vld [vmem:[%s6899_s1 + $0x80] sm:$0xf] }
  0x5f   :  { %1119 = vmatpush.bf16.msra.mxu1 %v3492_v42  ;;  %v3403_v42 = vld [vmem:[%s6899_s1 + $0x68] sm:$0xf]  ;;  %v3408_v45 = vor.u32 %v4230_v36, %v3405_v37  ;;  %v3536_v46 = vor.u32 %v4262_v38, %v3533_v40  ;;  %v3859_v36 = vld [vmem:[%s6899_s1 + $0x1e0] sm:$0xf]  ;;  %v4347_v37 = vld [vmem:[%s6899_s1 + $0x1ec] sm:$0xf0] }
  0x60   :  { %v4309_v38 = vld [vmem:[%s6899_s1 + $0xc4] sm:$0xf]  ;;  %v3717_v40 = vld [vmem:[%s6899_s1 + $0xd0] sm:$0xf0]  ;;  %v4303_v9 = vld [vmem:[%s6899_s1 + $0x8c] sm:$0xf0] }
  0x61   :  { %1139 = vmatpush.bf16.msra.mxu2 %v3352_v43  ;;  %v4232_v43 = vld [vmem:[%s6899_s1 + $0x74] sm:$0xf0]  ;;  %v3811_v10 = vld [vmem:[%s6899_s1 + $0x180] sm:$0xf]  ;;  %v4297_v14 = vld [vmem:[%s6899_s1 + $0x64] sm:$0xf] }
  0x62   :  { %1158 = vmatpush.bf16.msra.mxu3 %v3480_v55  ;;  %1101 = vmatpush.bf16.msra.mxu0 %v3348_v56  ;;  %v4215_v55 = vld [vmem:[%s6900_s0 + $0x34] sm:$0xf]  ;;  %v3341_v56 = vld [vmem:[%s6900_s0 + $0x38] sm:$0xf0]  ;;  %v3404_v57 = vor.u32 %v4232_v43, %v3403_v42  ;;  %v3356_v42 = vor.u32 %v4220_v27, %v3355_v26  ;;  %v3795_v22 = vld [vmem:[%s6899_s1 + $0x160] sm:$0xf] }
  0x63   :  { %1120 = vmatpush.bf16.msra.mxu1 %v3476_v58  ;;  %v3387_v58 = vld [vmem:[%s6899_s1 + $0x48] sm:$0xf]  ;;  %v5253_v5 = vor.u32 %v4215_v55, %v3341_v56  ;;  %v3797_v19 = vld [vmem:[%s6899_s1 + $0x170] sm:$0xf0]  ;;  %v4331_v23 = vld [vmem:[%s6899_s1 + $0x16c] sm:$0xf0] }
  0x64   :  { %1140 = vmatmul.bf16.vlgmr.msra.gmra.mxu2 %v5126_v11  ;;  %v4293_v26 = vld [vmem:[%s6899_s1 + $0x44] sm:$0xf]  ;;  %v3653_v27 = vld [vmem:[%s6899_s1 + $0x50] sm:$0xf0] }
  0x65   :  { %1208 = vmatpush.bf16.msrb.mxu2 %v3472_v48  ;;  %1102 = vmatmul.bf16.vlgmr.msra.gmra.mxu0 %v5126_v11  ;;  %v4264_v48 = vld [vmem:[%s6899_s1 + $0x174] sm:$0xf0] }
  0x66   :  { %1227 = vmatpush.bf16.msrb.mxu3 %v3600_v59  ;;  %1170 = vmatpush.bf16.msrb.mxu0 %v3468_v60  ;;  %v3532_v49 = vor.u32 %v4264_v48, %v3531_v47  ;;  %v4228_v59 = vld [vmem:[%s6899_s1 + $0x54] sm:$0xf0]  ;;  %v3392_v60 = vor.u32 %v4226_v50, %v3389_v51  ;;  %v3715_v47 = vld [vmem:[%s6899_s1 + $0xc0] sm:$0xf]  ;;  %v3720_v48 = vor.u32 %v4309_v38, %v3717_v40  ;;  %v4311_v51 = vld [vmem:[%s6899_s1 + $0xcc] sm:$0xf0] }
  0x67   :  { %1189 = vmatpush.bf16.msrb.mxu1 %v3596_v61  ;;  %1159 = vmatmul.bf16.vlgmr.msra.gmra.mxu3 %v5137_v15  ;;  %v3520_v61 = vor.u32 %v4258_v52, %v3517_v53  ;;  %v3388_v6 = vor.u32 %v4228_v59, %v3387_v58  ;;  %v3843_v52 = vld [vmem:[%s6899_s1 + $0x1c0] sm:$0xf]  ;;  %v4343_v53 = vld [vmem:[%s6899_s1 + $0x1cc] sm:$0xf0]  ;;  %v3716_v55 = vor.u32 %v4311_v51, %v3715_v47  ;;  %v4289_v38 = vld [vmem:[%s6899_s1 + $0x24] sm:$0xf] }
  0x68   :  { %1121 = vmatmul.bf16.vlgmr.msra.gmra.mxu1 %v5137_v15  ;;  %v3844_v56 = vor.u32 %v4343_v53, %v3843_v52  ;;  %v3699_v58 = vld [vmem:[%s6899_s1 + $0xa0] sm:$0xf]  ;;  %v4307_v59 = vld [vmem:[%s6899_s1 + $0xac] sm:$0xf0]  ;;  %v3637_v40 = vld [vmem:[%s6899_s1 + $0x30] sm:$0xf0] }
  0x69   :  { %1209 = vmatpush.bf16.msrb.mxu2 %v3456_v3  ;;  %v4254_v3 = vld [vmem:[%s6899_s1 + $0x12c] sm:$0xf]  ;;  %v3763_v47 = vld [vmem:[%s6899_s1 + $0x120] sm:$0xf]  ;;  %v3640_v51 = vor.u32 %v4289_v38, %v3637_v40  ;;  %v3621_v53 = vld [vmem:[%s6899_s1 + $0x10] sm:$0xf0] }
  0x6a   :  { %1228 = vmatpush.bf16.msrb.mxu3 %v3584_v7  ;;  %1171 = vmatpush.bf16.msrb.mxu0 %v3452_v16  ;;  %v3516_v7 = vor.u32 %v4260_v63, %v3515_v62  ;;  %v3504_v13 = vor.u32 %v4254_v3, %v3501_v4  ;;  %v4218_v16 = vld [vmem:[%s6899_s1 + $0xc] sm:$0xf]  ;;  %v3704_v62 = vor.u32 %v4305_v44, %v3701_v54  ;;  %v4317_v44 = vld [vmem:[%s6899_s1 + $0x104] sm:$0xf]  ;;  %v3749_v54 = vld [vmem:[%s6899_s1 + $0x110] sm:$0xf0] }
  0x6b   :  { %1190 = vmatpush.bf16.msrb.mxu1 %v3580_v17  ;;  %v3357_v17 = vld [vmem:[%s6899_s1 + $0x18] sm:$0xf0]  ;;  %v3700_v3 = vor.u32 %v4307_v59, %v3699_v58  ;;  %v3747_v58 = vld [vmem:[%s6899_s1 + $0x100] sm:$0xf]  ;;  %v4319_v59 = vld [vmem:[%s6899_s1 + $0x10c] sm:$0xf0] }
  0x6d   :  { %1210 = vmatpush.bf16.msrb.mxu2 %v3440_v20  ;;  %v4313_v20 = vld [vmem:[%s6899_s1 + $0xe4] sm:$0xf] }
  0x6e   :  { %1229 = vmatpush.bf16.msrb.mxu3 %v3568_v21  ;;  %1172 = vmatpush.bf16.msrb.mxu0 %v3436_v28  ;;  %v3733_v21 = vld [vmem:[%s6899_s1 + $0xf0] sm:$0xf0]  ;;  %v3483_v28 = vld [vmem:[%s6899_s1 + $0x108] sm:$0xf] }
  0x6f   :  { %1191 = vmatpush.bf16.msrb.mxu1 %v3564_v29  ;;  %v3360_v29 = vor.u32 %v4218_v16, %v3357_v17  ;;  %v3736_v35 = vor.u32 %v4313_v20, %v3733_v21  ;;  %v3484_v43 = vor.u32 %v4252_v31, %v3483_v28  ;;  %v3669_v16 = vld [vmem:[%s6899_s1 + $0x70] sm:$0xf0]  ;;  %v3684_v17 = vor.u32 %v4303_v9, %v3683_v8  ;;  %v3667_v20 = vld [vmem:[%s6899_s1 + $0x60] sm:$0xf]  ;;  %v4299_v21 = vld [vmem:[%s6899_s1 + $0x6c] sm:$0xf0] }
  0x70   :  { %v3668_v28 = vor.u32 %v4299_v21, %v3667_v20  ;;  %v3781_v31 = vld [vmem:[%s6899_s1 + $0x150] sm:$0xf0] }
  0x71   :  { %1211 = vmatpush.bf16.msrb.mxu2 %v3424_v32  ;;  %v3731_v32 = vld [vmem:[%s6899_s1 + $0xe0] sm:$0xf] }
  0x72   :  { %1230 = vmatpush.bf16.msrb.mxu3 %v3552_v33  ;;  %1173 = vmatpush.bf16.msrb.mxu0 %v3420_v39  ;;  %v4315_v33 = vld [vmem:[%s6899_s1 + $0xec] sm:$0xf0]  ;;  %v4341_v39 = vld [vmem:[%s6899_s1 + $0x1c4] sm:$0xf] }
  0x73   :  { %1192 = vmatpush.bf16.msrb.mxu1 %v3548_v41  ;;  %v3845_v41 = vld [vmem:[%s6899_s1 + $0x1d0] sm:$0xf0] }
  0x74   :  { %1145 = vmatmul.bf16.gmra.mxu2 %v5242_v1  ;;  %v3848_v50 = vor.u32 %v4341_v39, %v3845_v41 }
  0x75   :  { %1212 = vmatpush.bf16.msrb.mxu2 %v3408_v45  ;;  %1107 = vmatmul.bf16.gmra.mxu0 %v5242_v1  ;;  %v3732_v45 = vor.u32 %v4315_v33, %v3731_v32  ;;  %v3651_v32 = vld [vmem:[%s6899_s1 + $0x40] sm:$0xf]  ;;  %v4295_v33 = vld [vmem:[%s6899_s1 + $0x4c] sm:$0xf0] }
  0x76   :  { %1231 = vmatpush.bf16.msrb.mxu3 %v3536_v46  ;;  %1174 = vmatpush.bf16.msrb.mxu0 %v3404_v57  ;;  %v3860_v46 = vor.u32 %v4347_v37, %v3859_v36  ;;  %v4337_v57 = vld [vmem:[%s6899_s1 + $0x1a4] sm:$0xf]  ;;  %v3656_v36 = vor.u32 %v4293_v26, %v3653_v27  ;;  %v3652_v39 = vor.u32 %v4295_v33, %v3651_v32  ;;  %v3605_v27 = vld [vmem:[%s6900_s0 + $0x48] sm:$0xf0]  ;;  %v3707_v32 = vld [vmem:[%s6899_s1 + $0xa8] sm:$0xf] }
  0x77   :  { %1193 = vmatpush.bf16.msrb.mxu1 %v3532_v49  ;;  %1164 = vmatmul.bf16.gmra.mxu3 %v5253_v5  ;;  %v3829_v49 = vld [vmem:[%s6899_s1 + $0x1b0] sm:$0xf0] }
  0x78   :  { %1126 = vmatmul.bf16.gmra.mxu1 %v5253_v5  ;;  %v3832_v63 = vor.u32 %v4337_v57, %v3829_v49  ;;  %v3619_v57 = vld [vmem:[%s6899_s1] sm:$0xf]  ;;  %v4287_v49 = vld [vmem:[%s6899_s1 + $0xc] sm:$0xf0] }
  0x79   :  { %1213 = vmatpush.bf16.msrb.mxu2 %v3392_v60  ;;  %v3827_v60 = vld [vmem:[%s6899_s1 + $0x1a0] sm:$0xf] }
  0x7a   :  { %1232 = vmatpush.bf16.msrb.mxu3 %v3520_v61  ;;  %1175 = vmatpush.bf16.msrb.mxu0 %v3388_v6  ;;  %v4339_v61 = vld [vmem:[%s6899_s1 + $0x1ac] sm:$0xf0]  ;;  %v4333_v6 = vld [vmem:[%s6899_s1 + $0x184] sm:$0xf] }
  0x7b   :  { %1194 = vmatpush.bf16.msrb.mxu1 %v3516_v7  ;;  %v3828_v4 = vor.u32 %v4339_v61, %v3827_v60  ;;  %v3813_v7 = vld [vmem:[%s6899_s1 + $0x190] sm:$0xf0]  ;;  %v4314_v60 = vld [vmem:[%s6899_s1 + $0xec] sm:$0xf]  ;;  %v3741_v61 = vld [vmem:[%s6899_s1 + $0xf8] sm:$0xf0] }
  0x7c   :  { %v3744_v8 = vor.u32 %v4314_v60, %v3741_v61  ;;  %v4330_v60 = vld [vmem:[%s6899_s1 + $0x16c] sm:$0xf]  ;;  %v3805_v61 = vld [vmem:[%s6899_s1 + $0x178] sm:$0xf0] }
  0x7d   :  { %1214 = vmatpush.bf16.msrb.mxu2 %v3376_v12  ;;  %v4335_v12 = vld [vmem:[%s6899_s1 + $0x18c] sm:$0xf0] }
  0x7e   :  { %1233 = vmatpush.bf16.msrb.mxu3 %v3504_v13  ;;  %1176 = vmatpush.bf16.msrb.mxu0 %v3372_v24  ;;  %v3688_v13 = vor.u32 %v4301_v0, %v3685_v2  ;;  %v3812_v18 = vor.u32 %v4335_v12, %v3811_v10  ;;  %v3672_v24 = vor.u32 %v4297_v14, %v3669_v16  ;;  %v4310_v10 = vld [vmem:[%s6899_s1 + $0xcc] sm:$0xf]  ;;  %v3725_v12 = vld [vmem:[%s6899_s1 + $0xd8] sm:$0xf0] }
  0x7f   :  { %1195 = vmatpush.bf16.msrb.mxu1 %v3500_v25  ;;  %v3752_v2 = vor.u32 %v4317_v44, %v3749_v54  ;;  %v4342_v14 = vld [vmem:[%s6899_s1 + $0x1cc] sm:$0xf]  ;;  %v3853_v16 = vld [vmem:[%s6899_s1 + $0x1d8] sm:$0xf0]  ;;  %v3728_v20 = vor.u32 %v4310_v10, %v3725_v12  ;;  %v4336_v44 = vld [vmem:[%s6899_s1 + $0x194] sm:$0xf0] }
  0x80   :  { %v3856_v21 = vor.u32 %v4342_v14, %v3853_v16  ;;  %v3661_v10 = vld [vmem:[%s6899_s1 + $0x58] sm:$0xf0]  ;;  %v3659_v16 = vld [vmem:[%s6899_s1 + $0x48] sm:$0xf] }
  0x81   :  { %1215 = vmatpush.bf16.msrb.mxu2 %v3360_v29  ;;  %v3796_v29 = vor.u32 %v4331_v23, %v3795_v22  ;;  %v3603_v22 = vld [vmem:[%s6900_s0 + $0x40] sm:$0xf]  ;;  %v4282_v23 = vld [vmem:[%s6900_s0 + $0x44] sm:$0xf0]  ;;  %v3789_v14 = vld [vmem:[%s6899_s1 + $0x158] sm:$0xf0] }
  0x82   :  { %1234 = vmatpush.bf16.msrb.mxu3 %v3488_v30  ;;  %1177 = vmatpush.bf16.msrb.mxu0 %v3356_v42  ;;  %v4325_v30 = vld [vmem:[%s6899_s1 + $0x144] sm:$0xf] }
  0x83   :  { %1196 = vmatpush.bf16.msrb.mxu1 %v3484_v43  ;;  %v3784_v37 = vor.u32 %v4325_v30, %v3781_v31  ;;  %v4321_v42 = vld [vmem:[%s6899_s1 + $0x124] sm:$0xf]  ;;  %v3765_v43 = vld [vmem:[%s6899_s1 + $0x130] sm:$0xf0]  ;;  %v4338_v30 = vld [vmem:[%s6899_s1 + $0x1ac] sm:$0xf] }
  0x84   :  { %1216 = vmatmul.bf16.vlgmr.msrb.gmra.mxu2 %v5126_v11  ;;  %v3768_v52 = vor.u32 %v4321_v42, %v3765_v43  ;;  %v3837_v31 = vld [vmem:[%s6899_s1 + $0x1b8] sm:$0xf0]  ;;  %v4302_v43 = vld [vmem:[%s6899_s1 + $0x8c] sm:$0xf] }
  0x85   :  { %1804 = vmatpush.bf16.msra.mxu2 %v3736_v35  ;;  %1178 = vmatmul.bf16.vlgmr.msrb.gmra.mxu0 %v5126_v11  ;;  %v3816_v11 = vor.u32 %v4333_v6, %v3813_v7  ;;  %v3779_v35 = vld [vmem:[%s6899_s1 + $0x140] sm:$0xf]  ;;  %v3620_v6 = vor.u32 %v4287_v49, %v3619_v57  ;;  %v3748_v7 = vor.u32 %v4319_v59, %v3747_v58  ;;  %v3677_v57 = vld [vmem:[%s6899_s1 + $0x78] sm:$0xf0] }
  0x86   :  { %1823 = vmatpush.bf16.msra.mxu3 %v3864_v34  ;;  %1766 = vmatpush.bf16.msra.mxu0 %v3732_v45  ;;  %v4327_v34 = vld [vmem:[%s6899_s1 + $0x14c] sm:$0xf0]  ;;  %v3635_v45 = vld [vmem:[%s6899_s1 + $0x20] sm:$0xf]  ;;  %v3840_v42 = vor.u32 %v4338_v30, %v3837_v31  ;;  %v4322_v30 = vld [vmem:[%s6899_s1 + $0x12c] sm:$0xf] }
  0x87   :  { %1785 = vmatpush.bf16.msra.mxu1 %v3860_v46  ;;  %1235 = vmatmul.bf16.vlgmr.msrb.gmra.mxu3 %v5137_v15  ;;  %v3780_v41 = vor.u32 %v4327_v34, %v3779_v35  ;;  %v4291_v46 = vld [vmem:[%s6899_s1 + $0x2c] sm:$0xf0]  ;;  %v5570_v35 = vor.u32 %v4282_v23, %v3603_v22  ;;  %v4308_v34 = vld [vmem:[%s6899_s1 + $0xb4] sm:$0xf0]  ;;  %v3613_v22 = vld [vmem:[%s6900_s0 + $0x58] sm:$0xf0] }
  0x88   :  { %1197 = vmatmul.bf16.vlgmr.msrb.gmra.mxu1 %v5137_v15  ;;  %v4329_v15 = vld [vmem:[%s6899_s1 + $0x164] sm:$0xf]  ;;  %v3773_v31 = vld [vmem:[%s6899_s1 + $0x138] sm:$0xf0] }
  0x89   :  { %1805 = vmatpush.bf16.msra.mxu2 %v3720_v48  ;;  %v3800_v25 = vor.u32 %v4329_v15, %v3797_v19  ;;  %v4323_v48 = vld [vmem:[%s6899_s1 + $0x12c] sm:$0xf0]  ;;  %v3851_v15 = vld [vmem:[%s6899_s1 + $0x1c8] sm:$0xf]  ;;  %v4344_v19 = vld [vmem:[%s6899_s1 + $0x1d4] sm:$0xf0] }
  0x8a   :  { %1824 = vmatpush.bf16.msra.mxu3 %v3848_v50  ;;  %1767 = vmatpush.bf16.msra.mxu0 %v3716_v55  ;;  %v4285_v50 = vld [vmem:[%s6899_s1 + $0x4] sm:$0xf]  ;;  %v3636_v55 = vor.u32 %v4291_v46, %v3635_v45  ;;  %v3852_v26 = vor.u32 %v4344_v19, %v3851_v15  ;;  %v3693_v45 = vld [vmem:[%s6899_s1 + $0x98] sm:$0xf0]  ;;  %v3708_v46 = vor.u32 %v4308_v34, %v3707_v32  ;;  %v4328_v15 = vld [vmem:[%s6899_s1 + $0x154] sm:$0xf0] }
  0x8b   :  { %1786 = vmatpush.bf16.msra.mxu1 %v3844_v56  ;;  %v3764_v56 = vor.u32 %v4323_v48, %v3763_v47  ;;  %v3624_v0 = vor.u32 %v4285_v50, %v3621_v53  ;;  %v4334_v48 = vld [vmem:[%s6899_s1 + $0x18c] sm:$0xf]  ;;  %v3821_v50 = vld [vmem:[%s6899_s1 + $0x198] sm:$0xf0]  ;;  %v3819_v53 = vld [vmem:[%s6899_s1 + $0x188] sm:$0xf]  ;;  %v3696_v54 = vor.u32 %v4302_v43, %v3693_v45 }
  0x8c   :  { %v3820_v59 = vor.u32 %v4336_v44, %v3819_v53  ;;  %v3611_v19 = vld [vmem:[%s6900_s0 + $0x50] sm:$0xf]  ;;  %v3643_v32 = vld [vmem:[%s6899_s1 + $0x28] sm:$0xf]  ;;  %v3757_v53 = vld [vmem:[%s6899_s1 + $0x118] sm:$0xf0] }
  0x8d   :  { %1806 = vmatpush.bf16.msra.mxu2 %v3704_v62  ;;  %v3869_v62 = vld [vmem:[%s6899_s1 + $0x1f8] sm:$0xf0] }
  0x8e   :  { %1825 = vmatpush.bf16.msra.mxu3 %v3832_v63  ;;  %1768 = vmatpush.bf16.msra.mxu0 %v3700_v3  ;;  %v3739_v63 = vld [vmem:[%s6899_s1 + $0xe8] sm:$0xf] }
  0x8f   :  { %1787 = vmatpush.bf16.msra.mxu1 %v3828_v4  ;;  %v3867_v3 = vld [vmem:[%s6899_s1 + $0x1e8] sm:$0xf]  ;;  %v4348_v4 = vld [vmem:[%s6899_s1 + $0x1f4] sm:$0xf0] }
  0x91   :  { %1807 = vmatpush.bf16.msra.mxu2 %v3688_v13 }
  0x92   :  { %1826 = vmatpush.bf16.msra.mxu3 %v3816_v11  ;;  %1769 = vmatpush.bf16.msra.mxu0 %v3684_v17  ;;  %v3868_v11 = vor.u32 %v4348_v4, %v3867_v3  ;;  %v3723_v17 = vld [vmem:[%s6899_s1 + $0xc8] sm:$0xf] }
  0x93   :  { %1788 = vmatpush.bf16.msra.mxu1 %v3812_v18  ;;  %v4312_v18 = vld [vmem:[%s6899_s1 + $0xd4] sm:$0xf0] }
  0x94   :  { %1221 = vmatmul.bf16.gmra.mxu2 %v5242_v1 }
  0x95   :  { %1808 = vmatpush.bf16.msra.mxu2 %v3672_v24  ;;  %1183 = vmatmul.bf16.gmra.mxu0 %v5242_v1  ;;  %v4346_v1 = vld [vmem:[%s6899_s1 + $0x1ec] sm:$0xf]  ;;  %v4281_v24 = vld [vmem:[%s6900_s0 + $0x44] sm:$0xf] }
  0x96   :  { %1827 = vmatpush.bf16.msra.mxu3 %v3800_v25  ;;  %1770 = vmatpush.bf16.msra.mxu0 %v3668_v28  ;;  %v3872_v9 = vor.u32 %v4346_v1, %v3869_v62  ;;  %v3724_v25 = vor.u32 %v4312_v18, %v3723_v17  ;;  %v4306_v28 = vld [vmem:[%s6899_s1 + $0xac] sm:$0xf]  ;;  %v5581_v40 = vor.u32 %v4281_v24, %v3605_v27  ;;  %v3675_v1 = vld [vmem:[%s6899_s1 + $0x68] sm:$0xf]  ;;  %v4296_v17 = vld [vmem:[%s6899_s1 + $0x54] sm:$0xf0] }
  0x97   :  { %1789 = vmatpush.bf16.msra.mxu1 %v3796_v29  ;;  %1240 = vmatmul.bf16.gmra.mxu3 %v5253_v5  ;;  %v3709_v29 = vld [vmem:[%s6899_s1 + $0xb8] sm:$0xf0]  ;;  %v3787_v18 = vld [vmem:[%s6899_s1 + $0x148] sm:$0xf] }
  0x98   :  { %1202 = vmatmul.bf16.gmra.mxu1 %v5253_v5  ;;  %v4316_v5 = vld [vmem:[%s6899_s1 + $0xf4] sm:$0xf0] }
  0x99   :  { %1809 = vmatpush.bf16.msra.mxu2 %v3656_v36  ;;  %v3740_v13 = vor.u32 %v4316_v5, %v3739_v63  ;;  %v3835_v36 = vld [vmem:[%s6899_s1 + $0x1a8] sm:$0xf]  ;;  %v4332_v5 = vld [vmem:[%s6899_s1 + $0x174] sm:$0xf0] }
  0x9a   :  { %1828 = vmatpush.bf16.msra.mxu3 %v3784_v37  ;;  %1771 = vmatpush.bf16.msra.mxu0 %v3652_v39  ;;  %v4340_v37 = vld [vmem:[%s6899_s1 + $0x1b4] sm:$0xf0] }
  0x9b   :  { %1790 = vmatpush.bf16.msra.mxu1 %v3780_v41  ;;  %v3712_v41 = vor.u32 %v4306_v28, %v3709_v29  ;;  %v3836_v47 = vor.u32 %v4340_v37, %v3835_v36  ;;  %v3660_v28 = vor.u32 %v4296_v17, %v3659_v16  ;;  %v3788_v29 = vor.u32 %v4328_v15, %v3787_v18  ;;  %v4292_v37 = vld [vmem:[%s6899_s1 + $0x34] sm:$0xf0] }
  0x9c   :  { %v3644_v44 = vor.u32 %v4292_v37, %v3643_v32  ;;  %v3971_v37 = vld [vmem:[%s6899_s1 + $0xa0] sm:$0xf] }
  0x9d   :  { %1810 = vmatpush.bf16.msra.mxu2 %v3640_v51  ;;  %v3691_v51 = vld [vmem:[%s6899_s1 + $0x88] sm:$0xf] }
  0x9e   :  { %1829 = vmatpush.bf16.msra.mxu3 %v3768_v52  ;;  %1772 = vmatpush.bf16.msra.mxu0 %v3636_v55  ;;  %v4304_v52 = vld [vmem:[%s6899_s1 + $0x94] sm:$0xf0]  ;;  %v3824_v55 = vor.u32 %v4334_v48, %v3821_v50  ;;  %v3776_v50 = vor.u32 %v4322_v30, %v3773_v31  ;;  %v4373_v30 = vld [vmem:[%s6899_s1 + $0xa4] sm:$0xf]  ;;  %v3973_v31 = vld [vmem:[%s6899_s1 + $0xb0] sm:$0xf0] }
  0x9f   :  { %1791 = vmatpush.bf16.msra.mxu1 %v3764_v56  ;;  %v4298_v56 = vld [vmem:[%s6899_s1 + $0x6c] sm:$0xf]  ;;  %v3692_v58 = vor.u32 %v4304_v52, %v3691_v51  ;;  %v3629_v51 = vld [vmem:[%s6899_s1 + $0x18] sm:$0xf0] }
  0xa0   :  { %v431_v33 = vpop.f32.mrf.mxu0  ;;  %v4318_v52 = vld [vmem:[%s6899_s1 + $0x10c] sm:$0xf] }
  0xa1   :  { %1811 = vmatpush.bf16.msra.mxu2 %v3624_v0  ;;  %v450_v38 = vpop.f32.mrf.mxu1  ;;  %v4300_v0 = vld [vmem:[%s6899_s1 + $0x74] sm:$0xf0] }
  0xa2   :  { %1830 = vmatpush.bf16.msra.mxu3 %v3752_v2  ;;  %1773 = vmatpush.bf16.msra.mxu0 %v3620_v6  ;;  %v5583_v39 = vadd.f32 %v450_v38, %v431_v33  ;;  %v3803_v2 = vld [vmem:[%s6899_s1 + $0x168] sm:$0xf]  ;;  %v3676_v12 = vor.u32 %v4300_v0, %v3675_v1  ;;  %v4003_v1 = vld [vmem:[%s6899_s1 + $0xe0] sm:$0xf]  ;;  %v4383_v0 = vld [vmem:[%s6899_s1 + $0xec] sm:$0xf0] }
  0xa3   :  { %1792 = vmatpush.bf16.msra.mxu1 %v3748_v7  ;;  %v3680_v7 = vor.u32 %v4298_v56, %v3677_v57  ;;  %v3771_v38 = vld [vmem:[%s6899_s1 + $0x128] sm:$0xf]  ;;  %v4288_v56 = vld [vmem:[%s6899_s1 + $0x14] sm:$0xf0]  ;;  %v4004_v18 = vor.u32 %v4383_v0, %v4003_v1  ;;  %v4403_v1 = vld [vmem:[%s6899_s1 + $0x18c] sm:$0xf0] }
  0xa4   :  { %1812 = vmatmul.bf16.vlgmr.msra.gmra.mxu2 %v5570_v35  ;;  %v3755_v57 = vld [vmem:[%s6899_s1 + $0x108] sm:$0xf]  ;;  %v3941_v0 = vld [vmem:[%s6899_s1 + $0x70] sm:$0xf0] }
  0xa5   :  { %1880 = vmatpush.bf16.msrb.mxu2 %v3744_v8  ;;  %1774 = vmatmul.bf16.vlgmr.msra.gmra.mxu0 %v5570_v35  ;;  %v3808_v8 = vor.u32 %v4330_v60, %v3805_v61  ;;  %v4413_v60 = vld [vmem:[%s6899_s1 + $0x1e4] sm:$0xf]  ;;  %v4133_v61 = vld [vmem:[%s6899_s1 + $0x1f0] sm:$0xf0] }
  0xa6   :  { %1899 = vmatpush.bf16.msrb.mxu3 %v3872_v9  ;;  %1842 = vmatpush.bf16.msrb.mxu0 %v3740_v13  ;;  %v4294_v9 = vld [vmem:[%s6899_s1 + $0x4c] sm:$0xf]  ;;  %v3804_v13 = vor.u32 %v4332_v5, %v3803_v2  ;;  %v4131_v2 = vld [vmem:[%s6899_s1 + $0x1e0] sm:$0xf]  ;;  %v4415_v5 = vld [vmem:[%s6899_s1 + $0x1ec] sm:$0xf0] }
  0xa7   :  { %1861 = vmatpush.bf16.msrb.mxu1 %v3868_v11  ;;  %1831 = vmatmul.bf16.vlgmr.msra.gmra.mxu3 %v5581_v40  ;;  %v469_v49 = vpop.f32.mrf.mxu2  ;;  %v4326_v11 = vld [vmem:[%s6899_s1 + $0x14c] sm:$0xf]  ;;  %v3664_v23 = vor.u32 %v4294_v9, %v3661_v10  ;;  %v4132_v15 = vor.u32 %v4415_v5, %v4131_v2 }
  0xa8   :  { %1793 = vmatmul.bf16.vlgmr.msra.gmra.mxu1 %v5581_v40  ;;  %v488_v62 = vpop.f32.mrf.mxu3  ;;  %v433_v63 = vpop.f32.mrf.mxu0  ;;  %v3792_v24 = vor.u32 %v4326_v11, %v3789_v14  ;;  %v4377_v11 = vld [vmem:[%s6899_s1 + $0xc4] sm:$0xf]  ;;  %v3989_v14 = vld [vmem:[%s6899_s1 + $0xd0] sm:$0xf0] }
  0xa9   :  { %1881 = vmatpush.bf16.msrb.mxu2 %v3728_v20  ;;  %v5637_v3 = vadd.f32 %v488_v62, %v469_v49  ;;  %v452_v4 = vpop.f32.mrf.mxu1  ;;  %v4284_v20 = vld [vmem:[%s6900_s0 + $0x54] sm:$0xf0] }
  0xaa   :  { %1900 = vmatpush.bf16.msrb.mxu3 %v3856_v21  ;;  %1843 = vmatpush.bf16.msrb.mxu0 %v3724_v25  ;;  %v5639_v6 = vadd.f32 %v452_v4, %v433_v63  ;;  %v4283_v21 = vld [vmem:[%s6900_s0 + $0x54] sm:$0xf]  ;;  %v4290_v25 = vld [vmem:[%s6899_s1 + $0x2c] sm:$0xf]  ;;  %v5692_v36 = vor.u32 %v4284_v20, %v3611_v19  ;;  %v4320_v49 = vld [vmem:[%s6899_s1 + $0x114] sm:$0xf0]  ;;  %v3760_v63 = vor.u32 %v4318_v52, %v3757_v53 }
  0xab   :  { %1862 = vmatpush.bf16.msrb.mxu1 %v3852_v26  ;;  %6945 = vst [vmem:[#allocation3_spill] sm:$0xff] %v5637_v3  ;;  %v3645_v26 = vld [vmem:[%s6899_s1 + $0x38] sm:$0xf0]  ;;  %v5705_v45 = vor.u32 %v4283_v21, %v3613_v22  ;;  %v4409_v19 = vld [vmem:[%s6899_s1 + $0x1c4] sm:$0xf]  ;;  %v3976_v52 = vor.u32 %v4373_v30, %v3973_v31 }
  0xac   :  { %6946 = vst [vmem:[#allocation4_spill] sm:$0xff] %v5639_v6  ;;  %v3648_v48 = vor.u32 %v4290_v25, %v3645_v26  ;;  %v4117_v20 = vld [vmem:[%s6899_s1 + $0x1d0] sm:$0xf0]  ;;  %v3987_v21 = vld [vmem:[%s6899_s1 + $0xc0] sm:$0xf]  ;;  %v3992_v26 = vor.u32 %v4377_v11, %v3989_v14 }
  0xad   :  { %1882 = vmatpush.bf16.msrb.mxu2 %v3712_v41  ;;  %v4324_v41 = vld [vmem:[%s6899_s1 + $0x134] sm:$0xf0]  ;;  %v4411_v25 = vld [vmem:[%s6899_s1 + $0x1cc] sm:$0xf0]  ;;  %v4357_v31 = vld [vmem:[%s6899_s1 + $0x24] sm:$0xf] }
  0xae   :  { %1901 = vmatpush.bf16.msrb.mxu3 %v3840_v42  ;;  %1844 = vmatpush.bf16.msrb.mxu0 %v3708_v46  ;;  %v4286_v46 = vld [vmem:[%s6899_s1 + $0xc] sm:$0xf]  ;;  %v4395_v30 = vld [vmem:[%s6899_s1 + $0x14c] sm:$0xf0] }
  0xaf   :  { %1863 = vmatpush.bf16.msrb.mxu1 %v3836_v47  ;;  %v471_v27 = vpop.f32.mrf.mxu2  ;;  %v3632_v62 = vor.u32 %v4286_v46, %v3629_v51  ;;  %v4407_v46 = vld [vmem:[%s6899_s1 + $0x1ac] sm:$0xf0] }
  0xb0   :  { %v490_v33 = vpop.f32.mrf.mxu3  ;;  %v436_v34 = vpop.f32.mrf.mxu0 }
  0xb1   :  { %1883 = vmatpush.bf16.msrb.mxu2 %v3696_v54  ;;  %v5703_v42 = vadd.f32 %v490_v33, %v471_v27  ;;  %v455_v43 = vpop.f32.mrf.mxu1  ;;  %v3772_v54 = vor.u32 %v4324_v41, %v3771_v38  ;;  %v4120_v27 = vor.u32 %v4409_v19, %v4117_v20  ;;  %v4405_v33 = vld [vmem:[%s6899_s1 + $0x1a4] sm:$0xf]  ;;  %v4375_v41 = vld [vmem:[%s6899_s1 + $0xac] sm:$0xf0]  ;;  %v3925_v20 = vld [vmem:[%s6899_s1 + $0x50] sm:$0xf0] }
  0xb2   :  { %1902 = vmatpush.bf16.msrb.mxu3 %v3824_v55  ;;  %1845 = vmatpush.bf16.msrb.mxu0 %v3692_v58  ;;  %v5710_v47 = vadd.f32 %v455_v43, %v436_v34  ;;  %v3627_v55 = vld [vmem:[%s6899_s1 + $0x8] sm:$0xf]  ;;  %v4381_v58 = vld [vmem:[%s6899_s1 + $0xe4] sm:$0xf]  ;;  %v4101_v34 = vld [vmem:[%s6899_s1 + $0x1b0] sm:$0xf0] }
  0xb3   :  { %1864 = vmatpush.bf16.msrb.mxu1 %v3820_v59  ;;  %6947 = vst [vmem:[#allocation5_spill] sm:$0xff] %v5703_v42  ;;  %v4005_v59 = vld [vmem:[%s6899_s1 + $0xf0] sm:$0xf0]  ;;  %v4099_v43 = vld [vmem:[%s6899_s1 + $0x1a0] sm:$0xf]  ;;  %v4104_v53 = vor.u32 %v4405_v33, %v4101_v34 }
  0xb4   :  { %6948 = vst [vmem:[#allocation6_spill] sm:$0xff] %v5710_v47  ;;  %1817 = vmatmul.bf16.gmra.mxu2 %v5692_v36  ;;  %v4361_v19 = vld [vmem:[%s6899_s1 + $0x44] sm:$0xf] }
  0xb5   :  { %1884 = vmatpush.bf16.msrb.mxu2 %v3680_v7  ;;  %1779 = vmatmul.bf16.gmra.mxu0 %v5692_v36  ;;  %v3628_v7 = vor.u32 %v4288_v56, %v3627_v55  ;;  %v3972_v56 = vor.u32 %v4375_v41, %v3971_v37  ;;  %v3928_v33 = vor.u32 %v4361_v19, %v3925_v20  ;;  %v4389_v37 = vld [vmem:[%s6899_s1 + $0x124] sm:$0xf]  ;;  %v3907_v41 = vld [vmem:[%s6899_s1 + $0x20] sm:$0xf]  ;;  %v4416_v19 = vld [vmem:[%s6899_s1 + $0x1f4] sm:$0xf0] }
  0xb6   :  { %1903 = vmatpush.bf16.msrb.mxu3 %v3808_v8  ;;  %1846 = vmatpush.bf16.msrb.mxu0 %v3676_v12  ;;  %v3756_v8 = vor.u32 %v4320_v49, %v3755_v57  ;;  %v4008_v12 = vor.u32 %v4381_v58, %v4005_v59  ;;  %v4100_v57 = vor.u32 %v4407_v46, %v4099_v43  ;;  %v4401_v49 = vld [vmem:[%s6899_s1 + $0x184] sm:$0xf]  ;;  %v4085_v58 = vld [vmem:[%s6899_s1 + $0x190] sm:$0xf0]  ;;  %v3955_v59 = vld [vmem:[%s6899_s1 + $0x80] sm:$0xf] }
  0xb7   :  { %1865 = vmatpush.bf16.msrb.mxu1 %v3804_v13  ;;  %1836 = vmatmul.bf16.gmra.mxu3 %v5705_v45  ;;  %v474_v4 = vpop.f32.mrf.mxu2  ;;  %v4136_v13 = vor.u32 %v4413_v60, %v4133_v61  ;;  %v4371_v60 = vld [vmem:[%s6899_s1 + $0x8c] sm:$0xf0]  ;;  %v4083_v61 = vld [vmem:[%s6899_s1 + $0x180] sm:$0xf] }
  0xb8   :  { %1798 = vmatmul.bf16.gmra.mxu1 %v5705_v45  ;;  %v493_v9 = vpop.f32.mrf.mxu3  ;;  %v438_v10 = vpop.f32.mrf.mxu0  ;;  %v3956_v5 = vor.u32 %v4371_v60, %v3955_v59 }
  0xb9   :  { %1885 = vmatpush.bf16.msrb.mxu2 %v3664_v23  ;;  %v5767_v16 = vadd.f32 %v493_v9, %v474_v4  ;;  %v457_v17 = vpop.f32.mrf.mxu1  ;;  %v4379_v23 = vld [vmem:[%s6899_s1 + $0xcc] sm:$0xf0]  ;;  %v4084_v4 = vor.u32 %v4403_v1, %v4083_v61 }
  0xba   :  { %1904 = vmatpush.bf16.msrb.mxu3 %v3792_v24  ;;  %1847 = vmatpush.bf16.msrb.mxu0 %v3660_v28  ;;  %v5778_v22 = vadd.f32 %v457_v17, %v438_v10  ;;  %v4115_v24 = vld [vmem:[%s6899_s1 + $0x1c0] sm:$0xf]  ;;  %v3988_v28 = vor.u32 %v4379_v23, %v3987_v21  ;;  %v4367_v10 = vld [vmem:[%s6899_s1 + $0x6c] sm:$0xf0] }
  0xbb   :  { %1866 = vmatpush.bf16.msrb.mxu1 %v3788_v29  ;;  %6949 = vst [vmem:[#allocation7_spill] sm:$0xff] %v5767_v16  ;;  %v4116_v29 = vor.u32 %v4411_v25, %v4115_v24  ;;  %v4393_v25 = vld [vmem:[%s6899_s1 + $0x144] sm:$0xf] }
  0xbc   :  { %6950 = vst [vmem:[#allocation8_spill] sm:$0xff] %v5778_v22 }
  0xbd   :  { %1886 = vmatpush.bf16.msrb.mxu2 %v3648_v48 }
  0xbe   :  { %1905 = vmatpush.bf16.msrb.mxu3 %v3776_v50  ;;  %1848 = vmatpush.bf16.msrb.mxu0 %v3644_v44  ;;  %v4369_v44 = vld [vmem:[%s6899_s1 + $0x84] sm:$0xf] }
  0xbf   :  { %1867 = vmatpush.bf16.msrb.mxu1 %v3772_v54  ;;  %v476_v32 = vpop.f32.mrf.mxu2  ;;  %v3957_v54 = vld [vmem:[%s6899_s1 + $0x90] sm:$0xf0] }
  0xc0   :  { %v495_v38 = vpop.f32.mrf.mxu3 }
  0xc1   :  { %1887 = vmatpush.bf16.msrb.mxu2 %v3632_v62  ;;  %v5813_v48 = vadd.f32 %v495_v38, %v476_v32  ;;  %v3960_v62 = vor.u32 %v4369_v44, %v3957_v54  ;;  %v3909_v32 = vld [vmem:[%s6899_s1 + $0x30] sm:$0xf0] }
  0xc2   :  { %1906 = vmatpush.bf16.msrb.mxu3 %v3760_v63  ;;  %1849 = vmatpush.bf16.msrb.mxu0 %v3628_v7  ;;  %v507_v50 = vpop.f32.mrf.mxu0  ;;  %v4365_v63 = vld [vmem:[%s6899_s1 + $0x64] sm:$0xf]  ;;  %v4069_v7 = vld [vmem:[%s6899_s1 + $0x170] sm:$0xf0] }
  0xc3   :  { %1868 = vmatpush.bf16.msrb.mxu1 %v3756_v8  ;;  %6951 = vst [vmem:[#allocation9_spill] sm:$0xff] %v5813_v48  ;;  %v3939_v8 = vld [vmem:[%s6899_s1 + $0x60] sm:$0xf]  ;;  %v4037_v38 = vld [vmem:[%s6899_s1 + $0x130] sm:$0xf0] }
  0xc4   :  { %1888 = vmatmul.bf16.vlgmr.msrb.gmra.mxu2 %v5570_v35  ;;  %v3940_v23 = vor.u32 %v4367_v10, %v3939_v8  ;;  %v4387_v8 = vld [vmem:[%s6899_s1 + $0x10c] sm:$0xf0]  ;;  %v4013_v10 = vld [vmem:[%s6899_s1 + $0xf8] sm:$0xf0] }
  0xc5   :  { %2476 = vmatpush.bf16.msra.mxu2 %v4008_v12  ;;  %v526_v51 = vpop.f32.mrf.mxu1  ;;  %1850 = vmatmul.bf16.vlgmr.msrb.gmra.mxu0 %v5570_v35  ;;  %v4088_v35 = vor.u32 %v4401_v49, %v4085_v58  ;;  %v4067_v12 = vld [vmem:[%s6899_s1 + $0x160] sm:$0xf]  ;;  %v4040_v49 = vor.u32 %v4389_v37, %v4037_v38  ;;  %v4353_v58 = vld [vmem:[%s6899_s1 + $0x4] sm:$0xf]  ;;  %v4125_v37 = vld [vmem:[%s6899_s1 + $0x1d8] sm:$0xf0] }
  0xc6   :  { %2495 = vmatpush.bf16.msra.mxu3 %v4136_v13  ;;  %2438 = vmatpush.bf16.msra.mxu0 %v4004_v18  ;;  %v5821_v55 = vadd.f32 %v526_v51, %v507_v50  ;;  %v4399_v13 = vld [vmem:[%s6899_s1 + $0x16c] sm:$0xf0]  ;;  %v3944_v18 = vor.u32 %v4365_v63, %v3941_v0  ;;  %v4021_v63 = vld [vmem:[%s6899_s1 + $0x110] sm:$0xf0]  ;;  %v3995_v38 = vld [vmem:[%s6899_s1 + $0xc8] sm:$0xf] }
  0xc7   :  { %2457 = vmatpush.bf16.msra.mxu1 %v4132_v15  ;;  %1907 = vmatmul.bf16.vlgmr.msrb.gmra.mxu3 %v5581_v40  ;;  %v545_v2 = vpop.f32.mrf.mxu2  ;;  %v4068_v24 = vor.u32 %v4399_v13, %v4067_v12  ;;  %v4359_v51 = vld [vmem:[%s6899_s1 + $0x2c] sm:$0xf0]  ;;  %v4141_v13 = vld [vmem:[%s6899_s1 + $0x1f8] sm:$0xf0] }
  0xc8   :  { %6952 = vst [vmem:[#allocation10_spill] sm:$0xff] %v5821_v55  ;;  %1869 = vmatmul.bf16.vlgmr.msrb.gmra.mxu1 %v5581_v40  ;;  %v4397_v40 = vld [vmem:[%s6899_s1 + $0x164] sm:$0xf]  ;;  %v3908_v61 = vor.u32 %v4359_v51, %v3907_v41 }
  0xc9   :  { %2477 = vmatpush.bf16.msra.mxu2 %v3992_v26  ;;  %v4072_v15 = vor.u32 %v4397_v40, %v4069_v7  ;;  %v4053_v26 = vld [vmem:[%s6899_s1 + $0x150] sm:$0xf0]  ;;  %v4355_v40 = vld [vmem:[%s6899_s1 + $0xc] sm:$0xf0]  ;;  %v4019_v7 = vld [vmem:[%s6899_s1 + $0x100] sm:$0xf] }
  0xca   :  { %2496 = vmatpush.bf16.msra.mxu3 %v4120_v27  ;;  %2439 = vmatpush.bf16.msra.mxu0 %v3988_v28  ;;  %v564_v9 = vpop.f32.mrf.mxu3  ;;  %v509_v14 = vpop.f32.mrf.mxu0  ;;  %v3923_v27 = vld [vmem:[%s6899_s1 + $0x40] sm:$0xf]  ;;  %v4363_v28 = vld [vmem:[%s6899_s1 + $0x4c] sm:$0xf0]  ;;  %v4056_v34 = vor.u32 %v4393_v25, %v4053_v26 }
  0xcb   :  { %2458 = vmatpush.bf16.msra.mxu1 %v4116_v29  ;;  %v5869_v11 = vadd.f32 %v564_v9, %v545_v2  ;;  %v4051_v29 = vld [vmem:[%s6899_s1 + $0x140] sm:$0xf]  ;;  %v3924_v46 = vor.u32 %v4363_v28, %v3923_v27  ;;  %v4382_v9 = vld [vmem:[%s6899_s1 + $0xec] sm:$0xf] }
  0xcc   :  { %v4052_v50 = vor.u32 %v4395_v30, %v4051_v29  ;;  %v4016_v26 = vor.u32 %v4382_v9, %v4013_v10  ;;  %v4378_v28 = vld [vmem:[%s6899_s1 + $0xcc] sm:$0xf]  ;;  %v3997_v29 = vld [vmem:[%s6899_s1 + $0xd8] sm:$0xf0]  ;;  %v4107_v9 = vld [vmem:[%s6899_s1 + $0x1a8] sm:$0xf] }
  0xcd   :  { %2478 = vmatpush.bf16.msra.mxu2 %v3976_v52  ;;  %6953 = vst [vmem:[#allocation11_spill] sm:$0xff] %v5869_v11  ;;  %v528_v17 = vpop.f32.mrf.mxu1  ;;  %v4035_v52 = vld [vmem:[%s6899_s1 + $0x120] sm:$0xf]  ;;  %v633_v59 = vmul.f32 %v5869_v11, %v5869_v11  ;;  %v4408_v10 = vld [vmem:[%s6899_s1 + $0x1b4] sm:$0xf0] }
  0xce   :  { %2497 = vmatpush.bf16.msra.mxu3 %v4104_v53  ;;  %2440 = vmatpush.bf16.msra.mxu0 %v3972_v56  ;;  %v5877_v21 = vadd.f32 %v528_v17, %v509_v14  ;;  %v4391_v53 = vld [vmem:[%s6899_s1 + $0x12c] sm:$0xf0]  ;;  %v4011_v14 = vld [vmem:[%s6899_s1 + $0xe8] sm:$0xf] }
  0xcf   :  { %2459 = vmatpush.bf16.msra.mxu1 %v4100_v57  ;;  %v547_v43 = vpop.f32.mrf.mxu2  ;;  %v3912_v57 = vor.u32 %v4357_v31, %v3909_v32  ;;  %v4036_v1 = vor.u32 %v4391_v53, %v4035_v52 }
  0xd0   :  { %6954 = vst [vmem:[#allocation12_spill] sm:$0xff] %v5877_v21 }
  0xd1   :  { %2479 = vmatpush.bf16.msra.mxu2 %v3960_v62  ;;  %v3893_v62 = vld [vmem:[%s6899_s1 + $0x10] sm:$0xf0] }
  0xd2   :  { %2498 = vmatpush.bf16.msra.mxu3 %v4088_v35  ;;  %2441 = vmatpush.bf16.msra.mxu0 %v3956_v5  ;;  %v566_v44 = vpop.f32.mrf.mxu3  ;;  %v512_v56 = vpop.f32.mrf.mxu0  ;;  %v4385_v35 = vld [vmem:[%s6899_s1 + $0x104] sm:$0xf]  ;;  %v3896_v17 = vor.u32 %v4353_v58, %v3893_v62  ;;  %v4350_v58 = vld [vmem:[%s6900_s0 + $0x64] sm:$0xf0]  ;;  %v4374_v62 = vld [vmem:[%s6899_s1 + $0xac] sm:$0xf] }
  0xd3   :  { %2460 = vmatpush.bf16.msra.mxu1 %v4084_v4  ;;  %v5921_v54 = vadd.f32 %v566_v44, %v547_v43  ;;  %v3891_v4 = vld [vmem:[%s6899_s1] sm:$0xf]  ;;  %v4380_v43 = vld [vmem:[%s6899_s1 + $0xd4] sm:$0xf0]  ;;  %v4000_v44 = vor.u32 %v4378_v28, %v3997_v29 }
  0xd4   :  { %1893 = vmatmul.bf16.gmra.mxu2 %v5692_v36  ;;  %v4372_v29 = vld [vmem:[%s6899_s1 + $0x94] sm:$0xf0] }
  0xd5   :  { %2480 = vmatpush.bf16.msra.mxu2 %v3944_v18  ;;  %6955 = vst [vmem:[#allocation13_spill] sm:$0xff] %v5921_v54  ;;  %v531_v60 = vpop.f32.mrf.mxu1  ;;  %v617_v0 = vadd.f32 %v5921_v54, %v5869_v11  ;;  %v637_v2 = vmul.f32 %v5921_v54, %v5921_v54  ;;  %1855 = vmatmul.bf16.gmra.mxu0 %v5692_v36  ;;  %v4414_v36 = vld [vmem:[%s6899_s1 + $0x1ec] sm:$0xf] }
  0xd6   :  { %2499 = vmatpush.bf16.msra.mxu3 %v4072_v15  ;;  %2442 = vmatpush.bf16.msra.mxu0 %v3940_v23  ;;  %v5941_v5 = vadd.f32 %v531_v60, %v512_v56  ;;  %v4024_v18 = vor.u32 %v4385_v35, %v4021_v63  ;;  %v4139_v15 = vld [vmem:[%s6899_s1 + $0x1e8] sm:$0xf]  ;;  %v3892_v23 = vor.u32 %v4355_v40, %v3891_v4  ;;  %v3981_v35 = vld [vmem:[%s6899_s1 + $0xb8] sm:$0xf0] }
  0xd7   :  { %2461 = vmatpush.bf16.msra.mxu1 %v4068_v24  ;;  %v673_v12 = vadd.f32 %v637_v2, %v633_v59  ;;  %1912 = vmatmul.bf16.gmra.mxu3 %v5705_v45  ;;  %v550_v20 = vpop.f32.mrf.mxu2  ;;  %v4020_v24 = vor.u32 %v4387_v8, %v4019_v7  ;;  %v4144_v27 = vor.u32 %v4414_v36, %v4141_v13  ;;  %v4349_v59 = vld [vmem:[%s6900_s0 + $0x64] sm:$0xf]  ;;  %v4109_v2 = vld [vmem:[%s6899_s1 + $0x1b8] sm:$0xf0]  ;;  %v3979_v4 = vld [vmem:[%s6899_s1 + $0xa8] sm:$0xf] }
  0xd8   :  { %6956 = vst [vmem:[#allocation14_spill] sm:$0xff] %v5941_v5  ;;  %1874 = vmatmul.bf16.gmra.mxu1 %v5705_v45  ;;  %v4384_v45 = vld [vmem:[%s6899_s1 + $0xf4] sm:$0xf0]  ;;  %v3996_v60 = vor.u32 %v4380_v43, %v3995_v38  ;;  %v4366_v38 = vld [vmem:[%s6899_s1 + $0x6c] sm:$0xf] }
  0xd9   :  { %2481 = vmatpush.bf16.msra.mxu2 %v3928_v33  ;;  %v4012_v32 = vor.u32 %v4384_v45, %v4011_v14  ;;  %v4140_v33 = vor.u32 %v4416_v19, %v4139_v15  ;;  %v4376_v8 = vld [vmem:[%s6899_s1 + $0xb4] sm:$0xf0]  ;;  %v4370_v45 = vld [vmem:[%s6899_s1 + $0x8c] sm:$0xf]  ;;  %v3965_v15 = vld [vmem:[%s6899_s1 + $0x98] sm:$0xf0] }
  0xda   :  { %2500 = vmatpush.bf16.msra.mxu3 %v4056_v34  ;;  %2443 = vmatpush.bf16.msra.mxu0 %v3924_v46  ;;  %v569_v25 = vpop.f32.mrf.mxu3  ;;  %v514_v31 = vpop.f32.mrf.mxu0  ;;  %v4410_v34 = vld [vmem:[%s6899_s1 + $0x1cc] sm:$0xf]  ;;  %v4123_v46 = vld [vmem:[%s6899_s1 + $0x1c8] sm:$0xf] }
  0xdb   :  { %2462 = vmatpush.bf16.msra.mxu1 %v4052_v50  ;;  %v5989_v30 = vadd.f32 %v569_v25, %v550_v20  ;;  %v4412_v50 = vld [vmem:[%s6899_s1 + $0x1d4] sm:$0xf0]  ;;  %v4128_v56 = vor.u32 %v4410_v34, %v4125_v37  ;;  %v4402_v25 = vld [vmem:[%s6899_s1 + $0x18c] sm:$0xf]  ;;  %v3968_v34 = vor.u32 %v4370_v45, %v3965_v15  ;;  %v4351_v45 = vld [vmem:[%s6900_s0 + $0x74] sm:$0xf] }
  0xdc   :  { %v3885_v15 = vld [vmem:[%s6900_s0 + $0x78] sm:$0xf0] }
  0xdd   :  { %2482 = vmatpush.bf16.msra.mxu2 %v3912_v57  ;;  %6957 = vst [vmem:[#allocation15_spill] sm:$0xff] %v5989_v30  ;;  %v533_v41 = vpop.f32.mrf.mxu1  ;;  %v618_v51 = vadd.f32 %v617_v0, %v5989_v30  ;;  %v641_v52 = vmul.f32 %v5989_v30, %v5989_v30  ;;  %v4406_v0 = vld [vmem:[%s6899_s1 + $0x1ac] sm:$0xf] }
  0xde   :  { %2501 = vmatpush.bf16.msra.mxu3 %v4040_v49  ;;  %2444 = vmatpush.bf16.msra.mxu0 %v3908_v61  ;;  %v6012_v53 = vadd.f32 %v533_v41, %v514_v31  ;;  %v3875_v49 = vld [vmem:[%s6900_s0 + $0x60] sm:$0xf]  ;;  %v4124_v61 = vor.u32 %v4412_v50, %v4123_v46  ;;  %v4091_v31 = vld [vmem:[%s6899_s1 + $0x188] sm:$0xf]  ;;  %v3949_v41 = vld [vmem:[%s6899_s1 + $0x78] sm:$0xf0] }
  0xdf   :  { %2463 = vmatpush.bf16.msra.mxu1 %v4036_v1  ;;  %v674_v57 = vadd.f32 %v673_v12, %v641_v52  ;;  %v3877_v1 = vld [vmem:[%s6900_s0 + $0x68] sm:$0xf0]  ;;  %v552_v63 = vpop.f32.mrf.mxu2  ;;  %v6041_v7 = vor.u32 %v4350_v58, %v3875_v49  ;;  %v4077_v52 = vld [vmem:[%s6899_s1 + $0x178] sm:$0xf0]  ;;  %v4075_v49 = vld [vmem:[%s6899_s1 + $0x168] sm:$0xf] }
  0xe0   :  { %6958 = vst [vmem:[#allocation16_spill] sm:$0xff] %v6012_v53  ;;  %v6054_v13 = vor.u32 %v4349_v59, %v3877_v1  ;;  %v4400_v58 = vld [vmem:[%s6899_s1 + $0x174] sm:$0xf0]  ;;  %v3952_v1 = vor.u32 %v4366_v38, %v3949_v41 }
  0xe1   :  { %2483 = vmatpush.bf16.msra.mxu2 %v3896_v17  ;;  %v3984_v17 = vor.u32 %v4374_v62, %v3981_v35  ;;  %v4362_v35 = vld [vmem:[%s6899_s1 + $0x4c] sm:$0xf]  ;;  %v4360_v41 = vld [vmem:[%s6899_s1 + $0x34] sm:$0xf0] }
  0xe2   :  { %2502 = vmatpush.bf16.msra.mxu3 %v4024_v18  ;;  %2445 = vmatpush.bf16.msra.mxu0 %v3892_v23  ;;  %v571_v40 = vpop.f32.mrf.mxu3  ;;  %v1103_v36 = vpop.f32.mrf.mxu0  ;;  %v4112_v18 = vor.u32 %v4406_v0, %v4109_v2  ;;  %v3980_v23 = vor.u32 %v4376_v8, %v3979_v4  ;;  %v4076_v4 = vor.u32 %v4400_v58, %v4075_v49  ;;  %v4061_v8 = vld [vmem:[%s6899_s1 + $0x158] sm:$0xf0]  ;;  %v4354_v49 = vld [vmem:[%s6899_s1 + $0xc] sm:$0xf] }
  0xe3   :  { %2464 = vmatpush.bf16.msra.mxu1 %v4020_v24  ;;  %v6052_v12 = vadd.f32 %v571_v40, %v552_v63  ;;  %v4108_v24 = vor.u32 %v4408_v10, %v4107_v9  ;;  %v3933_v63 = vld [vmem:[%s6899_s1 + $0x58] sm:$0xf0]  ;;  %v4394_v40 = vld [vmem:[%s6899_s1 + $0x14c] sm:$0xf]  ;;  %v3931_v9 = vld [vmem:[%s6899_s1 + $0x48] sm:$0xf] }
  0xe4   :  { %2484 = vmatmul.bf16.vlgmr.msra.gmra.mxu2 %v6041_v7  ;;  %v4364_v10 = vld [vmem:[%s6899_s1 + $0x54] sm:$0xf0]  ;;  %v3901_v58 = vld [vmem:[%s6899_s1 + $0x18] sm:$0xf0] }
  0xe5   :  { %2552 = vmatpush.bf16.msrb.mxu2 %v4016_v26  ;;  %6959 = vst [vmem:[#allocation17_spill] sm:$0xff] %v6052_v12  ;;  %v1122_v14 = vpop.f32.mrf.mxu1  ;;  %v6063_v19 = vadd.f32 %v618_v51, %v6052_v12  ;;  %v645_v20 = vmul.f32 %v6052_v12, %v6052_v12  ;;  %v4093_v26 = vld [vmem:[%s6899_s1 + $0x198] sm:$0xf0]  ;;  %2446 = vmatmul.bf16.vlgmr.msra.gmra.mxu0 %v6041_v7  ;;  %v4398_v51 = vld [vmem:[%s6899_s1 + $0x16c] sm:$0xf] }
  0xe6   :  { %2571 = vmatpush.bf16.msrb.mxu3 %v4144_v27  ;;  %2514 = vmatpush.bf16.msrb.mxu0 %v4012_v32  ;;  %v3963_v27 = vld [vmem:[%s6899_s1 + $0x88] sm:$0xf]  ;;  %v6076_v28 = vadd.f32 %v1122_v14, %v1103_v36  ;;  %v4404_v32 = vld [vmem:[%s6899_s1 + $0x194] sm:$0xf0]  ;;  %v4096_v37 = vor.u32 %v4402_v25, %v4093_v26  ;;  %v4080_v62 = vor.u32 %v4398_v51, %v4077_v52  ;;  %v3917_v25 = vld [vmem:[%s6899_s1 + $0x38] sm:$0xf0] }
  0xe7   :  { %2533 = vmatpush.bf16.msrb.mxu1 %v4140_v33  ;;  %v6089_v33 = vadd.f32 %v674_v57, %v645_v20  ;;  %2503 = vmatmul.bf16.vlgmr.msra.gmra.mxu3 %v6054_v13  ;;  %v1141_v43 = vpop.f32.mrf.mxu2  ;;  %v3964_v46 = vor.u32 %v4372_v29, %v3963_v27  ;;  %v4092_v50 = vor.u32 %v4404_v32, %v4091_v31  ;;  %v4368_v57 = vld [vmem:[%s6899_s1 + $0x74] sm:$0xf0]  ;;  %v4059_v36 = vld [vmem:[%s6899_s1 + $0x148] sm:$0xf]  ;;  %v4390_v31 = vld [vmem:[%s6899_s1 + $0x12c] sm:$0xf] }
  0xe8   :  { %6960 = vst [vmem:[#allocation18_spill] sm:$0xff] %v6076_v28  ;;  %2465 = vmatmul.bf16.vlgmr.msra.gmra.mxu1 %v6054_v13  ;;  %v4396_v14 = vld [vmem:[%s6899_s1 + $0x154] sm:$0xf0]  ;;  %v3936_v20 = vor.u32 %v4362_v35, %v3933_v63  ;;  %v3932_v27 = vor.u32 %v4364_v10, %v3931_v9  ;;  %v4045_v32 = vld [vmem:[%s6899_s1 + $0x138] sm:$0xf0]  ;;  %v6185_v52 = vor.u32 %v4351_v45, %v3885_v15 }
  0xe9   :  { %2553 = vmatpush.bf16.msrb.mxu2 %v4000_v44  ;;  %v3947_v44 = vld [vmem:[%s6899_s1 + $0x68] sm:$0xf]  ;;  %v4060_v29 = vor.u32 %v4396_v14, %v4059_v36  ;;  %v4029_v35 = vld [vmem:[%s6899_s1 + $0x118] sm:$0xf0] }
  0xea   :  { %2572 = vmatpush.bf16.msrb.mxu3 %v4128_v56  ;;  %2515 = vmatpush.bf16.msrb.mxu0 %v3996_v60  ;;  %v1160_v56 = vpop.f32.mrf.mxu3  ;;  %v1105_v59 = vpop.f32.mrf.mxu0  ;;  %v3948_v2 = vor.u32 %v4368_v57, %v3947_v44  ;;  %v4048_v57 = vor.u32 %v4390_v31, %v4045_v32  ;;  %v3899_v63 = vld [vmem:[%s6899_s1 + $0x8] sm:$0xf] }
  0xeb   :  { %2534 = vmatpush.bf16.msrb.mxu1 %v4124_v61  ;;  %v6117_v60 = vadd.f32 %v1160_v56, %v1141_v43  ;;  %v4043_v43 = vld [vmem:[%s6899_s1 + $0x128] sm:$0xf] }
  0xed   :  { %2554 = vmatpush.bf16.msrb.mxu2 %v3984_v17  ;;  %6961 = vst [vmem:[#allocation19_spill] sm:$0xff] %v6117_v60  ;;  %v1124_v61 = vpop.f32.mrf.mxu1  ;;  %v3883_v17 = vld [vmem:[%s6900_s0 + $0x70] sm:$0xf] }
  0xee   :  { %2573 = vmatpush.bf16.msrb.mxu3 %v4112_v18  ;;  %2516 = vmatpush.bf16.msrb.mxu0 %v3980_v23  ;;  %v6125_v0 = vadd.f32 %v1124_v61, %v1105_v59  ;;  %v4352_v18 = vld [vmem:[%s6900_s0 + $0x74] sm:$0xf0]  ;;  %v4064_v23 = vor.u32 %v4394_v40, %v4061_v8  ;;  %v3904_v8 = vor.u32 %v4354_v49, %v3901_v58 }
  0xef   :  { %2535 = vmatpush.bf16.msrb.mxu1 %v4108_v24  ;;  %v4358_v24 = vld [vmem:[%s6899_s1 + $0x2c] sm:$0xf]  ;;  %v1143_v26 = vpop.f32.mrf.mxu2  ;;  %v6172_v38 = vor.u32 %v4352_v18, %v3883_v17  ;;  %v4388_v40 = vld [vmem:[%s6899_s1 + $0x114] sm:$0xf0] }
  0xf0   :  { %6962 = vst [vmem:[#allocation20_spill] sm:$0xff] %v6125_v0  ;;  %v3920_v56 = vor.u32 %v4358_v24, %v3917_v25 }
  0xf1   :  { %2555 = vmatpush.bf16.msrb.mxu2 %v3968_v34  ;;  %v3915_v34 = vld [vmem:[%s6899_s1 + $0x28] sm:$0xf] }
  0xf2   :  { %2574 = vmatpush.bf16.msrb.mxu3 %v4096_v37  ;;  %2517 = vmatpush.bf16.msrb.mxu0 %v3964_v46  ;;  %v1162_v37 = vpop.f32.mrf.mxu3  ;;  %v4392_v46 = vld [vmem:[%s6899_s1 + $0x134] sm:$0xf0]  ;;  %v1108_v51 = vpop.f32.mrf.mxu0  ;;  %v3916_v61 = vor.u32 %v4360_v41, %v3915_v34 }
  0xf3   :  { %2536 = vmatpush.bf16.msrb.mxu1 %v4092_v50  ;;  %v6183_v50 = vadd.f32 %v1162_v37, %v1143_v26 }
  0xf4   :  { %2489 = vmatmul.bf16.gmra.mxu2 %v6172_v38 }
  0xf5   :  { %2556 = vmatpush.bf16.msrb.mxu2 %v3952_v1  ;;  %6963 = vst [vmem:[#allocation21_spill] sm:$0xff] %v6183_v50  ;;  %v1127_v44 = vpop.f32.mrf.mxu1  ;;  %v4044_v1 = vor.u32 %v4392_v46, %v4043_v43  ;;  %2451 = vmatmul.bf16.gmra.mxu0 %v6172_v38 }
  0xf6   :  { %2575 = vmatpush.bf16.msrb.mxu3 %v4080_v62  ;;  %2518 = vmatpush.bf16.msrb.mxu0 %v3948_v2  ;;  %v6193_v59 = vadd.f32 %v1127_v44, %v1108_v51  ;;  %v4386_v62 = vld [vmem:[%s6899_s1 + $0x10c] sm:$0xf]  ;;  %v4356_v2 = vld [vmem:[%s6899_s1 + $0x14] sm:$0xf0] }
  0xf7   :  { %2537 = vmatpush.bf16.msrb.mxu1 %v4076_v4  ;;  %v4027_v4 = vld [vmem:[%s6899_s1 + $0x108] sm:$0xf]  ;;  %2508 = vmatmul.bf16.gmra.mxu3 %v6185_v52  ;;  %v4032_v9 = vor.u32 %v4386_v62, %v4029_v35  ;;  %v1146_v10 = vpop.f32.mrf.mxu2  ;;  %v3900_v36 = vor.u32 %v4356_v2, %v3899_v63 }
  0xf8   :  { %6964 = vst [vmem:[#allocation22_spill] sm:$0xff] %v6193_v59  ;;  %2470 = vmatmul.bf16.gmra.mxu1 %v6185_v52  ;;  %v4028_v14 = vor.u32 %v4388_v40, %v4027_v4  ;;  %v1310_v12 = vmul.f32 %v6193_v59, %v6193_v59 }
  0xf9   :  { %2557 = vmatpush.bf16.msrb.mxu2 %v3936_v20 }
  0xfa   :  { %2576 = vmatpush.bf16.msrb.mxu3 %v4064_v23  ;;  %2519 = vmatpush.bf16.msrb.mxu0 %v3932_v27  ;;  %v1165_v17 = vpop.f32.mrf.mxu3  ;;  %v1110_v45 = vpop.f32.mrf.mxu0 }
  0xfb   :  { %2538 = vmatpush.bf16.msrb.mxu1 %v4060_v29  ;;  %v6217_v18 = vadd.f32 %v1165_v17, %v1146_v10 }
  0xfd   :  { %2558 = vmatpush.bf16.msrb.mxu2 %v3920_v56  ;;  %6965 = vst [vmem:[#allocation23_spill] sm:$0xff] %v6217_v18  ;;  %v1129_v15 = vpop.f32.mrf.mxu1 }
  0xfe   :  { %2577 = vmatpush.bf16.msrb.mxu3 %v4048_v57  ;;  %2520 = vmatpush.bf16.msrb.mxu0 %v3916_v61  ;;  %v6219_v20 = vadd.f32 %v1129_v15, %v1110_v45 }
  0xff   :  { %2539 = vmatpush.bf16.msrb.mxu1 %v4044_v1  ;;  %v1148_v23 = vpop.f32.mrf.mxu2 }
 0x100   :  { %6966 = vst [vmem:[#allocation24_spill] sm:$0xff] %v6219_v20 }
 0x101   :  { %2559 = vmatpush.bf16.msrb.mxu2 %v3904_v8 }
 0x102   :  { %2578 = vmatpush.bf16.msrb.mxu3 %v4032_v9  ;;  %2521 = vmatpush.bf16.msrb.mxu0 %v3900_v36  ;;  %v1167_v24 = vpop.f32.mrf.mxu3  ;;  %v1179_v26 = vpop.f32.mrf.mxu0 }
 0x103   :  { %2540 = vmatpush.bf16.msrb.mxu1 %v4028_v14  ;;  %v6221_v25 = vadd.f32 %v1167_v24, %v1148_v23 }
 0x104   :  { %2560 = vmatmul.bf16.vlgmr.msrb.gmra.mxu2 %v6041_v7 }
 0x105   :  { %6967 = vst [vmem:[#allocation25_spill] sm:$0xff] %v6221_v25  ;;  %v1198_v27 = vpop.f32.mrf.mxu1  ;;  %2522 = vmatmul.bf16.vlgmr.msrb.gmra.mxu0 %v6041_v7 }
 0x106   :  { %v6223_v29 = vadd.f32 %v1198_v27, %v1179_v26 }
 0x107   :  { %2579 = vmatmul.bf16.vlgmr.msrb.gmra.mxu3 %v6054_v13  ;;  %v1217_v31 = vpop.f32.mrf.mxu2 }
 0x108   :  { %2541 = vmatmul.bf16.vlgmr.msrb.gmra.mxu1 %v6054_v13 }
 0x10a   :  { %v1236_v32 = vpop.f32.mrf.mxu3  ;;  %v1181_v34 = vpop.f32.mrf.mxu0 }
 0x10b   :  { %v6229_v37 = vadd.f32 %v1236_v32, %v1217_v31 }
 0x10d   :  { %v1200_v41 = vpop.f32.mrf.mxu1 }
 0x10e   :  { %v6231_v43 = vadd.f32 %v1200_v41, %v1181_v34 }
 0x10f   :  { %v1219_v46 = vpop.f32.mrf.mxu2 }
 0x112   :  { %v1238_v51 = vpop.f32.mrf.mxu3  ;;  %v1184_v56 = vpop.f32.mrf.mxu0 }
 0x113   :  { %v6233_v44 = vadd.f32 %v1238_v51, %v1219_v46 }
 0x114   :  { %2565 = vmatmul.bf16.gmra.mxu2 %v6172_v38 }
 0x115   :  { %v1203_v57 = vpop.f32.mrf.mxu1  ;;  %2527 = vmatmul.bf16.gmra.mxu0 %v6172_v38 }
 0x116   :  { %v6235_v49 = vadd.f32 %v1203_v57, %v1184_v56 }
 0x117   :  { %2584 = vmatmul.bf16.gmra.mxu3 %v6185_v52  ;;  %v1222_v7 = vpop.f32.mrf.mxu2 }
 0x118   :  { %6968 = vst [vmem:[#allocation26_spill] sm:$0xff] %v6235_v49  ;;  %2546 = vmatmul.bf16.gmra.mxu1 %v6185_v52 }
 0x11a   :  { %v1241_v13 = vpop.f32.mrf.mxu3  ;;  %v1186_v61 = vpop.f32.mrf.mxu0 }
 0x11b   :  { %v6241_v58 = vadd.f32 %v1241_v13, %v1222_v7 }
 0x11d   :  { %v1205_v1 = vpop.f32.mrf.mxu1 }
 0x11e   :  { %v6243_v62 = vadd.f32 %v1205_v1, %v1186_v61  ;;  %v634_v61 = vmul.f32 %v5639_v6, %v5639_v6 }
 0x11f   :  { %v1224_v35 = vpop.f32.mrf.mxu2 }
 0x122   :  { %v1243_v63 = vpop.f32.mrf.mxu3  ;;  %v1775_v4 = vpop.f32.mrf.mxu0 }
 0x123   :  { %v6245_v2 = vadd.f32 %v1243_v63, %v1224_v35  ;;  %v630_v35 = vmul.f32 %v5583_v39, %v5583_v39  ;;  %v638_v63 = vmul.f32 %v5710_v47, %v5710_v47 }
 0x125   :  { %v1794_v40 = vpop.f32.mrf.mxu1 }
 0x126   :  { %v6247_v8 = vadd.f32 %v1794_v40, %v1775_v4  ;;  %v590_v4 = vadd.f32 %v5639_v6, %v5583_v39  ;;  %v646_v40 = vadd.f32 %v634_v61, %v630_v35  ;;  %v643_v61 = vmul.f32 %v5813_v48, %v5813_v48 }
 0x127   :  { %v1813_v38 = vpop.f32.mrf.mxu2  ;;  %v636_v35 = vmul.f32 %v5877_v21, %v5877_v21 }
 0x128   :  { %6969 = vst [vmem:[#allocation27_spill] sm:$0xff] %v6247_v8 }
 0x12a   :  { %v1832_v9 = vpop.f32.mrf.mxu3  ;;  %v1777_v10 = vpop.f32.mrf.mxu0 }
 0x12b   :  { %v6249_v52 = vadd.f32 %v1832_v9, %v1813_v38  ;;  %v635_v38 = vmul.f32 %v5703_v42, %v5703_v42  ;;  %v642_v9 = vmul.f32 %v5778_v22, %v5778_v22 }
 0x12d   :  { %6970 = vst [vmem:[#allocation28_spill] sm:$0xff] %v6249_v52  ;;  %v1796_v36 = vpop.f32.mrf.mxu1 }
 0x12e   :  { %v6251_v14 = vadd.f32 %v1796_v36, %v1777_v10 }
 0x12f   :  { %v1815_v17 = vpop.f32.mrf.mxu2 }
 0x130   :  { %6971 = vst [vmem:[#allocation29_spill] sm:$0xff] %v6251_v14 }
 0x132   :  { %v1834_v45 = vpop.f32.mrf.mxu3  ;;  %v1780_v23 = vpop.f32.mrf.mxu0 }
 0x133   :  { %v6253_v15 = vadd.f32 %v1834_v45, %v1815_v17  ;;  %v631_v17 = vmul.f32 %v5637_v3, %v5637_v3  ;;  %v591_v45 = vadd.f32 %v590_v4, %v5710_v47 }
 0x135   :  { %6972 = vst [vmem:[#allocation30_spill] sm:$0xff] %v6253_v15  ;;  %v1799_v24 = vpop.f32.mrf.mxu1 }
 0x136   :  { %v6255_v26 = vadd.f32 %v1799_v24, %v1780_v23  ;;  %v647_v23 = vadd.f32 %v646_v40, %v638_v63 }
 0x137   :  { %v1818_v27 = vpop.f32.mrf.mxu2 }
 0x138   :  { %6973 = vst [vmem:[#allocation31_spill] sm:$0xff] %v6255_v26 }
 0x13a   :  { %v1837_v31 = vpop.f32.mrf.mxu3  ;;  %v1782_v34 = vpop.f32.mrf.mxu0 }
 0x13b   :  { %v6257_v32 = vadd.f32 %v1837_v31, %v1818_v27  ;;  %v599_v27 = vadd.f32 %v5703_v42, %v5637_v3  ;;  %v639_v31 = vmul.f32 %v5767_v16, %v5767_v16 }
 0x13d   :  { %6974 = vst [vmem:[#allocation32_spill] sm:$0xff] %v6257_v32  ;;  %v1801_v41 = vpop.f32.mrf.mxu1 }
 0x13e   :  { %v6259_v46 = vadd.f32 %v1801_v41, %v1782_v34 }
 0x13f   :  { %v1820_v51 = vpop.f32.mrf.mxu2 }
 0x140   :  { %6975 = vst [vmem:[#allocation33_spill] sm:$0xff] %v6259_v46 }
 0x142   :  { %v1839_v56 = vpop.f32.mrf.mxu3  ;;  %v1851_v7 = vpop.f32.mrf.mxu0 }
 0x143   :  { %v6261_v57 = vadd.f32 %v1839_v56, %v1820_v51  ;;  %v655_v51 = vadd.f32 %v635_v38, %v631_v17  ;;  %v592_v56 = vadd.f32 %v591_v45, %v5778_v22  ;;  %v640_v38 = vmul.f32 %v5941_v5, %v5941_v5 }
 0x144   :  { %v1306_v17 = vmul.f32 %v6125_v0, %v6125_v0 }
 0x145   :  { %6976 = vst [vmem:[#allocation34_spill] sm:$0xff] %v6261_v57  ;;  %v1870_v13 = vpop.f32.mrf.mxu1  ;;  %v656_v4 = vadd.f32 %v655_v51, %v639_v31  ;;  %v644_v31 = vmul.f32 %v6012_v53, %v6012_v53  ;;  %v1302_v51 = vmul.f32 %v6076_v28, %v6076_v28 }
 0x146   :  { %v6265_v1 = vadd.f32 %v1870_v13, %v1851_v7  ;;  %v648_v7 = vadd.f32 %v647_v23, %v642_v9  ;;  %v600_v13 = vadd.f32 %v599_v27, %v5767_v16  ;;  %v593_v9 = vrot.slane %v592_v56, 4 }
 0x147   :  { %v1889_v10 = vpop.f32.mrf.mxu2  ;;  %v657_v23 = vadd.f32 %v656_v4, %v643_v61  ;;  %v1318_v16 = vadd.f32 %v1306_v17, %v1302_v51  ;;  %v1271_v17 = vadd.f32 %v6183_v50, %v6117_v60 }
 0x148   :  { %v601_v40 = vadd.f32 %v600_v13, %v5813_v48  ;;  %v1262_v13 = vadd.f32 %v6125_v0, %v6076_v28  ;;  %v1314_v0 = vmul.f32 %v6219_v20, %v6219_v20 }
 0x149   :  { %v658_v54 = vrot.slane %v657_v23, 4 }
 0x14a   :  { %v1908_v36 = vpop.f32.mrf.mxu3  ;;  %v1853_v24 = vpop.f32.mrf.mxu0  ;;  %v602_v4 = vrot.slane %v601_v40, 4  ;;  %v1263_v47 = vadd.f32 %v1262_v13, %v6193_v59  ;;  %v594_v13 = vadd.f32 %v593_v9, %v592_v56 }
 0x14b   :  { %v6284_v34 = vadd.f32 %v1908_v36, %v1889_v10  ;;  %v632_v10 = vmul.f32 %v5821_v55, %v5821_v55  ;;  %v649_v36 = vrot.slane %v648_v7, 4  ;;  %v659_v42 = vadd.f32 %v658_v54, %v657_v23 }
 0x14c   :  { %v1264_v51 = vadd.f32 %v1263_v47, %v6219_v20  ;;  %v595_v56 = vrot.slane %v594_v13, 2 }
 0x14d   :  { %v1872_v41 = vpop.f32.mrf.mxu1  ;;  %v664_v27 = vadd.f32 %v636_v35, %v632_v10  ;;  %v1307_v10 = vmul.f32 %v6183_v50, %v6183_v50 }
 0x14e   :  { %v6292_v63 = vadd.f32 %v1872_v41, %v1853_v24  ;;  %v608_v24 = vadd.f32 %v5877_v21, %v5821_v55  ;;  %v603_v21 = vadd.f32 %v602_v4, %v601_v40  ;;  %v1265_v50 = vrot.slane %v1264_v51, 4 }
 0x14f   :  { %v1891_v45 = vpop.f32.mrf.mxu2  ;;  %v665_v35 = vadd.f32 %v664_v27, %v640_v38  ;;  %v1311_v38 = vmul.f32 %v6217_v18, %v6217_v18  ;;  %v1319_v27 = vadd.f32 %v1318_v16, %v1310_v12  ;;  %v660_v40 = vrot.slane %v659_v42, 2 }
 0x150   :  { %v609_v22 = vadd.f32 %v608_v24, %v5941_v5 }
 0x151   :  { %v666_v24 = vadd.f32 %v665_v35, %v644_v31 }
 0x152   :  { %v1910_v41 = vpop.f32.mrf.mxu3  ;;  %v1856_v61 = vpop.f32.mrf.mxu0 }
 0x153   :  { %v6311_v48 = vadd.f32 %v1910_v41, %v1891_v45  ;;  %v610_v45 = vadd.f32 %v609_v22, %v6012_v53  ;;  %v1303_v41 = vmul.f32 %v6117_v60, %v6117_v60  ;;  %v1272_v22 = vadd.f32 %v1271_v17, %v6217_v18 }
 0x154   :  { %v1320_v53 = vadd.f32 %v1319_v27, %v1314_v0  ;;  %v667_v11 = vrot.slane %v666_v24, 4  ;;  %v676_v27 = vrot.slane %v6089_v33, 4 }
 0x155   :  { %v1875_v30 = vpop.f32.mrf.mxu1  ;;  %v1327_v59 = vadd.f32 %v1307_v10, %v1303_v41  ;;  %v611_v6 = vrot.slane %v610_v45, 4  ;;  %v1273_v16 = vadd.f32 %v1272_v22, %v6221_v25  ;;  %v604_v10 = vrot.slane %v603_v21, 2 }
 0x156   :  { %v6319_v28 = vadd.f32 %v1875_v30, %v1856_v61  ;;  %v1315_v30 = vmul.f32 %v6221_v25, %v6221_v25  ;;  %v650_v61 = vadd.f32 %v649_v36, %v648_v7  ;;  %v1321_v0 = vrot.slane %v1320_v53, 4 }
 0x157   :  { %v1894_v5 = vpop.f32.mrf.mxu2  ;;  %v1328_v31 = vadd.f32 %v1327_v59, %v1311_v38  ;;  %v612_v54 = vadd.f32 %v611_v6, %v610_v45  ;;  %v668_v23 = vadd.f32 %v667_v11, %v666_v24  ;;  %v1266_v59 = vadd.f32 %v1265_v50, %v1264_v51 }
 0x158   :  { %v651_v36 = vrot.slane %v650_v61, 2  ;;  %v1274_v4 = vrot.slane %v1273_v16, 4  ;;  %v596_v41 = vadd.f32 %v595_v56, %v594_v13  ;;  %v1322_v22 = vadd.f32 %v1321_v0, %v1320_v53 }
 0x159   :  { %v1329_v9 = vadd.f32 %v1328_v31, %v1315_v30  ;;  %v605_v30 = vadd.f32 %v604_v10, %v603_v21  ;;  %v661_v31 = vadd.f32 %v660_v40, %v659_v42  ;;  %v613_v20 = vrot.slane %v612_v54, 2 }
 0x15a   :  { %v1913_v35 = vpop.f32.mrf.mxu3  ;;  %v6335_v12 = vpop.f32.mrf.mxu0  ;;  %v652_v17 = vadd.f32 %v651_v36, %v650_v61  ;;  %v669_v18 = vrot.slane %v668_v23, 2  ;;  %v1267_v6 = vrot.slane %v1266_v59, 2  ;;  %v1275_v11 = vadd.f32 %v1274_v4, %v1273_v16 }
 0x15b   :  { %v6333_v47 = vadd.f32 %v1913_v35, %v1894_v5  ;;  %v1330_v38 = vrot.slane %v1329_v9, 4  ;;  %v620_v5 = vrot.slane %v6063_v19, 4  ;;  %v597_v45 = vrot.slane %v596_v41, 1 }
 0x15c   :  { %v653_v13 = vrot.slane %v652_v17, 1  ;;  %v677_v53 = vadd.f32 %v676_v27, %v6089_v33  ;;  %v1323_v56 = vrot.slane %v1322_v22, 2  ;;  %v606_v21 = vrot.slane %v605_v30, 1 }
 0x15d   :  { %v6337_v7 = vpop.f32.mrf.mxu1  ;;  %v1331_v24 = vadd.f32 %v1330_v38, %v1329_v9  ;;  %v621_v61 = vadd.f32 %v620_v5, %v6063_v19  ;;  %v662_v42 = vrot.slane %v661_v31, 1  ;;  %v6351_v36 = vadd.f32 %v613_v20, %v612_v54 }
 0x15e   :  { %v6353_v0 = vadd.f32 %v669_v18, %v668_v23  ;;  %v1268_v10 = vadd.f32 %v1267_v6, %v1266_v59  ;;  %v1276_v16 = vrot.slane %v1275_v11, 2  ;;  %v598_v40 = vadd.f32 %v597_v45, %v596_v41 }
 0x15f   :  { %v6341_v35 = vpop.f32.mrf.mxu2  ;;  %v1332_v4 = vrot.slane %v1331_v24, 2  ;;  %v654_v60 = vadd.f32 %v653_v13, %v652_v17  ;;  %v622_v9 = vrot.slane %v621_v61, 2  ;;  %v678_v38 = vrot.slane %v677_v53, 2 }
 0x160   :  { %v1324_v55 = vadd.f32 %v1323_v56, %v1322_v22  ;;  %v6357_v19 = vadd.f32 %v606_v21, %v605_v30  ;;  %v6359_v33 = vadd.f32 %v662_v42, %v661_v31  ;;  %v1934_v20 = vadd.f32 %v6251_v14, %v6247_v8 }
 0x161   :  { %v1978_v18 = vmul.f32 %v6251_v14, %v6251_v14  ;;  %v1269_v41 = vrot.slane %v1268_v10, 1  ;;  %v1277_v17 = vadd.f32 %v1276_v16, %v1275_v11  ;;  %v1333_v27 = vadd.f32 %v1332_v4, %v1331_v24 }
 0x162   :  { %v6343_v25 = vpop.f32.mrf.mxu3  ;;  %v6345_v50 = vpop.f32.mrf.mxu0  ;;  %v1974_v22 = vmul.f32 %v6247_v8, %v6247_v8  ;;  %v1935_v30 = vadd.f32 %v1934_v20, %v6255_v26  ;;  %v1982_v31 = vmul.f32 %v6255_v26, %v6255_v26  ;;  %v6374_v45 = vadd.f32 %v622_v9, %v621_v61 }
 0x163   :  { %v6376_v13 = vadd.f32 %v678_v38, %v677_v53  ;;  %v1325_v56 = vrot.slane %v1324_v55, 1  ;;  %v1979_v21 = vmul.f32 %v6253_v15, %v6253_v15  ;;  %v1304_v11 = vmul.f32 %v6223_v29, %v6223_v29 }
 0x164   :  { %v1990_v24 = vadd.f32 %v1978_v18, %v1974_v22  ;;  %v1936_v42 = vadd.f32 %v1935_v30, %v6259_v46  ;;  %v1986_v16 = vmul.f32 %v6259_v46, %v6259_v46  ;;  %v1270_v4 = vadd.f32 %v1269_v41, %v1268_v10 }
 0x165   :  { %v6347_v51 = vpop.f32.mrf.mxu1  ;;  %v1278_v20 = vrot.slane %v1277_v17, 1  ;;  %v1280_v61 = vadd.f32 %v6231_v43, %v6223_v29  ;;  %v1975_v53 = vmul.f32 %v6249_v52, %v6249_v52  ;;  %v1334_v9 = vrot.slane %v1333_v27, 1 }
 0x166   :  { %v1943_v38 = vadd.f32 %v6253_v15, %v6249_v52  ;;  %v1991_v59 = vadd.f32 %v1990_v24, %v1982_v31  ;;  %v1983_v18 = vmul.f32 %v6257_v32, %v6257_v32  ;;  %v1326_v22 = vadd.f32 %v1325_v56, %v1324_v55 }
 0x167   :  { %v6355_v3 = vpop.f32.mrf.mxu2  ;;  %v1308_v30 = vmul.f32 %v6231_v43, %v6231_v43  ;;  %v1281_v10 = vadd.f32 %v1280_v61, %v6235_v49  ;;  %v1999_v41 = vadd.f32 %v1979_v21, %v1975_v53  ;;  %v1937_v26 = vrot.slane %v1936_v42, 4 }
 0x168   :  { %v1944_v46 = vadd.f32 %v1943_v38, %v6257_v32  ;;  %v1992_v14 = vadd.f32 %v1991_v59, %v1986_v16  ;;  %v1987_v8 = vmul.f32 %v6261_v57, %v6261_v57  ;;  %v6399_v31 = vadd.f32 %v1270_v4, %v598_v40 }
 0x169   :  { %v1279_v24 = vadd.f32 %v1278_v20, %v1277_v17  ;;  %v1305_v55 = vmul.f32 %v6229_v37, %v6229_v37  ;;  %v1312_v56 = vmul.f32 %v6235_v49, %v6235_v49  ;;  %v1335_v21 = vadd.f32 %v1334_v9, %v1333_v27 }
 0x16a   :  { %v6365_v54 = vpop.f32.mrf.mxu3  ;;  %v2449_v5 = vpop.f32.mrf.mxu0  ;;  %v1282_v53 = vadd.f32 %v1281_v10, %v6243_v62  ;;  %v2000_v38 = vadd.f32 %v1999_v41, %v1983_v18  ;;  %v1945_v59 = vadd.f32 %v1944_v46, %v6261_v57  ;;  %v1336_v32 = vadd.f32 %v1308_v30, %v1304_v11 }
 0x16b   :  { %v1309_v40 = vmul.f32 %v6233_v44, %v6233_v44  ;;  %v1316_v17 = vmul.f32 %v6243_v62, %v6243_v62  ;;  %v6413_v20 = vadd.f32 %v1326_v22, %v654_v60  ;;  %v1938_v52 = vadd.f32 %v1937_v26, %v1936_v42 }
 0x16c   :  { %v1993_v49 = vrot.slane %v1992_v14, 4  ;;  %v2001_v27 = vadd.f32 %v2000_v38, %v1987_v8  ;;  %v1289_v9 = vadd.f32 %v6233_v44, %v6229_v37  ;;  %v1337_v18 = vadd.f32 %v1336_v32, %v1312_v56 }
 0x16d   :  { %v2468_v6 = vpop.f32.mrf.mxu1  ;;  %v6419_v46 = vadd.f32 %v6347_v51, %v6345_v50  ;;  %v6424_v30 = vadd.f32 %v1279_v24, %v6357_v19  ;;  %v1283_v60 = vrot.slane %v1282_v53, 4  ;;  %v1946_v26 = vrot.slane %v1945_v59, 4 }
 0x16e   :  { %v6411_v4 = vadd.f32 %v2468_v6, %v2449_v5  ;;  %v6427_v5 = vadd.f32 %v1335_v21, %v6359_v33  ;;  %v1345_v6 = vadd.f32 %v1309_v40, %v1305_v55  ;;  %v1290_v8 = vadd.f32 %v1289_v9, %v6241_v58 }
 0x16f   :  { %v2487_v23 = vpop.f32.mrf.mxu2  ;;  %6978 = vst [vmem:[#allocation36_spill] sm:$0xff] %v6419_v46  ;;  %v1338_v42 = vadd.f32 %v1337_v18, %v1316_v17  ;;  %v1939_v50 = vrot.slane %v1938_v52, 2  ;;  %v1994_v51 = vadd.f32 %v1993_v49, %v1992_v14  ;;  %v2002_v10 = vrot.slane %v2001_v27, 4 }
 0x170   :  { %6977 = vst [vmem:[#allocation35_spill] sm:$0xff] %v6411_v4  ;;  %v2650_v32 = vmul.f32 %v6411_v4, %v6411_v4  ;;  %v1313_v33 = vmul.f32 %v6241_v58, %v6241_v58  ;;  %v2646_v24 = vmul.f32 %v6419_v46, %v6419_v46  ;;  %v2606_v55 = vadd.f32 %v6411_v4, %v6419_v46 }
 0x171   :  { %v1284_v21 = vadd.f32 %v1283_v60, %v1282_v53  ;;  %v1947_v38 = vadd.f32 %v1946_v26, %v1945_v59  ;;  %v6444_v49 = vadd.f32 %v6365_v54, %v6355_v3  ;;  %v1940_v9 = vadd.f32 %v1939_v50, %v1938_v52 }
 0x172   :  { %v2506_v15 = vpop.f32.mrf.mxu3  ;;  %v2452_v61 = vpop.f32.mrf.mxu0  ;;  %v1995_v18 = vrot.slane %v1994_v51, 2  ;;  %v2003_v4 = vadd.f32 %v2002_v10, %v2001_v27  ;;  %v1346_v59 = vadd.f32 %v1345_v6, %v1313_v33 }
 0x173   :  { %v6432_v41 = vadd.f32 %v2506_v15, %v2487_v23  ;;  %6981 = vst [vmem:[#allocation39_spill] sm:$0xff] %v6444_v49  ;;  %v1339_v23 = vrot.slane %v1338_v42, 4  ;;  %v1285_v26 = vrot.slane %v1284_v21, 2  ;;  %v1941_v33 = vrot.slane %v1940_v9, 1 }
 0x175   :  { %v2471_v16 = vpop.f32.mrf.mxu1  ;;  %6980 = vst [vmem:[#allocation38_spill] sm:$0xff] %v6432_v41  ;;  %v2651_v53 = vmul.f32 %v6432_v41, %v6432_v41  ;;  %v6460_v50 = vadd.f32 %v1339_v23, %v1338_v42  ;;  %v2615_v27 = vadd.f32 %v6432_v41, %v6444_v49  ;;  %v6470_v42 = vadd.f32 %v1290_v8, %v6245_v2 }
 0x176   :  { %v6421_v11 = vadd.f32 %v2471_v16, %v2452_v61  ;;  %v2662_v16 = vadd.f32 %v2650_v32, %v2646_v24  ;;  %v2647_v32 = vmul.f32 %v6444_v49, %v6444_v49  ;;  %v1996_v24 = vadd.f32 %v1995_v18, %v1994_v51 }
 0x177   :  { %v2490_v22 = vpop.f32.mrf.mxu2  ;;  %v1317_v23 = vmul.f32 %v6245_v2, %v6245_v2 }
 0x178   :  { %6979 = vst [vmem:[#allocation37_spill] sm:$0xff] %v6421_v11  ;;  %v2654_v56 = vmul.f32 %v6421_v11, %v6421_v11  ;;  %v2607_v40 = vadd.f32 %v2606_v55, %v6421_v11  ;;  %v2004_v55 = vrot.slane %v2003_v4, 2 }
 0x17a   :  { %v2509_v19 = vpop.f32.mrf.mxu3  ;;  %v2454_v61 = vpop.f32.mrf.mxu0  ;;  %v2663_v60 = vadd.f32 %v2662_v16, %v2654_v56  ;;  %v2671_v56 = vadd.f32 %v2651_v53, %v2647_v32  ;;  %v2005_v8 = vadd.f32 %v2004_v55, %v2003_v4 }
 0x17b   :  { %v6446_v14 = vadd.f32 %v2509_v19, %v2490_v22  ;;  %v1948_v22 = vrot.slane %v1947_v38, 2 }
 0x17d   :  { %6982 = vst [vmem:[#allocation40_spill] sm:$0xff] %v6446_v14  ;;  %v2473_v15 = vpop.f32.mrf.mxu1  ;;  %v2655_v52 = vmul.f32 %v6446_v14, %v6446_v14 }
 0x17e   :  { %v6449_v17 = vadd.f32 %v2473_v15, %v2454_v61  ;;  %v2616_v15 = vadd.f32 %v2615_v27, %v6446_v14  ;;  %v6479_v27 = vadd.f32 %v1285_v26, %v1284_v21 }
 0x17f   :  { %v2492_v19 = vpop.f32.mrf.mxu2 }
 0x180   :  { %6983 = vst [vmem:[#allocation41_spill] sm:$0xff] %v6449_v17  ;;  %v2608_v3 = vadd.f32 %v2607_v40, %v6449_v17  ;;  %v2658_v54 = vmul.f32 %v6449_v17, %v6449_v17 }
 0x182   :  { %v2609_v6 = vrot.slane %v2608_v3, 4  ;;  %v2664_v10 = vadd.f32 %v2663_v60, %v2658_v54  ;;  %v2511_v61 = vpop.f32.mrf.mxu3  ;;  %v6467_v11 = vpop.f32.mrf.mxu0  ;;  %v1949_v60 = vadd.f32 %v1948_v22, %v1947_v38  ;;  %v2672_v54 = vadd.f32 %v2671_v56, %v2655_v52 }
 0x183   :  { %v6465_v17 = vadd.f32 %v2511_v61, %v2492_v19  ;;  %v1997_v19 = vrot.slane %v1996_v24, 1  ;;  %v6481_v38 = vadd.f32 %v1346_v59, %v1317_v23  ;;  %v1976_v22 = vmul.f32 %v6265_v1, %v6265_v1 }
 0x184   :  { %v2610_v16 = vadd.f32 %v2609_v6, %v2608_v3  ;;  %v2665_v40 = vrot.slane %v2664_v10, 4  ;;  %v1942_v6 = vadd.f32 %v1941_v33, %v1940_v9  ;;  %v1980_v52 = vmul.f32 %v6292_v63, %v6292_v63 }
 0x185   :  { %6984 = vst [vmem:[#allocation42_spill] sm:$0xff] %v6465_v17  ;;  %v6474_v51 = vpop.f32.mrf.mxu1  ;;  %v2617_v32 = vadd.f32 %v2616_v15, %v6465_v17  ;;  %v2659_v3 = vmul.f32 %v6465_v17, %v6465_v17  ;;  %v1950_v21 = vrot.slane %v1949_v60, 1  ;;  %v1998_v59 = vadd.f32 %v1997_v19, %v1996_v24 }
 0x186   :  { %v2611_v18 = vrot.slane %v2610_v16, 2  ;;  %v2666_v53 = vadd.f32 %v2665_v40, %v2664_v10  ;;  %v6489_v10 = vadd.f32 %v6337_v7, %v6335_v12  ;;  %v1970_v55 = vadd.f32 %v1942_v6, %v6399_v31 }
 0x187   :  { %v2618_v41 = vrot.slane %v2617_v32, 4  ;;  %v2673_v49 = vadd.f32 %v2672_v54, %v2659_v3  ;;  %v6491_v33 = vpop.f32.mrf.mxu2  ;;  %v1952_v56 = vadd.f32 %v6292_v63, %v6265_v1  ;;  %v1984_v15 = vmul.f32 %v6319_v28, %v6319_v28 }
 0x188   :  { %v2612_v61 = vadd.f32 %v2611_v18, %v2610_v16  ;;  %v2667_v14 = vrot.slane %v2666_v53, 2  ;;  %v2006_v40 = vrot.slane %v2005_v8, 1  ;;  %v2008_v54 = vadd.f32 %v1980_v52, %v1976_v22 }
 0x189   :  { %v2619_v26 = vadd.f32 %v2618_v41, %v2617_v32  ;;  %v2674_v4 = vrot.slane %v2673_v49, 4  ;;  %v1977_v41 = vmul.f32 %v6284_v34, %v6284_v34  ;;  %v1953_v31 = vadd.f32 %v1952_v56, %v6319_v28 }
 0x18a   :  { %v2668_v9 = vadd.f32 %v2667_v14, %v2666_v53  ;;  %v6498_v16 = vpop.f32.mrf.mxu3  ;;  %v2613_v12 = vrot.slane %v2612_v61, 1  ;;  %v2525_v14 = vpop.f32.mrf.mxu0  ;;  %v1988_v24 = vmul.f32 %v6489_v10, %v6489_v10  ;;  %v1951_v53 = vadd.f32 %v1950_v21, %v1949_v60 }
 0x18b   :  { %v2620_v7 = vrot.slane %v2619_v26, 2  ;;  %v2675_v23 = vadd.f32 %v2674_v4, %v2673_v49  ;;  %v1981_v19 = vmul.f32 %v6311_v48, %v6311_v48  ;;  %v2009_v17 = vadd.f32 %v2008_v54, %v1984_v15 }
 0x18c   :  { %v2669_v32 = vrot.slane %v2668_v9, 1  ;;  %v1954_v49 = vadd.f32 %v1953_v31, %v6489_v10  ;;  %v6510_v4 = vadd.f32 %v6343_v25, %v6341_v35  ;;  %v2007_v22 = vadd.f32 %v2006_v40, %v2005_v8 }
 0x18d   :  { %v2544_v18 = vpop.f32.mrf.mxu1  ;;  %v2621_v3 = vadd.f32 %v2620_v7, %v2619_v26  ;;  %v2676_v6 = vrot.slane %v2675_v23, 2  ;;  %v2614_v52 = vadd.f32 %v2613_v12, %v2612_v61  ;;  %v2026_v57 = vadd.f32 %v1998_v59, %v6413_v20 }
 0x18e   :  { %v1961_v60 = vadd.f32 %v6311_v48, %v6284_v34  ;;  %v1985_v21 = vmul.f32 %v6333_v47, %v6333_v47  ;;  %v2010_v26 = vadd.f32 %v2009_v17, %v1988_v24  ;;  %v1971_v15 = vadd.f32 %v1951_v53, %v6424_v30 }
 0x18f   :  { %v2622_v56 = vrot.slane %v2621_v3, 1  ;;  %v2677_v46 = vadd.f32 %v2676_v6, %v2675_v23  ;;  %v2670_v7 = vadd.f32 %v2669_v32, %v2668_v9  ;;  %v2563_v25 = vpop.f32.mrf.mxu2  ;;  %v2017_v35 = vadd.f32 %v1981_v19, %v1977_v41 }
 0x190   :  { %v1962_v8 = vadd.f32 %v1961_v60, %v6333_v47  ;;  %v1955_v61 = vrot.slane %v1954_v49, 4  ;;  %v1989_v20 = vmul.f32 %v6510_v4, %v6510_v4  ;;  %v2027_v40 = vadd.f32 %v2007_v22, %v6427_v5 }
 0x191   :  { %v2623_v54 = vadd.f32 %v2622_v56, %v2621_v3  ;;  %v2678_v31 = vrot.slane %v2677_v46, 1  ;;  %v2642_v12 = vadd.f32 %v2614_v52, %v1970_v55  ;;  %v1341_v30 = vrot.slane %v6460_v50, 2 }
 0x192   :  { %v2582_v59 = vpop.f32.mrf.mxu3  ;;  %v2528_v17 = vpop.f32.mrf.mxu0  ;;  %v2018_v9 = vadd.f32 %v2017_v35, %v1985_v21  ;;  %v2011_v24 = vrot.slane %v2010_v26, 4  ;;  %v1963_v53 = vadd.f32 %v1962_v8, %v6510_v4  ;;  %v2698_v32 = vadd.f32 %v2670_v7, %v2026_v57 }
 0x193   :  { %v2643_v23 = vadd.f32 %v2623_v54, %v1971_v15  ;;  %v2679_v6 = vadd.f32 %v2678_v31, %v2677_v46  ;;  %v6526_v56 = vadd.f32 %v2544_v18, %v2525_v14  ;;  %v6985_v5 = vrot.slane %v6351_v36, 1 }
 0x194   :  { %v1292_v46 = vrot.slane %v6470_v42, 4  ;;  %v1956_v22 = vadd.f32 %v1955_v61, %v1954_v49  ;;  %v2019_v52 = vadd.f32 %v2018_v9, %v1989_v20  ;;  %v1348_v60 = vrot.slane %v6481_v38, 4 }
 0x195   :  { %v2547_v41 = vpop.f32.mrf.mxu1  ;;  %v2699_v3 = vadd.f32 %v2679_v6, %v2027_v40  ;;  %v6524_v19 = vadd.f32 %v2643_v23, %v2642_v12  ;;  %v6531_v55 = vadd.f32 %v6985_v5, %v6351_v36  ;;  %v6539_v57 = vadd.f32 %v6474_v51, %v6467_v11 }
 0x196   :  { %v6541_v15 = vadd.f32 %v2547_v41, %v2528_v17  ;;  %v6987_v14 = vrot.slane %v6353_v0, 1  ;;  %v2012_v7 = vadd.f32 %v2011_v24, %v2010_v26  ;;  %v1964_v49 = vrot.slane %v1963_v53, 4 }
 0x197   :  { %v6535_v21 = vadd.f32 %v2699_v3, %v2698_v32  ;;  %v1287_v31 = vrot.slane %v6479_v27, 1  ;;  %v1342_v35 = vadd.f32 %v1341_v30, %v6460_v50  ;;  %v2652_v11 = vmul.f32 %v6526_v56, %v6526_v56  ;;  %v2566_v51 = vpop.f32.mrf.mxu2 }
 0x198   :  { %6986 = vst [vmem:[#allocation43_spill] sm:$0xff] %v6541_v15  ;;  %v6546_v18 = vadd.f32 %v6987_v14, %v6353_v0  ;;  %v1293_v8 = vadd.f32 %v1292_v46, %v6470_v42  ;;  %v1957_v61 = vrot.slane %v1956_v22, 2  ;;  %v2020_v20 = vrot.slane %v2019_v52, 4 }
 0x199   :  { %v6555_v0 = vadd.f32 %v2582_v59, %v2563_v25  ;;  %v1349_v26 = vadd.f32 %v1348_v60, %v6481_v38  ;;  %v2648_v12 = vmul.f32 %v6539_v57, %v6539_v57  ;;  %v2624_v23 = vadd.f32 %v6526_v56, %v6539_v57 }
 0x19a   :  { %v2585_v40 = vpop.f32.mrf.mxu3  ;;  %v2656_v50 = vmul.f32 %v6541_v15, %v6541_v15  ;;  %v2530_v6 = vpop.f32.mrf.mxu0  ;;  %v2013_v17 = vrot.slane %v2012_v7, 2  ;;  %v1965_v30 = vadd.f32 %v1964_v49, %v1963_v53  ;;  %v6566_v42 = vadd.f32 %v6498_v16, %v6491_v33 }
 0x19b   :  { %v6568_v25 = vadd.f32 %v2585_v40, %v2566_v51  ;;  %v1288_v38 = vadd.f32 %v1287_v31, %v6479_v27  ;;  %v2680_v9 = vadd.f32 %v2652_v11, %v2648_v12  ;;  %v2625_v24 = vadd.f32 %v2624_v23, %v6541_v15 }
 0x19c   :  { %v1294_v32 = vrot.slane %v1293_v8, 2  ;;  %v1958_v3 = vadd.f32 %v1957_v61, %v1956_v22  ;;  %v2021_v5 = vadd.f32 %v2020_v20, %v2019_v52  ;;  %v2653_v53 = vmul.f32 %v6555_v0, %v6555_v0 }
 0x19d   :  { %v2549_v59 = vpop.f32.mrf.mxu1  ;;  %v1350_v46 = vrot.slane %v1349_v26, 2  ;;  %v2681_v60 = vadd.f32 %v2680_v9, %v2656_v50  ;;  %v2014_v14 = vadd.f32 %v2013_v17, %v2012_v7  ;;  %v1966_v27 = vrot.slane %v1965_v30, 2 }
 0x19e   :  { %v6572_v41 = vadd.f32 %v2549_v59, %v2530_v6  ;;  %v2649_v49 = vmul.f32 %v6566_v42, %v6566_v42  ;;  %v2657_v31 = vmul.f32 %v6568_v25, %v6568_v25  ;;  %v1343_v22 = vrot.slane %v1342_v35, 1 }
 0x19f   :  { %v2633_v52 = vadd.f32 %v6555_v0, %v6566_v42  ;;  %v2568_v61 = vpop.f32.mrf.mxu2  ;;  %v1295_v20 = vadd.f32 %v1294_v32, %v1293_v8  ;;  %v1959_v40 = vrot.slane %v1958_v3, 1  ;;  %v2022_v12 = vrot.slane %v2021_v5, 2 }
 0x1a0   :  { %6988 = vst [vmem:[#allocation44_spill] sm:$0xff] %v6572_v41  ;;  %v2626_v33 = vadd.f32 %v2625_v24, %v6572_v41  ;;  %v2660_v16 = vmul.f32 %v6572_v41, %v6572_v41  ;;  %v2689_v23 = vadd.f32 %v2653_v53, %v2649_v49  ;;  %v1351_v9 = vadd.f32 %v1350_v46, %v1349_v26 }
 0x1a1   :  { %v2634_v7 = vadd.f32 %v2633_v52, %v6568_v25  ;;  %v2015_v24 = vrot.slane %v2014_v14, 1  ;;  %v1967_v54 = vadd.f32 %v1966_v27, %v1965_v30  ;;  %v1344_v32 = vadd.f32 %v1343_v22, %v1342_v35 }
 0x1a2   :  { %v2627_v11 = vrot.slane %v2626_v33, 4  ;;  %v2682_v51 = vadd.f32 %v2681_v60, %v2660_v16  ;;  %v2587_v50 = vpop.f32.mrf.mxu3  ;;  %v2690_v36 = vadd.f32 %v2689_v23, %v2657_v31  ;;  %v1296_v53 = vrot.slane %v1295_v20, 1 }
 0x1a3   :  { %v6586_v59 = vadd.f32 %v2587_v50, %v2568_v61  ;;  %v1960_v16 = vadd.f32 %v1959_v40, %v1958_v3  ;;  %v2023_v49 = vadd.f32 %v2022_v12, %v2021_v5  ;;  %v1300_v26 = vadd.f32 %v1288_v38, %v6531_v55 }
 0x1a4   :  { %v2628_v6 = vadd.f32 %v2627_v11, %v2626_v33  ;;  %v2683_v17 = vrot.slane %v2682_v51, 4  ;;  %v1352_v46 = vrot.slane %v1351_v9, 1  ;;  %v2016_v30 = vadd.f32 %v2015_v24, %v2014_v14 }
 0x1a5   :  { %v2635_v60 = vadd.f32 %v2634_v7, %v6586_v59  ;;  %v2661_v8 = vmul.f32 %v6586_v59, %v6586_v59  ;;  %v1968_v27 = vrot.slane %v1967_v54, 1  ;;  %v1356_v7 = vadd.f32 %v1344_v32, %v6546_v18 }
 0x1a6   :  { %v2629_v41 = vrot.slane %v2628_v6, 2  ;;  %v2684_v15 = vadd.f32 %v2683_v17, %v2682_v51  ;;  %v1297_v17 = vadd.f32 %v1296_v53, %v1295_v20  ;;  %v1972_v35 = vadd.f32 %v1960_v16, %v1300_v26 }
 0x1a7   :  { %v2636_v11 = vrot.slane %v2635_v60, 4  ;;  %v2691_v61 = vadd.f32 %v2690_v36, %v2661_v8  ;;  %v2024_v22 = vrot.slane %v2023_v49, 1  ;;  %v6989_v36 = vrot.slane %v6374_v45, 1 }
 0x1a8   :  { %v2630_v52 = vadd.f32 %v2629_v41, %v2628_v6  ;;  %v2685_v33 = vrot.slane %v2684_v15, 2  ;;  %v1353_v38 = vadd.f32 %v1352_v46, %v1351_v9  ;;  %v2028_v14 = vadd.f32 %v2016_v30, %v1356_v7 }
 0x1a9   :  { %v2637_v23 = vadd.f32 %v2636_v11, %v2635_v60  ;;  %v2692_v50 = vrot.slane %v2691_v61, 4  ;;  %v625_v55 = vadd.f32 %v6989_v36, %v6374_v45  ;;  %v1969_v12 = vadd.f32 %v1968_v27, %v1967_v54 }
 0x1aa   :  { %v2631_v31 = vrot.slane %v2630_v52, 1  ;;  %v2686_v51 = vadd.f32 %v2685_v33, %v2684_v15  ;;  %v6990_v18 = vrot.slane %v6376_v13, 1  ;;  %v2025_v32 = vadd.f32 %v2024_v22, %v2023_v49 }
 0x1ab   :  { %v2638_v41 = vrot.slane %v2637_v23, 2  ;;  %v2693_v40 = vadd.f32 %v2692_v50, %v2691_v61  ;;  %v1301_v8 = vadd.f32 %v1297_v17, %v625_v55  ;;  %v2728_v55 = vld [vmem:[%s6901_s2 + $0x1] sm:$0x1] }
 0x1ac   :  { %v2632_v3 = vadd.f32 %v2631_v31, %v2630_v52  ;;  %v2687_v5 = vrot.slane %v2686_v51, 1  ;;  %v681_v20 = vadd.f32 %v6990_v18, %v6376_v13 }
 0x1ad   :  { %v2639_v24 = vadd.f32 %v2638_v41, %v2637_v23  ;;  %v2694_v60 = vrot.slane %v2693_v40, 2  ;;  %v1973_v45 = vadd.f32 %v1969_v12, %v1301_v8  ;;  %v2726_v41 = vld [vmem:[%s6901_s2] sm:$0x1] }
 0x1ae   :  { %v2644_v6 = vadd.f32 %v2632_v3, %v1972_v35  ;;  %v2688_v15 = vadd.f32 %v2687_v5, %v2686_v51  ;;  %v1357_v11 = vadd.f32 %v1353_v38, %v681_v20  ;;  %v6993_v20 = vld [vmem:[#allocation11_spill] sm:$0xff] }
 0x1af   :  { %v2640_v52 = vrot.slane %v2639_v24, 1  ;;  %v2695_v33 = vadd.f32 %v2694_v60, %v2693_v40  ;;  %v6992_v60 = vld [vmem:[#allocation10_spill] sm:$0xff] }
 0x1b0   :  { %v2700_v53 = vadd.f32 %v2688_v15, %v2028_v14  ;;  %v2704_v16 = vadd.f32 %v6524_v19, %v2644_v6  ;;  %v2029_v26 = vadd.f32 %v2025_v32, %v1357_v11  ;;  %v6991_v15 = vld [vmem:[#allocation3_spill] sm:$0xff]  ;;  %v6994_v32 = vld [vmem:[#allocation4_spill] sm:$0xff] }
 0x1b1   :  { %v2641_v54 = vadd.f32 %v2640_v52, %v2639_v24  ;;  %v2696_v61 = vrot.slane %v2695_v33, 1 }
 0x1b2   :  { %v2708_v9 = vadd.f32 %v6535_v21, %v2700_v53 }
 0x1b3   :  { %v2645_v46 = vadd.f32 %v2641_v54, %v1973_v45  ;;  %v2697_v30 = vadd.f32 %v2696_v61, %v2695_v33  ;;  %v6996_v33 = vld [vmem:[#allocation12_spill] sm:$0xff]  ;;  %v6997_v45 = vld [vmem:[#allocation13_spill] sm:$0xff]  ;;  %v6999_v61 = vld [vmem:[#allocation7_spill] sm:$0xff] }
 0x1b5   :  { %v2701_v27 = vadd.f32 %v2697_v30, %v2029_v26  ;;  %v2705_v31 = vadd.f32 %v2704_v16, %v2645_v46  ;;  %v6995_v16 = vld [vmem:[#allocation5_spill] sm:$0xff]  ;;  %v7000_v46 = vld [vmem:[#allocation14_spill] sm:$0xff] }
 0x1b7   :  { %v2709_v51 = vadd.f32 %v2708_v9, %v2701_v27  ;;  %v2710_v13 = vmul.f32 0.001953125, %v2705_v31  ;;  %v6998_v9 = vld [vmem:[#allocation6_spill] sm:$0xff]  ;;  %v7001_v27 = vld [vmem:[#allocation15_spill] sm:$0xff] }
 0x1b9   :  { %v2711_v23 = vmul.f32 0.001953125, %v2709_v51  ;;  %v2712_v49 = vmul.f32 %v2710_v13, %v2710_v13  ;;  %v7002_v51 = vld [vmem:[#allocation8_spill] sm:$0xff] }
 0x1bb   :  { %v2713_v50 = vsub.f32 %v2711_v23, %v2712_v49  ;;  %v7003_v23 = vld [vmem:[#allocation9_spill] sm:$0xff] }
 0x1bd   :  { %v2714_v7 = vmax.f32 %v2713_v50, 0.0  ;;  %v7004_v50 = vld [vmem:[#allocation16_spill] sm:$0xff] }
 0x1bf   :  { %v2715_v19 = vadd.f32 1e-05, %v2714_v7 }
 0x1c1   :  { %4417 = vrsqrt.f32 %v2715_v19  ;;  %vm2722_vm1 = vweird.f32 %v2715_v19 }
 0x1c7   :  { %v4418_v17 = vpop.eup %4417 }
 0x1c8   :  { %v2717_v35 = vmul.f32 %v4418_v17, %v2715_v19  ;;  %vm2723_vm0 = vweird.f32 %v4418_v17  ;;  %v7005_v19 = vld [vmem:[#allocation17_spill] sm:$0xff] }
 0x1c9   :  { %vm2724_vm2 = vmor %vm2722_vm1, %vm2723_vm0 }
 0x1ca   :  { %v2718_v22 = vmul.f32 %v4418_v17, %v2717_v35 }
 0x1cc   :  { %v2719_v3 = vmul.f32 0.5, %v2718_v22  ;;  %v7006_v22 = vld [vmem:[#allocation18_spill] sm:$0xff] }
 0x1ce   :  { %v2720_v21 = vsub.f32 1.5, %v2719_v3 }
 0x1d0   :  { %v2721_v5 = vmul.f32 %v4418_v17, %v2720_v21  ;;  %v7007_v21 = vld [vmem:[#allocation19_spill] sm:$0xff] }
 0x1d2   :  { %v2725_v40 = vsel %vm2724_vm2, %v4418_v17, %v2721_v5 }
 0x1d3   :  { %v2727_v36 = vmul.f32 %v2726_v41, %v2725_v40 }
 0x1d5   :  { %v2729_v38 = vmul.f32 %v2727_v36, %v2710_v13  ;;  %v6607_v14 = vperm.slane %v2727_v36, 0  ;;  %v7008_v36 = vld [vmem:[#allocation20_spill] sm:$0xff] }
 0x1d7   :  { %v2730_v12 = vsub.f32 %v2728_v55, %v2729_v38  ;;  %v2748_v6 = vmul.f32 %v6607_v14, %v5583_v39  ;;  %v2749_v24 = vmul.f32 %v6607_v14, %v6991_v15  ;;  %v2750_v18 = vmul.f32 %v6607_v14, %v6992_v60  ;;  %v7009_v38 = vld [vmem:[#allocation21_spill] sm:$0xff] }
 0x1d8   :  { %v2751_v8 = vmul.f32 %v6607_v14, %v6993_v20  ;;  %v2752_v53 = vmul.f32 %v6607_v14, %v6994_v32  ;;  %v2753_v52 = vmul.f32 %v6607_v14, %v6995_v16  ;;  %v2754_v11 = vmul.f32 %v6607_v14, %v6996_v33 }
 0x1d9   :  { %v2755_v39 = vmul.f32 %v6607_v14, %v6997_v45  ;;  %v2756_v54 = vmul.f32 %v6607_v14, %v6998_v9  ;;  %v2757_v26 = vmul.f32 %v6607_v14, %v6999_v61  ;;  %v2758_v30 = vmul.f32 %v6607_v14, %v7000_v46 }
 0x1da   :  { %v2759_v31 = vmul.f32 %v6607_v14, %v7001_v27  ;;  %v2760_v13 = vmul.f32 %v6607_v14, %v7002_v51  ;;  %v2761_v49 = vmul.f32 %v6607_v14, %v7003_v23  ;;  %v2762_v7 = vmul.f32 %v6607_v14, %v7004_v50 }
 0x1db   :  { %v2763_v17 = vmul.f32 %v6607_v14, %v7005_v19  ;;  %v6641_v35 = vperm.slane %v2730_v12, 0  ;;  %v2829_v3 = vmul.f32 %v6607_v14, %v7006_v22  ;;  %v2830_v5 = vmul.f32 %v6607_v14, %v7007_v21 }
 0x1dc   :  { %v2831_v41 = vmul.f32 %v6607_v14, %v6223_v29  ;;  %v2832_v40 = vmul.f32 %v6607_v14, %v6229_v37  ;;  %v2833_v55 = vmul.f32 %v6607_v14, %v7008_v36  ;;  %v2834_v15 = vmul.f32 %v6607_v14, %v7009_v38 }
 0x1dd   :  { %v2765_v12 = vadd.f32 %v6641_v35, %v2748_v6  ;;  %v2766_v60 = vadd.f32 %v6641_v35, %v2749_v24  ;;  %v2767_v20 = vadd.f32 %v6641_v35, %v2750_v18  ;;  %v2768_v32 = vadd.f32 %v6641_v35, %v2751_v8 }
 0x1de   :  { %v2769_v16 = vadd.f32 %v6641_v35, %v2752_v53  ;;  %v2770_v29 = vadd.f32 %v6641_v35, %v2753_v52  ;;  %v2771_v37 = vadd.f32 %v6641_v35, %v2754_v11  ;;  %v2772_v33 = vadd.f32 %v6641_v35, %v2755_v39 }
 0x1df   :  { %v2773_v45 = vadd.f32 %v6641_v35, %v2756_v54  ;;  %v2774_v9 = vadd.f32 %v6641_v35, %v2757_v26  ;;  %v2775_v6 = vadd.f32 %v6641_v35, %v2758_v30  ;;  %v2776_v24 = vadd.f32 %v6641_v35, %v2759_v31 }
 0x1e0   :  { %v2777_v18 = vadd.f32 %v6641_v35, %v2760_v13  ;;  %v2778_v8 = vadd.f32 %v6641_v35, %v2761_v49  ;;  %v2779_v53 = vadd.f32 %v6641_v35, %v2762_v7  ;;  %v2780_v52 = vadd.f32 %v6641_v35, %v2763_v17 }
 0x1e1   :  { %v2781_v61 = vmax.f32 %v2765_v12, 0.0  ;;  %v2782_v11 = vmax.f32 %v2766_v60, 0.0  ;;  %v2783_v46 = vmax.f32 %v2767_v20, 0.0  ;;  %v2784_v39 = vmax.f32 %v2768_v32, 0.0 }
 0x1e2   :  { %v2785_v27 = vmax.f32 %v2769_v16, 0.0  ;;  %v2786_v54 = vmax.f32 %v2770_v29, 0.0  ;;  %v2787_v51 = vmax.f32 %v2771_v37, 0.0  ;;  %v2788_v26 = vmax.f32 %v2772_v33, 0.0  ;;  %v7010_v29 = vld [vmem:[#allocation22_spill] sm:$0xff]  ;;  %v7011_v33 = vld [vmem:[#allocation23_spill] sm:$0xff] }
 0x1e3   :  { %v2789_v23 = vmax.f32 %v2773_v45, 0.0  ;;  %v2790_v30 = vmax.f32 %v2774_v9, 0.0  ;;  %v2791_v50 = vmax.f32 %v2775_v6, 0.0  ;;  %v2792_v31 = vmax.f32 %v2776_v24, 0.0  ;;  %v7012_v9 = vld [vmem:[#allocation26_spill] sm:$0xff] }
 0x1e4   :  { %v2793_v19 = vmax.f32 %v2777_v18, 0.0  ;;  %v2794_v13 = vmax.f32 %v2778_v8, 0.0  ;;  %v2795_v22 = vmax.f32 %v2779_v53, 0.0  ;;  %v2796_v49 = vmax.f32 %v2780_v52, 0.0 }
 0x1e5   :  { %v2797_v21 = vpack.c.bf16 %v2782_v11, %v2781_v61  ;;  %v2798_v7 = vpack.c.bf16 %v2784_v39, %v2783_v46  ;;  %v2799_v36 = vpack.c.bf16 %v2786_v54, %v2785_v27  ;;  %v2800_v17 = vpack.c.bf16 %v2788_v26, %v2787_v51 }
 0x1e6   :  { %v2801_v38 = vpack.c.bf16 %v2790_v30, %v2789_v23  ;;  %v2802_v12 = vpack.c.bf16 %v2792_v31, %v2791_v50  ;;  %v2803_v60 = vpack.c.bf16 %v2794_v13, %v2793_v19  ;;  %v2804_v20 = vpack.c.bf16 %v2796_v49, %v2795_v22 }
 0x1e7   :  { %2805 = vst [vmem:[%s6902_s3] sm:$0xff] %v2797_v21  ;;  %v2835_v32 = vmul.f32 %v6607_v14, %v6231_v43  ;;  %v2836_v16 = vmul.f32 %v6607_v14, %v6233_v44  ;;  %v2837_v37 = vmul.f32 %v6607_v14, %v7010_v29  ;;  %v2838_v45 = vmul.f32 %v6607_v14, %v7011_v33  ;;  %v7013_v43 = vld [vmem:[#allocation24_spill] sm:$0xff]  ;;  %v7014_v44 = vld [vmem:[#allocation25_spill] sm:$0xff] }
 0x1e8   :  { %2806 = vst [vmem:[%s6902_s3 + $0x8] sm:$0xff] %v2798_v7  ;;  %v2839_v6 = vmul.f32 %v6607_v14, %v7012_v9  ;;  %v2840_v24 = vmul.f32 %v6607_v14, %v6241_v58  ;;  %v2841_v18 = vmul.f32 %v6607_v14, %v7013_v43  ;;  %v2842_v8 = vmul.f32 %v6607_v14, %v7014_v44  ;;  %v7016_v43 = vld [vmem:[#allocation28_spill] sm:$0xff] }
 0x1e9   :  { %2807 = vst [vmem:[%s6902_s3 + $0x10] sm:$0xff] %v2799_v36  ;;  %v2843_v53 = vmul.f32 %v6607_v14, %v6243_v62  ;;  %v2844_v52 = vmul.f32 %v6607_v14, %v6245_v2  ;;  %v2845_v61 = vadd.f32 %v2829_v3, %v6641_v35  ;;  %v2846_v58 = vadd.f32 %v2830_v5, %v6641_v35 }
 0x1ea   :  { %2808 = vst [vmem:[%s6902_s3 + $0x18] sm:$0xff] %v2800_v17  ;;  %v2847_v11 = vadd.f32 %v2831_v41, %v6641_v35  ;;  %v2848_v46 = vadd.f32 %v2832_v40, %v6641_v35  ;;  %v2849_v39 = vadd.f32 %v2833_v55, %v6641_v35  ;;  %v2850_v27 = vadd.f32 %v2834_v15, %v6641_v35 }
 0x1eb   :  { %2809 = vst [vmem:[%s6902_s3 + $0x20] sm:$0xff] %v2801_v38  ;;  %v2851_v62 = vadd.f32 %v2835_v32, %v6641_v35  ;;  %v2852_v2 = vadd.f32 %v2836_v16, %v6641_v35  ;;  %v2853_v3 = vadd.f32 %v2837_v37, %v6641_v35  ;;  %v2854_v5 = vadd.f32 %v2838_v45, %v6641_v35 }
 0x1ec   :  { %2810 = vst [vmem:[%s6902_s3 + $0x28] sm:$0xff] %v2802_v12  ;;  %v2855_v41 = vadd.f32 %v2839_v6, %v6641_v35  ;;  %v2856_v40 = vadd.f32 %v2840_v24, %v6641_v35  ;;  %v2857_v55 = vadd.f32 %v2841_v18, %v6641_v35  ;;  %v2858_v15 = vadd.f32 %v2842_v8, %v6641_v35  ;;  %v7015_v6 = vld [vmem:[#allocation27_spill] sm:$0xff] }
 0x1ed   :  { %2811 = vst [vmem:[%s6902_s3 + $0x30] sm:$0xff] %v2803_v60  ;;  %v2859_v54 = vadd.f32 %v2843_v53, %v6641_v35  ;;  %v2860_v51 = vadd.f32 %v2844_v52, %v6641_v35  ;;  %v2861_v26 = vmax.f32 %v2845_v61, 0.0  ;;  %v2862_v23 = vmax.f32 %v2846_v58, 0.0  ;;  %v7017_v53 = vld [vmem:[#allocation29_spill] sm:$0xff]  ;;  %v7018_v61 = vld [vmem:[#allocation30_spill] sm:$0xff] }
 0x1ee   :  { %2812 = vst [vmem:[%s6902_s3 + $0x38] sm:$0xff] %v2804_v20  ;;  %v2863_v30 = vmax.f32 %v2847_v11, 0.0  ;;  %v2864_v50 = vmax.f32 %v2848_v46, 0.0  ;;  %v2865_v31 = vmax.f32 %v2849_v39, 0.0  ;;  %v2866_v19 = vmax.f32 %v2850_v27, 0.0 }
 0x1ef   :  { %v2867_v13 = vmax.f32 %v2851_v62, 0.0  ;;  %v2868_v22 = vmax.f32 %v2852_v2, 0.0  ;;  %v2869_v49 = vmax.f32 %v2853_v3, 0.0  ;;  %v2870_v21 = vmax.f32 %v2854_v5, 0.0 }
 0x1f0   :  { %v2871_v7 = vmax.f32 %v2855_v41, 0.0  ;;  %v2872_v36 = vmax.f32 %v2856_v40, 0.0  ;;  %v2873_v17 = vmax.f32 %v2857_v55, 0.0  ;;  %v2874_v38 = vmax.f32 %v2858_v15, 0.0 }
 0x1f1   :  { %v2875_v12 = vmax.f32 %v2859_v54, 0.0  ;;  %v2876_v60 = vmax.f32 %v2860_v51, 0.0  ;;  %v2877_v32 = vpack.c.bf16 %v2862_v23, %v2861_v26  ;;  %v2878_v16 = vpack.c.bf16 %v2864_v50, %v2863_v30 }
 0x1f2   :  { %v2879_v29 = vpack.c.bf16 %v2866_v19, %v2865_v31  ;;  %v2880_v37 = vpack.c.bf16 %v2868_v22, %v2867_v13  ;;  %v2881_v33 = vpack.c.bf16 %v2870_v21, %v2869_v49  ;;  %v2882_v20 = vpack.c.bf16 %v2872_v36, %v2871_v7 }
 0x1f3   :  { %v2883_v45 = vpack.c.bf16 %v2874_v38, %v2873_v17  ;;  %v2884_v9 = vpack.c.bf16 %v2876_v60, %v2875_v12  ;;  %2885 = vst [vmem:[%s6902_s3 + $0x40] sm:$0xff] %v2877_v32  ;;  %v2909_v24 = vmul.f32 %v6607_v14, %v7015_v6  ;;  %v2910_v18 = vmul.f32 %v6607_v14, %v7016_v43 }
 0x1f4   :  { %2886 = vst [vmem:[%s6902_s3 + $0x48] sm:$0xff] %v2878_v16  ;;  %v2911_v44 = vmul.f32 %v6607_v14, %v6265_v1  ;;  %v2912_v8 = vmul.f32 %v6607_v14, %v6284_v34  ;;  %v2913_v52 = vmul.f32 %v6607_v14, %v7017_v53  ;;  %v2914_v58 = vmul.f32 %v6607_v14, %v7018_v61  ;;  %v7019_v1 = vld [vmem:[#allocation31_spill] sm:$0xff]  ;;  %v7020_v34 = vld [vmem:[#allocation32_spill] sm:$0xff] }
 0x1f5   :  { %2887 = vst [vmem:[%s6902_s3 + $0x50] sm:$0xff] %v2879_v29  ;;  %v2915_v11 = vmul.f32 %v6607_v14, %v6292_v63  ;;  %v2916_v46 = vmul.f32 %v6607_v14, %v6311_v48  ;;  %v2917_v39 = vmul.f32 %v6607_v14, %v7019_v1  ;;  %v2918_v27 = vmul.f32 %v6607_v14, %v7020_v34  ;;  %v7021_v63 = vld [vmem:[#allocation33_spill] sm:$0xff]  ;;  %v7022_v48 = vld [vmem:[#allocation34_spill] sm:$0xff]  ;;  %v7023_v61 = vld [vmem:[#allocation36_spill] sm:$0xff] }
 0x1f6   :  { %2888 = vst [vmem:[%s6902_s3 + $0x58] sm:$0xff] %v2880_v37  ;;  %v2919_v62 = vmul.f32 %v6607_v14, %v6319_v28  ;;  %v2920_v2 = vmul.f32 %v6607_v14, %v6333_v47  ;;  %v2921_v3 = vmul.f32 %v6607_v14, %v7021_v63  ;;  %v2922_v5 = vmul.f32 %v6607_v14, %v7022_v48  ;;  %v7025_v34 = vld [vmem:[#allocation35_spill] sm:$0xff] }
 0x1f7   :  { %2889 = vst [vmem:[%s6902_s3 + $0x60] sm:$0xff] %v2881_v33  ;;  %v2923_v41 = vmul.f32 %v6607_v14, %v6489_v10  ;;  %v2924_v40 = vmul.f32 %v6607_v14, %v6510_v4  ;;  %v2925_v28 = vadd.f32 %v2909_v24, %v6641_v35  ;;  %v2926_v47 = vadd.f32 %v2910_v18, %v6641_v35 }
 0x1f8   :  { %2890 = vst [vmem:[%s6902_s3 + $0x68] sm:$0xff] %v2882_v20  ;;  %v2927_v55 = vadd.f32 %v2911_v44, %v6641_v35  ;;  %v2928_v15 = vadd.f32 %v2912_v8, %v6641_v35  ;;  %v2929_v54 = vadd.f32 %v2913_v52, %v6641_v35  ;;  %v2930_v51 = vadd.f32 %v2914_v58, %v6641_v35 }
 0x1f9   :  { %2891 = vst [vmem:[%s6902_s3 + $0x70] sm:$0xff] %v2883_v45  ;;  %v2931_v10 = vadd.f32 %v2915_v11, %v6641_v35  ;;  %v2932_v4 = vadd.f32 %v2916_v46, %v6641_v35  ;;  %v2933_v26 = vadd.f32 %v2917_v39, %v6641_v35  ;;  %v2934_v23 = vadd.f32 %v2918_v27, %v6641_v35  ;;  %v7024_v11 = vld [vmem:[#allocation39_spill] sm:$0xff] }
 0x1fa   :  { %2892 = vst [vmem:[%s6902_s3 + $0x78] sm:$0xff] %v2884_v9  ;;  %v2935_v30 = vadd.f32 %v2919_v62, %v6641_v35  ;;  %v2936_v50 = vadd.f32 %v2920_v2, %v6641_v35  ;;  %v2937_v31 = vadd.f32 %v2921_v3, %v6641_v35  ;;  %v2938_v19 = vadd.f32 %v2922_v5, %v6641_v35  ;;  %v7026_v62 = vld [vmem:[#allocation38_spill] sm:$0xff] }
 0x1fb   :  { %v2939_v13 = vadd.f32 %v2923_v41, %v6641_v35  ;;  %v2940_v22 = vadd.f32 %v2924_v40, %v6641_v35  ;;  %v2941_v49 = vmax.f32 %v2925_v28, 0.0  ;;  %v2942_v21 = vmax.f32 %v2926_v47, 0.0  ;;  %v7029_v41 = vld [vmem:[#allocation43_spill] sm:$0xff] }
 0x1fc   :  { %v2943_v7 = vmax.f32 %v2927_v55, 0.0  ;;  %v2944_v36 = vmax.f32 %v2928_v15, 0.0  ;;  %v2945_v17 = vmax.f32 %v2929_v54, 0.0  ;;  %v2946_v38 = vmax.f32 %v2930_v51, 0.0  ;;  %v7032_v15 = vld [vmem:[#allocation44_spill] sm:$0xff] }
 0x1fd   :  { %v2947_v12 = vmax.f32 %v2931_v10, 0.0  ;;  %v2948_v60 = vmax.f32 %v2932_v4, 0.0  ;;  %v2949_v32 = vmax.f32 %v2933_v26, 0.0  ;;  %v2950_v16 = vmax.f32 %v2934_v23, 0.0 }
 0x1fe   :  { %v2951_v29 = vmax.f32 %v2935_v30, 0.0  ;;  %v2952_v37 = vmax.f32 %v2936_v50, 0.0  ;;  %v2953_v33 = vmax.f32 %v2937_v31, 0.0  ;;  %v2954_v20 = vmax.f32 %v2938_v19, 0.0 }
 0x1ff   :  { %v2955_v45 = vmax.f32 %v2939_v13, 0.0  ;;  %v2956_v9 = vmax.f32 %v2940_v22, 0.0  ;;  %v2957_v6 = vpack.c.bf16 %v2942_v21, %v2941_v49  ;;  %v2958_v24 = vpack.c.bf16 %v2944_v36, %v2943_v7 }
 0x200   :  { %v2959_v43 = vpack.c.bf16 %v2946_v38, %v2945_v17  ;;  %v2960_v18 = vpack.c.bf16 %v2948_v60, %v2947_v12  ;;  %v2961_v44 = vpack.c.bf16 %v2950_v16, %v2949_v32  ;;  %v2962_v8 = vpack.c.bf16 %v2952_v37, %v2951_v29 }
 0x201   :  { %v2963_v53 = vpack.c.bf16 %v2954_v20, %v2953_v33  ;;  %v2964_v52 = vpack.c.bf16 %v2956_v9, %v2955_v45  ;;  %2965 = vst [vmem:[%s6902_s3 + $0x80] sm:$0xff] %v2957_v6  ;;  %v2989_v58 = vmul.f32 %v6607_v14, %v7023_v61  ;;  %v2990_v46 = vmul.f32 %v6607_v14, %v7024_v11 }
 0x202   :  { %2966 = vst [vmem:[%s6902_s3 + $0x88] sm:$0xff] %v2958_v24  ;;  %v2991_v1 = vmul.f32 %v6607_v14, %v6539_v57  ;;  %v2992_v39 = vmul.f32 %v6607_v14, %v6566_v42  ;;  %v2993_v27 = vmul.f32 %v6607_v14, %v7025_v34  ;;  %v2994_v2 = vmul.f32 %v6607_v14, %v7026_v62  ;;  %v7027_v57 = vld [vmem:[#allocation37_spill] sm:$0xff]  ;;  %v7028_v42 = vld [vmem:[#allocation40_spill] sm:$0xff] }
 0x203   :  { %2967 = vst [vmem:[%s6902_s3 + $0x90] sm:$0xff] %v2959_v43  ;;  %v2995_v63 = vmul.f32 %v6607_v14, %v6526_v56  ;;  %v2996_v3 = vmul.f32 %v6607_v14, %v6555_v0  ;;  %v2997_v48 = vmul.f32 %v6607_v14, %v7027_v57  ;;  %v2998_v5 = vmul.f32 %v6607_v14, %v7028_v42  ;;  %v7030_v56 = vld [vmem:[#allocation41_spill] sm:$0xff]  ;;  %v7031_v0 = vld [vmem:[#allocation42_spill] sm:$0xff] }
 0x204   :  { %2968 = vst [vmem:[%s6902_s3 + $0x98] sm:$0xff] %v2960_v18  ;;  %v2999_v40 = vmul.f32 %v6607_v14, %v7029_v41  ;;  %v3000_v28 = vmul.f32 %v6607_v14, %v6568_v25  ;;  %v3001_v47 = vmul.f32 %v6607_v14, %v7030_v56  ;;  %v3002_v55 = vmul.f32 %v6607_v14, %v7031_v0 }
 0x205   :  { %2969 = vst [vmem:[%s6902_s3 + $0xa0] sm:$0xff] %v2961_v44  ;;  %v3003_v54 = vmul.f32 %v6607_v14, %v7032_v15  ;;  %v3004_v51 = vmul.f32 %v6607_v14, %v6586_v59  ;;  %v3005_v10 = vadd.f32 %v2989_v58, %v6641_v35  ;;  %v3006_v25 = vadd.f32 %v2990_v46, %v6641_v35 }
 0x206   :  { %2970 = vst [vmem:[%s6902_s3 + $0xa8] sm:$0xff] %v2962_v8  ;;  %v3007_v4 = vadd.f32 %v2991_v1, %v6641_v35  ;;  %v3008_v26 = vadd.f32 %v2992_v39, %v6641_v35  ;;  %v3009_v23 = vadd.f32 %v2993_v27, %v6641_v35  ;;  %v3010_v30 = vadd.f32 %v2994_v2, %v6641_v35 }
 0x207   :  { %2971 = vst [vmem:[%s6902_s3 + $0xb0] sm:$0xff] %v2963_v53  ;;  %v3011_v59 = vadd.f32 %v2995_v63, %v6641_v35  ;;  %v3012_v14 = vadd.f32 %v2996_v3, %v6641_v35  ;;  %v3013_v50 = vadd.f32 %v2997_v48, %v6641_v35  ;;  %v3014_v31 = vadd.f32 %v2998_v5, %v6641_v35 }
 0x208   :  { %2972 = vst [vmem:[%s6902_s3 + $0xb8] sm:$0xff] %v2964_v52  ;;  %v3015_v19 = vadd.f32 %v2999_v40, %v6641_v35  ;;  %v3016_v13 = vadd.f32 %v3000_v28, %v6641_v35  ;;  %v3017_v22 = vadd.f32 %v3001_v47, %v6641_v35  ;;  %v3018_v49 = vadd.f32 %v3002_v55, %v6641_v35 }
 0x209   :  { %v3019_v21 = vadd.f32 %v3003_v54, %v6641_v35  ;;  %v3020_v7 = vadd.f32 %v3004_v51, %v6641_v35  ;;  %v3021_v36 = vmax.f32 %v3005_v10, 0.0  ;;  %v3022_v17 = vmax.f32 %v3006_v25, 0.0 }
 0x20a   :  { %v3023_v38 = vmax.f32 %v3007_v4, 0.0  ;;  %v3024_v12 = vmax.f32 %v3008_v26, 0.0  ;;  %v3025_v60 = vmax.f32 %v3009_v23, 0.0  ;;  %v3026_v32 = vmax.f32 %v3010_v30, 0.0 }
 0x20b   :  { %v3027_v16 = vmax.f32 %v3011_v59, 0.0  ;;  %v3028_v29 = vmax.f32 %v3012_v14, 0.0  ;;  %v3029_v37 = vmax.f32 %v3013_v50, 0.0  ;;  %v3030_v33 = vmax.f32 %v3014_v31, 0.0 }
 0x20c   :  { %v3031_v20 = vmax.f32 %v3015_v19, 0.0  ;;  %v3032_v45 = vmax.f32 %v3016_v13, 0.0  ;;  %v3033_v9 = vmax.f32 %v3017_v22, 0.0  ;;  %v3034_v6 = vmax.f32 %v3018_v49, 0.0 }
 0x20d   :  { %v3035_v24 = vmax.f32 %v3019_v21, 0.0  ;;  %v3036_v43 = vmax.f32 %v3020_v7, 0.0  ;;  %v3037_v18 = vpack.c.bf16 %v3022_v17, %v3021_v36  ;;  %v3038_v44 = vpack.c.bf16 %v3024_v12, %v3023_v38 }
 0x20e   :  { %v3039_v8 = vpack.c.bf16 %v3026_v32, %v3025_v60  ;;  %v3040_v35 = vpack.c.bf16 %v3028_v29, %v3027_v16  ;;  %v3041_v53 = vpack.c.bf16 %v3030_v33, %v3029_v37  ;;  %v3042_v52 = vpack.c.bf16 %v3032_v45, %v3031_v20 }
 0x20f   :  { %v3043_v61 = vpack.c.bf16 %v3034_v6, %v3033_v9  ;;  %v3044_v58 = vpack.c.bf16 %v3036_v43, %v3035_v24  ;;  %3045 = vst [vmem:[%s6902_s3 + $0xc0] sm:$0xff] %v3037_v18 }
 0x210   :  { %3046 = vst [vmem:[%s6902_s3 + $0xc8] sm:$0xff] %v3038_v44 }
 0x211   :  { %3047 = vst [vmem:[%s6902_s3 + $0xd0] sm:$0xff] %v3039_v8 }
 0x212   :  { %3048 = vst [vmem:[%s6902_s3 + $0xd8] sm:$0xff] %v3040_v35 }
 0x213   :  { %3049 = vst [vmem:[%s6902_s3 + $0xe0] sm:$0xff] %v3041_v53 }
 0x214   :  { %3050 = vst [vmem:[%s6902_s3 + $0xe8] sm:$0xff] %v3042_v52 }
 0x215   :  { %3051 = vst [vmem:[%s6902_s3 + $0xf0] sm:$0xff] %v3043_v61 }
 0x216   :  { %3052 = vst [vmem:[%s6902_s3 + $0xf8] sm:$0xff] %v3044_v58 }

// kernel: _lambda_.11
= control target key start
LH: loop header
LB: loop body
LE: loop exit
PB: predicated region body
PF: predicated region fallthrough
CT: control target
= control target key end

     0   :  { %s4480_s1 = inlined_call_operand.vmem [shape: bf16[384,128], index: 1, kind: input, shape index: {}]   ;;  %s4481_s2 = inlined_call_operand.vmem [shape: f32[2,128], index: 2, kind: input, shape index: {}]   ;;  %s4482_s0 = inlined_call_operand.vmem [shape: bf16[512,384], index: 0, kind: input, shape index: {}]   ;;  %s4483_s3 = inlined_call_operand.vmem [shape: f32[512,128], index: 3, kind: output, shape index: {}]  }
   0x1   :  { %v2943_v0 = vld [vmem:[%s4480_s1 + $0x38] sm:$0xff]  ;;  %v2942_v4 = vld [vmem:[%s4480_s1 + $0x30] sm:$0xff]  ;;  %v2941_v8 = vld [vmem:[%s4480_s1 + $0x28] sm:$0xff] }
   0x2   :  { %v2951_v1 = vld [vmem:[%s4480_s1 + $0x78] sm:$0xff]  ;;  %368 = vmatpush.bf16.msra.mxu0 %v2943_v0  ;;  %v2950_v5 = vld [vmem:[%s4480_s1 + $0x70] sm:$0xff]  ;;  %v2949_v9 = vld [vmem:[%s4480_s1 + $0x68] sm:$0xff] }
   0x3   :  { %v2959_v2 = vld [vmem:[%s4480_s1 + $0xb8] sm:$0xff]  ;;  %417 = vmatpush.bf16.msra.mxu1 %v2951_v1  ;;  %v2958_v6 = vld [vmem:[%s4480_s1 + $0xb0] sm:$0xff]  ;;  %v2957_v10 = vld [vmem:[%s4480_s1 + $0xa8] sm:$0xff] }
   0x4   :  { %v2991_v3 = vld [vmem:[%s4480_s1 + $0x38] sm:$0xff]  ;;  %466 = vmatpush.bf16.msra.mxu2 %v2959_v2  ;;  %v2990_v7 = vld [vmem:[%s4480_s1 + $0x30] sm:$0xff]  ;;  %v2989_v11 = vld [vmem:[%s4480_s1 + $0x28] sm:$0xff] }
   0x5   :  { %899 = vmatpush.bf16.msra.mxu3 %v2991_v3  ;;  %v2940_v12 = vld [vmem:[%s4480_s1 + $0x20] sm:$0xff]  ;;  %v2939_v16 = vld [vmem:[%s4480_s1 + $0x18] sm:$0xff]  ;;  %v2938_v20 = vld [vmem:[%s4480_s1 + $0x10] sm:$0xff] }
   0x6   :  { %369 = vmatpush.bf16.msra.mxu0 %v2942_v4  ;;  %v2948_v13 = vld [vmem:[%s4480_s1 + $0x60] sm:$0xff]  ;;  %v2947_v17 = vld [vmem:[%s4480_s1 + $0x58] sm:$0xff]  ;;  %v2946_v21 = vld [vmem:[%s4480_s1 + $0x50] sm:$0xff] }
   0x7   :  { %418 = vmatpush.bf16.msra.mxu1 %v2950_v5  ;;  %v2956_v14 = vld [vmem:[%s4480_s1 + $0xa0] sm:$0xff]  ;;  %v2955_v18 = vld [vmem:[%s4480_s1 + $0x98] sm:$0xff]  ;;  %v2954_v22 = vld [vmem:[%s4480_s1 + $0x90] sm:$0xff] }
   0x8   :  { %467 = vmatpush.bf16.msra.mxu2 %v2958_v6  ;;  %v2988_v15 = vld [vmem:[%s4480_s1 + $0x20] sm:$0xff]  ;;  %v2987_v19 = vld [vmem:[%s4480_s1 + $0x18] sm:$0xff]  ;;  %v2986_v23 = vld [vmem:[%s4480_s1 + $0x10] sm:$0xff] }
   0x9   :  { %900 = vmatpush.bf16.msra.mxu3 %v2990_v7  ;;  %v2937_v24 = vld [vmem:[%s4480_s1 + $0x8] sm:$0xff]  ;;  %v2936_v28 = vld [vmem:[%s4480_s1] sm:$0xff]  ;;  %v2148_v35 = vld [vmem:[%s4482_s0 + $0xc] sm:$0xf0] }
   0xa   :  { %370 = vmatpush.bf16.msra.mxu0 %v2941_v8  ;;  %v2945_v25 = vld [vmem:[%s4480_s1 + $0x48] sm:$0xff]  ;;  %v2944_v29 = vld [vmem:[%s4480_s1 + $0x40] sm:$0xff]  ;;  %v2914_v37 = vld [vmem:[%s4482_s0 + $0x10] sm:$0xf0] }
   0xb   :  { %419 = vmatpush.bf16.msra.mxu1 %v2949_v9  ;;  %v2953_v26 = vld [vmem:[%s4480_s1 + $0x88] sm:$0xff]  ;;  %v2952_v30 = vld [vmem:[%s4480_s1 + $0x80] sm:$0xff]  ;;  %v3039_v40 = vld [vmem:[%s4480_s1 + $0x38] sm:$0xff] }
   0xc   :  { %468 = vmatpush.bf16.msra.mxu2 %v2957_v10  ;;  %v2985_v27 = vld [vmem:[%s4480_s1 + $0x8] sm:$0xff]  ;;  %v2984_v31 = vld [vmem:[%s4480_s1] sm:$0xff]  ;;  %v3047_v41 = vld [vmem:[%s4480_s1 + $0x78] sm:$0xff] }
   0xd   :  { %901 = vmatpush.bf16.msra.mxu3 %v2989_v11  ;;  %v2146_v32 = vld [vmem:[%s4482_s0] sm:$0xf]  ;;  %v2913_v33 = vld [vmem:[%s4482_s0 + $0x8] sm:$0xf0]  ;;  %v2912_v34 = vld [vmem:[%s4482_s0 + $0x4] sm:$0xf] }
   0xe   :  { %371 = vmatpush.bf16.msra.mxu0 %v2940_v12  ;;  %v2154_v36 = vld [vmem:[%s4482_s0 + $0x8] sm:$0xf]  ;;  %v2338_v38 = vld [vmem:[%s4482_s0 + $0xc0] sm:$0xf]  ;;  %v2961_v39 = vld [vmem:[%s4482_s0 + $0xc8] sm:$0xf0]  ;;  %v2147_v42 = vor.u32 %v2913_v33, %v2146_v32  ;;  %v2151_v43 = vor.u32 %v2912_v34, %v2148_v35 }
   0xf   :  { %420 = vmatpush.bf16.msra.mxu1 %v2948_v13  ;;  %v2155_v44 = vor.u32 %v2914_v37, %v2154_v36  ;;  %v2339_v45 = vor.u32 %v2961_v39, %v2338_v38  ;;  %v3007_v46 = vld [vmem:[%s4480_s1 + $0xb8] sm:$0xff]  ;;  %v3038_v48 = vld [vmem:[%s4480_s1 + $0x30] sm:$0xff]  ;;  %v3037_v52 = vld [vmem:[%s4480_s1 + $0x28] sm:$0xff] }
  0x10   :  { %469 = vmatpush.bf16.msra.mxu2 %v2956_v14  ;;  %v2999_v47 = vld [vmem:[%s4480_s1 + $0x78] sm:$0xff]  ;;  %v3046_v49 = vld [vmem:[%s4480_s1 + $0x70] sm:$0xff]  ;;  %v3045_v53 = vld [vmem:[%s4480_s1 + $0x68] sm:$0xff] }
  0x11   :  { %902 = vmatpush.bf16.msra.mxu3 %v2988_v15  ;;  %v3006_v50 = vld [vmem:[%s4480_s1 + $0xb0] sm:$0xff]  ;;  %v3005_v54 = vld [vmem:[%s4480_s1 + $0xa8] sm:$0xff]  ;;  %v2158_v56 = vld [vmem:[%s4482_s0 + $0x18] sm:$0xf] }
  0x12   :  { %372 = vmatpush.bf16.msra.mxu0 %v2939_v16  ;;  %v2998_v51 = vld [vmem:[%s4480_s1 + $0x70] sm:$0xff]  ;;  %v2997_v55 = vld [vmem:[%s4480_s1 + $0x68] sm:$0xff]  ;;  %v2916_v57 = vld [vmem:[%s4482_s0 + $0x20] sm:$0xf0] }
  0x13   :  { %421 = vmatpush.bf16.msra.mxu1 %v2947_v17  ;;  %v2915_v58 = vld [vmem:[%s4482_s0 + $0x1c] sm:$0xf]  ;;  %v2160_v59 = vld [vmem:[%s4482_s0 + $0x24] sm:$0xf0]  ;;  %v2166_v60 = vld [vmem:[%s4482_s0 + $0x20] sm:$0xf]  ;;  %v2159_v0 = vor.u32 %v2916_v57, %v2158_v56 }
  0x14   :  { %470 = vmatpush.bf16.msra.mxu2 %v2955_v18  ;;  %v2917_v61 = vld [vmem:[%s4482_s0 + $0x28] sm:$0xf0]  ;;  %v2350_v62 = vld [vmem:[%s4482_s0 + $0xd8] sm:$0xf]  ;;  %v2964_v63 = vld [vmem:[%s4482_s0 + $0xe0] sm:$0xf0]  ;;  %v2163_v1 = vor.u32 %v2915_v58, %v2160_v59 }
  0x15   :  { %903 = vmatpush.bf16.msra.mxu3 %v2987_v19  ;;  %v2167_v2 = vor.u32 %v2917_v61, %v2166_v60  ;;  %v2351_v3 = vor.u32 %v2964_v63, %v2350_v62  ;;  %v3036_v4 = vld [vmem:[%s4480_s1 + $0x20] sm:$0xff]  ;;  %v2170_v8 = vld [vmem:[%s4482_s0 + $0x30] sm:$0xf]  ;;  %v2919_v9 = vld [vmem:[%s4482_s0 + $0x38] sm:$0xf0] }
  0x16   :  { %373 = vmatpush.bf16.msra.mxu0 %v2938_v20  ;;  %v3044_v5 = vld [vmem:[%s4480_s1 + $0x60] sm:$0xff]  ;;  %v2918_v10 = vld [vmem:[%s4482_s0 + $0x34] sm:$0xf]  ;;  %v2178_v12 = vld [vmem:[%s4482_s0 + $0x38] sm:$0xf]  ;;  %v2171_v16 = vor.u32 %v2919_v9, %v2170_v8 }
  0x17   :  { %422 = vmatpush.bf16.msra.mxu1 %v2946_v21  ;;  %v3004_v6 = vld [vmem:[%s4480_s1 + $0xa0] sm:$0xff]  ;;  %v2362_v14 = vld [vmem:[%s4482_s0 + $0xf0] sm:$0xf]  ;;  %v2967_v15 = vld [vmem:[%s4482_s0 + $0xf8] sm:$0xf0] }
  0x18   :  { %471 = vmatpush.bf16.msra.mxu2 %v2954_v22  ;;  %v2996_v7 = vld [vmem:[%s4480_s1 + $0x60] sm:$0xff]  ;;  %v2363_v19 = vor.u32 %v2967_v15, %v2362_v14  ;;  %v3035_v20 = vld [vmem:[%s4480_s1 + $0x18] sm:$0xff]  ;;  %v3034_v36 = vld [vmem:[%s4480_s1 + $0x10] sm:$0xff] }
  0x19   :  { %904 = vmatpush.bf16.msra.mxu3 %v2986_v23  ;;  %v2172_v11 = vld [vmem:[%s4482_s0 + $0x3c] sm:$0xf0]  ;;  %v2920_v13 = vld [vmem:[%s4482_s0 + $0x40] sm:$0xf0]  ;;  %v3043_v21 = vld [vmem:[%s4480_s1 + $0x58] sm:$0xff] }
  0x1a   :  { %374 = vmatpush.bf16.msra.mxu0 %v2937_v24  ;;  %v2175_v17 = vor.u32 %v2918_v10, %v2172_v11  ;;  %v2179_v18 = vor.u32 %v2920_v13, %v2178_v12  ;;  %v3003_v22 = vld [vmem:[%s4480_s1 + $0x98] sm:$0xff]  ;;  %v2182_v24 = vld [vmem:[%s4482_s0 + $0x48] sm:$0xf]  ;;  %v3042_v37 = vld [vmem:[%s4480_s1 + $0x50] sm:$0xff] }
  0x1b   :  { %423 = vmatpush.bf16.msra.mxu1 %v2945_v25  ;;  %v2995_v23 = vld [vmem:[%s4480_s1 + $0x58] sm:$0xff]  ;;  %v2922_v25 = vld [vmem:[%s4482_s0 + $0x50] sm:$0xf0]  ;;  %v2928_v57 = vld [vmem:[%s4482_s0 + $0x80] sm:$0xf0] }
  0x1c   :  { %472 = vmatpush.bf16.msra.mxu2 %v2953_v26  ;;  %v2921_v26 = vld [vmem:[%s4482_s0 + $0x4c] sm:$0xf]  ;;  %v2183_v32 = vor.u32 %v2922_v25, %v2182_v24  ;;  %v3002_v38 = vld [vmem:[%s4480_s1 + $0x90] sm:$0xff]  ;;  %v2206_v56 = vld [vmem:[%s4482_s0 + $0x78] sm:$0xf] }
  0x1d   :  { %905 = vmatpush.bf16.msra.mxu3 %v2985_v27  ;;  %v2184_v27 = vld [vmem:[%s4482_s0 + $0x54] sm:$0xf0]  ;;  %v2994_v39 = vld [vmem:[%s4480_s1 + $0x50] sm:$0xff]  ;;  %v2927_v58 = vld [vmem:[%s4482_s0 + $0x7c] sm:$0xf] }
  0x1e   :  { %375 = vmatpush.bf16.msra.mxu0 %v2936_v28  ;;  %v2190_v28 = vld [vmem:[%s4482_s0 + $0x50] sm:$0xf]  ;;  %v2187_v33 = vor.u32 %v2921_v26, %v2184_v27  ;;  %v2208_v59 = vld [vmem:[%s4482_s0 + $0x84] sm:$0xf0]  ;;  %v2214_v60 = vld [vmem:[%s4482_s0 + $0x80] sm:$0xf] }
  0x1f   :  { %424 = vmatpush.bf16.msra.mxu1 %v2944_v29  ;;  %v2923_v29 = vld [vmem:[%s4482_s0 + $0x58] sm:$0xf0]  ;;  %v2929_v61 = vld [vmem:[%s4482_s0 + $0x88] sm:$0xf0]  ;;  %v2398_v62 = vld [vmem:[%s4482_s0 + $0x138] sm:$0xf] }
  0x20   :  { %473 = vmatpush.bf16.msra.mxu2 %v2952_v30  ;;  %v2374_v30 = vld [vmem:[%s4482_s0 + $0x108] sm:$0xf]  ;;  %v2191_v34 = vor.u32 %v2923_v29, %v2190_v28  ;;  %v2976_v63 = vld [vmem:[%s4482_s0 + $0x140] sm:$0xf0]  ;;  %v2218_v8 = vld [vmem:[%s4482_s0 + $0x90] sm:$0xf] }
  0x21   :  { %906 = vmatpush.bf16.msra.mxu3 %v2984_v31  ;;  %376 = vmatmul.bf16.vlgmr.msra.gmra.mxu0 %v2147_v42  ;;  %v2970_v31 = vld [vmem:[%s4482_s0 + $0x110] sm:$0xf0]  ;;  %v2924_v42 = vld [vmem:[%s4482_s0 + $0x64] sm:$0xf]  ;;  %v2931_v9 = vld [vmem:[%s4482_s0 + $0x98] sm:$0xf0] }
  0x22   :  { %425 = vmatmul.bf16.vlgmr.msra.gmra.mxu1 %v2151_v43  ;;  %948 = vmatpush.bf16.msrb.mxu0 %v2999_v47  ;;  %v2375_v35 = vor.u32 %v2970_v31, %v2374_v30  ;;  %v2196_v43 = vld [vmem:[%s4482_s0 + $0x6c] sm:$0xf0]  ;;  %v2973_v47 = vld [vmem:[%s4482_s0 + $0x128] sm:$0xf0]  ;;  %v2930_v10 = vld [vmem:[%s4482_s0 + $0x94] sm:$0xf] }
  0x23   :  { %474 = vmatmul.bf16.vlgmr.msra.gmra.mxu2 %v2155_v44  ;;  %997 = vmatpush.bf16.msrb.mxu1 %v3007_v46  ;;  %v2202_v44 = vld [vmem:[%s4482_s0 + $0x68] sm:$0xf]  ;;  %v2386_v46 = vld [vmem:[%s4482_s0 + $0x120] sm:$0xf]  ;;  %v2226_v12 = vld [vmem:[%s4482_s0 + $0x98] sm:$0xf] }
  0x24   :  { %1430 = vmatpush.bf16.msrb.mxu2 %v3039_v40  ;;  %907 = vmatmul.bf16.vlgmr.msra.gmra.mxu3 %v2339_v45  ;;  %v2194_v40 = vld [vmem:[%s4482_s0 + $0x60] sm:$0xf]  ;;  %v2926_v45 = vld [vmem:[%s4482_s0 + $0x70] sm:$0xf0]  ;;  %v2932_v13 = vld [vmem:[%s4482_s0 + $0xa0] sm:$0xf0] }
  0x25   :  { %1479 = vmatpush.bf16.msrb.mxu3 %v3047_v41  ;;  %v2925_v41 = vld [vmem:[%s4482_s0 + $0x68] sm:$0xf0]  ;;  %v2220_v11 = vld [vmem:[%s4482_s0 + $0x9c] sm:$0xf0]  ;;  %v2410_v14 = vld [vmem:[%s4482_s0 + $0x150] sm:$0xf] }
  0x26   :  { %949 = vmatpush.bf16.msrb.mxu0 %v2998_v51  ;;  %v2387_v51 = vor.u32 %v2973_v47, %v2386_v46  ;;  %v2979_v15 = vld [vmem:[%s4482_s0 + $0x158] sm:$0xf0]  ;;  %v2933_v24 = vld [vmem:[%s4482_s0 + $0xac] sm:$0xf]  ;;  %v2232_v25 = vld [vmem:[%s4482_s0 + $0xb4] sm:$0xf0] }
  0x27   :  { %998 = vmatpush.bf16.msrb.mxu1 %v3006_v50  ;;  %v2203_v50 = vor.u32 %v2926_v45, %v2202_v44  ;;  %v2238_v26 = vld [vmem:[%s4482_s0 + $0xb0] sm:$0xf]  ;;  %v2935_v27 = vld [vmem:[%s4482_s0 + $0xb8] sm:$0xf0]  ;;  %v2422_v28 = vld [vmem:[%s4482_s0 + $0x168] sm:$0xf]  ;;  %v2235_v31 = vor.u32 %v2933_v24, %v2232_v25 }
  0x28   :  { %1431 = vmatpush.bf16.msrb.mxu2 %v3038_v48  ;;  %v2195_v48 = vor.u32 %v2925_v41, %v2194_v40  ;;  %v2982_v29 = vld [vmem:[%s4482_s0 + $0x170] sm:$0xf0]  ;;  %v2340_v40 = vld [vmem:[%s4482_s0 + $0xcc] sm:$0xf0]  ;;  %v2346_v41 = vld [vmem:[%s4482_s0 + $0xc8] sm:$0xf] }
  0x29   :  { %1480 = vmatpush.bf16.msrb.mxu3 %v3046_v49  ;;  %v2199_v49 = vor.u32 %v2924_v42, %v2196_v43  ;;  %v2962_v42 = vld [vmem:[%s4482_s0 + $0xd0] sm:$0xf0]  ;;  %v2530_v43 = vld [vmem:[%s4482_s0 + $0x180] sm:$0xf]  ;;  %v3009_v44 = vld [vmem:[%s4482_s0 + $0x188] sm:$0xf0] }
  0x2a   :  { %950 = vmatpush.bf16.msrb.mxu0 %v2997_v55  ;;  %v2993_v55 = vld [vmem:[%s4480_s1 + $0x48] sm:$0xff]  ;;  %v3008_v45 = vld [vmem:[%s4482_s0 + $0x184] sm:$0xf]  ;;  %v2532_v46 = vld [vmem:[%s4482_s0 + $0x18c] sm:$0xf0] }
  0x2b   :  { %999 = vmatpush.bf16.msrb.mxu1 %v3005_v54  ;;  %v3001_v54 = vld [vmem:[%s4480_s1 + $0x88] sm:$0xff] }
  0x2c   :  { %1432 = vmatpush.bf16.msrb.mxu2 %v3037_v52  ;;  %v3033_v52 = vld [vmem:[%s4480_s1 + $0x8] sm:$0xff] }
  0x2d   :  { %1481 = vmatpush.bf16.msrb.mxu3 %v3045_v53  ;;  %v3041_v53 = vld [vmem:[%s4480_s1 + $0x48] sm:$0xff] }
  0x2e   :  { %951 = vmatpush.bf16.msrb.mxu0 %v2996_v7  ;;  %v2992_v7 = vld [vmem:[%s4480_s1 + $0x40] sm:$0xff] }
  0x2f   :  { %1000 = vmatpush.bf16.msrb.mxu1 %v3004_v6  ;;  %v3000_v6 = vld [vmem:[%s4480_s1 + $0x80] sm:$0xff] }
  0x30   :  { %1433 = vmatpush.bf16.msrb.mxu2 %v3036_v4  ;;  %v3032_v4 = vld [vmem:[%s4480_s1] sm:$0xff] }
  0x31   :  { %381 = vmatmul.bf16.gmra.mxu0 %v2159_v0  ;;  %1482 = vmatpush.bf16.msrb.mxu3 %v3044_v5  ;;  %v2207_v0 = vor.u32 %v2928_v57, %v2206_v56  ;;  %v3040_v5 = vld [vmem:[%s4480_s1 + $0x40] sm:$0xff] }
  0x32   :  { %430 = vmatmul.bf16.gmra.mxu1 %v2163_v1  ;;  %952 = vmatpush.bf16.msrb.mxu0 %v2995_v23  ;;  %v2211_v1 = vor.u32 %v2927_v58, %v2208_v59  ;;  %v2934_v23 = vld [vmem:[%s4482_s0 + $0xb0] sm:$0xf0] }
  0x33   :  { %479 = vmatmul.bf16.gmra.mxu2 %v2167_v2  ;;  %1001 = vmatpush.bf16.msrb.mxu1 %v3003_v22  ;;  %v2215_v2 = vor.u32 %v2929_v61, %v2214_v60  ;;  %v2230_v22 = vld [vmem:[%s4482_s0 + $0xa8] sm:$0xf] }
  0x34   :  { %912 = vmatmul.bf16.gmra.mxu3 %v2351_v3  ;;  %1434 = vmatpush.bf16.msrb.mxu2 %v3035_v20  ;;  %v2399_v3 = vor.u32 %v2976_v63, %v2398_v62  ;;  %v3095_v20 = vld [vmem:[%s4480_s1 + $0x78] sm:$0xff]  ;;  %v2231_v30 = vor.u32 %v2934_v23, %v2230_v22  ;;  %v3093_v62 = vld [vmem:[%s4480_s1 + $0x68] sm:$0xff] }
  0x35   :  { %1483 = vmatpush.bf16.msrb.mxu3 %v3043_v21  ;;  %v3103_v21 = vld [vmem:[%s4480_s1 + $0xb8] sm:$0xff]  ;;  %v3101_v63 = vld [vmem:[%s4480_s1 + $0xa8] sm:$0xff] }
  0x36   :  { %953 = vmatpush.bf16.msrb.mxu0 %v2994_v39  ;;  %v2960_v39 = vld [vmem:[%s4482_s0 + $0xc4] sm:$0xf]  ;;  %v3053_v22 = vld [vmem:[%s4480_s1 + $0xa8] sm:$0xff] }
  0x37   :  { %1002 = vmatpush.bf16.msrb.mxu1 %v3002_v38  ;;  %v3659_v38 = vld [vmem:[%s4481_s2 + $0x1] ss:$0 sm:$0xff]  ;;  %v2343_v47 = vor.u32 %v2960_v39, %v2340_v40  ;;  %v3015_v39 = vld [vmem:[%s4482_s0 + $0x1b8] sm:$0xf0]  ;;  %v3014_v40 = vld [vmem:[%s4482_s0 + $0x1b4] sm:$0xf] }
  0x38   :  { %1435 = vmatpush.bf16.msrb.mxu2 %v3034_v36  ;;  %v3094_v36 = vld [vmem:[%s4480_s1 + $0x70] sm:$0xff] }
  0x39   :  { %1484 = vmatpush.bf16.msrb.mxu3 %v3042_v37  ;;  %v3102_v37 = vld [vmem:[%s4480_s1 + $0xb0] sm:$0xff] }
  0x3a   :  { %954 = vmatpush.bf16.msrb.mxu0 %v2993_v55  ;;  %v3054_v55 = vld [vmem:[%s4480_s1 + $0xb0] sm:$0xff] }
  0x3b   :  { %1003 = vmatpush.bf16.msrb.mxu1 %v3001_v54  ;;  %v3086_v54 = vld [vmem:[%s4480_s1 + $0x30] sm:$0xff] }
  0x3c   :  { %1436 = vmatpush.bf16.msrb.mxu2 %v3033_v52  ;;  %v2535_v52 = vor.u32 %v3008_v45, %v2532_v46 }
  0x3d   :  { %1485 = vmatpush.bf16.msrb.mxu3 %v3041_v53 }
  0x3e   :  { %955 = vmatpush.bf16.msrb.mxu0 %v2992_v7  ;;  %v3011_v7 = vld [vmem:[%s4482_s0 + $0x19c] sm:$0xf] }
  0x3f   :  { %1004 = vmatpush.bf16.msrb.mxu1 %v3000_v6  ;;  %v3012_v6 = vld [vmem:[%s4482_s0 + $0x1a0] sm:$0xf0] }
  0x40   :  { %1437 = vmatpush.bf16.msrb.mxu2 %v3032_v4  ;;  %v2965_v4 = vld [vmem:[%s4482_s0 + $0xe8] sm:$0xf0] }
  0x41   :  { %386 = vmatmul.bf16.gmra.mxu0 %v2171_v16  ;;  %1486 = vmatpush.bf16.msrb.mxu3 %v3040_v5  ;;  %v2219_v16 = vor.u32 %v2931_v9, %v2218_v8  ;;  %v2542_v5 = vld [vmem:[%s4482_s0 + $0x198] sm:$0xf]  ;;  %v2544_v8 = vld [vmem:[%s4482_s0 + $0x1a4] sm:$0xf0] }
  0x42   :  { %435 = vmatmul.bf16.gmra.mxu1 %v2175_v17  ;;  %v2223_v17 = vor.u32 %v2930_v10, %v2220_v11 }
  0x43   :  { %484 = vmatmul.bf16.gmra.mxu2 %v2179_v18  ;;  %v2227_v18 = vor.u32 %v2932_v13, %v2226_v12 }
  0x44   :  { %917 = vmatmul.bf16.gmra.mxu3 %v2363_v19  ;;  %v2411_v19 = vor.u32 %v2979_v15, %v2410_v14  ;;  %2010 = vmatpush.bf16.msra.mxu2 %v3095_v20 }
  0x45   :  { %2059 = vmatpush.bf16.msra.mxu3 %v3103_v21  ;;  %v3085_v21 = vld [vmem:[%s4480_s1 + $0x28] sm:$0xff] }
  0x48   :  { %2011 = vmatpush.bf16.msra.mxu2 %v3094_v36  ;;  %v2968_v36 = vld [vmem:[%s4482_s0 + $0x100] sm:$0xf0] }
  0x49   :  { %2060 = vmatpush.bf16.msra.mxu3 %v3102_v37  ;;  %v2554_v37 = vld [vmem:[%s4482_s0 + $0x1b0] sm:$0xf] }
  0x4c   :  { %2012 = vmatpush.bf16.msra.mxu2 %v3093_v62 }
  0x4d   :  { %2061 = vmatpush.bf16.msra.mxu3 %v3101_v63 }
  0x51   :  { %391 = vmatmul.bf16.gmra.mxu0 %v2183_v32  ;;  %v2239_v32 = vor.u32 %v2935_v27, %v2238_v26 }
  0x52   :  { %440 = vmatmul.bf16.gmra.mxu1 %v2187_v33  ;;  %v2423_v33 = vor.u32 %v2982_v29, %v2422_v28 }
  0x53   :  { %489 = vmatmul.bf16.gmra.mxu2 %v2191_v34  ;;  %v3087_v34 = vld [vmem:[%s4480_s1 + $0x38] sm:$0xff] }
  0x54   :  { %922 = vmatmul.bf16.gmra.mxu3 %v2375_v35  ;;  %v3055_v35 = vld [vmem:[%s4480_s1 + $0xb8] sm:$0xff]  ;;  %1961 = vmatpush.bf16.msra.mxu1 %v3087_v34  ;;  %v2364_v34 = vld [vmem:[%s4482_s0 + $0xfc] sm:$0xf0] }
  0x55   :  { %1528 = vmatpush.bf16.msra.mxu0 %v3055_v35  ;;  %v2370_v35 = vld [vmem:[%s4482_s0 + $0xf8] sm:$0xf] }
  0x56   :  { %v2371_v46 = vor.u32 %v2968_v36, %v2370_v35  ;;  %v3098_v35 = vld [vmem:[%s4480_s1 + $0x90] sm:$0xff] }
  0x58   :  { %1962 = vmatpush.bf16.msra.mxu1 %v3086_v54  ;;  %v3084_v54 = vld [vmem:[%s4480_s1 + $0x20] sm:$0xff] }
  0x59   :  { %1529 = vmatpush.bf16.msra.mxu0 %v3054_v55  ;;  %v3052_v55 = vld [vmem:[%s4480_s1 + $0xa0] sm:$0xff] }
  0x5c   :  { %1963 = vmatpush.bf16.msra.mxu1 %v3085_v21 }
  0x5d   :  { %1530 = vmatpush.bf16.msra.mxu0 %v3053_v22 }
  0x60   :  { %1964 = vmatpush.bf16.msra.mxu1 %v3084_v54 }
  0x61   :  { %396 = vmatmul.bf16.gmra.mxu0 %v2195_v48  ;;  %v2347_v48 = vor.u32 %v2962_v42, %v2346_v41  ;;  %v2556_v41 = vld [vmem:[%s4482_s0 + $0x1bc] sm:$0xf0] }
  0x62   :  { %445 = vmatmul.bf16.gmra.mxu1 %v2199_v49  ;;  %1531 = vmatpush.bf16.msra.mxu0 %v3052_v55 }
  0x63   :  { %494 = vmatmul.bf16.gmra.mxu2 %v2203_v50 }
  0x64   :  { %927 = vmatmul.bf16.gmra.mxu3 %v2387_v51  ;;  %v2531_v51 = vor.u32 %v3009_v44, %v2530_v43 }
  0x71   :  { %401 = vmatmul.bf16.gmra.mxu0 %v2207_v0 }
  0x72   :  { %450 = vmatmul.bf16.gmra.mxu1 %v2211_v1  ;;  %v2963_v1 = vld [vmem:[%s4482_s0 + $0xdc] sm:$0xf] }
  0x73   :  { %499 = vmatmul.bf16.gmra.mxu2 %v2215_v2  ;;  %v2352_v2 = vld [vmem:[%s4482_s0 + $0xe4] sm:$0xf0] }
  0x74   :  { %932 = vmatmul.bf16.gmra.mxu3 %v2399_v3  ;;  %v2358_v3 = vld [vmem:[%s4482_s0 + $0xe0] sm:$0xf]  ;;  %v2355_v12 = vor.u32 %v2963_v1, %v2352_v2  ;;  %v3099_v1 = vld [vmem:[%s4480_s1 + $0x98] sm:$0xff] }
  0x75   :  { %v2359_v13 = vor.u32 %v2965_v4, %v2358_v3  ;;  %v2969_v3 = vld [vmem:[%s4482_s0 + $0x10c] sm:$0xf]  ;;  %v2376_v4 = vld [vmem:[%s4482_s0 + $0x114] sm:$0xf0] }
  0x81   :  { %406 = vmatmul.bf16.gmra.mxu0 %v2219_v16 }
  0x82   :  { %455 = vmatmul.bf16.gmra.mxu1 %v2223_v17 }
  0x83   :  { %504 = vmatmul.bf16.gmra.mxu2 %v2227_v18  ;;  %v2543_v18 = vor.u32 %v3012_v6, %v2542_v5  ;;  %v2382_v5 = vld [vmem:[%s4482_s0 + $0x110] sm:$0xf]  ;;  %v2971_v6 = vld [vmem:[%s4482_s0 + $0x118] sm:$0xf0] }
  0x84   :  { %937 = vmatmul.bf16.gmra.mxu3 %v2411_v19  ;;  %v2547_v19 = vor.u32 %v3011_v7, %v2544_v8  ;;  %v2566_v7 = vld [vmem:[%s4482_s0 + $0x1c8] sm:$0xf]  ;;  %v3018_v8 = vld [vmem:[%s4482_s0 + $0x1d0] sm:$0xf0] }
  0x85   :  { %v2567_v21 = vor.u32 %v3018_v8, %v2566_v7  ;;  %v3097_v7 = vld [vmem:[%s4480_s1 + $0x88] sm:$0xff] }
  0x91   :  { %411 = vmatmul.bf16.gmra.mxu0 %v2231_v30  ;;  %v3092_v30 = vld [vmem:[%s4480_s1 + $0x60] sm:$0xff] }
  0x92   :  { %460 = vmatmul.bf16.gmra.mxu1 %v2235_v31  ;;  %v3100_v31 = vld [vmem:[%s4480_s1 + $0xa0] sm:$0xff]  ;;  %2013 = vmatpush.bf16.msra.mxu2 %v3092_v30 }
  0x93   :  { %509 = vmatmul.bf16.gmra.mxu2 %v2239_v32  ;;  %2062 = vmatpush.bf16.msra.mxu3 %v3100_v31 }
  0x94   :  { %942 = vmatmul.bf16.gmra.mxu3 %v2423_v33  ;;  %v2966_v33 = vld [vmem:[%s4482_s0 + $0xf4] sm:$0xf] }
  0x95   :  { %v2367_v45 = vor.u32 %v2966_v33, %v2364_v34  ;;  %v3090_v34 = vld [vmem:[%s4480_s1 + $0x50] sm:$0xff] }
  0x97   :  { %2063 = vmatpush.bf16.msra.mxu3 %v3099_v1 }
  0x9b   :  { %2064 = vmatpush.bf16.msra.mxu3 %v3098_v35 }
  0x9e   :  { %v377_v49 = vpop.f32.mrf.mxu0 }
  0x9f   :  { %v426_v50 = vpop.f32.mrf.mxu1  ;;  %v378_v53 = vadd.f32 %v3659_v38, %v377_v49  ;;  %2065 = vmatpush.bf16.msra.mxu3 %v3097_v7 }
  0xa1   :  { %956 = vmatmul.bf16.vlgmr.msrb.gmra.mxu0 %v2343_v47  ;;  %v427_v56 = vadd.f32 %v426_v50, %v378_v53 }
  0xa2   :  { %1005 = vmatmul.bf16.vlgmr.msrb.gmra.mxu1 %v2347_v48 }
  0xa3   :  { %1438 = vmatmul.bf16.vlgmr.msrb.gmra.mxu2 %v2531_v51  ;;  %v2555_v51 = vor.u32 %v3015_v39, %v2554_v37  ;;  %v2972_v37 = vld [vmem:[%s4482_s0 + $0x124] sm:$0xf]  ;;  %v2388_v39 = vld [vmem:[%s4482_s0 + $0x12c] sm:$0xf0] }
  0xa4   :  { %1487 = vmatmul.bf16.vlgmr.msrb.gmra.mxu3 %v2535_v52  ;;  %v2559_v52 = vor.u32 %v3014_v40, %v2556_v41  ;;  %v2394_v40 = vld [vmem:[%s4482_s0 + $0x128] sm:$0xf]  ;;  %v2974_v41 = vld [vmem:[%s4482_s0 + $0x130] sm:$0xf0] }
  0xa6   :  { %v475_v57 = vpop.f32.mrf.mxu2  ;;  %v379_v60 = vpop.f32.mrf.mxu0 }
  0xa7   :  { %v3692_v58 = vpop.f32.mrf.mxu3  ;;  %v476_v59 = vadd.f32 %v475_v57, %v427_v56  ;;  %v428_v61 = vpop.f32.mrf.mxu1  ;;  %v380_v0 = vadd.f32 %v3659_v38, %v379_v60 }
  0xa9   :  { %3105 = vtanh.f32 %v476_v59  ;;  %v429_v9 = vadd.f32 %v428_v61, %v380_v0  ;;  %v3091_v0 = vld [vmem:[%s4480_s1 + $0x58] sm:$0xff] }
  0xaa   :  { %2014 = vmatpush.bf16.msra.mxu2 %v3091_v0 }
  0xae   :  { %v477_v10 = vpop.f32.mrf.mxu2  ;;  %v382_v16 = vpop.f32.mrf.mxu0  ;;  %2015 = vmatpush.bf16.msra.mxu2 %v3090_v34  ;;  %v3049_v34 = vld [vmem:[%s4480_s1 + $0x88] sm:$0xff] }
  0xaf   :  { %v3725_v11 = vpop.f32.mrf.mxu3  ;;  %v3106_v14 = vpop.eup %3105  ;;  %v478_v15 = vadd.f32 %v477_v10, %v429_v9  ;;  %v383_v20 = vadd.f32 %v3659_v38, %v382_v16  ;;  %v3017_v9 = vld [vmem:[%s4482_s0 + $0x1cc] sm:$0xf]  ;;  %v2568_v10 = vld [vmem:[%s4482_s0 + $0x1d4] sm:$0xf0]  ;;  %v2383_v16 = vor.u32 %v2971_v6, %v2382_v5 }
  0xb0   :  { %v431_v17 = vpop.f32.mrf.mxu1  ;;  %531 = vst [vmem:[%s4483_s3] sm:$0xff] %v3106_v14  ;;  %v2571_v22 = vor.u32 %v3017_v9, %v2568_v10  ;;  %v3089_v6 = vld [vmem:[%s4480_s1 + $0x48] sm:$0xff]  ;;  %v2975_v9 = vld [vmem:[%s4482_s0 + $0x13c] sm:$0xf] }
  0xb1   :  { %3107 = vtanh.f32 %v478_v15  ;;  %961 = vmatmul.bf16.gmra.mxu0 %v2355_v12  ;;  %v432_v23 = vadd.f32 %v431_v17, %v383_v20  ;;  %v2379_v15 = vor.u32 %v2969_v3, %v2376_v4  ;;  %v2400_v10 = vld [vmem:[%s4482_s0 + $0x144] sm:$0xf0] }
  0xb2   :  { %1010 = vmatmul.bf16.gmra.mxu1 %v2359_v13  ;;  %2016 = vmatpush.bf16.msra.mxu2 %v3089_v6 }
  0xb3   :  { %1443 = vmatmul.bf16.gmra.mxu2 %v2543_v18 }
  0xb4   :  { %1492 = vmatmul.bf16.gmra.mxu3 %v2547_v19 }
  0xb6   :  { %v480_v24 = vpop.f32.mrf.mxu2  ;;  %v384_v28 = vpop.f32.mrf.mxu0 }
  0xb7   :  { %v3737_v25 = vpop.f32.mrf.mxu3  ;;  %v3108_v26 = vpop.eup %3107  ;;  %v481_v27 = vadd.f32 %v480_v24, %v432_v23  ;;  %v385_v32 = vadd.f32 %v3659_v38, %v384_v28  ;;  %v3083_v24 = vld [vmem:[%s4480_s1 + $0x18] sm:$0xff] }
  0xb8   :  { %v433_v29 = vpop.f32.mrf.mxu1  ;;  %532 = vst [vmem:[%s4483_s3 + $0x8] sm:$0xff] %v3108_v26  ;;  %v3051_v26 = vld [vmem:[%s4480_s1 + $0x98] sm:$0xff]  ;;  %1965 = vmatpush.bf16.msra.mxu1 %v3083_v24 }
  0xb9   :  { %3109 = vtanh.f32 %v481_v27  ;;  %v434_v42 = vadd.f32 %v433_v29, %v385_v32  ;;  %1532 = vmatpush.bf16.msra.mxu0 %v3051_v26 }
  0xbe   :  { %v482_v43 = vpop.f32.mrf.mxu2  ;;  %v387_v49 = vpop.f32.mrf.mxu0 }
  0xbf   :  { %v3773_v44 = vpop.f32.mrf.mxu3  ;;  %v3110_v47 = vpop.eup %3109  ;;  %v483_v48 = vadd.f32 %v482_v43, %v434_v42  ;;  %v388_v53 = vadd.f32 %v3659_v38, %v387_v49  ;;  %v2578_v42 = vld [vmem:[%s4482_s0 + $0x1e0] sm:$0xf]  ;;  %v3021_v43 = vld [vmem:[%s4482_s0 + $0x1e8] sm:$0xf0] }
  0xc0   :  { %v436_v50 = vpop.f32.mrf.mxu1  ;;  %533 = vst [vmem:[%s4483_s3 + $0x10] sm:$0xff] %v3110_v47 }
  0xc1   :  { %3111 = vtanh.f32 %v483_v48  ;;  %966 = vmatmul.bf16.gmra.mxu0 %v2367_v45  ;;  %v437_v56 = vadd.f32 %v436_v50, %v388_v53  ;;  %v3020_v45 = vld [vmem:[%s4482_s0 + $0x1e4] sm:$0xf]  ;;  %v2391_v50 = vor.u32 %v2972_v37, %v2388_v39 }
  0xc2   :  { %1015 = vmatmul.bf16.gmra.mxu1 %v2371_v46  ;;  %v2580_v46 = vld [vmem:[%s4482_s0 + $0x1ec] sm:$0xf0] }
  0xc3   :  { %1448 = vmatmul.bf16.gmra.mxu2 %v2555_v51  ;;  %v2395_v51 = vor.u32 %v2974_v41, %v2394_v40 }
  0xc4   :  { %1497 = vmatmul.bf16.gmra.mxu3 %v2559_v52 }
  0xc6   :  { %v485_v57 = vpop.f32.mrf.mxu2  ;;  %v389_v62 = vpop.f32.mrf.mxu0 }
  0xc7   :  { %v3785_v59 = vpop.f32.mrf.mxu3  ;;  %v3112_v60 = vpop.eup %3111  ;;  %v486_v61 = vadd.f32 %v485_v57, %v437_v56  ;;  %v390_v2 = vadd.f32 %v3659_v38, %v389_v62  ;;  %v2579_v56 = vor.u32 %v3021_v43, %v2578_v42  ;;  %v2583_v57 = vor.u32 %v3020_v45, %v2580_v46  ;;  %v3050_v62 = vld [vmem:[%s4480_s1 + $0x90] sm:$0xff]  ;;  %v3088_v43 = vld [vmem:[%s4480_s1 + $0x40] sm:$0xff] }
  0xc8   :  { %v438_v63 = vpop.f32.mrf.mxu1  ;;  %534 = vst [vmem:[%s4483_s3 + $0x18] sm:$0xff] %v3112_v60  ;;  %1533 = vmatpush.bf16.msra.mxu0 %v3050_v62  ;;  %v3096_v45 = vld [vmem:[%s4480_s1 + $0x80] sm:$0xff]  ;;  %2017 = vmatpush.bf16.msra.mxu2 %v3088_v43 }
  0xc9   :  { %3113 = vtanh.f32 %v486_v61  ;;  %v439_v12 = vadd.f32 %v438_v63, %v390_v2  ;;  %v3082_v61 = vld [vmem:[%s4480_s1 + $0x10] sm:$0xff]  ;;  %2066 = vmatpush.bf16.msra.mxu3 %v3096_v45 }
  0xca   :  { %1966 = vmatpush.bf16.msra.mxu1 %v3082_v61 }
  0xcc   :  { %1534 = vmatpush.bf16.msra.mxu0 %v3049_v34 }
  0xce   :  { %v487_v13 = vpop.f32.mrf.mxu2  ;;  %v392_v19 = vpop.f32.mrf.mxu0 }
  0xcf   :  { %v3821_v14 = vpop.f32.mrf.mxu3  ;;  %v3114_v17 = vpop.eup %3113  ;;  %v488_v18 = vadd.f32 %v487_v13, %v439_v12  ;;  %v393_v23 = vadd.f32 %v3659_v38, %v392_v19  ;;  %v2406_v12 = vld [vmem:[%s4482_s0 + $0x140] sm:$0xf]  ;;  %v2977_v13 = vld [vmem:[%s4482_s0 + $0x148] sm:$0xf0] }
  0xd0   :  { %v441_v20 = vpop.f32.mrf.mxu1  ;;  %535 = vst [vmem:[%s4483_s3 + $0x20] sm:$0xff] %v3114_v17  ;;  %v3023_v17 = vld [vmem:[%s4482_s0 + $0x1fc] sm:$0xf] }
  0xd1   :  { %3115 = vtanh.f32 %v488_v18  ;;  %971 = vmatmul.bf16.gmra.mxu0 %v2379_v15  ;;  %v442_v27 = vadd.f32 %v441_v20, %v393_v23  ;;  %v2590_v15 = vld [vmem:[%s4482_s0 + $0x1f8] sm:$0xf]  ;;  %v2592_v18 = vld [vmem:[%s4482_s0 + $0x204] sm:$0xf0]  ;;  %v2407_v23 = vor.u32 %v2977_v13, %v2406_v12 }
  0xd2   :  { %1020 = vmatmul.bf16.gmra.mxu1 %v2383_v16  ;;  %v3024_v16 = vld [vmem:[%s4482_s0 + $0x200] sm:$0xf0] }
  0xd3   :  { %1453 = vmatmul.bf16.gmra.mxu2 %v2567_v21 }
  0xd4   :  { %1502 = vmatmul.bf16.gmra.mxu3 %v2571_v22  ;;  %v2403_v22 = vor.u32 %v2975_v9, %v2400_v10 }
  0xd6   :  { %v490_v28 = vpop.f32.mrf.mxu2  ;;  %v394_v32 = vpop.f32.mrf.mxu0 }
  0xd7   :  { %v3833_v29 = vpop.f32.mrf.mxu3  ;;  %v3116_v30 = vpop.eup %3115  ;;  %v491_v31 = vadd.f32 %v490_v28, %v442_v27  ;;  %v395_v36 = vadd.f32 %v3659_v38, %v394_v32 }
  0xd8   :  { %v443_v33 = vpop.f32.mrf.mxu1  ;;  %536 = vst [vmem:[%s4483_s3 + $0x28] sm:$0xff] %v3116_v30  ;;  %v2591_v30 = vor.u32 %v3024_v16, %v2590_v15 }
  0xd9   :  { %3117 = vtanh.f32 %v491_v31  ;;  %v444_v47 = vadd.f32 %v443_v33, %v395_v36  ;;  %v2595_v31 = vor.u32 %v3023_v17, %v2592_v18  ;;  %v3081_v33 = vld [vmem:[%s4480_s1 + $0x8] sm:$0xff] }
  0xda   :  { %1967 = vmatpush.bf16.msra.mxu1 %v3081_v33 }
  0xde   :  { %v492_v48 = vpop.f32.mrf.mxu2  ;;  %v397_v54 = vpop.f32.mrf.mxu0 }
  0xdf   :  { %v3869_v49 = vpop.f32.mrf.mxu3  ;;  %v3118_v52 = vpop.eup %3117  ;;  %v493_v53 = vadd.f32 %v492_v48, %v444_v47  ;;  %v398_v60 = vadd.f32 %v3659_v38, %v397_v54  ;;  %v2978_v47 = vld [vmem:[%s4482_s0 + $0x154] sm:$0xf]  ;;  %v2412_v48 = vld [vmem:[%s4482_s0 + $0x15c] sm:$0xf0] }
  0xe0   :  { %v446_v55 = vpop.f32.mrf.mxu1  ;;  %537 = vst [vmem:[%s4483_s3 + $0x30] sm:$0xff] %v3118_v52  ;;  %v2602_v52 = vld [vmem:[%s4482_s0 + $0x210] sm:$0xf]  ;;  %v3026_v54 = vld [vmem:[%s4482_s0 + $0x214] sm:$0xf]  ;;  %v2415_v61 = vor.u32 %v2978_v47, %v2412_v48 }
  0xe1   :  { %3119 = vtanh.f32 %v493_v53  ;;  %976 = vmatmul.bf16.gmra.mxu0 %v2391_v50  ;;  %v447_v63 = vadd.f32 %v446_v55, %v398_v60  ;;  %v2418_v50 = vld [vmem:[%s4482_s0 + $0x158] sm:$0xf]  ;;  %v3027_v53 = vld [vmem:[%s4482_s0 + $0x218] sm:$0xf0]  ;;  %v2604_v55 = vld [vmem:[%s4482_s0 + $0x21c] sm:$0xf0] }
  0xe2   :  { %1025 = vmatmul.bf16.gmra.mxu1 %v2395_v51  ;;  %v2980_v51 = vld [vmem:[%s4482_s0 + $0x160] sm:$0xf0]  ;;  %v2603_v6 = vor.u32 %v3027_v53, %v2602_v52  ;;  %v2607_v7 = vor.u32 %v3026_v54, %v2604_v55  ;;  %v2538_v54 = vld [vmem:[%s4482_s0 + $0x188] sm:$0xf]  ;;  %v3010_v55 = vld [vmem:[%s4482_s0 + $0x190] sm:$0xf0] }
  0xe3   :  { %1458 = vmatmul.bf16.gmra.mxu2 %v2579_v56  ;;  %v2419_v62 = vor.u32 %v2980_v51, %v2418_v50 }
  0xe4   :  { %1507 = vmatmul.bf16.gmra.mxu3 %v2583_v57 }
  0xe6   :  { %v495_v0 = vpop.f32.mrf.mxu2  ;;  %v399_v4 = vpop.f32.mrf.mxu0 }
  0xe7   :  { %v3881_v1 = vpop.f32.mrf.mxu3  ;;  %v3120_v2 = vpop.eup %3119  ;;  %v496_v3 = vadd.f32 %v495_v0, %v447_v63  ;;  %v400_v8 = vadd.f32 %v3659_v38, %v399_v4  ;;  %v3080_v63 = vld [vmem:[%s4480_s1] sm:$0xff] }
  0xe8   :  { %v448_v5 = vpop.f32.mrf.mxu1  ;;  %538 = vst [vmem:[%s4483_s3 + $0x38] sm:$0xff] %v3120_v2  ;;  %v3048_v0 = vld [vmem:[%s4480_s1 + $0x80] sm:$0xff]  ;;  %1968 = vmatpush.bf16.msra.mxu1 %v3080_v63  ;;  %v2730_v63 = vld [vmem:[%s4482_s0 + $0x248] sm:$0xf] }
  0xe9   :  { %3121 = vtanh.f32 %v496_v3  ;;  %v449_v19 = vadd.f32 %v448_v5, %v400_v8  ;;  %1535 = vmatpush.bf16.msra.mxu0 %v3048_v0  ;;  %v3058_v0 = vld [vmem:[%s4482_s0 + $0x250] sm:$0xf0] }
  0xee   :  { %v497_v20 = vpop.f32.mrf.mxu2  ;;  %v402_v27 = vpop.f32.mrf.mxu0 }
  0xef   :  { %v3917_v21 = vpop.f32.mrf.mxu3  ;;  %v3122_v24 = vpop.eup %3121  ;;  %v498_v26 = vadd.f32 %v497_v20, %v449_v19  ;;  %v403_v32 = vadd.f32 %v3659_v38, %v402_v27  ;;  %v2981_v19 = vld [vmem:[%s4482_s0 + $0x16c] sm:$0xf]  ;;  %v2424_v20 = vld [vmem:[%s4482_s0 + $0x174] sm:$0xf0] }
  0xf0   :  { %v451_v28 = vpop.f32.mrf.mxu1  ;;  %539 = vst [vmem:[%s4483_s3 + $0x40] sm:$0xff] %v3122_v24  ;;  %v2614_v24 = vld [vmem:[%s4482_s0 + $0x228] sm:$0xf]  ;;  %v3029_v27 = vld [vmem:[%s4482_s0 + $0x22c] sm:$0xf]  ;;  %v2427_v33 = vor.u32 %v2981_v19, %v2424_v20 }
  0xf1   :  { %3123 = vtanh.f32 %v498_v26  ;;  %981 = vmatmul.bf16.gmra.mxu0 %v2403_v22  ;;  %v452_v35 = vadd.f32 %v451_v28, %v403_v32  ;;  %v2430_v22 = vld [vmem:[%s4482_s0 + $0x170] sm:$0xf]  ;;  %v3030_v26 = vld [vmem:[%s4482_s0 + $0x230] sm:$0xf0]  ;;  %v2616_v28 = vld [vmem:[%s4482_s0 + $0x234] sm:$0xf0] }
  0xf2   :  { %1030 = vmatmul.bf16.gmra.mxu1 %v2407_v23  ;;  %v2983_v23 = vld [vmem:[%s4482_s0 + $0x178] sm:$0xf0] }
  0xf3   :  { %1463 = vmatmul.bf16.gmra.mxu2 %v2591_v30  ;;  %v2431_v34 = vor.u32 %v2983_v23, %v2430_v22 }
  0xf4   :  { %1512 = vmatmul.bf16.gmra.mxu3 %v2595_v31 }
  0xf6   :  { %v500_v36 = vpop.f32.mrf.mxu2  ;;  %v404_v41 = vpop.f32.mrf.mxu0 }
  0xf7   :  { %v3929_v37 = vpop.f32.mrf.mxu3  ;;  %v3124_v39 = vpop.eup %3123  ;;  %v501_v40 = vadd.f32 %v500_v36, %v452_v35  ;;  %v405_v46 = vadd.f32 %v3659_v38, %v404_v41  ;;  %v2615_v41 = vor.u32 %v3030_v26, %v2614_v24 }
  0xf8   :  { %v453_v42 = vpop.f32.mrf.mxu1  ;;  %540 = vst [vmem:[%s4483_s3 + $0x48] sm:$0xff] %v3124_v39 }
  0xf9   :  { %3125 = vtanh.f32 %v501_v40  ;;  %v454_v56 = vadd.f32 %v453_v42, %v405_v46  ;;  %v2619_v42 = vor.u32 %v3029_v27, %v2616_v28 }
  0xfe   :  { %v502_v57 = vpop.f32.mrf.mxu2  ;;  %v407_v4 = vpop.f32.mrf.mxu0 }
  0xff   :  { %v3965_v60 = vpop.f32.mrf.mxu3  ;;  %v3126_v2 = vpop.eup %3125  ;;  %v503_v3 = vadd.f32 %v502_v57, %v454_v56  ;;  %v408_v8 = vadd.f32 %v3659_v38, %v407_v4  ;;  %v2722_v56 = vld [vmem:[%s4482_s0 + $0x240] sm:$0xf]  ;;  %v3057_v57 = vld [vmem:[%s4482_s0 + $0x248] sm:$0xf0] }
 0x100   :  { %v456_v5 = vpop.f32.mrf.mxu1  ;;  %541 = vst [vmem:[%s4483_s3 + $0x50] sm:$0xff] %v3126_v2 }
 0x101   :  { %3127 = vtanh.f32 %v503_v3  ;;  %986 = vmatmul.bf16.gmra.mxu0 %v2415_v61  ;;  %v457_v9 = vadd.f32 %v456_v5, %v408_v8  ;;  %v3056_v61 = vld [vmem:[%s4482_s0 + $0x244] sm:$0xf]  ;;  %v909_v3 = vadd.f32 %v3659_v38, %v3692_v58  ;;  %v911_v58 = vadd.f32 %v3659_v38, %v3725_v11  ;;  %v2550_v11 = vld [vmem:[%s4482_s0 + $0x1a0] sm:$0xf] }
 0x102   :  { %1035 = vmatmul.bf16.gmra.mxu1 %v2419_v62  ;;  %v2724_v62 = vld [vmem:[%s4482_s0 + $0x24c] sm:$0xf0] }
 0x103   :  { %1468 = vmatmul.bf16.gmra.mxu2 %v2603_v6  ;;  %v2539_v6 = vor.u32 %v3010_v55, %v2538_v54 }
 0x104   :  { %1517 = vmatmul.bf16.gmra.mxu3 %v2607_v7  ;;  %v2723_v7 = vor.u32 %v3057_v57, %v2722_v56 }
 0x106   :  { %v505_v10 = vpop.f32.mrf.mxu2  ;;  %v409_v16 = vpop.f32.mrf.mxu0 }
 0x107   :  { %v3977_v12 = vpop.f32.mrf.mxu3  ;;  %v3128_v13 = vpop.eup %3127  ;;  %v506_v15 = vadd.f32 %v505_v10, %v457_v9  ;;  %v410_v18 = vadd.f32 %v3659_v38, %v409_v16  ;;  %v2731_v16 = vor.u32 %v3058_v0, %v2730_v63 }
 0x108   :  { %v458_v17 = vpop.f32.mrf.mxu1  ;;  %542 = vst [vmem:[%s4483_s3 + $0x58] sm:$0xff] %v3128_v13 }
 0x109   :  { %3129 = vtanh.f32 %v506_v15  ;;  %v459_v30 = vadd.f32 %v458_v17, %v410_v18  ;;  %v2727_v15 = vor.u32 %v3056_v61, %v2724_v62 }
 0x10e   :  { %v507_v31 = vpop.f32.mrf.mxu2  ;;  %v412_v39 = vpop.f32.mrf.mxu0 }
 0x10f   :  { %v4007_v32 = vpop.f32.mrf.mxu3  ;;  %v3130_v35 = vpop.eup %3129  ;;  %v508_v36 = vadd.f32 %v507_v31, %v459_v30  ;;  %v413_v43 = vadd.f32 %v3659_v38, %v412_v39  ;;  %v2736_v39 = vld [vmem:[%s4482_s0 + $0x264] sm:$0xf0] }
 0x110   :  { %v461_v40 = vpop.f32.mrf.mxu1  ;;  %543 = vst [vmem:[%s4483_s3 + $0x60] sm:$0xff] %v3130_v35  ;;  %v3060_v35 = vld [vmem:[%s4482_s0 + $0x260] sm:$0xf0] }
 0x111   :  { %3131 = vtanh.f32 %v508_v36  ;;  %991 = vmatmul.bf16.gmra.mxu0 %v2427_v33  ;;  %v462_v45 = vadd.f32 %v461_v40, %v413_v43  ;;  %v3013_v33 = vld [vmem:[%s4482_s0 + $0x1a8] sm:$0xf0]  ;;  %v3059_v36 = vld [vmem:[%s4482_s0 + $0x25c] sm:$0xf]  ;;  %v2742_v40 = vld [vmem:[%s4482_s0 + $0x260] sm:$0xf] }
 0x112   :  { %1040 = vmatmul.bf16.gmra.mxu1 %v2431_v34  ;;  %v2734_v34 = vld [vmem:[%s4482_s0 + $0x258] sm:$0xf] }
 0x113   :  { %1473 = vmatmul.bf16.gmra.mxu2 %v2615_v41  ;;  %v3061_v41 = vld [vmem:[%s4482_s0 + $0x268] sm:$0xf0] }
 0x114   :  { %1522 = vmatmul.bf16.gmra.mxu3 %v2619_v42  ;;  %v914_v42 = vadd.f32 %v3659_v38, %v3737_v25  ;;  %v2743_v54 = vor.u32 %v3061_v41, %v2742_v40  ;;  %v916_v25 = vadd.f32 %v3659_v38, %v3773_v44  ;;  %v2746_v44 = vld [vmem:[%s4482_s0 + $0x270] sm:$0xf] }
 0x116   :  { %v510_v46 = vpop.f32.mrf.mxu2  ;;  %v414_v51 = vpop.f32.mrf.mxu0 }
 0x117   :  { %v4013_v47 = vpop.f32.mrf.mxu3  ;;  %v3132_v48 = vpop.eup %3131  ;;  %v511_v50 = vadd.f32 %v510_v46, %v462_v45  ;;  %v415_v53 = vadd.f32 %v3659_v38, %v414_v51  ;;  %v2551_v46 = vor.u32 %v3013_v33, %v2550_v11 }
 0x118   :  { %v463_v52 = vpop.f32.mrf.mxu1  ;;  %544 = vst [vmem:[%s4483_s3 + $0x68] sm:$0xff] %v3132_v48  ;;  %v2735_v48 = vor.u32 %v3060_v35, %v2734_v34 }
 0x119   :  { %3133 = vtanh.f32 %v511_v50  ;;  %v464_v2 = vadd.f32 %v463_v52, %v415_v53  ;;  %v2739_v53 = vor.u32 %v3059_v36, %v2736_v39 }
 0x11e   :  { %v512_v4 = vpop.f32.mrf.mxu2  ;;  %v957_v10 = vpop.f32.mrf.mxu0 }
 0x11f   :  { %v4045_v5 = vpop.f32.mrf.mxu3  ;;  %v3134_v8 = vpop.eup %3133  ;;  %v513_v9 = vadd.f32 %v512_v4, %v464_v2  ;;  %v958_v17 = vadd.f32 %v957_v10, %v909_v3  ;;  %v3016_v10 = vld [vmem:[%s4482_s0 + $0x1c0] sm:$0xf0] }
 0x120   :  { %v1006_v13 = vpop.f32.mrf.mxu1  ;;  %545 = vst [vmem:[%s4483_s3 + $0x70] sm:$0xff] %v3134_v8 }
 0x121   :  { %3135 = vtanh.f32 %v513_v9  ;;  %v1007_v18 = vadd.f32 %v1006_v13, %v958_v17  ;;  %1536 = vmatmul.bf16.vlgmr.msra.gmra.mxu0 %v2539_v6  ;;  %v2562_v9 = vld [vmem:[%s4482_s0 + $0x1b8] sm:$0xf]  ;;  %v3063_v13 = vld [vmem:[%s4482_s0 + $0x278] sm:$0xf0] }
 0x122   :  { %1969 = vmatmul.bf16.vlgmr.msra.gmra.mxu1 %v2723_v7  ;;  %v2754_v17 = vld [vmem:[%s4482_s0 + $0x278] sm:$0xf] }
 0x123   :  { %2018 = vmatmul.bf16.vlgmr.msra.gmra.mxu2 %v2727_v15  ;;  %3137 = vtanh.f32 %v1007_v18  ;;  %v3062_v15 = vld [vmem:[%s4482_s0 + $0x274] sm:$0xf]  ;;  %v3064_v18 = vld [vmem:[%s4482_s0 + $0x280] sm:$0xf0] }
 0x124   :  { %2067 = vmatmul.bf16.vlgmr.msra.gmra.mxu3 %v2731_v16  ;;  %v2748_v16 = vld [vmem:[%s4482_s0 + $0x27c] sm:$0xf0] }
 0x126   :  { %v1439_v19 = vpop.f32.mrf.mxu2  ;;  %v959_v24 = vpop.f32.mrf.mxu0 }
 0x127   :  { %v1488_v20 = vpop.f32.mrf.mxu3  ;;  %v3136_v22 = vpop.eup %3135  ;;  %v1440_v23 = vadd.f32 %v3659_v38, %v1439_v19  ;;  %v960_v27 = vadd.f32 %v959_v24, %v911_v58  ;;  %v919_v58 = vadd.f32 %v3659_v38, %v3785_v59  ;;  %v921_v59 = vadd.f32 %v3659_v38, %v3821_v14  ;;  %v2758_v14 = vld [vmem:[%s4482_s0 + $0x288] sm:$0xf] }
 0x128   :  { %v1008_v26 = vpop.f32.mrf.mxu1  ;;  %546 = vst [vmem:[%s4483_s3 + $0x78] sm:$0xff] %v3136_v22  ;;  %v2563_v22 = vor.u32 %v3016_v10, %v2562_v9 }
 0x129   :  { %v4056_v28 = vadd.f32 %v1488_v20, %v1440_v23  ;;  %v3138_v30 = vpop.eup %3137  ;;  %v1009_v31 = vadd.f32 %v1008_v26, %v960_v27  ;;  %v2747_v23 = vor.u32 %v3063_v13, %v2746_v44 }
 0x12a   :  { %1062 = vst [vmem:[%s4483_s3 + $0x80] sm:$0xff] %v3138_v30  ;;  %v2751_v30 = vor.u32 %v3062_v15, %v2748_v16 }
 0x12b   :  { %3139 = vtanh.f32 %v1009_v31  ;;  %v2755_v31 = vor.u32 %v3064_v18, %v2754_v17 }
 0x12e   :  { %v1441_v43 = vpop.f32.mrf.mxu2  ;;  %v962_v51 = vpop.f32.mrf.mxu0 }
 0x12f   :  { %v1490_v45 = vpop.f32.mrf.mxu3  ;;  %v1442_v50 = vadd.f32 %v3659_v38, %v1441_v43  ;;  %v963_v55 = vadd.f32 %v962_v51, %v914_v42  ;;  %v3019_v51 = vld [vmem:[%s4482_s0 + $0x1d8] sm:$0xf0] }
 0x130   :  { %v1011_v52 = vpop.f32.mrf.mxu1 }
 0x131   :  { %v4088_v56 = vadd.f32 %v1490_v45, %v1442_v50  ;;  %v3140_v57 = vpop.eup %3139  ;;  %v1012_v61 = vadd.f32 %v1011_v52, %v963_v55  ;;  %1541 = vmatmul.bf16.gmra.mxu0 %v2551_v46  ;;  %v2574_v50 = vld [vmem:[%s4482_s0 + $0x1d0] sm:$0xf]  ;;  %v3066_v52 = vld [vmem:[%s4482_s0 + $0x290] sm:$0xf0] }
 0x132   :  { %1974 = vmatmul.bf16.gmra.mxu1 %v2735_v48  ;;  %1063 = vst [vmem:[%s4483_s3 + $0x88] sm:$0xff] %v3140_v57  ;;  %v2766_v55 = vld [vmem:[%s4482_s0 + $0x290] sm:$0xf]  ;;  %v3067_v57 = vld [vmem:[%s4482_s0 + $0x298] sm:$0xf0] }
 0x133   :  { %2023 = vmatmul.bf16.gmra.mxu2 %v2739_v53  ;;  %3141 = vtanh.f32 %v1012_v61  ;;  %v3065_v53 = vld [vmem:[%s4482_s0 + $0x28c] sm:$0xf]  ;;  %v924_v61 = vadd.f32 %v3659_v38, %v3833_v29  ;;  %v926_v29 = vadd.f32 %v3659_v38, %v3869_v49  ;;  %v2770_v49 = vld [vmem:[%s4482_s0 + $0x2a0] sm:$0xf] }
 0x134   :  { %2072 = vmatmul.bf16.gmra.mxu3 %v2743_v54  ;;  %v2760_v54 = vld [vmem:[%s4482_s0 + $0x294] sm:$0xf0] }
 0x136   :  { %v1444_v62 = vpop.f32.mrf.mxu2  ;;  %v964_v2 = vpop.f32.mrf.mxu0 }
 0x137   :  { %v1493_v63 = vpop.f32.mrf.mxu3  ;;  %v1445_v0 = vadd.f32 %v3659_v38, %v1444_v62  ;;  %v965_v4 = vadd.f32 %v964_v2, %v916_v25 }
 0x138   :  { %v1013_v3 = vpop.f32.mrf.mxu1 }
 0x139   :  { %v4096_v6 = vadd.f32 %v1493_v63, %v1445_v0  ;;  %v3142_v7 = vpop.eup %3141  ;;  %v1014_v8 = vadd.f32 %v1013_v3, %v965_v4  ;;  %v2575_v63 = vor.u32 %v3019_v51, %v2574_v50  ;;  %v2759_v0 = vor.u32 %v3066_v52, %v2758_v14 }
 0x13a   :  { %1064 = vst [vmem:[%s4483_s3 + $0x90] sm:$0xff] %v3142_v7  ;;  %v2763_v7 = vor.u32 %v3065_v53, %v2760_v54 }
 0x13b   :  { %3143 = vtanh.f32 %v1014_v8  ;;  %v2767_v8 = vor.u32 %v3067_v57, %v2766_v55 }
 0x13e   :  { %v1446_v19 = vpop.f32.mrf.mxu2  ;;  %v967_v26 = vpop.f32.mrf.mxu0 }
 0x13f   :  { %v1495_v20 = vpop.f32.mrf.mxu3  ;;  %v1447_v24 = vadd.f32 %v3659_v38, %v1446_v19  ;;  %v968_v11 = vadd.f32 %v967_v26, %v919_v58  ;;  %v3022_v26 = vld [vmem:[%s4482_s0 + $0x1f0] sm:$0xf0] }
 0x140   :  { %v1016_v27 = vpop.f32.mrf.mxu1 }
 0x141   :  { %v4128_v33 = vadd.f32 %v1495_v20, %v1447_v24  ;;  %v3144_v34 = vpop.eup %3143  ;;  %v1017_v35 = vadd.f32 %v1016_v27, %v968_v11  ;;  %1546 = vmatmul.bf16.gmra.mxu0 %v2563_v22  ;;  %v2586_v24 = vld [vmem:[%s4482_s0 + $0x1e8] sm:$0xf]  ;;  %v3069_v27 = vld [vmem:[%s4482_s0 + $0x2a8] sm:$0xf0] }
 0x142   :  { %1979 = vmatmul.bf16.gmra.mxu1 %v2747_v23  ;;  %1065 = vst [vmem:[%s4483_s3 + $0x98] sm:$0xff] %v3144_v34  ;;  %v2778_v11 = vld [vmem:[%s4482_s0 + $0x2a8] sm:$0xf]  ;;  %v3070_v34 = vld [vmem:[%s4482_s0 + $0x2b0] sm:$0xf0] }
 0x143   :  { %2028 = vmatmul.bf16.gmra.mxu2 %v2751_v30  ;;  %3145 = vtanh.f32 %v1017_v35  ;;  %v3068_v30 = vld [vmem:[%s4482_s0 + $0x2a4] sm:$0xf]  ;;  %v929_v35 = vadd.f32 %v3659_v38, %v3881_v1 }
 0x144   :  { %2077 = vmatmul.bf16.gmra.mxu3 %v2755_v31  ;;  %v2772_v31 = vld [vmem:[%s4482_s0 + $0x2ac] sm:$0xf0] }
 0x146   :  { %v1449_v36 = vpop.f32.mrf.mxu2  ;;  %v969_v41 = vpop.f32.mrf.mxu0 }
 0x147   :  { %v1498_v39 = vpop.f32.mrf.mxu3  ;;  %v1450_v40 = vadd.f32 %v3659_v38, %v1449_v36  ;;  %v970_v43 = vadd.f32 %v969_v41, %v921_v59 }
 0x148   :  { %v1018_v42 = vpop.f32.mrf.mxu1 }
 0x149   :  { %v4136_v45 = vadd.f32 %v1498_v39, %v1450_v40  ;;  %v3146_v46 = vpop.eup %3145  ;;  %v1019_v48 = vadd.f32 %v1018_v42, %v970_v43  ;;  %v2587_v39 = vor.u32 %v3022_v26, %v2586_v24  ;;  %v2771_v40 = vor.u32 %v3069_v27, %v2770_v49 }
 0x14a   :  { %1066 = vst [vmem:[%s4483_s3 + $0xa0] sm:$0xff] %v3146_v46  ;;  %v2775_v46 = vor.u32 %v3068_v30, %v2772_v31 }
 0x14b   :  { %3147 = vtanh.f32 %v1019_v48  ;;  %v2779_v48 = vor.u32 %v3070_v34, %v2778_v11 }
 0x14e   :  { %v1451_v25 = vpop.f32.mrf.mxu2  ;;  %v972_v3 = vpop.f32.mrf.mxu0 }
 0x14f   :  { %v1500_v62 = vpop.f32.mrf.mxu3  ;;  %v1452_v2 = vadd.f32 %v3659_v38, %v1451_v25  ;;  %v973_v9 = vadd.f32 %v972_v3, %v924_v61  ;;  %v3025_v3 = vld [vmem:[%s4482_s0 + $0x208] sm:$0xf0] }
 0x150   :  { %v1021_v4 = vpop.f32.mrf.mxu1 }
 0x151   :  { %v4168_v10 = vadd.f32 %v1500_v62, %v1452_v2  ;;  %v3148_v44 = vpop.eup %3147  ;;  %v1022_v13 = vadd.f32 %v1021_v4, %v973_v9  ;;  %1551 = vmatmul.bf16.gmra.mxu0 %v2575_v63  ;;  %v2598_v2 = vld [vmem:[%s4482_s0 + $0x200] sm:$0xf]  ;;  %v3072_v4 = vld [vmem:[%s4482_s0 + $0x2c0] sm:$0xf0] }
 0x152   :  { %1984 = vmatmul.bf16.gmra.mxu1 %v2759_v0  ;;  %1067 = vst [vmem:[%s4483_s3 + $0xa8] sm:$0xff] %v3148_v44  ;;  %v2790_v9 = vld [vmem:[%s4482_s0 + $0x2c0] sm:$0xf]  ;;  %v3073_v44 = vld [vmem:[%s4482_s0 + $0x2c8] sm:$0xf0] }
 0x153   :  { %2033 = vmatmul.bf16.gmra.mxu2 %v2763_v7  ;;  %3149 = vtanh.f32 %v1022_v13  ;;  %v3071_v7 = vld [vmem:[%s4482_s0 + $0x2bc] sm:$0xf] }
 0x154   :  { %2082 = vmatmul.bf16.gmra.mxu3 %v2767_v8  ;;  %v2784_v8 = vld [vmem:[%s4482_s0 + $0x2c4] sm:$0xf0] }
 0x156   :  { %v1454_v15 = vpop.f32.mrf.mxu2  ;;  %v974_v18 = vpop.f32.mrf.mxu0 }
 0x157   :  { %v1503_v16 = vpop.f32.mrf.mxu3  ;;  %v1455_v17 = vadd.f32 %v3659_v38, %v1454_v15  ;;  %v975_v19 = vadd.f32 %v974_v18, %v926_v29 }
 0x158   :  { %v1023_v58 = vpop.f32.mrf.mxu1 }
 0x159   :  { %v4176_v20 = vadd.f32 %v1503_v16, %v1455_v17  ;;  %v3150_v22 = vpop.eup %3149  ;;  %v1024_v23 = vadd.f32 %v1023_v58, %v975_v19  ;;  %v2599_v16 = vor.u32 %v3025_v3, %v2598_v2 }
 0x15a   :  { %1068 = vst [vmem:[%s4483_s3 + $0xb0] sm:$0xff] %v3150_v22  ;;  %v2787_v22 = vor.u32 %v3071_v7, %v2784_v8 }
 0x15b   :  { %3151 = vtanh.f32 %v1024_v23  ;;  %v2791_v23 = vor.u32 %v3073_v44, %v2790_v9 }
 0x15e   :  { %v1456_v59 = vpop.f32.mrf.mxu2  ;;  %v977_v42 = vpop.f32.mrf.mxu0 }
 0x15f   :  { %v1505_v36 = vpop.f32.mrf.mxu3  ;;  %v1457_v41 = vadd.f32 %v3659_v38, %v1456_v59  ;;  %v978_v50 = vadd.f32 %v977_v42, %v929_v35  ;;  %v4216_v38 = vld [vmem:[%s4481_s2 + $0x1] ss:$0 sm:$0xff]  ;;  %v3028_v42 = vld [vmem:[%s4482_s0 + $0x220] sm:$0xf0] }
 0x160   :  { %v1026_v43 = vpop.f32.mrf.mxu1  ;;  %v931_v1 = vadd.f32 %v4216_v38, %v3917_v21  ;;  %v2782_v21 = vld [vmem:[%s4482_s0 + $0x2b8] sm:$0xf]  ;;  %v934_v13 = vadd.f32 %v4216_v38, %v3929_v37  ;;  %v936_v37 = vadd.f32 %v4216_v38, %v3965_v60  ;;  %v2794_v60 = vld [vmem:[%s4482_s0 + $0x2d0] sm:$0xf] }
 0x161   :  { %v4208_v51 = vadd.f32 %v1505_v36, %v1457_v41  ;;  %v3152_v14 = vpop.eup %3151  ;;  %v1027_v52 = vadd.f32 %v1026_v43, %v978_v50  ;;  %1556 = vmatmul.bf16.gmra.mxu0 %v2587_v39  ;;  %v2783_v17 = vor.u32 %v3072_v4, %v2782_v21  ;;  %v2610_v41 = vld [vmem:[%s4482_s0 + $0x218] sm:$0xf]  ;;  %v3075_v43 = vld [vmem:[%s4482_s0 + $0x2d8] sm:$0xf0] }
 0x162   :  { %1989 = vmatmul.bf16.gmra.mxu1 %v2771_v40  ;;  %1069 = vst [vmem:[%s4483_s3 + $0xb8] sm:$0xff] %v3152_v14  ;;  %v2802_v50 = vld [vmem:[%s4482_s0 + $0x2d8] sm:$0xf]  ;;  %v3076_v14 = vld [vmem:[%s4482_s0 + $0x2e0] sm:$0xf0] }
 0x163   :  { %2038 = vmatmul.bf16.gmra.mxu2 %v2775_v46  ;;  %3153 = vtanh.f32 %v1027_v52  ;;  %v3074_v46 = vld [vmem:[%s4482_s0 + $0x2d4] sm:$0xf]  ;;  %v939_v52 = vadd.f32 %v4216_v38, %v3977_v12  ;;  %v941_v12 = vadd.f32 %v4216_v38, %v4007_v32  ;;  %v2806_v32 = vld [vmem:[%s4482_s0 + $0x2e8] sm:$0xf] }
 0x164   :  { %2087 = vmatmul.bf16.gmra.mxu3 %v2779_v48  ;;  %v2796_v48 = vld [vmem:[%s4482_s0 + $0x2dc] sm:$0xf0] }
 0x166   :  { %v1459_v53 = vpop.f32.mrf.mxu2  ;;  %v979_v57 = vpop.f32.mrf.mxu0 }
 0x167   :  { %v1508_v54 = vpop.f32.mrf.mxu3  ;;  %v1460_v55 = vadd.f32 %v4216_v38, %v1459_v53  ;;  %v980_v25 = vadd.f32 %v979_v57, %v931_v1 }
 0x168   :  { %v1028_v61 = vpop.f32.mrf.mxu1 }
 0x169   :  { %v4221_v62 = vadd.f32 %v1508_v54, %v1460_v55  ;;  %v3154_v63 = vpop.eup %3153  ;;  %v1029_v0 = vadd.f32 %v1028_v61, %v980_v25  ;;  %v2611_v54 = vor.u32 %v3028_v42, %v2610_v41  ;;  %v2795_v55 = vor.u32 %v3075_v43, %v2794_v60 }
 0x16a   :  { %1070 = vst [vmem:[%s4483_s3 + $0xc0] sm:$0xff] %v3154_v63  ;;  %v2799_v63 = vor.u32 %v3074_v46, %v2796_v48 }
 0x16b   :  { %3155 = vtanh.f32 %v1029_v0  ;;  %v2803_v0 = vor.u32 %v3076_v14, %v2802_v50 }
 0x16e   :  { %v1461_v29 = vpop.f32.mrf.mxu2  ;;  %v982_v58 = vpop.f32.mrf.mxu0 }
 0x16f   :  { %v1510_v15 = vpop.f32.mrf.mxu3  ;;  %v1462_v18 = vadd.f32 %v4216_v38, %v1461_v29  ;;  %v983_v24 = vadd.f32 %v982_v58, %v934_v13  ;;  %v3031_v58 = vld [vmem:[%s4482_s0 + $0x238] sm:$0xf0] }
 0x170   :  { %v1031_v19 = vpop.f32.mrf.mxu1 }
 0x171   :  { %v4253_v26 = vadd.f32 %v1510_v15, %v1462_v18  ;;  %v3156_v49 = vpop.eup %3155  ;;  %v1032_v27 = vadd.f32 %v1031_v19, %v983_v24  ;;  %1561 = vmatmul.bf16.gmra.mxu0 %v2599_v16  ;;  %v2622_v18 = vld [vmem:[%s4482_s0 + $0x230] sm:$0xf]  ;;  %v3078_v19 = vld [vmem:[%s4482_s0 + $0x2f0] sm:$0xf0] }
 0x172   :  { %1994 = vmatmul.bf16.gmra.mxu1 %v2783_v17  ;;  %1071 = vst [vmem:[%s4483_s3 + $0xc8] sm:$0xff] %v3156_v49  ;;  %v2814_v24 = vld [vmem:[%s4482_s0 + $0x2f0] sm:$0xf]  ;;  %v3079_v49 = vld [vmem:[%s4482_s0 + $0x2f8] sm:$0xf0] }
 0x173   :  { %2043 = vmatmul.bf16.gmra.mxu2 %v2787_v22  ;;  %3157 = vtanh.f32 %v1032_v27  ;;  %v3077_v22 = vld [vmem:[%s4482_s0 + $0x2ec] sm:$0xf]  ;;  %v944_v27 = vadd.f32 %v4216_v38, %v4013_v47  ;;  %v946_v47 = vadd.f32 %v4216_v38, %v4045_v5 }
 0x174   :  { %2092 = vmatmul.bf16.gmra.mxu3 %v2791_v23  ;;  %v2808_v23 = vld [vmem:[%s4482_s0 + $0x2f4] sm:$0xf0] }
 0x176   :  { %v1464_v30 = vpop.f32.mrf.mxu2  ;;  %v984_v34 = vpop.f32.mrf.mxu0 }
 0x177   :  { %v1513_v31 = vpop.f32.mrf.mxu3  ;;  %v1465_v11 = vadd.f32 %v4216_v38, %v1464_v30  ;;  %v985_v59 = vadd.f32 %v984_v34, %v936_v37 }
 0x178   :  { %v1033_v35 = vpop.f32.mrf.mxu1 }
 0x179   :  { %v4261_v36 = vadd.f32 %v1513_v31, %v1465_v11  ;;  %v3158_v39 = vpop.eup %3157  ;;  %v1034_v40 = vadd.f32 %v1033_v35, %v985_v59  ;;  %v2623_v31 = vor.u32 %v3031_v58, %v2622_v18  ;;  %v2807_v11 = vor.u32 %v3078_v19, %v2806_v32 }
 0x17a   :  { %1072 = vst [vmem:[%s4483_s3 + $0xd0] sm:$0xff] %v3158_v39  ;;  %v2811_v39 = vor.u32 %v3077_v22, %v2808_v23 }
 0x17b   :  { %3159 = vtanh.f32 %v1034_v40  ;;  %v2815_v40 = vor.u32 %v3079_v49, %v2814_v24 }
 0x17e   :  { %v1466_v1 = vpop.f32.mrf.mxu2  ;;  %v987_v61 = vpop.f32.mrf.mxu0 }
 0x17f   :  { %v1515_v53 = vpop.f32.mrf.mxu3  ;;  %v1467_v57 = vadd.f32 %v4216_v38, %v1466_v1  ;;  %v988_v2 = vadd.f32 %v987_v61, %v939_v52 }
 0x180   :  { %v1036_v25 = vpop.f32.mrf.mxu1 }
 0x181   :  { %v4293_v3 = vadd.f32 %v1515_v53, %v1467_v57  ;;  %v3160_v21 = vpop.eup %3159  ;;  %v1037_v4 = vadd.f32 %v1036_v25, %v988_v2  ;;  %1566 = vmatmul.bf16.gmra.mxu0 %v2611_v54 }
 0x182   :  { %1999 = vmatmul.bf16.gmra.mxu1 %v2795_v55  ;;  %1073 = vst [vmem:[%s4483_s3 + $0xd8] sm:$0xff] %v3160_v21 }
 0x183   :  { %2048 = vmatmul.bf16.gmra.mxu2 %v2799_v63  ;;  %3161 = vtanh.f32 %v1037_v4 }
 0x184   :  { %2097 = vmatmul.bf16.gmra.mxu3 %v2803_v0 }
 0x186   :  { %v1469_v7 = vpop.f32.mrf.mxu2  ;;  %v989_v44 = vpop.f32.mrf.mxu0 }
 0x187   :  { %v1518_v8 = vpop.f32.mrf.mxu3  ;;  %v1470_v9 = vadd.f32 %v4216_v38, %v1469_v7  ;;  %v990_v29 = vadd.f32 %v989_v44, %v941_v12 }
 0x188   :  { %v1038_v13 = vpop.f32.mrf.mxu1 }
 0x189   :  { %v4301_v15 = vadd.f32 %v1518_v8, %v1470_v9  ;;  %v3162_v16 = vpop.eup %3161  ;;  %v1039_v17 = vadd.f32 %v1038_v13, %v990_v29 }
 0x18a   :  { %1074 = vst [vmem:[%s4483_s3 + $0xe0] sm:$0xff] %v3162_v16 }
 0x18b   :  { %3163 = vtanh.f32 %v1039_v17 }
 0x18e   :  { %v1471_v37 = vpop.f32.mrf.mxu2  ;;  %v992_v35 = vpop.f32.mrf.mxu0 }
 0x18f   :  { %v1520_v30 = vpop.f32.mrf.mxu3  ;;  %v1472_v34 = vadd.f32 %v4216_v38, %v1471_v37  ;;  %v993_v41 = vadd.f32 %v992_v35, %v944_v27 }
 0x190   :  { %v1041_v59 = vpop.f32.mrf.mxu1 }
 0x191   :  { %v4333_v42 = vadd.f32 %v1520_v30, %v1472_v34  ;;  %v3164_v60 = vpop.eup %3163  ;;  %v1042_v43 = vadd.f32 %v1041_v59, %v993_v41  ;;  %1571 = vmatmul.bf16.gmra.mxu0 %v2623_v31 }
 0x192   :  { %2004 = vmatmul.bf16.gmra.mxu1 %v2807_v11  ;;  %1075 = vst [vmem:[%s4483_s3 + $0xe8] sm:$0xff] %v3164_v60 }
 0x193   :  { %2053 = vmatmul.bf16.gmra.mxu2 %v2811_v39  ;;  %3165 = vtanh.f32 %v1042_v43 }
 0x194   :  { %2102 = vmatmul.bf16.gmra.mxu3 %v2815_v40 }
 0x196   :  { %v1474_v46 = vpop.f32.mrf.mxu2  ;;  %v994_v14 = vpop.f32.mrf.mxu0 }
 0x197   :  { %v1523_v48 = vpop.f32.mrf.mxu3  ;;  %v1475_v50 = vadd.f32 %v4216_v38, %v1474_v46  ;;  %v995_v1 = vadd.f32 %v994_v14, %v946_v47 }
 0x198   :  { %v1043_v52 = vpop.f32.mrf.mxu1 }
 0x199   :  { %v4341_v53 = vadd.f32 %v1523_v48, %v1475_v50  ;;  %v3166_v54 = vpop.eup %3165  ;;  %v1044_v55 = vadd.f32 %v1043_v52, %v995_v1 }
 0x19a   :  { %1076 = vst [vmem:[%s4483_s3 + $0xf0] sm:$0xff] %v3166_v54 }
 0x19b   :  { %3167 = vtanh.f32 %v1044_v55 }
 0x19e   :  { %v1476_v57 = vpop.f32.mrf.mxu2  ;;  %v1537_v25 = vpop.f32.mrf.mxu0 }
 0x19f   :  { %v1525_v61 = vpop.f32.mrf.mxu3  ;;  %v1477_v5 = vadd.f32 %v4216_v38, %v1476_v57  ;;  %v1538_v0 = vadd.f32 %v1537_v25, %v4056_v28 }
 0x1a0   :  { %v1970_v63 = vpop.f32.mrf.mxu1 }
 0x1a1   :  { %v4348_v2 = vadd.f32 %v1525_v61, %v1477_v5  ;;  %v3168_v21 = vpop.eup %3167  ;;  %3169 = vtanh.f32 %v1538_v0  ;;  %v1971_v4 = vadd.f32 %v4216_v38, %v1970_v63 }
 0x1a2   :  { %1077 = vst [vmem:[%s4483_s3 + $0xf8] sm:$0xff] %v3168_v21 }
 0x1a6   :  { %v2019_v12 = vpop.f32.mrf.mxu2  ;;  %v1539_v9 = vpop.f32.mrf.mxu0 }
 0x1a7   :  { %v2068_v7 = vpop.f32.mrf.mxu3  ;;  %v2020_v8 = vadd.f32 %v2019_v12, %v1971_v4  ;;  %v3170_v13 = vpop.eup %3169  ;;  %v1540_v29 = vadd.f32 %v1539_v9, %v4088_v56 }
 0x1a8   :  { %v1972_v44 = vpop.f32.mrf.mxu1  ;;  %1593 = vst [vmem:[%s4483_s3 + $0x100] sm:$0xff] %v3170_v13 }
 0x1a9   :  { %v2069_v28 = vadd.f32 %v2068_v7, %v2020_v8  ;;  %3171 = vtanh.f32 %v1540_v29  ;;  %v1973_v16 = vadd.f32 %v4216_v38, %v1972_v44 }
 0x1ab   :  { %3173 = vtanh.f32 %v2069_v28 }
 0x1ae   :  { %v2021_v17 = vpop.f32.mrf.mxu2  ;;  %v1542_v32 = vpop.f32.mrf.mxu0 }
 0x1af   :  { %v2070_v18 = vpop.f32.mrf.mxu3  ;;  %v2022_v58 = vadd.f32 %v2021_v17, %v1973_v16  ;;  %v3172_v22 = vpop.eup %3171  ;;  %v1543_v23 = vadd.f32 %v1542_v32, %v4096_v6 }
 0x1b0   :  { %v1975_v19 = vpop.f32.mrf.mxu1  ;;  %1594 = vst [vmem:[%s4483_s3 + $0x108] sm:$0xff] %v3172_v22 }
 0x1b1   :  { %v3174_v24 = vpop.eup %3173  ;;  %v2071_v56 = vadd.f32 %v2070_v18, %v2022_v58  ;;  %3175 = vtanh.f32 %v1543_v23  ;;  %v1976_v49 = vadd.f32 %v4216_v38, %v1975_v19 }
 0x1b2   :  { %2124 = vst [vmem:[%s4483_s3 + $0x180] sm:$0xff] %v3174_v24 }
 0x1b3   :  { %3177 = vtanh.f32 %v2071_v56 }
 0x1b6   :  { %v2024_v27 = vpop.f32.mrf.mxu2  ;;  %v1544_v31 = vpop.f32.mrf.mxu0 }
 0x1b7   :  { %v2073_v37 = vpop.f32.mrf.mxu3  ;;  %v2025_v30 = vadd.f32 %v2024_v27, %v1976_v49  ;;  %v3176_v6 = vpop.eup %3175  ;;  %v1545_v34 = vadd.f32 %v1544_v31, %v4128_v33 }
 0x1b8   :  { %v1977_v11 = vpop.f32.mrf.mxu1  ;;  %1595 = vst [vmem:[%s4483_s3 + $0x110] sm:$0xff] %v3176_v6 }
 0x1b9   :  { %v3178_v35 = vpop.eup %3177  ;;  %v2074_v59 = vadd.f32 %v2073_v37, %v2025_v30  ;;  %3179 = vtanh.f32 %v1545_v34  ;;  %v1978_v39 = vadd.f32 %v4216_v38, %v1977_v11 }
 0x1ba   :  { %2125 = vst [vmem:[%s4483_s3 + $0x188] sm:$0xff] %v3178_v35 }
 0x1bb   :  { %3181 = vtanh.f32 %v2074_v59 }
 0x1be   :  { %v2026_v40 = vpop.f32.mrf.mxu2  ;;  %v1547_v43 = vpop.f32.mrf.mxu0 }
 0x1bf   :  { %v2075_v41 = vpop.f32.mrf.mxu3  ;;  %v2027_v60 = vadd.f32 %v2026_v40, %v1978_v39  ;;  %v3180_v33 = vpop.eup %3179  ;;  %v1548_v46 = vadd.f32 %v1547_v43, %v4136_v45 }
 0x1c0   :  { %v1980_v47 = vpop.f32.mrf.mxu1  ;;  %1596 = vst [vmem:[%s4483_s3 + $0x118] sm:$0xff] %v3180_v33 }
 0x1c1   :  { %v3182_v48 = vpop.eup %3181  ;;  %v2076_v50 = vadd.f32 %v2075_v41, %v2027_v60  ;;  %3183 = vtanh.f32 %v1548_v46  ;;  %v1981_v14 = vadd.f32 %v4216_v38, %v1980_v47 }
 0x1c2   :  { %2126 = vst [vmem:[%s4483_s3 + $0x190] sm:$0xff] %v3182_v48 }
 0x1c3   :  { %3185 = vtanh.f32 %v2076_v50 }
 0x1c6   :  { %v2029_v52 = vpop.f32.mrf.mxu2  ;;  %v1549_v55 = vpop.f32.mrf.mxu0 }
 0x1c7   :  { %v2078_v1 = vpop.f32.mrf.mxu3  ;;  %v2030_v54 = vadd.f32 %v2029_v52, %v1981_v14  ;;  %v3184_v45 = vpop.eup %3183  ;;  %v1550_v61 = vadd.f32 %v1549_v55, %v4168_v10 }
 0x1c8   :  { %v1982_v57 = vpop.f32.mrf.mxu1  ;;  %1597 = vst [vmem:[%s4483_s3 + $0x120] sm:$0xff] %v3184_v45 }
 0x1c9   :  { %v3186_v5 = vpop.eup %3185  ;;  %v2079_v25 = vadd.f32 %v2078_v1, %v2030_v54  ;;  %3187 = vtanh.f32 %v1550_v61  ;;  %v1983_v63 = vadd.f32 %v4216_v38, %v1982_v57 }
 0x1ca   :  { %2127 = vst [vmem:[%s4483_s3 + $0x198] sm:$0xff] %v3186_v5 }
 0x1cb   :  { %3189 = vtanh.f32 %v2079_v25 }
 0x1ce   :  { %v2031_v0 = vpop.f32.mrf.mxu2  ;;  %v1552_v12 = vpop.f32.mrf.mxu0 }
 0x1cf   :  { %v2080_v21 = vpop.f32.mrf.mxu3  ;;  %v2032_v4 = vadd.f32 %v2031_v0, %v1983_v63  ;;  %v3188_v10 = vpop.eup %3187  ;;  %v1553_v8 = vadd.f32 %v1552_v12, %v4176_v20 }
 0x1d0   :  { %v1985_v7 = vpop.f32.mrf.mxu1  ;;  %1598 = vst [vmem:[%s4483_s3 + $0x128] sm:$0xff] %v3188_v10 }
 0x1d1   :  { %v3190_v9 = vpop.eup %3189  ;;  %v2081_v44 = vadd.f32 %v2080_v21, %v2032_v4  ;;  %3191 = vtanh.f32 %v1553_v8  ;;  %v1986_v13 = vadd.f32 %v4216_v38, %v1985_v7 }
 0x1d2   :  { %2128 = vst [vmem:[%s4483_s3 + $0x1a0] sm:$0xff] %v3190_v9 }
 0x1d3   :  { %3193 = vtanh.f32 %v2081_v44 }
 0x1d6   :  { %v2034_v29 = vpop.f32.mrf.mxu2  ;;  %v1554_v17 = vpop.f32.mrf.mxu0 }
 0x1d7   :  { %v2083_v28 = vpop.f32.mrf.mxu3  ;;  %v2035_v16 = vadd.f32 %v2034_v29, %v1986_v13  ;;  %v3192_v20 = vpop.eup %3191  ;;  %v1555_v58 = vadd.f32 %v1554_v17, %v4208_v51 }
 0x1d8   :  { %v1987_v18 = vpop.f32.mrf.mxu1  ;;  %1599 = vst [vmem:[%s4483_s3 + $0x130] sm:$0xff] %v3192_v20 }
 0x1d9   :  { %v3194_v32 = vpop.eup %3193  ;;  %v2084_v19 = vadd.f32 %v2083_v28, %v2035_v16  ;;  %3195 = vtanh.f32 %v1555_v58  ;;  %v1988_v22 = vadd.f32 %v4216_v38, %v1987_v18 }
 0x1da   :  { %2129 = vst [vmem:[%s4483_s3 + $0x1a8] sm:$0xff] %v3194_v32 }
 0x1db   :  { %3197 = vtanh.f32 %v2084_v19 }
 0x1de   :  { %v2036_v23 = vpop.f32.mrf.mxu2  ;;  %v1557_v49 = vpop.f32.mrf.mxu0 }
 0x1df   :  { %v2085_v24 = vpop.f32.mrf.mxu3  ;;  %v2037_v56 = vadd.f32 %v2036_v23, %v1988_v22  ;;  %v3196_v51 = vpop.eup %3195  ;;  %v1558_v37 = vadd.f32 %v1557_v49, %v4221_v62 }
 0x1e0   :  { %v1990_v27 = vpop.f32.mrf.mxu1  ;;  %1600 = vst [vmem:[%s4483_s3 + $0x138] sm:$0xff] %v3196_v51 }
 0x1e1   :  { %v3198_v30 = vpop.eup %3197  ;;  %v2086_v31 = vadd.f32 %v2085_v24, %v2037_v56  ;;  %3199 = vtanh.f32 %v1558_v37  ;;  %v1991_v11 = vadd.f32 %v4216_v38, %v1990_v27 }
 0x1e2   :  { %2130 = vst [vmem:[%s4483_s3 + $0x1b0] sm:$0xff] %v3198_v30 }
 0x1e3   :  { %3201 = vtanh.f32 %v2086_v31 }
 0x1e6   :  { %v2039_v6 = vpop.f32.mrf.mxu2  ;;  %v1559_v59 = vpop.f32.mrf.mxu0 }
 0x1e7   :  { %v2088_v34 = vpop.f32.mrf.mxu3  ;;  %v2040_v35 = vadd.f32 %v2039_v6, %v1991_v11  ;;  %v3200_v62 = vpop.eup %3199  ;;  %v1560_v40 = vadd.f32 %v1559_v59, %v4253_v26 }
 0x1e8   :  { %v1992_v39 = vpop.f32.mrf.mxu1  ;;  %1601 = vst [vmem:[%s4483_s3 + $0x140] sm:$0xff] %v3200_v62 }
 0x1e9   :  { %v3202_v41 = vpop.eup %3201  ;;  %v2089_v60 = vadd.f32 %v2088_v34, %v2040_v35  ;;  %3203 = vtanh.f32 %v1560_v40  ;;  %v1993_v43 = vadd.f32 %v4216_v38, %v1992_v39 }
 0x1ea   :  { %2131 = vst [vmem:[%s4483_s3 + $0x1b8] sm:$0xff] %v3202_v41 }
 0x1eb   :  { %3205 = vtanh.f32 %v2089_v60 }
 0x1ee   :  { %v2041_v47 = vpop.f32.mrf.mxu2  ;;  %v1562_v48 = vpop.f32.mrf.mxu0 }
 0x1ef   :  { %v2090_v33 = vpop.f32.mrf.mxu3  ;;  %v2042_v46 = vadd.f32 %v2041_v47, %v1993_v43  ;;  %v3204_v26 = vpop.eup %3203  ;;  %v1563_v14 = vadd.f32 %v1562_v48, %v4261_v36 }
 0x1f0   :  { %v1995_v50 = vpop.f32.mrf.mxu1  ;;  %1602 = vst [vmem:[%s4483_s3 + $0x148] sm:$0xff] %v3204_v26 }
 0x1f1   :  { %v3206_v52 = vpop.eup %3205  ;;  %v2091_v1 = vadd.f32 %v2090_v33, %v2042_v46  ;;  %3207 = vtanh.f32 %v1563_v14  ;;  %v1996_v54 = vadd.f32 %v4216_v38, %v1995_v50 }
 0x1f2   :  { %2132 = vst [vmem:[%s4483_s3 + $0x1c0] sm:$0xff] %v3206_v52 }
 0x1f3   :  { %3209 = vtanh.f32 %v2091_v1 }
 0x1f6   :  { %v2044_v55 = vpop.f32.mrf.mxu2  ;;  %v1564_v61 = vpop.f32.mrf.mxu0 }
 0x1f7   :  { %v2093_v57 = vpop.f32.mrf.mxu3  ;;  %v2045_v45 = vadd.f32 %v2044_v55, %v1996_v54  ;;  %v3208_v36 = vpop.eup %3207  ;;  %v1565_v25 = vadd.f32 %v1564_v61, %v4293_v3 }
 0x1f8   :  { %v1997_v5 = vpop.f32.mrf.mxu1  ;;  %1603 = vst [vmem:[%s4483_s3 + $0x150] sm:$0xff] %v3208_v36 }
 0x1f9   :  { %v3210_v63 = vpop.eup %3209  ;;  %v2094_v0 = vadd.f32 %v2093_v57, %v2045_v45  ;;  %3211 = vtanh.f32 %v1565_v25  ;;  %v1998_v21 = vadd.f32 %v4216_v38, %v1997_v5 }
 0x1fa   :  { %2133 = vst [vmem:[%s4483_s3 + $0x1c8] sm:$0xff] %v3210_v63 }
 0x1fb   :  { %3213 = vtanh.f32 %v2094_v0 }
 0x1fe   :  { %v2046_v4 = vpop.f32.mrf.mxu2  ;;  %v1567_v10 = vpop.f32.mrf.mxu0 }
 0x1ff   :  { %v2095_v12 = vpop.f32.mrf.mxu3  ;;  %v2047_v7 = vadd.f32 %v2046_v4, %v1998_v21  ;;  %v3212_v3 = vpop.eup %3211  ;;  %v1568_v9 = vadd.f32 %v1567_v10, %v4301_v15 }
 0x200   :  { %v2000_v8 = vpop.f32.mrf.mxu1  ;;  %1604 = vst [vmem:[%s4483_s3 + $0x158] sm:$0xff] %v3212_v3 }
 0x201   :  { %v3214_v44 = vpop.eup %3213  ;;  %v2096_v13 = vadd.f32 %v2095_v12, %v2047_v7  ;;  %3215 = vtanh.f32 %v1568_v9  ;;  %v2001_v29 = vadd.f32 %v4216_v38, %v2000_v8 }
 0x202   :  { %2134 = vst [vmem:[%s4483_s3 + $0x1d0] sm:$0xff] %v3214_v44 }
 0x203   :  { %3217 = vtanh.f32 %v2096_v13 }
 0x206   :  { %v2049_v28 = vpop.f32.mrf.mxu2  ;;  %v1569_v18 = vpop.f32.mrf.mxu0 }
 0x207   :  { %v2098_v16 = vpop.f32.mrf.mxu3  ;;  %v2050_v17 = vadd.f32 %v2049_v28, %v2001_v29  ;;  %v3216_v15 = vpop.eup %3215  ;;  %v1570_v58 = vadd.f32 %v1569_v18, %v4333_v42 }
 0x208   :  { %v2002_v20 = vpop.f32.mrf.mxu1  ;;  %1605 = vst [vmem:[%s4483_s3 + $0x160] sm:$0xff] %v3216_v15 }
 0x209   :  { %v3218_v32 = vpop.eup %3217  ;;  %v2099_v19 = vadd.f32 %v2098_v16, %v2050_v17  ;;  %3219 = vtanh.f32 %v1570_v58  ;;  %v2003_v22 = vadd.f32 %v4216_v38, %v2002_v20 }
 0x20a   :  { %2135 = vst [vmem:[%s4483_s3 + $0x1d8] sm:$0xff] %v3218_v32 }
 0x20b   :  { %3221 = vtanh.f32 %v2099_v19 }
 0x20e   :  { %v2051_v23 = vpop.f32.mrf.mxu2  ;;  %v1572_v49 = vpop.f32.mrf.mxu0 }
 0x20f   :  { %v2100_v24 = vpop.f32.mrf.mxu3  ;;  %v2052_v56 = vadd.f32 %v2051_v23, %v2003_v22  ;;  %v3220_v27 = vpop.eup %3219  ;;  %v1573_v42 = vadd.f32 %v1572_v49, %v4341_v53 }
 0x210   :  { %v2005_v51 = vpop.f32.mrf.mxu1  ;;  %1606 = vst [vmem:[%s4483_s3 + $0x168] sm:$0xff] %v3220_v27 }
 0x211   :  { %v3222_v37 = vpop.eup %3221  ;;  %v2101_v30 = vadd.f32 %v2100_v24, %v2052_v56  ;;  %3223 = vtanh.f32 %v1573_v42  ;;  %v2006_v31 = vadd.f32 %v4216_v38, %v2005_v51 }
 0x212   :  { %2136 = vst [vmem:[%s4483_s3 + $0x1e0] sm:$0xff] %v3222_v37 }
 0x213   :  { %3225 = vtanh.f32 %v2101_v30 }
 0x216   :  { %v2054_v11 = vpop.f32.mrf.mxu2  ;;  %v1574_v35 = vpop.f32.mrf.mxu0 }
 0x217   :  { %v2103_v6 = vpop.f32.mrf.mxu3  ;;  %v2055_v34 = vadd.f32 %v2054_v11, %v2006_v31  ;;  %v3224_v53 = vpop.eup %3223  ;;  %v1575_v59 = vadd.f32 %v1574_v35, %v4348_v2 }
 0x218   :  { %1607 = vst [vmem:[%s4483_s3 + $0x170] sm:$0xff] %v3224_v53  ;;  %v2007_v40 = vpop.f32.mrf.mxu1 }
 0x219   :  { %v3226_v39 = vpop.eup %3225  ;;  %v2104_v62 = vadd.f32 %v2103_v6, %v2055_v34  ;;  %3227 = vtanh.f32 %v1575_v59  ;;  %v2008_v41 = vadd.f32 %v4216_v38, %v2007_v40 }
 0x21a   :  { %2137 = vst [vmem:[%s4483_s3 + $0x1e8] sm:$0xff] %v3226_v39 }
 0x21b   :  { %3229 = vtanh.f32 %v2104_v62 }
 0x21e   :  { %v2056_v60 = vpop.f32.mrf.mxu2 }
 0x21f   :  { %v2057_v43 = vadd.f32 %v2056_v60, %v2008_v41  ;;  %v3228_v47 = vpop.eup %3227  ;;  %v2105_v33 = vpop.f32.mrf.mxu3 }
 0x220   :  { %1608 = vst [vmem:[%s4483_s3 + $0x178] sm:$0xff] %v3228_v47 }
 0x221   :  { %v3230_v2 = vpop.eup %3229  ;;  %v2106_v46 = vadd.f32 %v2105_v33, %v2057_v43 }
 0x222   :  { %2138 = vst [vmem:[%s4483_s3 + $0x1f0] sm:$0xff] %v3230_v2 }
 0x223   :  { %3231 = vtanh.f32 %v2106_v46 }
 0x229   :  { %v3232_v48 = vpop.eup %3231 }
 0x22a   :  { %2139 = vst [vmem:[%s4483_s3 + $0x1f8] sm:$0xff] %v3232_v48 }

</bundles_post_ra>
